<compile_context>
chip_gen: v7x
topology: tpu7x:2x2x1
jax: 0.10.0
libtpu: 0.0.40
codegen_flags: <defaults>
</compile_context>

<pallas_src>
import functools
import math

import jax
import jax.numpy as jnp
import numpy as np
from jax.experimental import pallas as pl
from jax.experimental.pallas import tpu as pltpu


# ----------------------------------------------------------------------------
# Pallas kernel: full Euler-Maruyama integration for one batch tile
# ----------------------------------------------------------------------------
def sde_kernel(y0_ref, pre_ref, dw_ref, w_y_ref, w_net_ref, b_net_ref, z_ref,
               *, n_lin, n_steps, hidden):
    # --- hoisted invariant loads (weights already bf16, biases pre-broadcast) ---
    w_y = w_y_ref[...]                                   # (H, 2H)  bf16
    w_net = [w_net_ref[l] for l in range(n_lin)]         # (2H, 2H) bf16 each
    b_net = [b_net_ref[l] for l in range(n_lin)]         # (TB, 2H) f32  each

    y = y0_ref[...]                                      # (TB, H) f32 SDE state
    z_ref[0] = y

    # fully unrolled time loop: static trip count, static ref indices
    for n in range(n_steps - 1):
        # fused linear_in / noise_in: xt- and t- contributions live in pre[n]
        h = (jnp.dot(y.astype(jnp.bfloat16), w_y,
                     preferred_element_type=jnp.float32)
             + pre_ref[n])                               # (TB, 2H) = [hf || hg]
        # fused f_net || g_net (block-diagonal weights); 0.909 LipSwish scale is
        # folded into the next layer's weights and dt into the f half of the
        # last layer, so h[:, :H] is already f*dt.
        for l in range(n_lin):
            h = (jnp.dot(h.astype(jnp.bfloat16), w_net[l],
                         preferred_element_type=jnp.float32)
                 + b_net[l])
            if l < n_lin - 1:
                h = h * jax.nn.sigmoid(h)                # LipSwish (scale folded)
        # Euler-Maruyama (ito, diagonal noise): y <- y + f*dt + g*dW   (all f32)
        y = y + h[:, :hidden] + h[:, hidden:] * dw_ref[n]
        z_ref[n + 1] = y


# ----------------------------------------------------------------------------
# Host-side glue
# ----------------------------------------------------------------------------
def spline_eval_all(coeffs, times, n_channels):
    """torchcde.CubicSpline(coeffs, times).evaluate(t) at every t in `times`.

    coeffs: (B, N-1, 4*C) concatenation of [a, b, 2c, 3d] per segment.
    Returns (N, B, C).
    """
    C = n_channels
    a = coeffs[..., 0 * C:1 * C]
    b = coeffs[..., 1 * C:2 * C]
    two_c = coeffs[..., 2 * C:3 * C]
    three_d = coeffs[..., 3 * C:4 * C]
    N = times.shape[0]
    vals = []
    for n in range(N):
        idx = max(n - 1, 0)                     # bucketize(t, times) - 1, clamped
        frac = times[n] - times[idx]
        inner = 0.5 * two_c[:, idx] + three_d[:, idx] * frac / 3.0
        inner = b[:, idx] + inner * frac
        vals.append(a[:, idx] + inner * frac)   # (B, C)
    return jnp.stack(vals, axis=0)              # (N, B, C)


@jax.jit
def neural_sde_forward(coeffs, times, params, dW):
    B = coeffs.shape[0]
    N = times.shape[0]
    C, H = params['w_init'].shape
    n_lin = params['wf_net'].shape[0]

    # batch tile: fill MXU sublanes; leading grid axis is "parallel" (v7x: 2 TCs)
    TB = 128 if (B >= 128 and B % 128 == 0) else B
    n_tiles = B // TB

    xt_all = spline_eval_all(coeffs, times, C)                 # (N, B, C)
    dt = (times[1] - times[0]).astype(jnp.float32)

    # initial projection done once in plain JAX
    y0 = xt_all[0] @ params['w_init'] + params['b_init']       # (B, H)

    # hoisted xt/t contributions of linear_in / noise_in for steps 0..N-2
    ts = times[:N - 1]                                         # (N-1,)
    xs = xt_all[:N - 1]                                        # (N-1, B, C)
    pre_f = (ts[:, None, None] * params['wf_t'][None, None, :]
             + jnp.einsum('nbc,ch->nbh', xs, params['wf_x'])
             + params['bf_in'])
    pre_g = (ts[:, None, None] * params['wg_t'][None, None, :]
             + jnp.einsum('nbc,ch->nbh', xs, params['wg_x'])
             + params['bg_in'])
    pre = jnp.concatenate([pre_f, pre_g], axis=-1)             # (N-1, B, 2H) f32

    # fused first-layer y-weights: y @ [wf_y | wg_y]  (bf16 for single-pass MXU)
    w_y = jnp.concatenate([params['wf_y'], params['wg_y']],
                          axis=1).astype(jnp.bfloat16)         # (H, 2H)

    # fused block-diagonal MLP stacks; 0.909 folded into layers 1..L-1 weights,
    # dt folded into the f half of the last layer (weights & bias)
    zerosHH = jnp.zeros((H, H), jnp.float32)
    w_net, b_net = [], []
    for l in range(n_lin):
        wf = params['wf_net'][l]
        wg = params['wg_net'][l]
        bf = params['bf_net'][l, 0]
        bg = params['bg_net'][l, 0]
        if l >= 1:                         # absorb LipSwish 0.909 of previous act
            wf = wf * 0.909
            wg = wg * 0.909
        if l == n_lin - 1:                 # absorb Euler dt into the drift half
            wf = wf * dt
            bf = bf * dt
        w_net.append(jnp.block([[wf, zerosHH], [zerosHH, wg]]))        # (2H, 2H)
        b_net.append(jnp.concatenate([bf, bg]))                        # (2H,)
    w_net = jnp.stack(w_net).astype(jnp.bfloat16)                      # (n_lin, 2H, 2H)
    # pre-broadcast biases so the kernel never re-emits broadcast_in_dim
    b_net = jnp.broadcast_to(jnp.stack(b_net)[:, None, :],
                             (n_lin, TB, 2 * H)).astype(jnp.float32)   # (n_lin, TB, 2H)

    grid_spec = pltpu.PrefetchScalarGridSpec(
        num_scalar_prefetch=0,
        grid=(n_tiles,),
        in_specs=[
            pl.BlockSpec((TB, H), lambda i: (i, 0)),                   # y0
            pl.BlockSpec((N - 1, TB, 2 * H), lambda i: (0, i, 0)),     # pre
            pl.BlockSpec((N - 1, TB, H), lambda i: (0, i, 0)),         # dW
            pl.BlockSpec((H, 2 * H), lambda i: (0, 0)),                # w_y (bf16)
            pl.BlockSpec((n_lin, 2 * H, 2 * H), lambda i: (0, 0, 0)),  # w_net (bf16)
            pl.BlockSpec((n_lin, TB, 2 * H), lambda i: (0, 0, 0)),     # b_net
        ],
        out_specs=pl.BlockSpec((N, TB, H), lambda i: (0, i, 0)),
    )

    z = pl.pallas_call(
        functools.partial(sde_kernel, n_lin=n_lin, n_steps=N, hidden=H),
        out_shape=jax.ShapeDtypeStruct((N, B, H), jnp.float32),
        grid_spec=grid_spec,
        compiler_params=pltpu.CompilerParams(dimension_semantics=("parallel",)),
    )(y0, pre, dW, w_y, w_net, b_net)

    # decoder applied once to the whole trajectory (tiny matmul handled by XLA)
    out = jnp.transpose(z, (1, 0, 2)) @ params['w_dec'] + params['b_dec']
    return out                                                  # (B, N, O)


# ----------------------------------------------------------------------------
# Deterministic parameter init (mimics torch nn.Linear default init)
# ----------------------------------------------------------------------------
def _init_linear(key, fan_in, fan_out):
    kw, kb = jax.random.split(key)
    bound = 1.0 / math.sqrt(fan_in)
    w = jax.random.uniform(kw, (fan_in, fan_out), jnp.float32, -bound, bound)
    b = jax.random.uniform(kb, (fan_out,), jnp.float32, -bound, bound)
    return w, b


def init_params(key, C, H, O, n_lin):
    keys = jax.random.split(key, 4 + 2 * n_lin)
    p = {}
    w, b = _init_linear(keys[0], C, H)              # initial: Linear(C, H)
    p['w_init'], p['b_init'] = w, b.reshape(1, H)
    w, b = _init_linear(keys[1], H, O)              # decoder: Linear(H, O)
    p['w_dec'], p['b_dec'] = w, b.reshape(1, O)
    # linear_in: Linear(1 + H + C, H) — split columns [t | y | x]
    w, b = _init_linear(keys[2], 1 + H + C, H)
    p['wf_t'], p['wf_y'], p['wf_x'], p['bf_in'] = w[0], w[1:1 + H], w[1 + H:], b
    # noise_in: Linear(1 + H + C, H)
    w, b = _init_linear(keys[3], 1 + H + C, H)
    p['wg_t'], p['wg_y'], p['wg_x'], p['bg_in'] = w[0], w[1:1 + H], w[1 + H:], b
    # f_net / g_net: MLP(H, H, H, num_layers) → n_lin stacked (H, H) linears
    fw, fb, gw, gb = [], [], [], []
    for l in range(n_lin):
        w, b = _init_linear(keys[4 + l], H, H)
        fw.append(w); fb.append(b)
        w, b = _init_linear(keys[4 + n_lin + l], H, H)
        gw.append(w); gb.append(b)
    p['wf_net'] = jnp.stack(fw); p['bf_net'] = jnp.stack(fb)[:, None, :]
    p['wg_net'] = jnp.stack(gw); p['bg_net'] = jnp.stack(gb)[:, None, :]
    return p


# ----------------------------------------------------------------------------
# Pure-JAX f32 reference (mirrors the PyTorch forward)
# ----------------------------------------------------------------------------
def _mlp_ref(h, w_stack, b_stack):
    n_lin = w_stack.shape[0]
    for l in range(n_lin):
        h = h @ w_stack[l] + b_stack[l, 0]
        if l < n_lin - 1:
            h = 0.909 * h * jax.nn.sigmoid(h)
    return h


def reference_forward(coeffs, times, params, dW, C):
    N = times.shape[0]
    xt_all = spline_eval_all(coeffs, times, C)
    y = xt_all[0] @ params['w_init'] + params['b_init']
    dt = times[1] - times[0]
    zs = [y]
    for n in range(N - 1):
        t = times[n]
        xt = xt_all[n]
        hf = t * params['wf_t'] + y @ params['wf_y'] + xt @ params['wf_x'] + params['bf_in']
        f = _mlp_ref(hf, params['wf_net'], params['bf_net'])
        hg = t * params['wg_t'] + y @ params['wg_y'] + xt @ params['wg_x'] + params['bg_in']
        g = _mlp_ref(hg, params['wg_net'], params['bg_net'])
        y = y + f * dt + g * dW[n]
        zs.append(y)
    z = jnp.stack(zs, axis=0)                        # (N, B, H)
    out = z @ params['w_dec'] + params['b_dec']      # (N, B, O)
    return jnp.transpose(out, (1, 0, 2))             # (B, N, O)


# ----------------------------------------------------------------------------
if __name__ == "__main__":
    B, N = 256, 8               # batch (paths), number of time points
    C, H, O = 4, 32, 4          # input_dim, hidden_dim, output_dim
    NUM_LAYERS = 2
    n_lin = NUM_LAYERS + 1      # linears inside each MLP

    key = jax.random.PRNGKey(0)
    k_coef, k_dw, k_par = jax.random.split(key, 3)

    times = jnp.linspace(0.0, 1.0, N, dtype=jnp.float32)
    coeffs = jax.random.normal(k_coef, (B, N - 1, 4 * C), dtype=jnp.float32)
    dt = times[1] - times[0]
    dW = jax.random.normal(k_dw, (N - 1, B, H), dtype=jnp.float32) * jnp.sqrt(dt)

    params = init_params(k_par, C, H, O, n_lin)

    out = neural_sde_forward(coeffs, times, params, dW)
    out = jax.block_until_ready(out)
    assert out.shape == (B, N, O)

    # f32 reference; kernel runs bf16 MXU operands with f32 accumulation
    ref = reference_forward(coeffs, times, params, dW, C)
    np.testing.assert_allclose(np.asarray(out), np.asarray(ref), rtol=2e-2, atol=2e-2)

    print("KERNEL_OK")
</pallas_src>

<mosaic_0001>
module attributes {stable_mosaic.version = 11 : i64} {
  func.func @sde_kernel(%arg0: i32, %arg1: memref<128x32xf32, #tpu.memory_space<vmem>>, %arg2: memref<7x128x64xf32, #tpu.memory_space<vmem>>, %arg3: memref<7x128x32xf32, #tpu.memory_space<vmem>>, %arg4: memref<32x64xbf16, #tpu.memory_space<vmem>>, %arg5: memref<3x64x64xbf16, #tpu.memory_space<vmem>>, %arg6: memref<3x128x64xf32, #tpu.memory_space<vmem>>, %arg7: memref<8x128x32xf32, #tpu.memory_space<vmem>>) attributes {dimension_semantics = [#tpu.dimension_semantics<parallel>], iteration_bounds = array<i64: 2>, scalar_prefetch = 0 : i64, scratch_operands = 0 : i64, tpu.core_type = #tpu.core_type<tc>, window_params = [{transform_indices = @transform_0, window_bounds = array<i64: 128, 32>}, {transform_indices = @transform_1, window_bounds = array<i64: 7, 128, 64>}, {transform_indices = @transform_2, window_bounds = array<i64: 7, 128, 32>}, {pipeline_mode = #tpu.pipeline_mode<synchronous>, transform_indices = @transform_3, window_bounds = array<i64: 32, 64>}, {pipeline_mode = #tpu.pipeline_mode<synchronous>, transform_indices = @transform_4, window_bounds = array<i64: 3, 64, 64>}, {pipeline_mode = #tpu.pipeline_mode<synchronous>, transform_indices = @transform_5, window_bounds = array<i64: 3, 128, 64>}, {transform_indices = @transform_6, window_bounds = array<i64: 8, 128, 32>}]} {
    %c0 = arith.constant 0 : index
    %c0_0 = arith.constant 0 : index
    %0 = vector.load %arg4[%c0, %c0_0] : memref<32x64xbf16, #tpu.memory_space<vmem>>, vector<32x64xbf16>
    %c0_1 = arith.constant 0 : index
    %c0_2 = arith.constant 0 : index
    %c0_3 = arith.constant 0 : index
    %1 = vector.load %arg5[%c0_1, %c0_2, %c0_3] : memref<3x64x64xbf16, #tpu.memory_space<vmem>>, vector<1x64x64xbf16>
    %2 = vector.shape_cast %1 : vector<1x64x64xbf16> to vector<64x64xbf16>
    %c1 = arith.constant 1 : index
    %c0_4 = arith.constant 0 : index
    %c0_5 = arith.constant 0 : index
    %3 = vector.load %arg5[%c1, %c0_4, %c0_5] : memref<3x64x64xbf16, #tpu.memory_space<vmem>>, vector<1x64x64xbf16>
    %4 = vector.shape_cast %3 : vector<1x64x64xbf16> to vector<64x64xbf16>
    %c2 = arith.constant 2 : index
    %c0_6 = arith.constant 0 : index
    %c0_7 = arith.constant 0 : index
    %5 = vector.load %arg5[%c2, %c0_6, %c0_7] : memref<3x64x64xbf16, #tpu.memory_space<vmem>>, vector<1x64x64xbf16>
    %6 = vector.shape_cast %5 : vector<1x64x64xbf16> to vector<64x64xbf16>
    %c0_8 = arith.constant 0 : index
    %c0_9 = arith.constant 0 : index
    %c0_10 = arith.constant 0 : index
    %7 = vector.load %arg6[%c0_8, %c0_9, %c0_10] : memref<3x128x64xf32, #tpu.memory_space<vmem>>, vector<1x128x64xf32>
    %8 = vector.shape_cast %7 : vector<1x128x64xf32> to vector<128x64xf32>
    %c1_11 = arith.constant 1 : index
    %c0_12 = arith.constant 0 : index
    %c0_13 = arith.constant 0 : index
    %9 = vector.load %arg6[%c1_11, %c0_12, %c0_13] : memref<3x128x64xf32, #tpu.memory_space<vmem>>, vector<1x128x64xf32>
    %10 = vector.shape_cast %9 : vector<1x128x64xf32> to vector<128x64xf32>
    %c2_14 = arith.constant 2 : index
    %c0_15 = arith.constant 0 : index
    %c0_16 = arith.constant 0 : index
    %11 = vector.load %arg6[%c2_14, %c0_15, %c0_16] : memref<3x128x64xf32, #tpu.memory_space<vmem>>, vector<1x128x64xf32>
    %12 = vector.shape_cast %11 : vector<1x128x64xf32> to vector<128x64xf32>
    %c0_17 = arith.constant 0 : index
    %c0_18 = arith.constant 0 : index
    %13 = vector.load %arg1[%c0_17, %c0_18] : memref<128x32xf32, #tpu.memory_space<vmem>>, vector<128x32xf32>
    %c0_19 = arith.constant 0 : index
    %c0_20 = arith.constant 0 : index
    %c0_21 = arith.constant 0 : index
    %14 = vector.load %arg7[%c0_19, %c0_20, %c0_21] : memref<8x128x32xf32, #tpu.memory_space<vmem>>, vector<1x128x32xf32>
    %15 = vector.shape_cast %14 : vector<1x128x32xf32> to vector<128x32xf32>
    %16 = vector.shape_cast %13 : vector<128x32xf32> to vector<1x128x32xf32>
    tpu.vector_store %arg7[%c0_19, %c0_20, %c0_21], %16 {strides = array<i32>} : memref<8x128x32xf32, #tpu.memory_space<vmem>>, vector<1x128x32xf32>,
    %17 = arith.truncf %13 : vector<128x32xf32> to vector<128x32xbf16>
    %cst = arith.constant dense<0.000000e+00> : vector<128x64xf32>
    %18 = tpu.matmul %17, %0, %cst {dimension_numbers = #tpu.dot_dimension_numbers<[1], [0], [0], [1], [0, 0, 1, 1], [], []>} : vector<128x32xbf16>, vector<32x64xbf16>, vector<128x64xf32> -> vector<128x64xf32>
    %c0_22 = arith.constant 0 : index
    %c0_23 = arith.constant 0 : index
    %c0_24 = arith.constant 0 : index
    %19 = vector.load %arg2[%c0_22, %c0_23, %c0_24] : memref<7x128x64xf32, #tpu.memory_space<vmem>>, vector<1x128x64xf32>
    %20 = vector.shape_cast %19 : vector<1x128x64xf32> to vector<128x64xf32>
    %21 = arith.addf %18, %20 : vector<128x64xf32>
    %22 = arith.truncf %21 : vector<128x64xf32> to vector<128x64xbf16>
    %cst_25 = arith.constant dense<0.000000e+00> : vector<128x64xf32>
    %23 = tpu.matmul %22, %2, %cst_25 {dimension_numbers = #tpu.dot_dimension_numbers<[1], [0], [0], [1], [0, 0, 1, 1], [], []>} : vector<128x64xbf16>, vector<64x64xbf16>, vector<128x64xf32> -> vector<128x64xf32>
    %24 = arith.addf %23, %8 : vector<128x64xf32>
    %25 = arith.negf %24 : vector<128x64xf32>
    %26 = math.exp %25 : vector<128x64xf32>
    %cst_26 = arith.constant 1.000000e+00 : f32
    %27 = vector.broadcast %cst_26 : f32 to vector<128x64xf32>
    %28 = arith.addf %27, %26 : vector<128x64xf32>
    %29 = arith.divf %27, %28 : vector<128x64xf32>
    %30 = arith.mulf %24, %29 : vector<128x64xf32>
    %31 = arith.truncf %30 : vector<128x64xf32> to vector<128x64xbf16>
    %cst_27 = arith.constant dense<0.000000e+00> : vector<128x64xf32>
    %32 = tpu.matmul %31, %4, %cst_27 {dimension_numbers = #tpu.dot_dimension_numbers<[1], [0], [0], [1], [0, 0, 1, 1], [], []>} : vector<128x64xbf16>, vector<64x64xbf16>, vector<128x64xf32> -> vector<128x64xf32>
    %33 = arith.addf %32, %10 : vector<128x64xf32>
    %34 = arith.negf %33 : vector<128x64xf32>
    %35 = math.exp %34 : vector<128x64xf32>
    %cst_28 = arith.constant 1.000000e+00 : f32
    %36 = vector.broadcast %cst_28 : f32 to vector<128x64xf32>
    %37 = arith.addf %36, %35 : vector<128x64xf32>
    %38 = arith.divf %36, %37 : vector<128x64xf32>
    %39 = arith.mulf %33, %38 : vector<128x64xf32>
    %40 = arith.truncf %39 : vector<128x64xf32> to vector<128x64xbf16>
    %cst_29 = arith.constant dense<0.000000e+00> : vector<128x64xf32>
    %41 = tpu.matmul %40, %6, %cst_29 {dimension_numbers = #tpu.dot_dimension_numbers<[1], [0], [0], [1], [0, 0, 1, 1], [], []>} : vector<128x64xbf16>, vector<64x64xbf16>, vector<128x64xf32> -> vector<128x64xf32>
    %42 = arith.addf %41, %12 : vector<128x64xf32>
    %43 = vector.extract_strided_slice %42 {offsets = [0, 0], sizes = [128, 32], strides = [1, 1]} : vector<128x64xf32> to vector<128x32xf32>
    %44 = arith.addf %13, %43 : vector<128x32xf32>
    %45 = vector.extract_strided_slice %42 {offsets = [0, 32], sizes = [128, 32], strides = [1, 1]} : vector<128x64xf32> to vector<128x32xf32>
    %c0_30 = arith.constant 0 : index
    %c0_31 = arith.constant 0 : index
    %c0_32 = arith.constant 0 : index
    %46 = vector.load %arg3[%c0_30, %c0_31, %c0_32] : memref<7x128x32xf32, #tpu.memory_space<vmem>>, vector<1x128x32xf32>
    %47 = vector.shape_cast %46 : vector<1x128x32xf32> to vector<128x32xf32>
    %48 = arith.mulf %45, %47 : vector<128x32xf32>
    %49 = arith.addf %44, %48 : vector<128x32xf32>
    %c1_33 = arith.constant 1 : index
    %c0_34 = arith.constant 0 : index
    %c0_35 = arith.constant 0 : index
    %50 = vector.load %arg7[%c1_33, %c0_34, %c0_35] : memref<8x128x32xf32, #tpu.memory_space<vmem>>, vector<1x128x32xf32>
    %51 = vector.shape_cast %50 : vector<1x128x32xf32> to vector<128x32xf32>
    %52 = vector.shape_cast %49 : vector<128x32xf32> to vector<1x128x32xf32>
    tpu.vector_store %arg7[%c1_33, %c0_34, %c0_35], %52 {strides = array<i32>} : memref<8x128x32xf32, #tpu.memory_space<vmem>>, vector<1x128x32xf32>,
    %53 = arith.truncf %49 : vector<128x32xf32> to vector<128x32xbf16>
    %cst_36 = arith.constant dense<0.000000e+00> : vector<128x64xf32>
    %54 = tpu.matmul %53, %0, %cst_36 {dimension_numbers = #tpu.dot_dimension_numbers<[1], [0], [0], [1], [0, 0, 1, 1], [], []>} : vector<128x32xbf16>, vector<32x64xbf16>, vector<128x64xf32> -> vector<128x64xf32>
    %c1_37 = arith.constant 1 : index
    %c0_38 = arith.constant 0 : index
    %c0_39 = arith.constant 0 : index
    %55 = vector.load %arg2[%c1_37, %c0_38, %c0_39] : memref<7x128x64xf32, #tpu.memory_space<vmem>>, vector<1x128x64xf32>
    %56 = vector.shape_cast %55 : vector<1x128x64xf32> to vector<128x64xf32>
    %57 = arith.addf %54, %56 : vector<128x64xf32>
    %58 = arith.truncf %57 : vector<128x64xf32> to vector<128x64xbf16>
    %cst_40 = arith.constant dense<0.000000e+00> : vector<128x64xf32>
    %59 = tpu.matmul %58, %2, %cst_40 {dimension_numbers = #tpu.dot_dimension_numbers<[1], [0], [0], [1], [0, 0, 1, 1], [], []>} : vector<128x64xbf16>, vector<64x64xbf16>, vector<128x64xf32> -> vector<128x64xf32>
    %60 = arith.addf %59, %8 : vector<128x64xf32>
    %61 = arith.negf %60 : vector<128x64xf32>
    %62 = math.exp %61 : vector<128x64xf32>
    %cst_41 = arith.constant 1.000000e+00 : f32
    %63 = vector.broadcast %cst_41 : f32 to vector<128x64xf32>
    %64 = arith.addf %63, %62 : vector<128x64xf32>
    %65 = arith.divf %63, %64 : vector<128x64xf32>
    %66 = arith.mulf %60, %65 : vector<128x64xf32>
    %67 = arith.truncf %66 : vector<128x64xf32> to vector<128x64xbf16>
    %cst_42 = arith.constant dense<0.000000e+00> : vector<128x64xf32>
    %68 = tpu.matmul %67, %4, %cst_42 {dimension_numbers = #tpu.dot_dimension_numbers<[1], [0], [0], [1], [0, 0, 1, 1], [], []>} : vector<128x64xbf16>, vector<64x64xbf16>, vector<128x64xf32> -> vector<128x64xf32>
    %69 = arith.addf %68, %10 : vector<128x64xf32>
    %70 = arith.negf %69 : vector<128x64xf32>
    %71 = math.exp %70 : vector<128x64xf32>
    %cst_43 = arith.constant 1.000000e+00 : f32
    %72 = vector.broadcast %cst_43 : f32 to vector<128x64xf32>
    %73 = arith.addf %72, %71 : vector<128x64xf32>
    %74 = arith.divf %72, %73 : vector<128x64xf32>
    %75 = arith.mulf %69, %74 : vector<128x64xf32>
    %76 = arith.truncf %75 : vector<128x64xf32> to vector<128x64xbf16>
    %cst_44 = arith.constant dense<0.000000e+00> : vector<128x64xf32>
    %77 = tpu.matmul %76, %6, %cst_44 {dimension_numbers = #tpu.dot_dimension_numbers<[1], [0], [0], [1], [0, 0, 1, 1], [], []>} : vector<128x64xbf16>, vector<64x64xbf16>, vector<128x64xf32> -> vector<128x64xf32>
    %78 = arith.addf %77, %12 : vector<128x64xf32>
    %79 = vector.extract_strided_slice %78 {offsets = [0, 0], sizes = [128, 32], strides = [1, 1]} : vector<128x64xf32> to vector<128x32xf32>
    %80 = arith.addf %49, %79 : vector<128x32xf32>
    %81 = vector.extract_strided_slice %78 {offsets = [0, 32], sizes = [128, 32], strides = [1, 1]} : vector<128x64xf32> to vector<128x32xf32>
    %c1_45 = arith.constant 1 : index
    %c0_46 = arith.constant 0 : index
    %c0_47 = arith.constant 0 : index
    %82 = vector.load %arg3[%c1_45, %c0_46, %c0_47] : memref<7x128x32xf32, #tpu.memory_space<vmem>>, vector<1x128x32xf32>
    %83 = vector.shape_cast %82 : vector<1x128x32xf32> to vector<128x32xf32>
    %84 = arith.mulf %81, %83 : vector<128x32xf32>
    %85 = arith.addf %80, %84 : vector<128x32xf32>
    %c2_48 = arith.constant 2 : index
    %c0_49 = arith.constant 0 : index
    %c0_50 = arith.constant 0 : index
    %86 = vector.load %arg7[%c2_48, %c0_49, %c0_50] : memref<8x128x32xf32, #tpu.memory_space<vmem>>, vector<1x128x32xf32>
    %87 = vector.shape_cast %86 : vector<1x128x32xf32> to vector<128x32xf32>
    %88 = vector.shape_cast %85 : vector<128x32xf32> to vector<1x128x32xf32>
    tpu.vector_store %arg7[%c2_48, %c0_49, %c0_50], %88 {strides = array<i32>} : memref<8x128x32xf32, #tpu.memory_space<vmem>>, vector<1x128x32xf32>,
    %89 = arith.truncf %85 : vector<128x32xf32> to vector<128x32xbf16>
    %cst_51 = arith.constant dense<0.000000e+00> : vector<128x64xf32>
    %90 = tpu.matmul %89, %0, %cst_51 {dimension_numbers = #tpu.dot_dimension_numbers<[1], [0], [0], [1], [0, 0, 1, 1], [], []>} : vector<128x32xbf16>, vector<32x64xbf16>, vector<128x64xf32> -> vector<128x64xf32>
    %c2_52 = arith.constant 2 : index
    %c0_53 = arith.constant 0 : index
    %c0_54 = arith.constant 0 : index
    %91 = vector.load %arg2[%c2_52, %c0_53, %c0_54] : memref<7x128x64xf32, #tpu.memory_space<vmem>>, vector<1x128x64xf32>
    %92 = vector.shape_cast %91 : vector<1x128x64xf32> to vector<128x64xf32>
    %93 = arith.addf %90, %92 : vector<128x64xf32>
    %94 = arith.truncf %93 : vector<128x64xf32> to vector<128x64xbf16>
    %cst_55 = arith.constant dense<0.000000e+00> : vector<128x64xf32>
    %95 = tpu.matmul %94, %2, %cst_55 {dimension_numbers = #tpu.dot_dimension_numbers<[1], [0], [0], [1], [0, 0, 1, 1], [], []>} : vector<128x64xbf16>, vector<64x64xbf16>, vector<128x64xf32> -> vector<128x64xf32>
    %96 = arith.addf %95, %8 : vector<128x64xf32>
    %97 = arith.negf %96 : vector<128x64xf32>
    %98 = math.exp %97 : vector<128x64xf32>
    %cst_56 = arith.constant 1.000000e+00 : f32
    %99 = vector.broadcast %cst_56 : f32 to vector<128x64xf32>
    %100 = arith.addf %99, %98 : vector<128x64xf32>
    %101 = arith.divf %99, %100 : vector<128x64xf32>
    %102 = arith.mulf %96, %101 : vector<128x64xf32>
    %103 = arith.truncf %102 : vector<128x64xf32> to vector<128x64xbf16>
    %cst_57 = arith.constant dense<0.000000e+00> : vector<128x64xf32>
    %104 = tpu.matmul %103, %4, %cst_57 {dimension_numbers = #tpu.dot_dimension_numbers<[1], [0], [0], [1], [0, 0, 1, 1], [], []>} : vector<128x64xbf16>, vector<64x64xbf16>, vector<128x64xf32> -> vector<128x64xf32>
    %105 = arith.addf %104, %10 : vector<128x64xf32>
    %106 = arith.negf %105 : vector<128x64xf32>
    %107 = math.exp %106 : vector<128x64xf32>
    %cst_58 = arith.constant 1.000000e+00 : f32
    %108 = vector.broadcast %cst_58 : f32 to vector<128x64xf32>
    %109 = arith.addf %108, %107 : vector<128x64xf32>
    %110 = arith.divf %108, %109 : vector<128x64xf32>
    %111 = arith.mulf %105, %110 : vector<128x64xf32>
    %112 = arith.truncf %111 : vector<128x64xf32> to vector<128x64xbf16>
    %cst_59 = arith.constant dense<0.000000e+00> : vector<128x64xf32>
    %113 = tpu.matmul %112, %6, %cst_59 {dimension_numbers = #tpu.dot_dimension_numbers<[1], [0], [0], [1], [0, 0, 1, 1], [], []>} : vector<128x64xbf16>, vector<64x64xbf16>, vector<128x64xf32> -> vector<128x64xf32>
    %114 = arith.addf %113, %12 : vector<128x64xf32>
    %115 = vector.extract_strided_slice %114 {offsets = [0, 0], sizes = [128, 32], strides = [1, 1]} : vector<128x64xf32> to vector<128x32xf32>
    %116 = arith.addf %85, %115 : vector<128x32xf32>
    %117 = vector.extract_strided_slice %114 {offsets = [0, 32], sizes = [128, 32], strides = [1, 1]} : vector<128x64xf32> to vector<128x32xf32>
    %c2_60 = arith.constant 2 : index
    %c0_61 = arith.constant 0 : index
    %c0_62 = arith.constant 0 : index
    %118 = vector.load %arg3[%c2_60, %c0_61, %c0_62] : memref<7x128x32xf32, #tpu.memory_space<vmem>>, vector<1x128x32xf32>
    %119 = vector.shape_cast %118 : vector<1x128x32xf32> to vector<128x32xf32>
    %120 = arith.mulf %117, %119 : vector<128x32xf32>
    %121 = arith.addf %116, %120 : vector<128x32xf32>
    %c3 = arith.constant 3 : index
    %c0_63 = arith.constant 0 : index
    %c0_64 = arith.constant 0 : index
    %122 = vector.load %arg7[%c3, %c0_63, %c0_64] : memref<8x128x32xf32, #tpu.memory_space<vmem>>, vector<1x128x32xf32>
    %123 = vector.shape_cast %122 : vector<1x128x32xf32> to vector<128x32xf32>
    %124 = vector.shape_cast %121 : vector<128x32xf32> to vector<1x128x32xf32>
    tpu.vector_store %arg7[%c3, %c0_63, %c0_64], %124 {strides = array<i32>} : memref<8x128x32xf32, #tpu.memory_space<vmem>>, vector<1x128x32xf32>,
    %125 = arith.truncf %121 : vector<128x32xf32> to vector<128x32xbf16>
    %cst_65 = arith.constant dense<0.000000e+00> : vector<128x64xf32>
    %126 = tpu.matmul %125, %0, %cst_65 {dimension_numbers = #tpu.dot_dimension_numbers<[1], [0], [0], [1], [0, 0, 1, 1], [], []>} : vector<128x32xbf16>, vector<32x64xbf16>, vector<128x64xf32> -> vector<128x64xf32>
    %c3_66 = arith.constant 3 : index
    %c0_67 = arith.constant 0 : index
    %c0_68 = arith.constant 0 : index
    %127 = vector.load %arg2[%c3_66, %c0_67, %c0_68] : memref<7x128x64xf32, #tpu.memory_space<vmem>>, vector<1x128x64xf32>
    %128 = vector.shape_cast %127 : vector<1x128x64xf32> to vector<128x64xf32>
    %129 = arith.addf %126, %128 : vector<128x64xf32>
    %130 = arith.truncf %129 : vector<128x64xf32> to vector<128x64xbf16>
    %cst_69 = arith.constant dense<0.000000e+00> : vector<128x64xf32>
    %131 = tpu.matmul %130, %2, %cst_69 {dimension_numbers = #tpu.dot_dimension_numbers<[1], [0], [0], [1], [0, 0, 1, 1], [], []>} : vector<128x64xbf16>, vector<64x64xbf16>, vector<128x64xf32> -> vector<128x64xf32>
    %132 = arith.addf %131, %8 : vector<128x64xf32>
    %133 = arith.negf %132 : vector<128x64xf32>
    %134 = math.exp %133 : vector<128x64xf32>
    %cst_70 = arith.constant 1.000000e+00 : f32
    %135 = vector.broadcast %cst_70 : f32 to vector<128x64xf32>
    %136 = arith.addf %135, %134 : vector<128x64xf32>
    %137 = arith.divf %135, %136 : vector<128x64xf32>
    %138 = arith.mulf %132, %137 : vector<128x64xf32>
    %139 = arith.truncf %138 : vector<128x64xf32> to vector<128x64xbf16>
    %cst_71 = arith.constant dense<0.000000e+00> : vector<128x64xf32>
    %140 = tpu.matmul %139, %4, %cst_71 {dimension_numbers = #tpu.dot_dimension_numbers<[1], [0], [0], [1], [0, 0, 1, 1], [], []>} : vector<128x64xbf16>, vector<64x64xbf16>, vector<128x64xf32> -> vector<128x64xf32>
    %141 = arith.addf %140, %10 : vector<128x64xf32>
    %142 = arith.negf %141 : vector<128x64xf32>
    %143 = math.exp %142 : vector<128x64xf32>
    %cst_72 = arith.constant 1.000000e+00 : f32
    %144 = vector.broadcast %cst_72 : f32 to vector<128x64xf32>
    %145 = arith.addf %144, %143 : vector<128x64xf32>
    %146 = arith.divf %144, %145 : vector<128x64xf32>
    %147 = arith.mulf %141, %146 : vector<128x64xf32>
    %148 = arith.truncf %147 : vector<128x64xf32> to vector<128x64xbf16>
    %cst_73 = arith.constant dense<0.000000e+00> : vector<128x64xf32>
    %149 = tpu.matmul %148, %6, %cst_73 {dimension_numbers = #tpu.dot_dimension_numbers<[1], [0], [0], [1], [0, 0, 1, 1], [], []>} : vector<128x64xbf16>, vector<64x64xbf16>, vector<128x64xf32> -> vector<128x64xf32>
    %150 = arith.addf %149, %12 : vector<128x64xf32>
    %151 = vector.extract_strided_slice %150 {offsets = [0, 0], sizes = [128, 32], strides = [1, 1]} : vector<128x64xf32> to vector<128x32xf32>
    %152 = arith.addf %121, %151 : vector<128x32xf32>
    %153 = vector.extract_strided_slice %150 {offsets = [0, 32], sizes = [128, 32], strides = [1, 1]} : vector<128x64xf32> to vector<128x32xf32>
    %c3_74 = arith.constant 3 : index
    %c0_75 = arith.constant 0 : index
    %c0_76 = arith.constant 0 : index
    %154 = vector.load %arg3[%c3_74, %c0_75, %c0_76] : memref<7x128x32xf32, #tpu.memory_space<vmem>>, vector<1x128x32xf32>
    %155 = vector.shape_cast %154 : vector<1x128x32xf32> to vector<128x32xf32>
    %156 = arith.mulf %153, %155 : vector<128x32xf32>
    %157 = arith.addf %152, %156 : vector<128x32xf32>
    %c4 = arith.constant 4 : index
    %c0_77 = arith.constant 0 : index
    %c0_78 = arith.constant 0 : index
    %158 = vector.load %arg7[%c4, %c0_77, %c0_78] : memref<8x128x32xf32, #tpu.memory_space<vmem>>, vector<1x128x32xf32>
    %159 = vector.shape_cast %158 : vector<1x128x32xf32> to vector<128x32xf32>
    %160 = vector.shape_cast %157 : vector<128x32xf32> to vector<1x128x32xf32>
    tpu.vector_store %arg7[%c4, %c0_77, %c0_78], %160 {strides = array<i32>} : memref<8x128x32xf32, #tpu.memory_space<vmem>>, vector<1x128x32xf32>,
    %161 = arith.truncf %157 : vector<128x32xf32> to vector<128x32xbf16>
    %cst_79 = arith.constant dense<0.000000e+00> : vector<128x64xf32>
    %162 = tpu.matmul %161, %0, %cst_79 {dimension_numbers = #tpu.dot_dimension_numbers<[1], [0], [0], [1], [0, 0, 1, 1], [], []>} : vector<128x32xbf16>, vector<32x64xbf16>, vector<128x64xf32> -> vector<128x64xf32>
    %c4_80 = arith.constant 4 : index
    %c0_81 = arith.constant 0 : index
    %c0_82 = arith.constant 0 : index
    %163 = vector.load %arg2[%c4_80, %c0_81, %c0_82] : memref<7x128x64xf32, #tpu.memory_space<vmem>>, vector<1x128x64xf32>
    %164 = vector.shape_cast %163 : vector<1x128x64xf32> to vector<128x64xf32>
    %165 = arith.addf %162, %164 : vector<128x64xf32>
    %166 = arith.truncf %165 : vector<128x64xf32> to vector<128x64xbf16>
    %cst_83 = arith.constant dense<0.000000e+00> : vector<128x64xf32>
    %167 = tpu.matmul %166, %2, %cst_83 {dimension_numbers = #tpu.dot_dimension_numbers<[1], [0], [0], [1], [0, 0, 1, 1], [], []>} : vector<128x64xbf16>, vector<64x64xbf16>, vector<128x64xf32> -> vector<128x64xf32>
    %168 = arith.addf %167, %8 : vector<128x64xf32>
    %169 = arith.negf %168 : vector<128x64xf32>
    %170 = math.exp %169 : vector<128x64xf32>
    %cst_84 = arith.constant 1.000000e+00 : f32
    %171 = vector.broadcast %cst_84 : f32 to vector<128x64xf32>
    %172 = arith.addf %171, %170 : vector<128x64xf32>
    %173 = arith.divf %171, %172 : vector<128x64xf32>
    %174 = arith.mulf %168, %173 : vector<128x64xf32>
    %175 = arith.truncf %174 : vector<128x64xf32> to vector<128x64xbf16>
    %cst_85 = arith.constant dense<0.000000e+00> : vector<128x64xf32>
    %176 = tpu.matmul %175, %4, %cst_85 {dimension_numbers = #tpu.dot_dimension_numbers<[1], [0], [0], [1], [0, 0, 1, 1], [], []>} : vector<128x64xbf16>, vector<64x64xbf16>, vector<128x64xf32> -> vector<128x64xf32>
    %177 = arith.addf %176, %10 : vector<128x64xf32>
    %178 = arith.negf %177 : vector<128x64xf32>
    %179 = math.exp %178 : vector<128x64xf32>
    %cst_86 = arith.constant 1.000000e+00 : f32
    %180 = vector.broadcast %cst_86 : f32 to vector<128x64xf32>
    %181 = arith.addf %180, %179 : vector<128x64xf32>
    %182 = arith.divf %180, %181 : vector<128x64xf32>
    %183 = arith.mulf %177, %182 : vector<128x64xf32>
    %184 = arith.truncf %183 : vector<128x64xf32> to vector<128x64xbf16>
    %cst_87 = arith.constant dense<0.000000e+00> : vector<128x64xf32>
    %185 = tpu.matmul %184, %6, %cst_87 {dimension_numbers = #tpu.dot_dimension_numbers<[1], [0], [0], [1], [0, 0, 1, 1], [], []>} : vector<128x64xbf16>, vector<64x64xbf16>, vector<128x64xf32> -> vector<128x64xf32>
    %186 = arith.addf %185, %12 : vector<128x64xf32>
    %187 = vector.extract_strided_slice %186 {offsets = [0, 0], sizes = [128, 32], strides = [1, 1]} : vector<128x64xf32> to vector<128x32xf32>
    %188 = arith.addf %157, %187 : vector<128x32xf32>
    %189 = vector.extract_strided_slice %186 {offsets = [0, 32], sizes = [128, 32], strides = [1, 1]} : vector<128x64xf32> to vector<128x32xf32>
    %c4_88 = arith.constant 4 : index
    %c0_89 = arith.constant 0 : index
    %c0_90 = arith.constant 0 : index
    %190 = vector.load %arg3[%c4_88, %c0_89, %c0_90] : memref<7x128x32xf32, #tpu.memory_space<vmem>>, vector<1x128x32xf32>
    %191 = vector.shape_cast %190 : vector<1x128x32xf32> to vector<128x32xf32>
    %192 = arith.mulf %189, %191 : vector<128x32xf32>
    %193 = arith.addf %188, %192 : vector<128x32xf32>
    %c5 = arith.constant 5 : index
    %c0_91 = arith.constant 0 : index
    %c0_92 = arith.constant 0 : index
    %194 = vector.load %arg7[%c5, %c0_91, %c0_92] : memref<8x128x32xf32, #tpu.memory_space<vmem>>, vector<1x128x32xf32>
    %195 = vector.shape_cast %194 : vector<1x128x32xf32> to vector<128x32xf32>
    %196 = vector.shape_cast %193 : vector<128x32xf32> to vector<1x128x32xf32>
    tpu.vector_store %arg7[%c5, %c0_91, %c0_92], %196 {strides = array<i32>} : memref<8x128x32xf32, #tpu.memory_space<vmem>>, vector<1x128x32xf32>,
    %197 = arith.truncf %193 : vector<128x32xf32> to vector<128x32xbf16>
    %cst_93 = arith.constant dense<0.000000e+00> : vector<128x64xf32>
    %198 = tpu.matmul %197, %0, %cst_93 {dimension_numbers = #tpu.dot_dimension_numbers<[1], [0], [0], [1], [0, 0, 1, 1], [], []>} : vector<128x32xbf16>, vector<32x64xbf16>, vector<128x64xf32> -> vector<128x64xf32>
    %c5_94 = arith.constant 5 : index
    %c0_95 = arith.constant 0 : index
    %c0_96 = arith.constant 0 : index
    %199 = vector.load %arg2[%c5_94, %c0_95, %c0_96] : memref<7x128x64xf32, #tpu.memory_space<vmem>>, vector<1x128x64xf32>
    %200 = vector.shape_cast %199 : vector<1x128x64xf32> to vector<128x64xf32>
    %201 = arith.addf %198, %200 : vector<128x64xf32>
    %202 = arith.truncf %201 : vector<128x64xf32> to vector<128x64xbf16>
    %cst_97 = arith.constant dense<0.000000e+00> : vector<128x64xf32>
    %203 = tpu.matmul %202, %2, %cst_97 {dimension_numbers = #tpu.dot_dimension_numbers<[1], [0], [0], [1], [0, 0, 1, 1], [], []>} : vector<128x64xbf16>, vector<64x64xbf16>, vector<128x64xf32> -> vector<128x64xf32>
    %204 = arith.addf %203, %8 : vector<128x64xf32>
    %205 = arith.negf %204 : vector<128x64xf32>
    %206 = math.exp %205 : vector<128x64xf32>
    %cst_98 = arith.constant 1.000000e+00 : f32
    %207 = vector.broadcast %cst_98 : f32 to vector<128x64xf32>
    %208 = arith.addf %207, %206 : vector<128x64xf32>
    %209 = arith.divf %207, %208 : vector<128x64xf32>
    %210 = arith.mulf %204, %209 : vector<128x64xf32>
    %211 = arith.truncf %210 : vector<128x64xf32> to vector<128x64xbf16>
    %cst_99 = arith.constant dense<0.000000e+00> : vector<128x64xf32>
    %212 = tpu.matmul %211, %4, %cst_99 {dimension_numbers = #tpu.dot_dimension_numbers<[1], [0], [0], [1], [0, 0, 1, 1], [], []>} : vector<128x64xbf16>, vector<64x64xbf16>, vector<128x64xf32> -> vector<128x64xf32>
    %213 = arith.addf %212, %10 : vector<128x64xf32>
    %214 = arith.negf %213 : vector<128x64xf32>
    %215 = math.exp %214 : vector<128x64xf32>
    %cst_100 = arith.constant 1.000000e+00 : f32
    %216 = vector.broadcast %cst_100 : f32 to vector<128x64xf32>
    %217 = arith.addf %216, %215 : vector<128x64xf32>
    %218 = arith.divf %216, %217 : vector<128x64xf32>
    %219 = arith.mulf %213, %218 : vector<128x64xf32>
    %220 = arith.truncf %219 : vector<128x64xf32> to vector<128x64xbf16>
    %cst_101 = arith.constant dense<0.000000e+00> : vector<128x64xf32>
    %221 = tpu.matmul %220, %6, %cst_101 {dimension_numbers = #tpu.dot_dimension_numbers<[1], [0], [0], [1], [0, 0, 1, 1], [], []>} : vector<128x64xbf16>, vector<64x64xbf16>, vector<128x64xf32> -> vector<128x64xf32>
    %222 = arith.addf %221, %12 : vector<128x64xf32>
    %223 = vector.extract_strided_slice %222 {offsets = [0, 0], sizes = [128, 32], strides = [1, 1]} : vector<128x64xf32> to vector<128x32xf32>
    %224 = arith.addf %193, %223 : vector<128x32xf32>
    %225 = vector.extract_strided_slice %222 {offsets = [0, 32], sizes = [128, 32], strides = [1, 1]} : vector<128x64xf32> to vector<128x32xf32>
    %c5_102 = arith.constant 5 : index
    %c0_103 = arith.constant 0 : index
    %c0_104 = arith.constant 0 : index
    %226 = vector.load %arg3[%c5_102, %c0_103, %c0_104] : memref<7x128x32xf32, #tpu.memory_space<vmem>>, vector<1x128x32xf32>
    %227 = vector.shape_cast %226 : vector<1x128x32xf32> to vector<128x32xf32>
    %228 = arith.mulf %225, %227 : vector<128x32xf32>
    %229 = arith.addf %224, %228 : vector<128x32xf32>
    %c6 = arith.constant 6 : index
    %c0_105 = arith.constant 0 : index
    %c0_106 = arith.constant 0 : index
    %230 = vector.load %arg7[%c6, %c0_105, %c0_106] : memref<8x128x32xf32, #tpu.memory_space<vmem>>, vector<1x128x32xf32>
    %231 = vector.shape_cast %230 : vector<1x128x32xf32> to vector<128x32xf32>
    %232 = vector.shape_cast %229 : vector<128x32xf32> to vector<1x128x32xf32>
    tpu.vector_store %arg7[%c6, %c0_105, %c0_106], %232 {strides = array<i32>} : memref<8x128x32xf32, #tpu.memory_space<vmem>>, vector<1x128x32xf32>,
    %233 = arith.truncf %229 : vector<128x32xf32> to vector<128x32xbf16>
    %cst_107 = arith.constant dense<0.000000e+00> : vector<128x64xf32>
    %234 = tpu.matmul %233, %0, %cst_107 {dimension_numbers = #tpu.dot_dimension_numbers<[1], [0], [0], [1], [0, 0, 1, 1], [], []>} : vector<128x32xbf16>, vector<32x64xbf16>, vector<128x64xf32> -> vector<128x64xf32>
    %c6_108 = arith.constant 6 : index
    %c0_109 = arith.constant 0 : index
    %c0_110 = arith.constant 0 : index
    %235 = vector.load %arg2[%c6_108, %c0_109, %c0_110] : memref<7x128x64xf32, #tpu.memory_space<vmem>>, vector<1x128x64xf32>
    %236 = vector.shape_cast %235 : vector<1x128x64xf32> to vector<128x64xf32>
    %237 = arith.addf %234, %236 : vector<128x64xf32>
    %238 = arith.truncf %237 : vector<128x64xf32> to vector<128x64xbf16>
    %cst_111 = arith.constant dense<0.000000e+00> : vector<128x64xf32>
    %239 = tpu.matmul %238, %2, %cst_111 {dimension_numbers = #tpu.dot_dimension_numbers<[1], [0], [0], [1], [0, 0, 1, 1], [], []>} : vector<128x64xbf16>, vector<64x64xbf16>, vector<128x64xf32> -> vector<128x64xf32>
    %240 = arith.addf %239, %8 : vector<128x64xf32>
    %241 = arith.negf %240 : vector<128x64xf32>
    %242 = math.exp %241 : vector<128x64xf32>
    %cst_112 = arith.constant 1.000000e+00 : f32
    %243 = vector.broadcast %cst_112 : f32 to vector<128x64xf32>
    %244 = arith.addf %243, %242 : vector<128x64xf32>
    %245 = arith.divf %243, %244 : vector<128x64xf32>
    %246 = arith.mulf %240, %245 : vector<128x64xf32>
    %247 = arith.truncf %246 : vector<128x64xf32> to vector<128x64xbf16>
    %cst_113 = arith.constant dense<0.000000e+00> : vector<128x64xf32>
    %248 = tpu.matmul %247, %4, %cst_113 {dimension_numbers = #tpu.dot_dimension_numbers<[1], [0], [0], [1], [0, 0, 1, 1], [], []>} : vector<128x64xbf16>, vector<64x64xbf16>, vector<128x64xf32> -> vector<128x64xf32>
    %249 = arith.addf %248, %10 : vector<128x64xf32>
    %250 = arith.negf %249 : vector<128x64xf32>
    %251 = math.exp %250 : vector<128x64xf32>
    %cst_114 = arith.constant 1.000000e+00 : f32
    %252 = vector.broadcast %cst_114 : f32 to vector<128x64xf32>
    %253 = arith.addf %252, %251 : vector<128x64xf32>
    %254 = arith.divf %252, %253 : vector<128x64xf32>
    %255 = arith.mulf %249, %254 : vector<128x64xf32>
    %256 = arith.truncf %255 : vector<128x64xf32> to vector<128x64xbf16>
    %cst_115 = arith.constant dense<0.000000e+00> : vector<128x64xf32>
    %257 = tpu.matmul %256, %6, %cst_115 {dimension_numbers = #tpu.dot_dimension_numbers<[1], [0], [0], [1], [0, 0, 1, 1], [], []>} : vector<128x64xbf16>, vector<64x64xbf16>, vector<128x64xf32> -> vector<128x64xf32>
    %258 = arith.addf %257, %12 : vector<128x64xf32>
    %259 = vector.extract_strided_slice %258 {offsets = [0, 0], sizes = [128, 32], strides = [1, 1]} : vector<128x64xf32> to vector<128x32xf32>
    %260 = arith.addf %229, %259 : vector<128x32xf32>
    %261 = vector.extract_strided_slice %258 {offsets = [0, 32], sizes = [128, 32], strides = [1, 1]} : vector<128x64xf32> to vector<128x32xf32>
    %c6_116 = arith.constant 6 : index
    %c0_117 = arith.constant 0 : index
    %c0_118 = arith.constant 0 : index
    %262 = vector.load %arg3[%c6_116, %c0_117, %c0_118] : memref<7x128x32xf32, #tpu.memory_space<vmem>>, vector<1x128x32xf32>
    %263 = vector.shape_cast %262 : vector<1x128x32xf32> to vector<128x32xf32>
    %264 = arith.mulf %261, %263 : vector<128x32xf32>
    %265 = arith.addf %260, %264 : vector<128x32xf32>
    %c7 = arith.constant 7 : index
    %c0_119 = arith.constant 0 : index
    %c0_120 = arith.constant 0 : index
    %266 = vector.load %arg7[%c7, %c0_119, %c0_120] : memref<8x128x32xf32, #tpu.memory_space<vmem>>, vector<1x128x32xf32>
    %267 = vector.shape_cast %266 : vector<1x128x32xf32> to vector<128x32xf32>
    %268 = vector.shape_cast %265 : vector<128x32xf32> to vector<1x128x32xf32>
    tpu.vector_store %arg7[%c7, %c0_119, %c0_120], %268 {strides = array<i32>} : memref<8x128x32xf32, #tpu.memory_space<vmem>>, vector<1x128x32xf32>,
    return
  }
  func.func @transform_0(%arg0: i32) -> (i32, i32) {
    %c0_i32 = arith.constant 0 : i32
    %c0_i32_0 = arith.constant 0 : i32
    return %arg0, %c0_i32 : i32, i32
  }
  func.func @transform_1(%arg0: i32) -> (i32, i32, i32) {
    %c0_i32 = arith.constant 0 : i32
    %c0_i32_0 = arith.constant 0 : i32
    %c0_i32_1 = arith.constant 0 : i32
    return %c0_i32, %arg0, %c0_i32_0 : i32, i32, i32
  }
  func.func @transform_2(%arg0: i32) -> (i32, i32, i32) {
    %c0_i32 = arith.constant 0 : i32
    %c0_i32_0 = arith.constant 0 : i32
    %c0_i32_1 = arith.constant 0 : i32
    return %c0_i32, %arg0, %c0_i32_0 : i32, i32, i32
  }
  func.func @transform_3(%arg0: i32) -> (i32, i32) {
    %c0_i32 = arith.constant 0 : i32
    %c0_i32_0 = arith.constant 0 : i32
    %c0_i32_1 = arith.constant 0 : i32
    return %c0_i32, %c0_i32_0 : i32, i32
  }
  func.func @transform_4(%arg0: i32) -> (i32, i32, i32) {
    %c0_i32 = arith.constant 0 : i32
    %c0_i32_0 = arith.constant 0 : i32
    %c0_i32_1 = arith.constant 0 : i32
    %c0_i32_2 = arith.constant 0 : i32
    return %c0_i32, %c0_i32_0, %c0_i32_1 : i32, i32, i32
  }
  func.func @transform_5(%arg0: i32) -> (i32, i32, i32) {
    %c0_i32 = arith.constant 0 : i32
    %c0_i32_0 = arith.constant 0 : i32
    %c0_i32_1 = arith.constant 0 : i32
    %c0_i32_2 = arith.constant 0 : i32
    return %c0_i32, %c0_i32_0, %c0_i32_1 : i32, i32, i32
  }
  func.func @transform_6(%arg0: i32) -> (i32, i32, i32) {
    %c0_i32 = arith.constant 0 : i32
    %c0_i32_0 = arith.constant 0 : i32
    %c0_i32_1 = arith.constant 0 : i32
    return %c0_i32, %arg0, %c0_i32_0 : i32, i32, i32
  }
}

</mosaic_0001>

<bundles_post_ra>
// kernel: neural_sde_forward.1
= control target key start
LH: loop header
LB: loop body
LE: loop exit
PB: predicated region body
PF: predicated region fallthrough
CT: control target
= control target key end

     0   :  { %s12015_s21 = smov 0   ;;  %s12017_s22 = smov 0   ;;  %s17086_s0 = inlined_call_operand.vmem [shape: f32[256,32], index: 0, kind: input, shape index: {}]   ;;  %s17087_s1 = inlined_call_operand.vmem [shape: f32[7,256,64], index: 1, kind: input, shape index: {}]   ;;  %s17088_s2 = inlined_call_operand.vmem [shape: f32[7,256,32], index: 2, kind: input, shape index: {}]   ;;  %s17089_s3 = inlined_call_operand.vmem [shape: bf16[32,64], index: 3, kind: input, shape index: {}]   ;;  %s17090_s4 = inlined_call_operand.vmem [shape: bf16[3,64,64], index: 4, kind: input, shape index: {}]   ;;  %s17091_s5 = inlined_call_operand.vmem [shape: f32[3,128,64], index: 5, kind: input, shape index: {}]   ;;  %s17092_s6 = inlined_call_operand.vmem [shape: f32[8,256,32], index: 6, kind: output, shape index: {}]  }
   0x1   :  { %s12019_s23 = smov 0  }
   0x2 LB: > { %s12031_s24 = sadd.s32 4294967295, %s11976_s23   ;;  %s12034_s25 = sadd.s32 1, %s11976_s23   ;;  %s11976_s23 = sphi %s12019_s23, %s17097_s23   ;;  %s11972_s22 = sphi %s12017_s22, %s17096_s22   ;;  %s11968_s21 = sphi %s12015_s21, %s17095_s21  }
   0x3   : > { %s46_s26 = ssub.s32 %s11976_s23, %s12034_s25  ;;  %s49_s27 = sadd.s32 1, %s11972_s22 }
   0x4   : > { %p47_p0 = scmp.eq.s32.totalorder %s46_s26, 0  ;;  %p56_p1 = scmp.ne.s32.totalorder %s11972_s22, %s11968_s21 }
   0x5   : > { %p57_p2 = scmp.eq.s32.totalorder %s11976_s23, 0  ;;  %p175_p3 = scmp.eq.s32.totalorder %s12031_s24, 1 }
   0x6   : > { %s12044_s28 = scalar_select %p47_p0, %s11972_s22, %s49_s27  }
   0x7   : > { %p12046_p4 = por %p57_p2, %p56_p1  ;;  %p12050_p5 = por %p175_p3, %p56_p1 }
   0x8   : > { %p8854_p6 = scmp.ge.s32.totalorder %s11976_s23, 2 }
   0xa   : > { %206 = sbr.rel (%p8854_p6) target bundleno = 139 (0x8b), region = 28 }
  0x11   : > { %218 = sbr.rel (!%p12046_p4) target bundleno = 78 (0x4e), region = 36  ;;  %s220_s7 = sand.u32 (%p12046_p4), 1, %s11972_s22  }
  0x12   : > { %s9682_s8 = sshll.u32 (%p12046_p4), %s11976_s23, 7  ;;  %s10651_s9 = smul.u32 (%p12046_p4), 896, %s220_s7 }
  0x13   : > { %s12062_s12 = scalar_lea.vmem (%p12046_p4), %s17087_s1, %s9682_s8 }
  0x14   : > { %v475_v0 = vld [vmem:[%s12062_s12] sm:$0xff] (%p12046_p4)  ;;  %v477_v1 = vld [vmem:[%s12062_s12 + $0x8] sm:$0xff] (%p12046_p4)  ;;  %v479_v2 = vld [vmem:[%s12062_s12 + $0x10] sm:$0xff] (%p12046_p4)  ;;  %s12070_s13 = scalar_lea.vmem (%p12046_p4), [#allocation2], %s10651_s9 }
  0x15   : > { %v481_v3 = vld [vmem:[%s12062_s12 + $0x18] sm:$0xff] (%p12046_p4)  ;;  %v483_v4 = vld [vmem:[%s12062_s12 + $0x20] sm:$0xff] (%p12046_p4)  ;;  %v485_v5 = vld [vmem:[%s12062_s12 + $0x28] sm:$0xff] (%p12046_p4)  ;;  %476 = vst [vmem:[%s12070_s13] sm:$0xff] (%p12046_p4), %v475_v0 }
  0x16   : > { %478 = vst [vmem:[%s12070_s13 + $0x8] sm:$0xff] (%p12046_p4), %v477_v1  ;;  %480 = vst [vmem:[%s12070_s13 + $0x10] sm:$0xff] (%p12046_p4), %v479_v2  ;;  %v487_v6 = vld [vmem:[%s12062_s12 + $0x30] sm:$0xff] (%p12046_p4)  ;;  %v489_v7 = vld [vmem:[%s12062_s12 + $0x38] sm:$0xff] (%p12046_p4) }
  0x17   : > { %482 = vst [vmem:[%s12070_s13 + $0x18] sm:$0xff] (%p12046_p4), %v481_v3  ;;  %484 = vst [vmem:[%s12070_s13 + $0x20] sm:$0xff] (%p12046_p4), %v483_v4  ;;  %v491_v8 = vld [vmem:[%s12062_s12 + $0x40] sm:$0xff] (%p12046_p4)  ;;  %v493_v9 = vld [vmem:[%s12062_s12 + $0x48] sm:$0xff] (%p12046_p4) }
  0x18   : > { %486 = vst [vmem:[%s12070_s13 + $0x28] sm:$0xff] %v485_v5  ;;  %488 = vst [vmem:[%s12070_s13 + $0x30] sm:$0xff] %v487_v6  ;;  %v495_v10 = vld [vmem:[%s12062_s12 + $0x50] sm:$0xff]  ;;  %v497_v11 = vld [vmem:[%s12062_s12 + $0x58] sm:$0xff] }
  0x19   : > { %490 = vst [vmem:[%s12070_s13 + $0x38] sm:$0xff] %v489_v7  ;;  %492 = vst [vmem:[%s12070_s13 + $0x40] sm:$0xff] %v491_v8  ;;  %v499_v12 = vld [vmem:[%s12062_s12 + $0x60] sm:$0xff]  ;;  %v501_v13 = vld [vmem:[%s12062_s12 + $0x68] sm:$0xff] }
  0x1a   : > { %494 = vst [vmem:[%s12070_s13 + $0x48] sm:$0xff] %v493_v9  ;;  %496 = vst [vmem:[%s12070_s13 + $0x50] sm:$0xff] %v495_v10  ;;  %v503_v14 = vld [vmem:[%s12062_s12 + $0x70] sm:$0xff]  ;;  %v505_v15 = vld [vmem:[%s12062_s12 + $0x78] sm:$0xff] }
  0x1b   : > { %498 = vst [vmem:[%s12070_s13 + $0x58] sm:$0xff] %v497_v11  ;;  %500 = vst [vmem:[%s12070_s13 + $0x60] sm:$0xff] %v499_v12  ;;  %v507_v16 = vld [vmem:[%s12062_s12 + $0x100] sm:$0xff]  ;;  %v509_v17 = vld [vmem:[%s12062_s12 + $0x108] sm:$0xff] }
  0x1c   : > { %502 = vst [vmem:[%s12070_s13 + $0x68] sm:$0xff] %v501_v13  ;;  %504 = vst [vmem:[%s12070_s13 + $0x70] sm:$0xff] %v503_v14  ;;  %v511_v18 = vld [vmem:[%s12062_s12 + $0x110] sm:$0xff]  ;;  %v513_v19 = vld [vmem:[%s12062_s12 + $0x118] sm:$0xff] }
  0x1d   : > { %506 = vst [vmem:[%s12070_s13 + $0x78] sm:$0xff] %v505_v15  ;;  %508 = vst [vmem:[%s12070_s13 + $0x80] sm:$0xff] %v507_v16  ;;  %v515_v20 = vld [vmem:[%s12062_s12 + $0x120] sm:$0xff]  ;;  %v517_v21 = vld [vmem:[%s12062_s12 + $0x128] sm:$0xff] }
  0x1e   : > { %510 = vst [vmem:[%s12070_s13 + $0x88] sm:$0xff] %v509_v17  ;;  %512 = vst [vmem:[%s12070_s13 + $0x90] sm:$0xff] %v511_v18  ;;  %v519_v22 = vld [vmem:[%s12062_s12 + $0x130] sm:$0xff]  ;;  %v521_v23 = vld [vmem:[%s12062_s12 + $0x138] sm:$0xff] }
  0x1f   : > { %514 = vst [vmem:[%s12070_s13 + $0x98] sm:$0xff] %v513_v19  ;;  %516 = vst [vmem:[%s12070_s13 + $0xa0] sm:$0xff] %v515_v20  ;;  %v523_v24 = vld [vmem:[%s12062_s12 + $0x140] sm:$0xff]  ;;  %v525_v25 = vld [vmem:[%s12062_s12 + $0x148] sm:$0xff] }
  0x20   : > { %518 = vst [vmem:[%s12070_s13 + $0xa8] sm:$0xff] %v517_v21  ;;  %520 = vst [vmem:[%s12070_s13 + $0xb0] sm:$0xff] %v519_v22  ;;  %v527_v26 = vld [vmem:[%s12062_s12 + $0x150] sm:$0xff]  ;;  %v529_v27 = vld [vmem:[%s12062_s12 + $0x158] sm:$0xff] }
  0x21   : > { %522 = vst [vmem:[%s12070_s13 + $0xb8] sm:$0xff] %v521_v23  ;;  %524 = vst [vmem:[%s12070_s13 + $0xc0] sm:$0xff] %v523_v24  ;;  %v531_v28 = vld [vmem:[%s12062_s12 + $0x160] sm:$0xff]  ;;  %v533_v29 = vld [vmem:[%s12062_s12 + $0x168] sm:$0xff] }
  0x22   : > { %526 = vst [vmem:[%s12070_s13 + $0xc8] sm:$0xff] %v525_v25  ;;  %528 = vst [vmem:[%s12070_s13 + $0xd0] sm:$0xff] %v527_v26  ;;  %v535_v30 = vld [vmem:[%s12062_s12 + $0x170] sm:$0xff]  ;;  %v537_v31 = vld [vmem:[%s12062_s12 + $0x178] sm:$0xff] }
  0x23   : > { %530 = vst [vmem:[%s12070_s13 + $0xd8] sm:$0xff] %v529_v27  ;;  %532 = vst [vmem:[%s12070_s13 + $0xe0] sm:$0xff] %v531_v28  ;;  %v539_v32 = vld [vmem:[%s12062_s12 + $0x200] sm:$0xff]  ;;  %v541_v33 = vld [vmem:[%s12062_s12 + $0x208] sm:$0xff] }
  0x24   : > { %534 = vst [vmem:[%s12070_s13 + $0xe8] sm:$0xff] %v533_v29  ;;  %536 = vst [vmem:[%s12070_s13 + $0xf0] sm:$0xff] %v535_v30  ;;  %v543_v34 = vld [vmem:[%s12062_s12 + $0x210] sm:$0xff]  ;;  %v545_v35 = vld [vmem:[%s12062_s12 + $0x218] sm:$0xff] }
  0x25   : > { %538 = vst [vmem:[%s12070_s13 + $0xf8] sm:$0xff] %v537_v31  ;;  %540 = vst [vmem:[%s12070_s13 + $0x100] sm:$0xff] %v539_v32  ;;  %v547_v36 = vld [vmem:[%s12062_s12 + $0x220] sm:$0xff]  ;;  %v549_v37 = vld [vmem:[%s12062_s12 + $0x228] sm:$0xff] }
  0x26   : > { %542 = vst [vmem:[%s12070_s13 + $0x108] sm:$0xff] %v541_v33  ;;  %544 = vst [vmem:[%s12070_s13 + $0x110] sm:$0xff] %v543_v34  ;;  %v551_v38 = vld [vmem:[%s12062_s12 + $0x230] sm:$0xff]  ;;  %v553_v39 = vld [vmem:[%s12062_s12 + $0x238] sm:$0xff] }
  0x27   : > { %546 = vst [vmem:[%s12070_s13 + $0x118] sm:$0xff] %v545_v35  ;;  %548 = vst [vmem:[%s12070_s13 + $0x120] sm:$0xff] %v547_v36  ;;  %v555_v40 = vld [vmem:[%s12062_s12 + $0x240] sm:$0xff]  ;;  %v557_v41 = vld [vmem:[%s12062_s12 + $0x248] sm:$0xff] }
  0x28   : > { %550 = vst [vmem:[%s12070_s13 + $0x128] sm:$0xff] %v549_v37  ;;  %552 = vst [vmem:[%s12070_s13 + $0x130] sm:$0xff] %v551_v38  ;;  %v559_v42 = vld [vmem:[%s12062_s12 + $0x250] sm:$0xff]  ;;  %v561_v43 = vld [vmem:[%s12062_s12 + $0x258] sm:$0xff] }
  0x29   : > { %554 = vst [vmem:[%s12070_s13 + $0x138] sm:$0xff] %v553_v39  ;;  %556 = vst [vmem:[%s12070_s13 + $0x140] sm:$0xff] %v555_v40  ;;  %v563_v44 = vld [vmem:[%s12062_s12 + $0x260] sm:$0xff]  ;;  %v565_v45 = vld [vmem:[%s12062_s12 + $0x268] sm:$0xff] }
  0x2a   : > { %558 = vst [vmem:[%s12070_s13 + $0x148] sm:$0xff] %v557_v41  ;;  %560 = vst [vmem:[%s12070_s13 + $0x150] sm:$0xff] %v559_v42  ;;  %v567_v46 = vld [vmem:[%s12062_s12 + $0x270] sm:$0xff]  ;;  %v569_v47 = vld [vmem:[%s12062_s12 + $0x278] sm:$0xff] }
  0x2b   : > { %562 = vst [vmem:[%s12070_s13 + $0x158] sm:$0xff] %v561_v43  ;;  %564 = vst [vmem:[%s12070_s13 + $0x160] sm:$0xff] %v563_v44  ;;  %v571_v48 = vld [vmem:[%s12062_s12 + $0x300] sm:$0xff]  ;;  %v573_v49 = vld [vmem:[%s12062_s12 + $0x308] sm:$0xff] }
  0x2c   : > { %566 = vst [vmem:[%s12070_s13 + $0x168] sm:$0xff] %v565_v45  ;;  %568 = vst [vmem:[%s12070_s13 + $0x170] sm:$0xff] %v567_v46  ;;  %v575_v50 = vld [vmem:[%s12062_s12 + $0x310] sm:$0xff]  ;;  %v577_v51 = vld [vmem:[%s12062_s12 + $0x318] sm:$0xff] }
  0x2d   : > { %570 = vst [vmem:[%s12070_s13 + $0x178] sm:$0xff] %v569_v47  ;;  %572 = vst [vmem:[%s12070_s13 + $0x180] sm:$0xff] %v571_v48  ;;  %v579_v52 = vld [vmem:[%s12062_s12 + $0x320] sm:$0xff]  ;;  %v581_v53 = vld [vmem:[%s12062_s12 + $0x328] sm:$0xff] }
  0x2e   : > { %574 = vst [vmem:[%s12070_s13 + $0x188] sm:$0xff] %v573_v49  ;;  %576 = vst [vmem:[%s12070_s13 + $0x190] sm:$0xff] %v575_v50  ;;  %v583_v54 = vld [vmem:[%s12062_s12 + $0x330] sm:$0xff]  ;;  %v585_v55 = vld [vmem:[%s12062_s12 + $0x338] sm:$0xff] }
  0x2f   : > { %578 = vst [vmem:[%s12070_s13 + $0x198] sm:$0xff] %v577_v51  ;;  %580 = vst [vmem:[%s12070_s13 + $0x1a0] sm:$0xff] %v579_v52  ;;  %v587_v56 = vld [vmem:[%s12062_s12 + $0x340] sm:$0xff]  ;;  %v589_v57 = vld [vmem:[%s12062_s12 + $0x348] sm:$0xff] }
  0x30   : > { %582 = vst [vmem:[%s12070_s13 + $0x1a8] sm:$0xff] %v581_v53  ;;  %584 = vst [vmem:[%s12070_s13 + $0x1b0] sm:$0xff] %v583_v54  ;;  %v591_v58 = vld [vmem:[%s12062_s12 + $0x350] sm:$0xff]  ;;  %v593_v59 = vld [vmem:[%s12062_s12 + $0x358] sm:$0xff] }
  0x31   : > { %586 = vst [vmem:[%s12070_s13 + $0x1b8] sm:$0xff] %v585_v55  ;;  %588 = vst [vmem:[%s12070_s13 + $0x1c0] sm:$0xff] %v587_v56  ;;  %v595_v60 = vld [vmem:[%s12062_s12 + $0x360] sm:$0xff]  ;;  %v597_v61 = vld [vmem:[%s12062_s12 + $0x368] sm:$0xff] }
  0x32   : > { %590 = vst [vmem:[%s12070_s13 + $0x1c8] sm:$0xff] %v589_v57  ;;  %592 = vst [vmem:[%s12070_s13 + $0x1d0] sm:$0xff] %v591_v58  ;;  %v599_v62 = vld [vmem:[%s12062_s12 + $0x370] sm:$0xff]  ;;  %v601_v63 = vld [vmem:[%s12062_s12 + $0x378] sm:$0xff] }
  0x33   : > { %594 = vst [vmem:[%s12070_s13 + $0x1d8] sm:$0xff] %v593_v59  ;;  %596 = vst [vmem:[%s12070_s13 + $0x1e0] sm:$0xff] %v595_v60  ;;  %v603_v0 = vld [vmem:[%s12062_s12 + $0x400] sm:$0xff]  ;;  %v605_v1 = vld [vmem:[%s12062_s12 + $0x408] sm:$0xff] }
  0x34   : > { %598 = vst [vmem:[%s12070_s13 + $0x1e8] sm:$0xff] %v597_v61  ;;  %600 = vst [vmem:[%s12070_s13 + $0x1f0] sm:$0xff] %v599_v62  ;;  %v607_v2 = vld [vmem:[%s12062_s12 + $0x410] sm:$0xff]  ;;  %v609_v3 = vld [vmem:[%s12062_s12 + $0x418] sm:$0xff] }
  0x35   : > { %602 = vst [vmem:[%s12070_s13 + $0x1f8] sm:$0xff] %v601_v63  ;;  %604 = vst [vmem:[%s12070_s13 + $0x200] sm:$0xff] %v603_v0  ;;  %v611_v4 = vld [vmem:[%s12062_s12 + $0x420] sm:$0xff]  ;;  %v613_v5 = vld [vmem:[%s12062_s12 + $0x428] sm:$0xff] }
  0x36   : > { %606 = vst [vmem:[%s12070_s13 + $0x208] sm:$0xff] %v605_v1  ;;  %608 = vst [vmem:[%s12070_s13 + $0x210] sm:$0xff] %v607_v2  ;;  %v615_v6 = vld [vmem:[%s12062_s12 + $0x430] sm:$0xff]  ;;  %v617_v7 = vld [vmem:[%s12062_s12 + $0x438] sm:$0xff] }
  0x37   : > { %610 = vst [vmem:[%s12070_s13 + $0x218] sm:$0xff] %v609_v3  ;;  %612 = vst [vmem:[%s12070_s13 + $0x220] sm:$0xff] %v611_v4  ;;  %v619_v8 = vld [vmem:[%s12062_s12 + $0x440] sm:$0xff]  ;;  %v621_v9 = vld [vmem:[%s12062_s12 + $0x448] sm:$0xff] }
  0x38   : > { %614 = vst [vmem:[%s12070_s13 + $0x228] sm:$0xff] %v613_v5  ;;  %616 = vst [vmem:[%s12070_s13 + $0x230] sm:$0xff] %v615_v6  ;;  %v623_v10 = vld [vmem:[%s12062_s12 + $0x450] sm:$0xff]  ;;  %v625_v11 = vld [vmem:[%s12062_s12 + $0x458] sm:$0xff] }
  0x39   : > { %618 = vst [vmem:[%s12070_s13 + $0x238] sm:$0xff] %v617_v7  ;;  %620 = vst [vmem:[%s12070_s13 + $0x240] sm:$0xff] %v619_v8  ;;  %v627_v12 = vld [vmem:[%s12062_s12 + $0x460] sm:$0xff]  ;;  %v629_v13 = vld [vmem:[%s12062_s12 + $0x468] sm:$0xff] }
  0x3a   : > { %622 = vst [vmem:[%s12070_s13 + $0x248] sm:$0xff] %v621_v9  ;;  %624 = vst [vmem:[%s12070_s13 + $0x250] sm:$0xff] %v623_v10  ;;  %v631_v14 = vld [vmem:[%s12062_s12 + $0x470] sm:$0xff]  ;;  %v633_v15 = vld [vmem:[%s12062_s12 + $0x478] sm:$0xff] }
  0x3b   : > { %626 = vst [vmem:[%s12070_s13 + $0x258] sm:$0xff] %v625_v11  ;;  %628 = vst [vmem:[%s12070_s13 + $0x260] sm:$0xff] %v627_v12  ;;  %v635_v16 = vld [vmem:[%s12062_s12 + $0x500] sm:$0xff]  ;;  %v637_v17 = vld [vmem:[%s12062_s12 + $0x508] sm:$0xff] }
  0x3c   : > { %630 = vst [vmem:[%s12070_s13 + $0x268] sm:$0xff] %v629_v13  ;;  %632 = vst [vmem:[%s12070_s13 + $0x270] sm:$0xff] %v631_v14  ;;  %v639_v18 = vld [vmem:[%s12062_s12 + $0x510] sm:$0xff]  ;;  %v641_v19 = vld [vmem:[%s12062_s12 + $0x518] sm:$0xff] }
  0x3d   : > { %634 = vst [vmem:[%s12070_s13 + $0x278] sm:$0xff] %v633_v15  ;;  %636 = vst [vmem:[%s12070_s13 + $0x280] sm:$0xff] %v635_v16  ;;  %v643_v20 = vld [vmem:[%s12062_s12 + $0x520] sm:$0xff]  ;;  %v645_v21 = vld [vmem:[%s12062_s12 + $0x528] sm:$0xff] }
  0x3e   : > { %638 = vst [vmem:[%s12070_s13 + $0x288] sm:$0xff] %v637_v17  ;;  %640 = vst [vmem:[%s12070_s13 + $0x290] sm:$0xff] %v639_v18  ;;  %v647_v22 = vld [vmem:[%s12062_s12 + $0x530] sm:$0xff]  ;;  %v649_v23 = vld [vmem:[%s12062_s12 + $0x538] sm:$0xff] }
  0x3f   : > { %642 = vst [vmem:[%s12070_s13 + $0x298] sm:$0xff] %v641_v19  ;;  %644 = vst [vmem:[%s12070_s13 + $0x2a0] sm:$0xff] %v643_v20  ;;  %v651_v24 = vld [vmem:[%s12062_s12 + $0x540] sm:$0xff]  ;;  %v653_v25 = vld [vmem:[%s12062_s12 + $0x548] sm:$0xff] }
  0x40   : > { %646 = vst [vmem:[%s12070_s13 + $0x2a8] sm:$0xff] %v645_v21  ;;  %648 = vst [vmem:[%s12070_s13 + $0x2b0] sm:$0xff] %v647_v22  ;;  %v655_v26 = vld [vmem:[%s12062_s12 + $0x550] sm:$0xff]  ;;  %v657_v27 = vld [vmem:[%s12062_s12 + $0x558] sm:$0xff] }
  0x41   : > { %650 = vst [vmem:[%s12070_s13 + $0x2b8] sm:$0xff] %v649_v23  ;;  %652 = vst [vmem:[%s12070_s13 + $0x2c0] sm:$0xff] %v651_v24  ;;  %v659_v28 = vld [vmem:[%s12062_s12 + $0x560] sm:$0xff]  ;;  %v661_v29 = vld [vmem:[%s12062_s12 + $0x568] sm:$0xff] }
  0x42   : > { %654 = vst [vmem:[%s12070_s13 + $0x2c8] sm:$0xff] %v653_v25  ;;  %656 = vst [vmem:[%s12070_s13 + $0x2d0] sm:$0xff] %v655_v26  ;;  %v663_v30 = vld [vmem:[%s12062_s12 + $0x570] sm:$0xff]  ;;  %v665_v31 = vld [vmem:[%s12062_s12 + $0x578] sm:$0xff] }
  0x43   : > { %658 = vst [vmem:[%s12070_s13 + $0x2d8] sm:$0xff] %v657_v27  ;;  %660 = vst [vmem:[%s12070_s13 + $0x2e0] sm:$0xff] %v659_v28  ;;  %v667_v32 = vld [vmem:[%s12062_s12 + $0x600] sm:$0xff]  ;;  %v669_v33 = vld [vmem:[%s12062_s12 + $0x608] sm:$0xff] }
  0x44   : > { %662 = vst [vmem:[%s12070_s13 + $0x2e8] sm:$0xff] %v661_v29  ;;  %664 = vst [vmem:[%s12070_s13 + $0x2f0] sm:$0xff] %v663_v30  ;;  %v671_v34 = vld [vmem:[%s12062_s12 + $0x610] sm:$0xff]  ;;  %v673_v35 = vld [vmem:[%s12062_s12 + $0x618] sm:$0xff] }
  0x45   : > { %666 = vst [vmem:[%s12070_s13 + $0x2f8] sm:$0xff] %v665_v31  ;;  %668 = vst [vmem:[%s12070_s13 + $0x300] sm:$0xff] %v667_v32  ;;  %v675_v36 = vld [vmem:[%s12062_s12 + $0x620] sm:$0xff]  ;;  %v677_v37 = vld [vmem:[%s12062_s12 + $0x628] sm:$0xff] }
  0x46   : > { %670 = vst [vmem:[%s12070_s13 + $0x308] sm:$0xff] %v669_v33  ;;  %672 = vst [vmem:[%s12070_s13 + $0x310] sm:$0xff] %v671_v34  ;;  %v679_v38 = vld [vmem:[%s12062_s12 + $0x630] sm:$0xff]  ;;  %v681_v39 = vld [vmem:[%s12062_s12 + $0x638] sm:$0xff] }
  0x47   : > { %674 = vst [vmem:[%s12070_s13 + $0x318] sm:$0xff] %v673_v35  ;;  %676 = vst [vmem:[%s12070_s13 + $0x320] sm:$0xff] %v675_v36  ;;  %v683_v40 = vld [vmem:[%s12062_s12 + $0x640] sm:$0xff]  ;;  %v685_v41 = vld [vmem:[%s12062_s12 + $0x648] sm:$0xff] }
  0x48   : > { %678 = vst [vmem:[%s12070_s13 + $0x328] sm:$0xff] %v677_v37  ;;  %680 = vst [vmem:[%s12070_s13 + $0x330] sm:$0xff] %v679_v38  ;;  %v687_v42 = vld [vmem:[%s12062_s12 + $0x650] sm:$0xff]  ;;  %v689_v43 = vld [vmem:[%s12062_s12 + $0x658] sm:$0xff] }
  0x49   : > { %682 = vst [vmem:[%s12070_s13 + $0x338] sm:$0xff] %v681_v39  ;;  %684 = vst [vmem:[%s12070_s13 + $0x340] sm:$0xff] %v683_v40  ;;  %v691_v44 = vld [vmem:[%s12062_s12 + $0x660] sm:$0xff]  ;;  %v693_v45 = vld [vmem:[%s12062_s12 + $0x668] sm:$0xff] }
  0x4a   : > { %686 = vst [vmem:[%s12070_s13 + $0x348] sm:$0xff] %v685_v41  ;;  %688 = vst [vmem:[%s12070_s13 + $0x350] sm:$0xff] %v687_v42  ;;  %v695_v46 = vld [vmem:[%s12062_s12 + $0x670] sm:$0xff]  ;;  %v697_v47 = vld [vmem:[%s12062_s12 + $0x678] sm:$0xff] }
  0x4b   : > { %690 = vst [vmem:[%s12070_s13 + $0x358] sm:$0xff] %v689_v43  ;;  %692 = vst [vmem:[%s12070_s13 + $0x360] sm:$0xff] %v691_v44 }
  0x4c   : > { %694 = vst [vmem:[%s12070_s13 + $0x368] sm:$0xff] %v693_v45  ;;  %696 = vst [vmem:[%s12070_s13 + $0x370] sm:$0xff] %v695_v46 }
  0x4d   : > { %698 = vst [vmem:[%s12070_s13 + $0x378] sm:$0xff] %v697_v47 }
  0x4e PF: > { %704 = sbr.rel (!%p12046_p4) target bundleno = 139 (0x8b), region = 74  ;;  %s706_s14 = sand.u32 (%p12046_p4), 1, %s11972_s22  }
  0x4f   : > { %s9683_s15 = sshll.u32 (%p12046_p4), %s11976_s23, 7  ;;  %s10652_s16 = smul.u32 (%p12046_p4), 896, %s706_s14 }
  0x50   : > { %s12297_s19 = scalar_lea.vmem (%p12046_p4), %s17088_s2, %s9683_s15 }
  0x51   : > { %v961_v48 = vld [vmem:[%s12297_s19] sm:$0xff] (%p12046_p4)  ;;  %v963_v49 = vld [vmem:[%s12297_s19 + $0x8] sm:$0xff] (%p12046_p4)  ;;  %v965_v50 = vld [vmem:[%s12297_s19 + $0x10] sm:$0xff] (%p12046_p4)  ;;  %s12305_s20 = scalar_lea.vmem (%p12046_p4), [#allocation3], %s10652_s16 }
  0x52   : > { %v967_v51 = vld [vmem:[%s12297_s19 + $0x18] sm:$0xff] (%p12046_p4)  ;;  %v969_v52 = vld [vmem:[%s12297_s19 + $0x20] sm:$0xff] (%p12046_p4)  ;;  %v971_v53 = vld [vmem:[%s12297_s19 + $0x28] sm:$0xff] (%p12046_p4)  ;;  %962 = vst [vmem:[%s12305_s20] sm:$0xff] (%p12046_p4), %v961_v48 }
  0x53   : > { %964 = vst [vmem:[%s12305_s20 + $0x8] sm:$0xff] (%p12046_p4), %v963_v49  ;;  %966 = vst [vmem:[%s12305_s20 + $0x10] sm:$0xff] (%p12046_p4), %v965_v50  ;;  %v973_v54 = vld [vmem:[%s12297_s19 + $0x30] sm:$0xff] (%p12046_p4)  ;;  %v975_v55 = vld [vmem:[%s12297_s19 + $0x38] sm:$0xff] (%p12046_p4) }
  0x54   : > { %968 = vst [vmem:[%s12305_s20 + $0x18] sm:$0xff] (%p12046_p4), %v967_v51  ;;  %970 = vst [vmem:[%s12305_s20 + $0x20] sm:$0xff] (%p12046_p4), %v969_v52  ;;  %v977_v56 = vld [vmem:[%s12297_s19 + $0x40] sm:$0xff] (%p12046_p4)  ;;  %v979_v57 = vld [vmem:[%s12297_s19 + $0x48] sm:$0xff] (%p12046_p4) }
  0x55   : > { %972 = vst [vmem:[%s12305_s20 + $0x28] sm:$0xff] %v971_v53  ;;  %974 = vst [vmem:[%s12305_s20 + $0x30] sm:$0xff] %v973_v54  ;;  %v981_v58 = vld [vmem:[%s12297_s19 + $0x50] sm:$0xff]  ;;  %v983_v59 = vld [vmem:[%s12297_s19 + $0x58] sm:$0xff] }
  0x56   : > { %976 = vst [vmem:[%s12305_s20 + $0x38] sm:$0xff] %v975_v55  ;;  %978 = vst [vmem:[%s12305_s20 + $0x40] sm:$0xff] %v977_v56  ;;  %v985_v60 = vld [vmem:[%s12297_s19 + $0x60] sm:$0xff]  ;;  %v987_v61 = vld [vmem:[%s12297_s19 + $0x68] sm:$0xff] }
  0x57   : > { %980 = vst [vmem:[%s12305_s20 + $0x48] sm:$0xff] %v979_v57  ;;  %982 = vst [vmem:[%s12305_s20 + $0x50] sm:$0xff] %v981_v58  ;;  %v989_v62 = vld [vmem:[%s12297_s19 + $0x70] sm:$0xff]  ;;  %v991_v63 = vld [vmem:[%s12297_s19 + $0x78] sm:$0xff] }
  0x58   : > { %984 = vst [vmem:[%s12305_s20 + $0x58] sm:$0xff] %v983_v59  ;;  %986 = vst [vmem:[%s12305_s20 + $0x60] sm:$0xff] %v985_v60  ;;  %v993_v0 = vld [vmem:[%s12297_s19 + $0x100] sm:$0xff]  ;;  %v995_v1 = vld [vmem:[%s12297_s19 + $0x108] sm:$0xff] }
  0x59   : > { %988 = vst [vmem:[%s12305_s20 + $0x68] sm:$0xff] %v987_v61  ;;  %990 = vst [vmem:[%s12305_s20 + $0x70] sm:$0xff] %v989_v62  ;;  %v997_v2 = vld [vmem:[%s12297_s19 + $0x110] sm:$0xff]  ;;  %v999_v3 = vld [vmem:[%s12297_s19 + $0x118] sm:$0xff] }
  0x5a   : > { %992 = vst [vmem:[%s12305_s20 + $0x78] sm:$0xff] %v991_v63  ;;  %994 = vst [vmem:[%s12305_s20 + $0x80] sm:$0xff] %v993_v0  ;;  %v1001_v4 = vld [vmem:[%s12297_s19 + $0x120] sm:$0xff]  ;;  %v1003_v5 = vld [vmem:[%s12297_s19 + $0x128] sm:$0xff] }
  0x5b   : > { %996 = vst [vmem:[%s12305_s20 + $0x88] sm:$0xff] %v995_v1  ;;  %998 = vst [vmem:[%s12305_s20 + $0x90] sm:$0xff] %v997_v2  ;;  %v1005_v6 = vld [vmem:[%s12297_s19 + $0x130] sm:$0xff]  ;;  %v1007_v7 = vld [vmem:[%s12297_s19 + $0x138] sm:$0xff] }
  0x5c   : > { %1000 = vst [vmem:[%s12305_s20 + $0x98] sm:$0xff] %v999_v3  ;;  %1002 = vst [vmem:[%s12305_s20 + $0xa0] sm:$0xff] %v1001_v4  ;;  %v1009_v8 = vld [vmem:[%s12297_s19 + $0x140] sm:$0xff]  ;;  %v1011_v9 = vld [vmem:[%s12297_s19 + $0x148] sm:$0xff] }
  0x5d   : > { %1004 = vst [vmem:[%s12305_s20 + $0xa8] sm:$0xff] %v1003_v5  ;;  %1006 = vst [vmem:[%s12305_s20 + $0xb0] sm:$0xff] %v1005_v6  ;;  %v1013_v10 = vld [vmem:[%s12297_s19 + $0x150] sm:$0xff]  ;;  %v1015_v11 = vld [vmem:[%s12297_s19 + $0x158] sm:$0xff] }
  0x5e   : > { %1008 = vst [vmem:[%s12305_s20 + $0xb8] sm:$0xff] %v1007_v7  ;;  %1010 = vst [vmem:[%s12305_s20 + $0xc0] sm:$0xff] %v1009_v8  ;;  %v1017_v12 = vld [vmem:[%s12297_s19 + $0x160] sm:$0xff]  ;;  %v1019_v13 = vld [vmem:[%s12297_s19 + $0x168] sm:$0xff] }
  0x5f   : > { %1012 = vst [vmem:[%s12305_s20 + $0xc8] sm:$0xff] %v1011_v9  ;;  %1014 = vst [vmem:[%s12305_s20 + $0xd0] sm:$0xff] %v1013_v10  ;;  %v1021_v14 = vld [vmem:[%s12297_s19 + $0x170] sm:$0xff]  ;;  %v1023_v15 = vld [vmem:[%s12297_s19 + $0x178] sm:$0xff] }
  0x60   : > { %1016 = vst [vmem:[%s12305_s20 + $0xd8] sm:$0xff] %v1015_v11  ;;  %1018 = vst [vmem:[%s12305_s20 + $0xe0] sm:$0xff] %v1017_v12  ;;  %v1025_v16 = vld [vmem:[%s12297_s19 + $0x200] sm:$0xff]  ;;  %v1027_v17 = vld [vmem:[%s12297_s19 + $0x208] sm:$0xff] }
  0x61   : > { %1020 = vst [vmem:[%s12305_s20 + $0xe8] sm:$0xff] %v1019_v13  ;;  %1022 = vst [vmem:[%s12305_s20 + $0xf0] sm:$0xff] %v1021_v14  ;;  %v1029_v18 = vld [vmem:[%s12297_s19 + $0x210] sm:$0xff]  ;;  %v1031_v19 = vld [vmem:[%s12297_s19 + $0x218] sm:$0xff] }
  0x62   : > { %1024 = vst [vmem:[%s12305_s20 + $0xf8] sm:$0xff] %v1023_v15  ;;  %1026 = vst [vmem:[%s12305_s20 + $0x100] sm:$0xff] %v1025_v16  ;;  %v1033_v20 = vld [vmem:[%s12297_s19 + $0x220] sm:$0xff]  ;;  %v1035_v21 = vld [vmem:[%s12297_s19 + $0x228] sm:$0xff] }
  0x63   : > { %1028 = vst [vmem:[%s12305_s20 + $0x108] sm:$0xff] %v1027_v17  ;;  %1030 = vst [vmem:[%s12305_s20 + $0x110] sm:$0xff] %v1029_v18  ;;  %v1037_v22 = vld [vmem:[%s12297_s19 + $0x230] sm:$0xff]  ;;  %v1039_v23 = vld [vmem:[%s12297_s19 + $0x238] sm:$0xff] }
  0x64   : > { %1032 = vst [vmem:[%s12305_s20 + $0x118] sm:$0xff] %v1031_v19  ;;  %1034 = vst [vmem:[%s12305_s20 + $0x120] sm:$0xff] %v1033_v20  ;;  %v1041_v24 = vld [vmem:[%s12297_s19 + $0x240] sm:$0xff]  ;;  %v1043_v25 = vld [vmem:[%s12297_s19 + $0x248] sm:$0xff] }
  0x65   : > { %1036 = vst [vmem:[%s12305_s20 + $0x128] sm:$0xff] %v1035_v21  ;;  %1038 = vst [vmem:[%s12305_s20 + $0x130] sm:$0xff] %v1037_v22  ;;  %v1045_v26 = vld [vmem:[%s12297_s19 + $0x250] sm:$0xff]  ;;  %v1047_v27 = vld [vmem:[%s12297_s19 + $0x258] sm:$0xff] }
  0x66   : > { %1040 = vst [vmem:[%s12305_s20 + $0x138] sm:$0xff] %v1039_v23  ;;  %1042 = vst [vmem:[%s12305_s20 + $0x140] sm:$0xff] %v1041_v24  ;;  %v1049_v28 = vld [vmem:[%s12297_s19 + $0x260] sm:$0xff]  ;;  %v1051_v29 = vld [vmem:[%s12297_s19 + $0x268] sm:$0xff] }
  0x67   : > { %1044 = vst [vmem:[%s12305_s20 + $0x148] sm:$0xff] %v1043_v25  ;;  %1046 = vst [vmem:[%s12305_s20 + $0x150] sm:$0xff] %v1045_v26  ;;  %v1053_v30 = vld [vmem:[%s12297_s19 + $0x270] sm:$0xff]  ;;  %v1055_v31 = vld [vmem:[%s12297_s19 + $0x278] sm:$0xff] }
  0x68   : > { %1048 = vst [vmem:[%s12305_s20 + $0x158] sm:$0xff] %v1047_v27  ;;  %1050 = vst [vmem:[%s12305_s20 + $0x160] sm:$0xff] %v1049_v28  ;;  %v1057_v32 = vld [vmem:[%s12297_s19 + $0x300] sm:$0xff]  ;;  %v1059_v33 = vld [vmem:[%s12297_s19 + $0x308] sm:$0xff] }
  0x69   : > { %1052 = vst [vmem:[%s12305_s20 + $0x168] sm:$0xff] %v1051_v29  ;;  %1054 = vst [vmem:[%s12305_s20 + $0x170] sm:$0xff] %v1053_v30  ;;  %v1061_v34 = vld [vmem:[%s12297_s19 + $0x310] sm:$0xff]  ;;  %v1063_v35 = vld [vmem:[%s12297_s19 + $0x318] sm:$0xff] }
  0x6a   : > { %1056 = vst [vmem:[%s12305_s20 + $0x178] sm:$0xff] %v1055_v31  ;;  %1058 = vst [vmem:[%s12305_s20 + $0x180] sm:$0xff] %v1057_v32  ;;  %v1065_v36 = vld [vmem:[%s12297_s19 + $0x320] sm:$0xff]  ;;  %v1067_v37 = vld [vmem:[%s12297_s19 + $0x328] sm:$0xff] }
  0x6b   : > { %1060 = vst [vmem:[%s12305_s20 + $0x188] sm:$0xff] %v1059_v33  ;;  %1062 = vst [vmem:[%s12305_s20 + $0x190] sm:$0xff] %v1061_v34  ;;  %v1069_v38 = vld [vmem:[%s12297_s19 + $0x330] sm:$0xff]  ;;  %v1071_v39 = vld [vmem:[%s12297_s19 + $0x338] sm:$0xff] }
  0x6c   : > { %1064 = vst [vmem:[%s12305_s20 + $0x198] sm:$0xff] %v1063_v35  ;;  %1066 = vst [vmem:[%s12305_s20 + $0x1a0] sm:$0xff] %v1065_v36  ;;  %v1073_v40 = vld [vmem:[%s12297_s19 + $0x340] sm:$0xff]  ;;  %v1075_v41 = vld [vmem:[%s12297_s19 + $0x348] sm:$0xff] }
  0x6d   : > { %1068 = vst [vmem:[%s12305_s20 + $0x1a8] sm:$0xff] %v1067_v37  ;;  %1070 = vst [vmem:[%s12305_s20 + $0x1b0] sm:$0xff] %v1069_v38  ;;  %v1077_v42 = vld [vmem:[%s12297_s19 + $0x350] sm:$0xff]  ;;  %v1079_v43 = vld [vmem:[%s12297_s19 + $0x358] sm:$0xff] }
  0x6e   : > { %1072 = vst [vmem:[%s12305_s20 + $0x1b8] sm:$0xff] %v1071_v39  ;;  %1074 = vst [vmem:[%s12305_s20 + $0x1c0] sm:$0xff] %v1073_v40  ;;  %v1081_v44 = vld [vmem:[%s12297_s19 + $0x360] sm:$0xff]  ;;  %v1083_v45 = vld [vmem:[%s12297_s19 + $0x368] sm:$0xff] }
  0x6f   : > { %1076 = vst [vmem:[%s12305_s20 + $0x1c8] sm:$0xff] %v1075_v41  ;;  %1078 = vst [vmem:[%s12305_s20 + $0x1d0] sm:$0xff] %v1077_v42  ;;  %v1085_v46 = vld [vmem:[%s12297_s19 + $0x370] sm:$0xff]  ;;  %v1087_v47 = vld [vmem:[%s12297_s19 + $0x378] sm:$0xff] }
  0x70   : > { %1080 = vst [vmem:[%s12305_s20 + $0x1d8] sm:$0xff] %v1079_v43  ;;  %1082 = vst [vmem:[%s12305_s20 + $0x1e0] sm:$0xff] %v1081_v44  ;;  %v1089_v48 = vld [vmem:[%s12297_s19 + $0x400] sm:$0xff]  ;;  %v1091_v49 = vld [vmem:[%s12297_s19 + $0x408] sm:$0xff] }
  0x71   : > { %1084 = vst [vmem:[%s12305_s20 + $0x1e8] sm:$0xff] %v1083_v45  ;;  %1086 = vst [vmem:[%s12305_s20 + $0x1f0] sm:$0xff] %v1085_v46  ;;  %v1093_v50 = vld [vmem:[%s12297_s19 + $0x410] sm:$0xff]  ;;  %v1095_v51 = vld [vmem:[%s12297_s19 + $0x418] sm:$0xff] }
  0x72   : > { %1088 = vst [vmem:[%s12305_s20 + $0x1f8] sm:$0xff] %v1087_v47  ;;  %1090 = vst [vmem:[%s12305_s20 + $0x200] sm:$0xff] %v1089_v48  ;;  %v1097_v52 = vld [vmem:[%s12297_s19 + $0x420] sm:$0xff]  ;;  %v1099_v53 = vld [vmem:[%s12297_s19 + $0x428] sm:$0xff] }
  0x73   : > { %1092 = vst [vmem:[%s12305_s20 + $0x208] sm:$0xff] %v1091_v49  ;;  %1094 = vst [vmem:[%s12305_s20 + $0x210] sm:$0xff] %v1093_v50  ;;  %v1101_v54 = vld [vmem:[%s12297_s19 + $0x430] sm:$0xff]  ;;  %v1103_v55 = vld [vmem:[%s12297_s19 + $0x438] sm:$0xff] }
  0x74   : > { %1096 = vst [vmem:[%s12305_s20 + $0x218] sm:$0xff] %v1095_v51  ;;  %1098 = vst [vmem:[%s12305_s20 + $0x220] sm:$0xff] %v1097_v52  ;;  %v1105_v56 = vld [vmem:[%s12297_s19 + $0x440] sm:$0xff]  ;;  %v1107_v57 = vld [vmem:[%s12297_s19 + $0x448] sm:$0xff] }
  0x75   : > { %1100 = vst [vmem:[%s12305_s20 + $0x228] sm:$0xff] %v1099_v53  ;;  %1102 = vst [vmem:[%s12305_s20 + $0x230] sm:$0xff] %v1101_v54  ;;  %v1109_v58 = vld [vmem:[%s12297_s19 + $0x450] sm:$0xff]  ;;  %v1111_v59 = vld [vmem:[%s12297_s19 + $0x458] sm:$0xff] }
  0x76   : > { %1104 = vst [vmem:[%s12305_s20 + $0x238] sm:$0xff] %v1103_v55  ;;  %1106 = vst [vmem:[%s12305_s20 + $0x240] sm:$0xff] %v1105_v56  ;;  %v1113_v60 = vld [vmem:[%s12297_s19 + $0x460] sm:$0xff]  ;;  %v1115_v61 = vld [vmem:[%s12297_s19 + $0x468] sm:$0xff] }
  0x77   : > { %1108 = vst [vmem:[%s12305_s20 + $0x248] sm:$0xff] %v1107_v57  ;;  %1110 = vst [vmem:[%s12305_s20 + $0x250] sm:$0xff] %v1109_v58  ;;  %v1117_v62 = vld [vmem:[%s12297_s19 + $0x470] sm:$0xff]  ;;  %v1119_v63 = vld [vmem:[%s12297_s19 + $0x478] sm:$0xff] }
  0x78   : > { %1112 = vst [vmem:[%s12305_s20 + $0x258] sm:$0xff] %v1111_v59  ;;  %1114 = vst [vmem:[%s12305_s20 + $0x260] sm:$0xff] %v1113_v60  ;;  %v1121_v0 = vld [vmem:[%s12297_s19 + $0x500] sm:$0xff]  ;;  %v1123_v1 = vld [vmem:[%s12297_s19 + $0x508] sm:$0xff] }
  0x79   : > { %1116 = vst [vmem:[%s12305_s20 + $0x268] sm:$0xff] %v1115_v61  ;;  %1118 = vst [vmem:[%s12305_s20 + $0x270] sm:$0xff] %v1117_v62  ;;  %v1125_v2 = vld [vmem:[%s12297_s19 + $0x510] sm:$0xff]  ;;  %v1127_v3 = vld [vmem:[%s12297_s19 + $0x518] sm:$0xff] }
  0x7a   : > { %1120 = vst [vmem:[%s12305_s20 + $0x278] sm:$0xff] %v1119_v63  ;;  %1122 = vst [vmem:[%s12305_s20 + $0x280] sm:$0xff] %v1121_v0  ;;  %v1129_v4 = vld [vmem:[%s12297_s19 + $0x520] sm:$0xff]  ;;  %v1131_v5 = vld [vmem:[%s12297_s19 + $0x528] sm:$0xff] }
  0x7b   : > { %1124 = vst [vmem:[%s12305_s20 + $0x288] sm:$0xff] %v1123_v1  ;;  %1126 = vst [vmem:[%s12305_s20 + $0x290] sm:$0xff] %v1125_v2  ;;  %v1133_v6 = vld [vmem:[%s12297_s19 + $0x530] sm:$0xff]  ;;  %v1135_v7 = vld [vmem:[%s12297_s19 + $0x538] sm:$0xff] }
  0x7c   : > { %1128 = vst [vmem:[%s12305_s20 + $0x298] sm:$0xff] %v1127_v3  ;;  %1130 = vst [vmem:[%s12305_s20 + $0x2a0] sm:$0xff] %v1129_v4  ;;  %v1137_v8 = vld [vmem:[%s12297_s19 + $0x540] sm:$0xff]  ;;  %v1139_v9 = vld [vmem:[%s12297_s19 + $0x548] sm:$0xff] }
  0x7d   : > { %1132 = vst [vmem:[%s12305_s20 + $0x2a8] sm:$0xff] %v1131_v5  ;;  %1134 = vst [vmem:[%s12305_s20 + $0x2b0] sm:$0xff] %v1133_v6  ;;  %v1141_v10 = vld [vmem:[%s12297_s19 + $0x550] sm:$0xff]  ;;  %v1143_v11 = vld [vmem:[%s12297_s19 + $0x558] sm:$0xff] }
  0x7e   : > { %1136 = vst [vmem:[%s12305_s20 + $0x2b8] sm:$0xff] %v1135_v7  ;;  %1138 = vst [vmem:[%s12305_s20 + $0x2c0] sm:$0xff] %v1137_v8  ;;  %v1145_v12 = vld [vmem:[%s12297_s19 + $0x560] sm:$0xff]  ;;  %v1147_v13 = vld [vmem:[%s12297_s19 + $0x568] sm:$0xff] }
  0x7f   : > { %1140 = vst [vmem:[%s12305_s20 + $0x2c8] sm:$0xff] %v1139_v9  ;;  %1142 = vst [vmem:[%s12305_s20 + $0x2d0] sm:$0xff] %v1141_v10  ;;  %v1149_v14 = vld [vmem:[%s12297_s19 + $0x570] sm:$0xff]  ;;  %v1151_v15 = vld [vmem:[%s12297_s19 + $0x578] sm:$0xff] }
  0x80   : > { %1144 = vst [vmem:[%s12305_s20 + $0x2d8] sm:$0xff] %v1143_v11  ;;  %1146 = vst [vmem:[%s12305_s20 + $0x2e0] sm:$0xff] %v1145_v12  ;;  %v1153_v16 = vld [vmem:[%s12297_s19 + $0x600] sm:$0xff]  ;;  %v1155_v17 = vld [vmem:[%s12297_s19 + $0x608] sm:$0xff] }
  0x81   : > { %1148 = vst [vmem:[%s12305_s20 + $0x2e8] sm:$0xff] %v1147_v13  ;;  %1150 = vst [vmem:[%s12305_s20 + $0x2f0] sm:$0xff] %v1149_v14  ;;  %v1157_v18 = vld [vmem:[%s12297_s19 + $0x610] sm:$0xff]  ;;  %v1159_v19 = vld [vmem:[%s12297_s19 + $0x618] sm:$0xff] }
  0x82   : > { %1152 = vst [vmem:[%s12305_s20 + $0x2f8] sm:$0xff] %v1151_v15  ;;  %1154 = vst [vmem:[%s12305_s20 + $0x300] sm:$0xff] %v1153_v16  ;;  %v1161_v20 = vld [vmem:[%s12297_s19 + $0x620] sm:$0xff]  ;;  %v1163_v21 = vld [vmem:[%s12297_s19 + $0x628] sm:$0xff] }
  0x83   : > { %1156 = vst [vmem:[%s12305_s20 + $0x308] sm:$0xff] %v1155_v17  ;;  %1158 = vst [vmem:[%s12305_s20 + $0x310] sm:$0xff] %v1157_v18  ;;  %v1165_v22 = vld [vmem:[%s12297_s19 + $0x630] sm:$0xff]  ;;  %v1167_v23 = vld [vmem:[%s12297_s19 + $0x638] sm:$0xff] }
  0x84   : > { %1160 = vst [vmem:[%s12305_s20 + $0x318] sm:$0xff] %v1159_v19  ;;  %1162 = vst [vmem:[%s12305_s20 + $0x320] sm:$0xff] %v1161_v20  ;;  %v1169_v24 = vld [vmem:[%s12297_s19 + $0x640] sm:$0xff]  ;;  %v1171_v25 = vld [vmem:[%s12297_s19 + $0x648] sm:$0xff] }
  0x85   : > { %1164 = vst [vmem:[%s12305_s20 + $0x328] sm:$0xff] %v1163_v21  ;;  %1166 = vst [vmem:[%s12305_s20 + $0x330] sm:$0xff] %v1165_v22  ;;  %v1173_v26 = vld [vmem:[%s12297_s19 + $0x650] sm:$0xff]  ;;  %v1175_v27 = vld [vmem:[%s12297_s19 + $0x658] sm:$0xff] }
  0x86   : > { %1168 = vst [vmem:[%s12305_s20 + $0x338] sm:$0xff] %v1167_v23  ;;  %1170 = vst [vmem:[%s12305_s20 + $0x340] sm:$0xff] %v1169_v24  ;;  %v1177_v28 = vld [vmem:[%s12297_s19 + $0x660] sm:$0xff]  ;;  %v1179_v29 = vld [vmem:[%s12297_s19 + $0x668] sm:$0xff] }
  0x87   : > { %1172 = vst [vmem:[%s12305_s20 + $0x348] sm:$0xff] %v1171_v25  ;;  %1174 = vst [vmem:[%s12305_s20 + $0x350] sm:$0xff] %v1173_v26  ;;  %v1181_v30 = vld [vmem:[%s12297_s19 + $0x670] sm:$0xff]  ;;  %v1183_v31 = vld [vmem:[%s12297_s19 + $0x678] sm:$0xff] }
  0x88   : > { %1176 = vst [vmem:[%s12305_s20 + $0x358] sm:$0xff] %v1175_v27  ;;  %1178 = vst [vmem:[%s12305_s20 + $0x360] sm:$0xff] %v1177_v28 }
  0x89   : > { %1180 = vst [vmem:[%s12305_s20 + $0x368] sm:$0xff] %v1179_v29  ;;  %1182 = vst [vmem:[%s12305_s20 + $0x370] sm:$0xff] %v1181_v30 }
  0x8a   : > { %1184 = vst [vmem:[%s12305_s20 + $0x378] sm:$0xff] %v1183_v31 }
  0x8b PF: > { %p8859_p7 = scmp.ge.s32.totalorder %s11976_s23, 1  ;;  %p1189_p8 = scmp.lt.s32.totalorder %s11976_s23, 3 }
  0x8d   : > { %p1190_p9 = pnand %p8859_p7, %p1189_p8 }
  0x8e   : > { %v12530_v32 = vld [vmem:[%s17089_s3] sm:$0xff] (!%p1190_p9)   ;;  %v12535_v33 = vld [vmem:[%s17089_s3 + $0x8] sm:$0xff] (!%p1190_p9)   ;;  %s8861_s8 = sshll.u32 (!%p1190_p9), %s12031_s24, 4  ;;  %s1196_s12 = sand.u32 (!%p1190_p9), 1, %s11968_s21   ;;  %vm1346_vm0 = vcmask (!%p1190_p9), 261120   ;;  %v12685_v60 = vld [vmem:[%s17090_s4 + $0x10] sm:$0xff] (!%p1190_p9)  }
  0x8f   : > { %1193 = sbr.rel (%p1190_p9) target bundleno = 7611 (0x1dbb), region = 112  ;;  %10007 = vmatprep.subr.bf16.mxu0 (!%p1190_p9), %v12530_v32  ;;  %v12542_v34 = vld [vmem:[%s17090_s4] sm:$0xff] (!%p1190_p9)   ;;  %p1241_p10 = scmp.lt.s32.totalorder (!%p1190_p9), %s8861_s8, 31  ;;  %v10683_v35 = vld [vmem:[%s17090_s4 + $0x8] sm:$0xff] (!%p1190_p9)   ;;  %v12692_v61 = vld [vmem:[%s17090_s4 + $0x18] sm:$0xff] (!%p1190_p9)   ;;  %vm1552_vm1 = vcmask (!%p1190_p9), 523264  }
  0x90   : > { %10008 = vmatpush3.bf16.msra.mxu0 (!%p1190_p9), %v12530_v32  ;;  %10027 = vmatprep.subr.bf16.mxu1 (!%p1190_p9), %v12542_v34  ;;  %s8860_s13 = sshll.u32 (!%p1190_p9), %s1196_s12, 10  ;;  %s12698_s29 = smul.u32 (!%p1190_p9), 896, %s1196_s12 }
  0x91   : > { %10009 = vmatprep.subr.bf16.mxu0 (!%p1190_p9), %v12535_v33  ;;  %10028 = vmatpush3.bf16.msra.mxu1 (!%p1190_p9), %v12542_v34  ;;  %s12569_s18 = scalar_lea.vmem (!%p1190_p9), [#allocation4], %s8860_s13  ;;  %s11979_s27 = smov (!%p1190_p9), 96  }
  0x92   : > { %10029 = vmatprep.subr.bf16.mxu1 (!%p1190_p9), %v10683_v35  ;;  %s12701_s7 = scalar_lea.vmem (!%p1190_p9), [#allocation2], %s12698_s29  ;;  %s12898_s21 = scalar_lea.vmem (!%p1190_p9), [#allocation3], %s12698_s29 }
  0x93   : > { %v1373_v62 = vld [vmem:[%s12701_s7 + $0x10] sm:$0xff] (!%p1190_p9)  ;;  %v1374_v0 = vld [vmem:[%s12701_s7 + $0x18] sm:$0xff] (!%p1190_p9)  ;;  %v1371_v2 = vld [vmem:[%s12701_s7] sm:$0xff] (!%p1190_p9) }
  0x94   : > { %10010 = vmatpush3.bf16.msra.mxu0 (!%p1190_p9), %v12535_v33  ;;  %v1372_v3 = vld [vmem:[%s12701_s7 + $0x8] sm:$0xff] (!%p1190_p9)  ;;  %v1377_v12 = vld [vmem:[%s12701_s7 + $0x30] sm:$0xff] (!%p1190_p9)  ;;  %v1378_v14 = vld [vmem:[%s12701_s7 + $0x38] sm:$0xff] (!%p1190_p9) }
  0x95   : > { %10030 = vmatpush3.bf16.msra.mxu1 (!%p1190_p9), %v10683_v35  ;;  %v1375_v16 = vld [vmem:[%s12701_s7 + $0x20] sm:$0xff] (!%p1190_p9)  ;;  %v1376_v17 = vld [vmem:[%s12701_s7 + $0x28] sm:$0xff] (!%p1190_p9)  ;;  %v1381_v26 = vld [vmem:[%s12701_s7 + $0x50] sm:$0xff] (!%p1190_p9) }
  0x96   : > { %s17099_s8 = smov (!%p1241_p10, %s8861_s8), 31  ;;  %10031 = vmatprep.subr.bf16.mxu1 %v12685_v60  ;;  %v1382_v28 = vld [vmem:[%s12701_s7 + $0x58] sm:$0xff]  ;;  %v1379_v30 = vld [vmem:[%s12701_s7 + $0x40] sm:$0xff]  ;;  %v1380_v31 = vld [vmem:[%s12701_s7 + $0x48] sm:$0xff] }
  0x97   : > { %s8862_s14 = sshll.u32 %s17099_s8, 3  ;;  %s11978_s8 = smov 32  }
  0x98   : > { %s12558_s17 = scalar_lea.vmem %s17086_s0, %s8862_s14 }
  0x99   : > { %v12561_v36 = vld [vmem:[%s12558_s17] sm:$0xff]  ;;  %v12564_v37 = vld [vmem:[%s12558_s17 + $0x8] sm:$0xff]  ;;  %v12567_v38 = vld [vmem:[%s12558_s17 + $0x10] sm:$0xff]  ;;  %10032 = vmatpush3.bf16.msra.mxu1 %v12685_v60 }
  0x9a   : > { %1347 = vst.msk [vmem:[%s12569_s18] sm:$0xff] %vm1346_vm0, %v12561_v36  ;;  %1348 = vst.msk [vmem:[%s12569_s18 + $0x8] sm:$0xff] %vm1346_vm0, %v12564_v37  ;;  %v1363_v39 = vpack.c.bf16 %v12564_v37, %v12561_v36  ;;  %v12580_v40 = vld [vmem:[%s12558_s17 + $0x18] sm:$0xff]  ;;  %v12586_v41 = vld [vmem:[%s12558_s17 + $0x20] sm:$0xff]  ;;  %10033 = vmatprep.subr.bf16.mxu1 %v12692_v61 }
  0x9b   : > { %1349 = vst.msk [vmem:[%s12569_s18 + $0x10] sm:$0xff] %vm1346_vm0, %v12567_v38  ;;  %v12589_v42 = vld [vmem:[%s12558_s17 + $0x28] sm:$0xff]  ;;  %1350 = vst.msk [vmem:[%s12569_s18 + $0x18] sm:$0xff] %vm1346_vm0, %v12580_v40  ;;  %v1364_v43 = vpack.c.bf16 %v12580_v40, %v12567_v38  ;;  %v12605_v45 = vld [vmem:[%s12558_s17 + $0x30] sm:$0xff] }
  0x9c   : > { %1351 = vst.msk [vmem:[%s12569_s18 + $0x20] sm:$0xff] %vm1346_vm0, %v12586_v41  ;;  %1352 = vst.msk [vmem:[%s12569_s18 + $0x28] sm:$0xff] %vm1346_vm0, %v12589_v42  ;;  %v1365_v44 = vpack.c.bf16 %v12589_v42, %v12586_v41  ;;  %v12608_v46 = vld [vmem:[%s12558_s17 + $0x38] sm:$0xff]  ;;  %v12611_v47 = vld [vmem:[%s12558_s17 + $0x40] sm:$0xff]  ;;  %10011 = vmatprep.mubr.msk.bf16.mxu0 %vm1346_vm0, %v1363_v39 }
  0x9d   : > { %1353 = vst.msk [vmem:[%s12569_s18 + $0x30] sm:$0xff] %vm1346_vm0, %v12605_v45  ;;  %1354 = vst.msk [vmem:[%s12569_s18 + $0x38] sm:$0xff] %vm1346_vm0, %v12608_v46  ;;  %v12621_v48 = vld [vmem:[%s12558_s17 + $0x48] sm:$0xff]  ;;  %v12627_v49 = vld [vmem:[%s12558_s17 + $0x50] sm:$0xff]  ;;  %10012 = vmatmul.mubr.msk.bf16.vlgmr.msra.gmra.mrb[0].mxu0 %vm1346_vm0, %v1364_v43  ;;  %v1366_v55 = vpack.c.bf16 %v12608_v46, %v12605_v45  ;;  %10034 = vmatpush3.bf16.msra.mxu1 %v12692_v61 }
  0x9e   : > { %1355 = vst.msk [vmem:[%s12569_s18 + $0x40] sm:$0xff] %vm1346_vm0, %v12611_v47  ;;  %v12630_v50 = vld [vmem:[%s12558_s17 + $0x58] sm:$0xff]  ;;  %1356 = vst.msk [vmem:[%s12569_s18 + $0x48] sm:$0xff] %vm1346_vm0, %v12621_v48  ;;  %v12643_v51 = vld [vmem:[%s12558_s17 + $0x60] sm:$0xff]  ;;  %10015 = vmatprep.mubr.msk.bf16.mxu0 %vm1346_vm0, %v1365_v44  ;;  %v1367_v56 = vpack.c.bf16 %v12621_v48, %v12611_v47 }
  0x9f   : > { %1357 = vst.msk [vmem:[%s12569_s18 + $0x50] sm:$0xff] %vm1346_vm0, %v12627_v49  ;;  %1358 = vst.msk [vmem:[%s12569_s18 + $0x58] sm:$0xff] %vm1346_vm0, %v12630_v50  ;;  %v12646_v52 = vld [vmem:[%s12558_s17 + $0x68] sm:$0xff]  ;;  %v12649_v53 = vld [vmem:[%s12558_s17 + $0x70] sm:$0xff]  ;;  %v1368_v57 = vpack.c.bf16 %v12630_v50, %v12627_v49 }
  0xa0   : > { %1359 = vst.msk [vmem:[%s12569_s18 + $0x60] sm:$0xff] %vm1346_vm0, %v12643_v51  ;;  %1360 = vst.msk [vmem:[%s12569_s18 + $0x68] sm:$0xff] %vm1346_vm0, %v12646_v52  ;;  %v12659_v54 = vld [vmem:[%s12558_s17 + $0x78] sm:$0xff]  ;;  %v1369_v58 = vpack.c.bf16 %v12646_v52, %v12643_v51 }
  0xa1   : > { %1361 = vst.msk [vmem:[%s12569_s18 + $0x70] sm:$0xff] %vm1346_vm0, %v12649_v53  ;;  %1362 = vst.msk [vmem:[%s12569_s18 + $0x78] sm:$0xff] %vm1346_vm0, %v12659_v54  ;;  %v1370_v59 = vpack.c.bf16 %v12659_v54, %v12649_v53 }
  0xa5   : > { %10016 = vmatmul.mubr.msk.bf16.gmra.mrb[4].mxu0 %vm1346_vm0, %v1366_v55 }
  0xa6   : > { %10019 = vmatprep.mubr.msk.bf16.mxu0 %vm1346_vm0, %v1367_v56 }
  0xad   : > { %10020 = vmatmul.mubr.msk.bf16.gmra.mrb[8].mxu0 %vm1346_vm0, %v1368_v57 }
  0xae   : > { %10023 = vmatprep.mubr.msk.bf16.mxu0 %vm1346_vm0, %v1369_v58 }
  0xb5   : > { %10024 = vmatmul.mubr.msk.bf16.gmra.mrb[12].mxu0 %vm1346_vm0, %v1370_v59  ;;  %v1385_v59 = vld [vmem:[%s12701_s7 + $0x70] sm:$0xff] }
 0x170   : > { %v10013_v63 = vpop.f32.mrb[0].mxu0 }
 0x171   : > { %v1457_v1 = vpop.f32.mrb[1].mxu0  ;;  %v1466_v5 = vadd.f32 %v10013_v63, %v1373_v62  ;;  %v1386_v63 = vld [vmem:[%s12701_s7 + $0x78] sm:$0xff] }
 0x172   : > { %v10014_v4 = vpop.f32.mrb[2].mxu0  ;;  %v1458_v8 = vadd.f32 %v1457_v1, %v1371_v2  ;;  %v1383_v1 = vld [vmem:[%s12701_s7 + $0x60] sm:$0xff]  ;;  %v1384_v2 = vld [vmem:[%s12701_s7 + $0x68] sm:$0xff] }
 0x173   : > { %v1469_v6 = vadd.f32 %v10014_v4, %v1374_v0  ;;  %v1460_v7 = vpop.f32.mrb[3].mxu0 }
 0x174   : > { %v1461_v9 = vadd.f32 %v1460_v7, %v1372_v3 }
 0x175   : > { %v1521_v10 = vpack.c.bf16 %v1469_v6, %v1466_v5 }
 0x176   : > { %v1520_v11 = vpack.c.bf16 %v1461_v9, %v1458_v8 }
 0x178   : > { %v10017_v13 = vpop.f32.mrb[4].mxu0  ;;  %10035 = vmatprep.mubr.msk.bf16.mxu1 %vm1552_vm1, %v1520_v11  ;;  %v12730_v11 = vld [vmem:[%s17090_s4 + $0x20] sm:$0xff]  }
 0x179   : > { %v1473_v15 = vpop.f32.mrb[5].mxu0  ;;  %10036 = vmatmul.mubr.msk.bf16.vlgmr.msra.gmra.mrb[0].mxu1 %vm1552_vm1, %v1521_v10  ;;  %v1482_v19 = vadd.f32 %v10017_v13, %v1377_v12  ;;  %10051 = vmatprep.subr.bf16.mxu0 %v12730_v11  ;;  %v10687_v12 = vld [vmem:[%s17090_s4 + $0x28] sm:$0xff]   ;;  %v10688_v13 = vld [vmem:[%s17090_s4 + $0x30] sm:$0xff]  }
 0x17a   : > { %v10018_v18 = vpop.f32.mrb[6].mxu0  ;;  %v1474_v22 = vadd.f32 %v1473_v15, %v1375_v16  ;;  %10052 = vmatpush3.bf16.msra.mxu0 %v12730_v11  ;;  %v1282_v15 = vld [vmem:[%s17091_s5 + $0x10] sm:$0xff]  ;;  %v1280_v16 = vld [vmem:[%s17091_s5] sm:$0xff] }
 0x17b   : > { %v1485_v20 = vadd.f32 %v10018_v18, %v1378_v14  ;;  %v1476_v21 = vpop.f32.mrb[7].mxu0  ;;  %10053 = vmatprep.subr.bf16.mxu0 %v10687_v12  ;;  %v10689_v14 = vld [vmem:[%s17090_s4 + $0x38] sm:$0xff]  }
 0x17c   : > { %v1477_v23 = vadd.f32 %v1476_v21, %v1376_v17  ;;  %v1283_v18 = vld [vmem:[%s17091_s5 + $0x18] sm:$0xff]  ;;  %v1281_v21 = vld [vmem:[%s17091_s5 + $0x8] sm:$0xff] }
 0x17d   : > { %v1523_v24 = vpack.c.bf16 %v1485_v20, %v1482_v19 }
 0x17e   : > { %v1522_v25 = vpack.c.bf16 %v1477_v23, %v1474_v22  ;;  %10054 = vmatpush3.bf16.msra.mxu0 %v10687_v12 }
 0x17f   : > { %10055 = vmatprep.subr.bf16.mxu0 %v10688_v13 }
 0x180   : > { %v10021_v27 = vpop.f32.mrb[8].mxu0  ;;  %10039 = vmatprep.mubr.msk.bf16.mxu1 %vm1552_vm1, %v1522_v25 }
 0x181   : > { %v1489_v29 = vpop.f32.mrb[9].mxu0  ;;  %10040 = vmatmul.mubr.msk.bf16.gmra.mrb[4].mxu1 %vm1552_vm1, %v1523_v24  ;;  %v1498_v39 = vadd.f32 %v10021_v27, %v1381_v26 }
 0x182   : > { %v10022_v35 = vpop.f32.mrb[10].mxu0  ;;  %v1490_v55 = vadd.f32 %v1489_v29, %v1379_v30  ;;  %10056 = vmatpush3.bf16.msra.mxu0 %v10688_v13 }
 0x183   : > { %v1501_v43 = vadd.f32 %v10022_v35, %v1382_v28  ;;  %v1492_v44 = vpop.f32.mrb[11].mxu0  ;;  %10057 = vmatprep.subr.bf16.mxu0 %v10689_v14  ;;  %v1284_v35 = vld [vmem:[%s17091_s5 + $0x20] sm:$0xff] }
 0x184   : > { %v1493_v56 = vadd.f32 %v1492_v44, %v1380_v31  ;;  %v1286_v31 = vld [vmem:[%s17091_s5 + $0x30] sm:$0xff] }
 0x185   : > { %v1525_v57 = vpack.c.bf16 %v1501_v43, %v1498_v39  ;;  %v1287_v43 = vld [vmem:[%s17091_s5 + $0x38] sm:$0xff] }
 0x186   : > { %v1524_v58 = vpack.c.bf16 %v1493_v56, %v1490_v55  ;;  %10058 = vmatpush3.bf16.msra.mxu0 %v10689_v14  ;;  %v1285_v56 = vld [vmem:[%s17091_s5 + $0x28] sm:$0xff] }
 0x187   : > { %10099 = vmatprep.subr.bf16.mxu0 %v12530_v32 }
 0x188   : > { %v10025_v62 = vpop.f32.mrb[12].mxu0  ;;  %10043 = vmatprep.mubr.msk.bf16.mxu1 %vm1552_vm1, %v1524_v58 }
 0x189   : > { %v1505_v0 = vpop.f32.mrb[13].mxu0  ;;  %10044 = vmatmul.mubr.msk.bf16.gmra.mrb[8].mxu1 %vm1552_vm1, %v1525_v57  ;;  %v1514_v4 = vadd.f32 %v10025_v62, %v1385_v59 }
 0x18a   : > { %v10026_v3 = vpop.f32.mrb[14].mxu0  ;;  %v1506_v7 = vadd.f32 %v1505_v0, %v1383_v1 }
 0x18b   : > { %v1517_v5 = vadd.f32 %v10026_v3, %v1386_v63  ;;  %v1508_v6 = vpop.f32.mrb[15].mxu0 }
 0x18c   : > { %v1509_v8 = vadd.f32 %v1508_v6, %v1384_v2  ;;  %v1288_v6 = vld [vmem:[%s17091_s5 + $0x40] sm:$0xff] }
 0x18d   : > { %v1527_v9 = vpack.c.bf16 %v1517_v5, %v1514_v4  ;;  %v1290_v4 = vld [vmem:[%s17091_s5 + $0x50] sm:$0xff] }
 0x18e   : > { %v1526_v10 = vpack.c.bf16 %v1509_v8, %v1506_v7 }
 0x190   : > { %10047 = vmatprep.mubr.msk.bf16.mxu1 %vm1552_vm1, %v1526_v10  ;;  %v1291_v10 = vld [vmem:[%s17091_s5 + $0x58] sm:$0xff] }
 0x191   : > { %10048 = vmatmul.mubr.msk.bf16.gmra.mrb[12].mxu1 %vm1552_vm1, %v1527_v9 }
 0x24c   : > { %v10037_v17 = vpop.f32.mrb[0].mxu1 }
 0x24d   : > { %v12753_v19 = vadd.f32 %v10037_v17, %v1282_v15  ;;  %v1611_v20 = vpop.f32.mrb[1].mxu1 }
 0x24e   : > { %v12758_v22 = vadd.f32 %v1611_v20, %v1280_v16  ;;  %v10038_v23 = vpop.f32.mrb[2].mxu1  ;;  %v1289_v16 = vld [vmem:[%s17091_s5 + $0x48] sm:$0xff] }
 0x24f   : > { %v8935_v24 = vmul.f32 -1.442695, %v12753_v19  ;;  %v12761_v25 = vadd.f32 %v10038_v23, %v1283_v18  ;;  %v1614_v26 = vpop.f32.mrb[3].mxu1 }
 0x250   : > { %v8933_v27 = vmul.f32 -1.442695, %v12758_v22  ;;  %v12764_v28 = vadd.f32 %v1614_v26, %v1281_v21 }
 0x251   : > { %10694 = vpow2.f32 %v8935_v24  ;;  %v8936_v29 = vmul.f32 -1.442695, %v12761_v25 }
 0x252   : > { %10696 = vpow2.f32 %v8933_v27  ;;  %v8934_v30 = vmul.f32 -1.442695, %v12764_v28 }
 0x253   : > { %10698 = vpow2.f32 %v8936_v29 }
 0x254   : > { %10700 = vpow2.f32 %v8934_v30  ;;  %v10041_v39 = vpop.f32.mrb[4].mxu1 }
 0x255   : > { %v12777_v44 = vadd.f32 %v10041_v39, %v1286_v31  ;;  %v1627_v55 = vpop.f32.mrb[5].mxu1  ;;  %v1294_v39 = vld [vmem:[%s17091_s5 + $0x70] sm:$0xff] }
 0x256   : > { %v12782_v57 = vadd.f32 %v1627_v55, %v1284_v35  ;;  %v10042_v58 = vpop.f32.mrb[6].mxu1  ;;  %v1292_v55 = vld [vmem:[%s17091_s5 + $0x60] sm:$0xff] }
 0x257   : > { %v8939_v59 = vmul.f32 -1.442695, %v12777_v44  ;;  %v12785_v62 = vadd.f32 %v10042_v58, %v1287_v43  ;;  %v1630_v63 = vpop.f32.mrb[7].mxu1 }
 0x258   : > { %v8937_v0 = vmul.f32 -1.442695, %v12782_v57  ;;  %v12788_v1 = vadd.f32 %v1630_v63, %v1285_v56  ;;  %v1295_v63 = vld [vmem:[%s17091_s5 + $0x78] sm:$0xff] }
 0x259   : > { %10702 = vpow2.f32 %v8939_v59  ;;  %v8940_v2 = vmul.f32 -1.442695, %v12785_v62 }
 0x25a   : > { %10704 = vpow2.f32 %v8937_v0  ;;  %v8938_v3 = vmul.f32 -1.442695, %v12788_v1 }
 0x25b   : > { %v10695_v5 = vpop.eup %10694  ;;  %10706 = vpow2.f32 %v8940_v2 }
 0x25c   : > { %v10697_v7 = vpop.eup %10696  ;;  %v1724_v8 = vadd.f32 1.0, %v10695_v5  ;;  %10708 = vpow2.f32 %v8938_v3  ;;  %v10045_v9 = vpop.f32.mrb[8].mxu1  ;;  %v1293_v5 = vld [vmem:[%s17091_s5 + $0x68] sm:$0xff] }
 0x25d   : > { %v10699_v12 = vpop.eup %10698  ;;  %v1722_v13 = vadd.f32 1.0, %v10697_v7  ;;  %v12801_v14 = vadd.f32 %v10045_v9, %v1290_v4  ;;  %v1643_v15 = vpop.f32.mrb[9].mxu1 }
 0x25e   : > { %v10701_v17 = vpop.eup %10700  ;;  %10710 = vrcp.f32 %v1724_v8  ;;  %v1725_v18 = vadd.f32 1.0, %v10699_v12  ;;  %v12806_v20 = vadd.f32 %v1643_v15, %v1288_v6  ;;  %v10046_v21 = vpop.f32.mrb[10].mxu1 }
 0x25f   : > { %10712 = vrcp.f32 %v1722_v13  ;;  %v1723_v23 = vadd.f32 1.0, %v10701_v17  ;;  %v8943_v24 = vmul.f32 -1.442695, %v12801_v14  ;;  %v12809_v26 = vadd.f32 %v10046_v21, %v1291_v10  ;;  %v1646_v27 = vpop.f32.mrb[11].mxu1 }
 0x260   : > { %10714 = vrcp.f32 %v1725_v18  ;;  %v8941_v29 = vmul.f32 -1.442695, %v12806_v20  ;;  %v12812_v30 = vadd.f32 %v1646_v27, %v1289_v16 }
 0x261   : > { %10716 = vrcp.f32 %v1723_v23  ;;  %v8944_v31 = vmul.f32 -1.442695, %v12809_v26 }
 0x262   : > { %10718 = vpow2.f32 %v8943_v24  ;;  %v8942_v35 = vmul.f32 -1.442695, %v12812_v30 }
 0x263   : > { %v10703_v43 = vpop.eup %10702  ;;  %10720 = vpow2.f32 %v8941_v29 }
 0x264   : > { %v10705_v56 = vpop.eup %10704  ;;  %v1728_v58 = vadd.f32 1.0, %v10703_v43  ;;  %10722 = vpow2.f32 %v8944_v31  ;;  %v10049_v59 = vpop.f32.mrb[12].mxu1 }
 0x265   : > { %v10707_v0 = vpop.eup %10706  ;;  %v1726_v2 = vadd.f32 1.0, %v10705_v56  ;;  %10724 = vpow2.f32 %v8942_v35  ;;  %v12825_v3 = vadd.f32 %v10049_v59, %v1294_v39  ;;  %v1659_v4 = vpop.f32.mrb[13].mxu1 }
 0x266   : > { %v10709_v6 = vpop.eup %10708  ;;  %10726 = vrcp.f32 %v1728_v58  ;;  %v1729_v7 = vadd.f32 1.0, %v10707_v0  ;;  %v12830_v8 = vadd.f32 %v1659_v4, %v1292_v55  ;;  %v10050_v9 = vpop.f32.mrb[14].mxu1 }
 0x267   : > { %10728 = vrcp.f32 %v1726_v2  ;;  %v1727_v10 = vadd.f32 1.0, %v10709_v6  ;;  %v8947_v12 = vmul.f32 -1.442695, %v12825_v3  ;;  %v12833_v13 = vadd.f32 %v10050_v9, %v1295_v63  ;;  %v1662_v15 = vpop.f32.mrb[15].mxu1 }
 0x268   : > { %v10711_v16 = vpop.eup %10710  ;;  %10730 = vrcp.f32 %v1729_v7  ;;  %v8945_v17 = vmul.f32 -1.442695, %v12830_v8  ;;  %v12836_v18 = vadd.f32 %v1662_v15, %v1293_v5 }
 0x269   : > { %v10713_v21 = vpop.eup %10712  ;;  %10732 = vrcp.f32 %v1727_v10  ;;  %v8948_v23 = vmul.f32 -1.442695, %v12833_v13  ;;  %v1772_v31 = vmul.f32 %v10711_v16, %v12753_v19 }
 0x26a   : > { %v10715_v24 = vpop.eup %10714  ;;  %10734 = vpow2.f32 %v8947_v12  ;;  %v8946_v27 = vmul.f32 -1.442695, %v12836_v18  ;;  %v1770_v43 = vmul.f32 %v10713_v21, %v12758_v22 }
 0x26b   : > { %v10717_v29 = vpop.eup %10716  ;;  %v1773_v35 = vmul.f32 %v10715_v24, %v12761_v25  ;;  %10736 = vpow2.f32 %v8945_v17 }
 0x26c   : > { %v10719_v39 = vpop.eup %10718  ;;  %v1771_v55 = vmul.f32 %v10717_v29, %v12764_v28  ;;  %10738 = vpow2.f32 %v8948_v23 }
 0x26d   : > { %v10721_v56 = vpop.eup %10720  ;;  %v1787_v58 = vpack.c.bf16 %v1773_v35, %v1772_v31  ;;  %v1732_v59 = vadd.f32 1.0, %v10719_v39  ;;  %10740 = vpow2.f32 %v8946_v27 }
 0x26e   : > { %v10723_v63 = vpop.eup %10722  ;;  %v1786_v0 = vpack.c.bf16 %v1771_v55, %v1770_v43  ;;  %v1730_v2 = vadd.f32 1.0, %v10721_v56 }
 0x26f   : > { %v10725_v4 = vpop.eup %10724  ;;  %10742 = vrcp.f32 %v1732_v59  ;;  %v1733_v5 = vadd.f32 1.0, %v10723_v63 }
 0x270   : > { %v10727_v19 = vpop.eup %10726  ;;  %10744 = vrcp.f32 %v1730_v2  ;;  %v1731_v25 = vadd.f32 1.0, %v10725_v4  ;;  %10059 = vmatprep.mubr.msk.bf16.mxu0 %vm1552_vm1, %v1786_v0  ;;  %v12871_v4 = vld [vmem:[%s17090_s4 + $0x40] sm:$0xff]  }
 0x271   : > { %v10729_v6 = vpop.eup %10728  ;;  %10746 = vrcp.f32 %v1733_v5  ;;  %10060 = vmatmul.mubr.msk.bf16.vlgmr.msra.gmra.mrb[16].mxu0 %vm1552_vm1, %v1787_v58  ;;  %v1776_v7 = vmul.f32 %v10727_v19, %v12777_v44  ;;  %10075 = vmatprep.subr.bf16.mxu1 %v12871_v4  ;;  %v2222_v5 = vld [vmem:[%s12898_s21 + $0x10] sm:$0xff]  ;;  %v2223_v19 = vld [vmem:[%s12898_s21 + $0x18] sm:$0xff] }
 0x272   : > { %v10731_v22 = vpop.eup %10730  ;;  %10748 = vrcp.f32 %v1731_v25  ;;  %10100 = vmatpush3.bf16.msra.mxu0 %v12530_v32  ;;  %v1774_v12 = vmul.f32 %v10729_v6, %v12782_v57  ;;  %10076 = vmatpush3.bf16.msra.mxu1 %v12871_v4  ;;  %v2224_v25 = vld [vmem:[%s12898_s21 + $0x20] sm:$0xff]  ;;  %v2225_v6 = vld [vmem:[%s12898_s21 + $0x28] sm:$0xff] }
 0x273   : > { %v10733_v28 = vpop.eup %10732  ;;  %v1777_v9 = vmul.f32 %v10731_v22, %v12785_v62  ;;  %10101 = vmatprep.subr.bf16.mxu0 %v12535_v33  ;;  %2256 = vrot.lane.b32.xlu1 %v2222_v5, %s11978_s8  ;;  %v2226_v22 = vld [vmem:[%s12898_s21 + $0x30] sm:$0xff] }
 0x274   : > { %v10735_v10 = vpop.eup %10734  ;;  %v1775_v15 = vmul.f32 %v10733_v28, %v12788_v1  ;;  %v2227_v28 = vld [vmem:[%s12898_s21 + $0x38] sm:$0xff] }
 0x275   : > { %v10737_v16 = vpop.eup %10736  ;;  %v1789_v17 = vpack.c.bf16 %v1777_v9, %v1776_v7  ;;  %v1736_v21 = vadd.f32 1.0, %v10735_v10  ;;  %v2228_v7 = vld [vmem:[%s12898_s21 + $0x40] sm:$0xff]  ;;  %v2229_v9 = vld [vmem:[%s12898_s21 + $0x48] sm:$0xff]  ;;  %v2230_v10 = vld [vmem:[%s12898_s21 + $0x50] sm:$0xff] }
 0x276   : > { %v10739_v23 = vpop.eup %10738  ;;  %v1788_v24 = vpack.c.bf16 %v1775_v15, %v1774_v12  ;;  %v1734_v27 = vadd.f32 1.0, %v10737_v16  ;;  %10102 = vmatpush3.bf16.msra.mxu0 %v12535_v33  ;;  %v2231_v12 = vld [vmem:[%s12898_s21 + $0x58] sm:$0xff]  ;;  %v2232_v15 = vld [vmem:[%s12898_s21 + $0x60] sm:$0xff]  ;;  %v2233_v16 = vld [vmem:[%s12898_s21 + $0x68] sm:$0xff] }
 0x277   : > { %v10741_v32 = vpop.eup %10740  ;;  %10750 = vrcp.f32 %v1736_v21  ;;  %v1737_v44 = vadd.f32 1.0, %v10739_v23  ;;  %10143 = vmatprep.subr.bf16.mxu0 %v12730_v11  ;;  %2258 = vrot.lane.b32.xlu1 %v2223_v19, %s11978_s8  ;;  %v2235_v21 = vld [vmem:[%s12898_s21 + $0x78] sm:$0xff]  ;;  %v8881_v23 = vld [vmem:[%s17091_s5 + $0x90] sm:$0xff] }
 0x278   : > { %10752 = vrcp.f32 %v1734_v27  ;;  %v1735_v62 = vadd.f32 1.0, %v10741_v32  ;;  %10063 = vmatprep.mubr.msk.bf16.mxu0 %vm1552_vm1, %v1788_v24  ;;  %v8879_v24 = vld [vmem:[%s17091_s5 + $0x80] sm:$0xff]  ;;  %v8882_v32 = vld [vmem:[%s17091_s5 + $0x98] sm:$0xff] }
 0x279   : > { %v10743_v57 = vpop.eup %10742  ;;  %10754 = vrcp.f32 %v1737_v44  ;;  %10064 = vmatmul.mubr.msk.bf16.gmra.mrb[20].mxu0 %vm1552_vm1, %v1789_v17  ;;  %v2234_v17 = vld [vmem:[%s12898_s21 + $0x70] sm:$0xff] }
 0x27a   : > { %v10745_v1 = vpop.eup %10744  ;;  %10756 = vrcp.f32 %v1735_v62  ;;  %v1780_v35 = vmul.f32 %v10743_v57, %v12801_v14  ;;  %v8880_v57 = vld [vmem:[%s17091_s5 + $0x88] sm:$0xff] }
 0x27b   : > { %v10747_v29 = vpop.eup %10746  ;;  %v1778_v39 = vmul.f32 %v10745_v1, %v12806_v20  ;;  %2262 = vrot.lane.b32.xlu1 %v2225_v6, %s11978_s8 }
 0x27c   : > { %v10749_v31 = vpop.eup %10748  ;;  %v1781_v33 = vmul.f32 %v10747_v29, %v12809_v26 }
 0x27d   : > { %v1779_v11 = vmul.f32 %v10749_v31, %v12812_v30 }
 0x27e   : > { %v1791_v43 = vpack.c.bf16 %v1781_v33, %v1780_v35 }
 0x27f   : > { %v1790_v55 = vpack.c.bf16 %v1779_v11, %v1778_v39  ;;  %2266 = vrot.lane.b32.xlu1 %v2227_v28, %s11978_s8  ;;  %v8889_v28 = vld [vmem:[%s17091_s5 + $0xd0] sm:$0xff] }
 0x281   : > { %v10751_v56 = vpop.eup %10750  ;;  %10067 = vmatprep.mubr.msk.bf16.mxu0 %vm1552_vm1, %v1790_v55 }
 0x282   : > { %v10753_v58 = vpop.eup %10752  ;;  %10068 = vmatmul.mubr.msk.bf16.gmra.mrb[24].mxu0 %vm1552_vm1, %v1791_v43  ;;  %v1784_v0 = vmul.f32 %v10751_v56, %v12825_v3  ;;  %v12878_v3 = vld [vmem:[%s17090_s4 + $0x48] sm:$0xff]   ;;  %v8885_v56 = vld [vmem:[%s17091_s5 + $0xb0] sm:$0xff] }
 0x283   : > { %v10755_v59 = vpop.eup %10754  ;;  %v1782_v26 = vmul.f32 %v10753_v58, %v12830_v8  ;;  %10077 = vmatprep.subr.bf16.mxu1 %v12878_v3  ;;  %v12885_v8 = vld [vmem:[%s17090_s4 + $0x50] sm:$0xff]   ;;  %2270 = vrot.lane.b32.xlu1 %v2229_v9, %s11978_s8  ;;  %v8883_v58 = vld [vmem:[%s17091_s5 + $0xa0] sm:$0xff] }
 0x284   : > { %v10757_v63 = vpop.eup %10756  ;;  %v1785_v14 = vmul.f32 %v10755_v59, %v12833_v13  ;;  %10078 = vmatpush3.bf16.msra.mxu1 %v12878_v3  ;;  %v12892_v13 = vld [vmem:[%s17090_s4 + $0x58] sm:$0xff]  }
 0x285   : > { %v1783_v20 = vmul.f32 %v10757_v63, %v12836_v18  ;;  %10079 = vmatprep.subr.bf16.mxu1 %v12885_v8  ;;  %v2220_v18 = vld [vmem:[%s12898_s21] sm:$0xff]  ;;  %v8886_v63 = vld [vmem:[%s17091_s5 + $0xb8] sm:$0xff] }
 0x286   : > { %v1793_v2 = vpack.c.bf16 %v1785_v14, %v1784_v0  ;;  %2252 = vrot.lane.b32.xlu0 %v2220_v18, %s11978_s8 }
 0x287   : > { %v1792_v30 = vpack.c.bf16 %v1783_v20, %v1782_v26  ;;  %2274 = vrot.lane.b32.xlu1 %v2231_v12, %s11978_s8  ;;  %v8884_v26 = vld [vmem:[%s17091_s5 + $0xa8] sm:$0xff] }
 0x288   : > { %10080 = vmatpush3.bf16.msra.mxu1 %v12885_v8 }
 0x289   : > { %10071 = vmatprep.mubr.msk.bf16.mxu0 %vm1552_vm1, %v1792_v30  ;;  %10081 = vmatprep.subr.bf16.mxu1 %v12892_v13 }
 0x28a   : > { %10072 = vmatmul.mubr.msk.bf16.gmra.mrb[28].mxu0 %vm1552_vm1, %v1793_v2 }
 0x28b   : > { %2278 = vrot.lane.b32.xlu1 %v2233_v16, %s11978_s8 }
 0x28c   : > { %10082 = vmatpush3.bf16.msra.mxu1 %v12892_v13 }
 0x28d   : > { %10119 = vmatprep.subr.bf16.mxu1 %v12542_v34  ;;  %v2221_v34 = vld [vmem:[%s12898_s21 + $0x8] sm:$0xff] }
 0x28e   : > { %2254 = vrot.lane.b32.xlu0 %v2221_v34, %s11978_s8 }
 0x28f   : > { %2282 = vrot.lane.b32.xlu1 %v2235_v21, %s11978_s8 }
 0x292   : > { %2260 = vrot.lane.b32.xlu0 %v2224_v25, %s11978_s8 }
 0x296   : > { %2264 = vrot.lane.b32.xlu0 %v2226_v22, %s11978_s8 }
 0x29a   : > { %2268 = vrot.lane.b32.xlu0 %v2228_v7, %s11978_s8 }
 0x29e   : > { %2272 = vrot.lane.b32.xlu0 %v2230_v10, %s11978_s8  ;;  %v8887_v10 = vld [vmem:[%s17091_s5 + $0xc0] sm:$0xff] }
 0x2a2   : > { %2276 = vrot.lane.b32.xlu0 %v2232_v15, %s11978_s8 }
 0x2a6   : > { %2280 = vrot.lane.b32.xlu0 %v2234_v17, %s11978_s8  ;;  %v8890_v17 = vld [vmem:[%s17091_s5 + $0xd8] sm:$0xff] }
 0x344   : > { %v10061_v27 = vpop.f32.mrb[16].mxu0 }
 0x345   : > { %v12941_v44 = vadd.f32 %v10061_v27, %v8881_v23  ;;  %v1876_v62 = vpop.f32.mrb[17].mxu0 }
 0x346   : > { %v12946_v1 = vadd.f32 %v8879_v24, %v1876_v62  ;;  %v10062_v29 = vpop.f32.mrb[18].mxu0 }
 0x347   : > { %v8963_v31 = vmul.f32 -1.442695, %v12941_v44  ;;  %v12949_v35 = vadd.f32 %v10062_v29, %v8882_v32  ;;  %v1879_v33 = vpop.f32.mrb[19].mxu0  ;;  %v8888_v32 = vld [vmem:[%s17091_s5 + $0xc8] sm:$0xff] }
 0x348   : > { %v8961_v39 = vmul.f32 -1.442695, %v12946_v1  ;;  %v12952_v11 = vadd.f32 %v8880_v57, %v1879_v33 }
 0x349   : > { %10758 = vpow2.f32 %v8963_v31  ;;  %v8964_v43 = vmul.f32 -1.442695, %v12949_v35 }
 0x34a   : > { %10760 = vpow2.f32 %v8961_v39  ;;  %v8962_v55 = vmul.f32 -1.442695, %v12952_v11 }
 0x34b   : > { %10762 = vpow2.f32 %v8964_v43 }
 0x34c   : > { %10764 = vpow2.f32 %v8962_v55  ;;  %v10065_v59 = vpop.f32.mrb[20].mxu0 }
 0x34d   : > { %v12965_v0 = vadd.f32 %v10065_v59, %v8885_v56  ;;  %v1892_v14 = vpop.f32.mrb[21].mxu0 }
 0x34e   : > { %v12970_v20 = vadd.f32 %v8883_v58, %v1892_v14  ;;  %v10066_v2 = vpop.f32.mrb[22].mxu0 }
 0x34f   : > { %v8967_v30 = vmul.f32 -1.442695, %v12965_v0  ;;  %v12973_v18 = vadd.f32 %v10066_v2, %v8886_v63  ;;  %v1895_v5 = vpop.f32.mrb[23].mxu0  ;;  %v8893_v63 = vld [vmem:[%s17091_s5 + $0xf0] sm:$0xff]  ;;  %v8891_v2 = vld [vmem:[%s17091_s5 + $0xe0] sm:$0xff] }
 0x350   : > { %v8965_v34 = vmul.f32 -1.442695, %v12970_v20  ;;  %v12976_v19 = vadd.f32 %v8884_v26, %v1895_v5 }
 0x351   : > { %10766 = vpow2.f32 %v8967_v30  ;;  %v8968_v25 = vmul.f32 -1.442695, %v12973_v18 }
 0x352   : > { %10768 = vpow2.f32 %v8965_v34  ;;  %v8966_v6 = vmul.f32 -1.442695, %v12976_v19 }
 0x353   : > { %v10759_v22 = vpop.eup %10758  ;;  %10770 = vpow2.f32 %v8968_v25  ;;  %v8894_v25 = vld [vmem:[%s17091_s5 + $0xf8] sm:$0xff] }
 0x354   : > { %v10761_v7 = vpop.eup %10760  ;;  %v1989_v9 = vadd.f32 1.0, %v10759_v22  ;;  %10772 = vpow2.f32 %v8966_v6 }
 0x355   : > { %v10763_v12 = vpop.eup %10762  ;;  %v1987_v15 = vadd.f32 1.0, %v10761_v7  ;;  %v10069_v16 = vpop.f32.mrb[24].mxu0 }
 0x356   : > { %v10765_v21 = vpop.eup %10764  ;;  %10774 = vrcp.f32 %v1989_v9  ;;  %v1990_v23 = vadd.f32 1.0, %v10763_v12  ;;  %v12989_v24 = vadd.f32 %v10069_v16, %v8889_v28  ;;  %v1908_v27 = vpop.f32.mrb[25].mxu0  ;;  %v8892_v9 = vld [vmem:[%s17091_s5 + $0xe8] sm:$0xff] }
 0x357   : > { %10776 = vrcp.f32 %v1987_v15  ;;  %v1988_v62 = vadd.f32 1.0, %v10765_v21  ;;  %v12994_v57 = vadd.f32 %v8887_v10, %v1908_v27  ;;  %v10070_v29 = vpop.f32.mrb[26].mxu0 }
 0x358   : > { %10778 = vrcp.f32 %v1990_v23  ;;  %v8971_v31 = vmul.f32 -1.442695, %v12989_v24  ;;  %v12997_v33 = vadd.f32 %v10070_v29, %v8890_v17  ;;  %v1911_v39 = vpop.f32.mrb[27].mxu0 }
 0x359   : > { %10780 = vrcp.f32 %v1988_v62  ;;  %v8969_v43 = vmul.f32 -1.442695, %v12994_v57  ;;  %v13000_v55 = vadd.f32 %v8888_v32, %v1911_v39 }
 0x35a   : > { %10782 = vpow2.f32 %v8971_v31  ;;  %v8972_v56 = vmul.f32 -1.442695, %v12997_v33 }
 0x35b   : > { %v10767_v58 = vpop.eup %10766  ;;  %10784 = vpow2.f32 %v8969_v43  ;;  %v8970_v59 = vmul.f32 -1.442695, %v13000_v55 }
 0x35c   : > { %v10769_v14 = vpop.eup %10768  ;;  %v1993_v26 = vadd.f32 1.0, %v10767_v58  ;;  %10786 = vpow2.f32 %v8972_v56 }
 0x35d   : > { %v10771_v30 = vpop.eup %10770  ;;  %v1991_v5 = vadd.f32 1.0, %v10769_v14  ;;  %10788 = vpow2.f32 %v8970_v59  ;;  %v10073_v34 = vpop.f32.mrb[28].mxu0 }
 0x35e   : > { %v10773_v6 = vpop.eup %10772  ;;  %10790 = vrcp.f32 %v1993_v26  ;;  %v1994_v22 = vadd.f32 1.0, %v10771_v30  ;;  %v13013_v28 = vadd.f32 %v10073_v34, %v8893_v63  ;;  %v1924_v7 = vpop.f32.mrb[29].mxu0 }
 0x35f   : > { %10792 = vrcp.f32 %v1991_v5  ;;  %v1992_v10 = vadd.f32 1.0, %v10773_v6  ;;  %v13018_v12 = vadd.f32 %v8891_v2, %v1924_v7  ;;  %v10074_v15 = vpop.f32.mrb[30].mxu0 }
 0x360   : > { %v10775_v16 = vpop.eup %10774  ;;  %10794 = vrcp.f32 %v1994_v22  ;;  %v8975_v17 = vmul.f32 -1.442695, %v13013_v28  ;;  %v13021_v21 = vadd.f32 %v10074_v15, %v8894_v25  ;;  %v1927_v23 = vpop.f32.mrb[31].mxu0 }
 0x361   : > { %v10777_v27 = vpop.eup %10776  ;;  %10796 = vrcp.f32 %v1992_v10  ;;  %v8973_v32 = vmul.f32 -1.442695, %v13018_v12  ;;  %v13024_v62 = vadd.f32 %v8892_v9, %v1927_v23  ;;  %v2037_v43 = vmul.f32 %v10775_v16, %v12941_v44  ;;  %v11591_v16 = vld [vmem:[%s17090_s4 + $0x8] sm:$0xff]  }
 0x362   : > { %v10779_v29 = vpop.eup %10778  ;;  %10798 = vpow2.f32 %v8975_v17  ;;  %v8976_v31 = vmul.f32 -1.442695, %v13021_v21  ;;  %v2035_v63 = vmul.f32 %v10777_v27, %v12946_v1 }
 0x363   : > { %v10781_v39 = vpop.eup %10780  ;;  %v2038_v56 = vmul.f32 %v10779_v29, %v12949_v35  ;;  %10800 = vpow2.f32 %v8973_v32  ;;  %v8974_v58 = vmul.f32 -1.442695, %v13024_v62 }
 0x364   : > { %v10783_v59 = vpop.eup %10782  ;;  %v2036_v14 = vmul.f32 %v10781_v39, %v12952_v11  ;;  %10802 = vpow2.f32 %v8976_v31  ;;  %v13037_v11 = vld [vmem:[%s17090_s4] sm:$0xff]  }
 0x365   : > { %v10785_v26 = vpop.eup %10784  ;;  %v2052_v2 = vpack.c.bf16 %v2038_v56, %v2037_v43  ;;  %v1997_v30 = vadd.f32 1.0, %v10783_v59  ;;  %10804 = vpow2.f32 %v8974_v58 }
 0x366   : > { %v10787_v5 = vpop.eup %10786  ;;  %v2051_v34 = vpack.c.bf16 %v2036_v14, %v2035_v63  ;;  %v1995_v25 = vadd.f32 1.0, %v10785_v26 }
 0x367   : > { %v10789_v6 = vpop.eup %10788  ;;  %10806 = vrcp.f32 %v1997_v30  ;;  %v1998_v44 = vadd.f32 1.0, %v10787_v5 }
 0x368   : > { %v10791_v35 = vpop.eup %10790  ;;  %10808 = vrcp.f32 %v1995_v25  ;;  %v1996_v22 = vadd.f32 1.0, %v10789_v6  ;;  %10083 = vmatprep.mubr.msk.bf16.mxu1 %vm1552_vm1, %v2051_v34 }
 0x369   : > { %v10793_v7 = vpop.eup %10792  ;;  %10810 = vrcp.f32 %v1998_v44  ;;  %10084 = vmatmul.mubr.msk.bf16.vlgmr.msra.gmra.mrb[16].mxu1 %vm1552_vm1, %v2052_v2  ;;  %v2041_v10 = vmul.f32 %v10791_v35, %v12965_v0 }
 0x36a   : > { %v10795_v1 = vpop.eup %10794  ;;  %10812 = vrcp.f32 %v1996_v22  ;;  %10120 = vmatpush3.bf16.msra.mxu1 %v13037_v11  ;;  %v2039_v23 = vmul.f32 %v10793_v7, %v12970_v20  ;;  %v2253_v22 = vpop.permute.xlu0 %2252 }
 0x36b   : > { %v10797_v9 = vpop.eup %10796  ;;  %v2042_v15 = vmul.f32 %v10795_v1, %v12973_v18  ;;  %10121 = vmatprep.subr.bf16.mxu1 %v11591_v16  ;;  %v2257_v7 = vpop.permute.xlu1 %2256 }
 0x36c   : > { %v10799_v17 = vpop.eup %10798  ;;  %v2040_v27 = vmul.f32 %v10797_v9, %v12976_v19 }
 0x36d   : > { %v10801_v32 = vpop.eup %10800  ;;  %v2054_v29 = vpack.c.bf16 %v2042_v15, %v2041_v10  ;;  %v2001_v31 = vadd.f32 1.0, %v10799_v17  ;;  %v8896_v15 = vld [vmem:[%s17091_s5 + $0x108] sm:$0xff] }
 0x36e   : > { %v10803_v39 = vpop.eup %10802  ;;  %v2053_v43 = vpack.c.bf16 %v2040_v27, %v2039_v23  ;;  %v1999_v56 = vadd.f32 1.0, %v10801_v32  ;;  %10122 = vmatpush3.bf16.msra.mxu1 %v11591_v16  ;;  %v2255_v1 = vpop.permute.xlu0 %2254  ;;  %v8898_v27 = vld [vmem:[%s17091_s5 + $0x118] sm:$0xff] }
 0x36f   : > { %v10805_v0 = vpop.eup %10804  ;;  %10814 = vrcp.f32 %v2001_v31  ;;  %v2002_v18 = vadd.f32 1.0, %v10803_v39  ;;  %10123 = vmatprep.subr.bf16.mxu1 %v12685_v60  ;;  %v2259_v9 = vpop.permute.xlu1 %2258 }
 0x370   : > { %10816 = vrcp.f32 %v1999_v56  ;;  %v2000_v58 = vadd.f32 1.0, %v10805_v0  ;;  %10087 = vmatprep.mubr.msk.bf16.mxu1 %vm1552_vm1, %v2053_v43 }
 0x371   : > { %v10807_v59 = vpop.eup %10806  ;;  %10818 = vrcp.f32 %v2002_v18  ;;  %10088 = vmatmul.mubr.msk.bf16.gmra.mrb[20].mxu1 %vm1552_vm1, %v2054_v29  ;;  %v8899_v18 = vld [vmem:[%s17091_s5 + $0x120] sm:$0xff] }
 0x372   : > { %v10809_v20 = vpop.eup %10808  ;;  %10820 = vrcp.f32 %v2000_v58  ;;  %10124 = vmatpush3.bf16.msra.mxu1 %v12685_v60  ;;  %v2045_v14 = vmul.f32 %v10807_v59, %v12989_v24 }
 0x373   : > { %v10811_v19 = vpop.eup %10810  ;;  %10125 = vmatprep.subr.bf16.mxu1 %v12692_v61  ;;  %v2043_v2 = vmul.f32 %v10809_v20, %v12994_v57  ;;  %v2263_v23 = vpop.permute.xlu1 %2262 }
 0x374   : > { %v10813_v63 = vpop.eup %10812  ;;  %v2046_v26 = vmul.f32 %v10811_v19, %v12997_v33  ;;  %v8901_v19 = vld [vmem:[%s17091_s5 + $0x130] sm:$0xff] }
 0x375   : > { %v2044_v30 = vmul.f32 %v10813_v63, %v13000_v55 }
 0x376   : > { %v2056_v5 = vpack.c.bf16 %v2046_v26, %v2045_v14  ;;  %10126 = vmatpush3.bf16.msra.mxu1 %v12692_v61  ;;  %v8900_v14 = vld [vmem:[%s17091_s5 + $0x128] sm:$0xff] }
 0x377   : > { %v2055_v34 = vpack.c.bf16 %v2044_v30, %v2043_v2  ;;  %10167 = vmatprep.subr.bf16.mxu1 %v12871_v4  ;;  %v2267_v20 = vpop.permute.xlu1 %2266 }
 0x379   : > { %v10815_v25 = vpop.eup %10814  ;;  %10091 = vmatprep.mubr.msk.bf16.mxu1 %vm1552_vm1, %v2055_v34 }
 0x37a   : > { %v10817_v60 = vpop.eup %10816  ;;  %10092 = vmatmul.mubr.msk.bf16.gmra.mrb[24].mxu1 %vm1552_vm1, %v2056_v5  ;;  %v2049_v33 = vmul.f32 %v10815_v25, %v13013_v28  ;;  %v8895_v28 = vld [vmem:[%s17091_s5 + $0x100] sm:$0xff]  ;;  %v8902_v5 = vld [vmem:[%s17091_s5 + $0x138] sm:$0xff] }
 0x37b   : > { %v10819_v6 = vpop.eup %10818  ;;  %v2047_v55 = vmul.f32 %v10817_v60, %v13018_v12  ;;  %v8897_v12 = vld [vmem:[%s17091_s5 + $0x110] sm:$0xff] }
 0x37c   : > { %v10821_v24 = vpop.eup %10820  ;;  %v2050_v57 = vmul.f32 %v10819_v6, %v13021_v21  ;;  %v2261_v21 = vpop.permute.xlu0 %2260 }
 0x37d   : > { %v2048_v44 = vmul.f32 %v10821_v24, %v13024_v62 }
 0x37e   : > { %v2058_v61 = vpack.c.bf16 %v2050_v57, %v2049_v33 }
 0x37f   : > { %v2057_v35 = vpack.c.bf16 %v2048_v44, %v2047_v55  ;;  %v2271_v55 = vpop.permute.xlu1 %2270 }
 0x380   : > { %v2265_v0 = vpop.permute.xlu0 %2264 }
 0x381   : > { %10095 = vmatprep.mubr.msk.bf16.mxu1 %vm1552_vm1, %v2057_v35 }
 0x382   : > { %10096 = vmatmul.mubr.msk.bf16.gmra.mrb[28].mxu1 %vm1552_vm1, %v2058_v61  ;;  %v8903_v61 = vld [vmem:[%s17091_s5 + $0x140] sm:$0xff] }
 0x384   : > { %v2269_v24 = vpop.permute.xlu0 %2268 }
 0x43c   : > { %v10085_v10 = vpop.f32.mrb[16].mxu1 }
 0x43d   : > { %v2141_v62 = vpop.f32.mrb[17].mxu1  ;;  %v13080_v29 = vadd.f32 %v10085_v10, %v8897_v12  ;;  %v8906_v12 = vld [vmem:[%s17091_s5 + $0x158] sm:$0xff] }
 0x43e   : > { %v13075_v16 = vadd.f32 %v8895_v28, %v2141_v62  ;;  %v10086_v17 = vpop.f32.mrb[18].mxu1  ;;  %v8904_v28 = vld [vmem:[%s17091_s5 + $0x148] sm:$0xff] }
 0x43f   : > { %v2144_v32 = vpop.f32.mrb[19].mxu1  ;;  %v13085_v43 = vadd.f32 %v10086_v17, %v8898_v27  ;;  %v2302_v58 = vmul.f32 %v2257_v7, %v13080_v29  ;;  %v8905_v7 = vld [vmem:[%s17091_s5 + $0x150] sm:$0xff] }
 0x440   : > { %v2300_v31 = vmul.f32 %v2253_v22, %v13075_v16  ;;  %v13083_v39 = vadd.f32 %v8896_v15, %v2144_v32  ;;  %v2275_v15 = vpop.permute.xlu1 %2274 }
 0x441   : > { %v2303_v26 = vmul.f32 %v2259_v9, %v13085_v43  ;;  %v2273_v9 = vpop.permute.xlu0 %2272 }
 0x442   : > { %v2301_v56 = vmul.f32 %v2255_v1, %v13083_v39  ;;  %2332 = vrot.lane.b32.xlu0 %v2300_v31, %s11979_s27 }
 0x444   : > { %v10089_v59 = vpop.f32.mrb[20].mxu1  ;;  %2334 = vrot.lane.b32.xlu1 %v2301_v56, %s11979_s27 }
 0x445   : > { %v2157_v63 = vpop.f32.mrb[21].mxu1  ;;  %v13107_v25 = vadd.f32 %v10089_v59, %v8901_v19  ;;  %v2277_v56 = vpop.permute.xlu0 %2276 }
 0x446   : > { %v13101_v2 = vadd.f32 %v8899_v18, %v2157_v63  ;;  %v10090_v30 = vpop.f32.mrb[22].mxu1  ;;  %2336 = vrot.lane.b32.xlu0 %v2302_v58, %s11979_s27  ;;  %v2279_v59 = vpop.permute.xlu1 %2278  ;;  %v8908_v63 = vld [vmem:[%s17091_s5 + $0x168] sm:$0xff] }
 0x447   : > { %v2160_v34 = vpop.f32.mrb[23].mxu1  ;;  %v13113_v33 = vadd.f32 %v10090_v30, %v8902_v5  ;;  %v2306_v44 = vmul.f32 %v2265_v0, %v13107_v25  ;;  %v8907_v0 = vld [vmem:[%s17091_s5 + $0x160] sm:$0xff]  ;;  %v8910_v5 = vld [vmem:[%s17091_s5 + $0x178] sm:$0xff] }
 0x448   : > { %v2304_v60 = vmul.f32 %v2261_v21, %v13101_v2  ;;  %v13110_v6 = vadd.f32 %v8900_v14, %v2160_v34  ;;  %2338 = vrot.lane.b32.xlu1 %v2303_v26, %s11979_s27 }
 0x449   : > { %v2307_v22 = vmul.f32 %v2267_v20, %v13113_v33  ;;  %v8909_v20 = vld [vmem:[%s17091_s5 + $0x170] sm:$0xff] }
 0x44a   : > { %v2305_v57 = vmul.f32 %v2263_v23, %v13110_v6  ;;  %2340 = vrot.lane.b32.xlu0 %v2304_v60, %s11979_s27 }
 0x44c   : > { %2342 = vrot.lane.b32.xlu1 %v2305_v57, %s11979_s27 }
 0x44d   : > { %v10093_v35 = vpop.f32.mrb[24].mxu1 }
 0x44e   : > { %v2173_v1 = vpop.f32.mrb[25].mxu1  ;;  %2344 = vrot.lane.b32.xlu0 %v2306_v44, %s11979_s27  ;;  %v13136_v17 = vadd.f32 %v10093_v35, %v8905_v7  ;;  %v2283_v35 = vpop.permute.xlu1 %2282 }
 0x44f   : > { %v13130_v10 = vadd.f32 %v8903_v61, %v2173_v1  ;;  %v10094_v21 = vpop.f32.mrb[26].mxu1  ;;  %v2204_v1 = vadd.f32 %v13075_v16, %v12561_v36  ;;  %v2207_v36 = vadd.f32 %v13085_v43, %v12580_v40  ;;  %v2209_v43 = vadd.f32 %v13110_v6, %v12589_v42  ;;  %v13228_v6 = vld [vmem:[%s17090_s4 + $0x20] sm:$0xff]  }
 0x450   : > { %v2176_v62 = vpop.f32.mrb[27].mxu1  ;;  %2346 = vrot.lane.b32.xlu1 %v2307_v22, %s11979_s27  ;;  %v13141_v32 = vadd.f32 %v10094_v21, %v8906_v12  ;;  %v2310_v18 = vmul.f32 %v2273_v9, %v13136_v17 }
 0x451   : > { %v2308_v23 = vmul.f32 %v2269_v24, %v13130_v10  ;;  %v13139_v27 = vadd.f32 %v8904_v28, %v2176_v62  ;;  %v2205_v28 = vadd.f32 %v13083_v39, %v12564_v37  ;;  %v2206_v62 = vadd.f32 %v13080_v29, %v12567_v38 }
 0x452   : > { %v2311_v14 = vmul.f32 %v2275_v15, %v13141_v32  ;;  %v2208_v38 = vadd.f32 %v13101_v2, %v12586_v41  ;;  %v2210_v2 = vadd.f32 %v13107_v25, %v12605_v45 }
 0x453   : > { %v2309_v31 = vmul.f32 %v2271_v55, %v13139_v27  ;;  %2348 = vrot.lane.b32.xlu0 %v2308_v23, %s11979_s27  ;;  %v2281_v55 = vpop.permute.xlu0 %2280 }
 0x455   : > { %v10097_v58 = vpop.f32.mrb[28].mxu1  ;;  %2350 = vrot.lane.b32.xlu1 %v2309_v31, %s11979_s27 }
 0x456   : > { %v2189_v19 = vpop.f32.mrb[29].mxu1  ;;  %v13163_v60 = vadd.f32 %v10097_v58, %v8909_v20  ;;  %v11593_v58 = vld [vmem:[%s17090_s4 + $0x28] sm:$0xff]  }
 0x457   : > { %v13157_v26 = vadd.f32 %v8907_v0, %v2189_v19  ;;  %v10098_v30 = vpop.f32.mrb[30].mxu1  ;;  %2352 = vrot.lane.b32.xlu0 %v2310_v18, %s11979_s27  ;;  %v2211_v18 = vadd.f32 %v13113_v33, %v12608_v46  ;;  %v2212_v46 = vadd.f32 %v13130_v10, %v12611_v47  ;;  %v2214_v10 = vadd.f32 %v13136_v17, %v12627_v49 }
 0x458   : > { %v2192_v34 = vpop.f32.mrb[31].mxu1  ;;  %v13169_v44 = vadd.f32 %v10098_v30, %v8910_v5  ;;  %v2314_v22 = vmul.f32 %v2281_v55, %v13163_v60 }
 0x459   : > { %v2312_v24 = vmul.f32 %v2277_v56, %v13157_v26  ;;  %v13166_v57 = vadd.f32 %v8908_v63, %v2192_v34  ;;  %2354 = vrot.lane.b32.xlu1 %v2311_v14, %s11979_s27  ;;  %v11594_v63 = vld [vmem:[%s17090_s4 + $0x30] sm:$0xff]   ;;  %v2213_v14 = vadd.f32 %v13139_v27, %v12621_v48  ;;  %v11595_v48 = vld [vmem:[%s17090_s4 + $0x38] sm:$0xff]   ;;  %v2215_v27 = vadd.f32 %v13141_v32, %v12630_v50  ;;  %v13294_v32 = vld [vmem:[%s17089_s3] sm:$0xff]  }
 0x45a   : > { %v2315_v7 = vmul.f32 %v2283_v35, %v13169_v44  ;;  %v2216_v55 = vadd.f32 %v13157_v26, %v12643_v51 }
 0x45b   : > { %v2313_v61 = vmul.f32 %v2279_v59, %v13166_v57  ;;  %2356 = vrot.lane.b32.xlu0 %v2312_v24, %s11979_s27  ;;  %v2217_v51 = vadd.f32 %v13166_v57, %v12646_v52  ;;  %v2219_v57 = vadd.f32 %v13169_v44, %v12659_v54  ;;  %v9007_v44 = vld [vmem:[%s12701_s7 + $0x90] sm:$0xff] }
 0x45d   : > { %2358 = vrot.lane.b32.xlu1 %v2313_v61, %s11979_s27 }
 0x45f   : > { %2360 = vrot.lane.b32.xlu0 %v2314_v22, %s11979_s27 }
 0x461   : > { %2362 = vrot.lane.b32.xlu1 %v2315_v7, %s11979_s27  ;;  %v2218_v7 = vadd.f32 %v13163_v60, %v12649_v53 }
 0x4b4   : > { %v2333_v9 = vpop.permute.xlu0 %2332 }
 0x4b5   : > { %v13182_v21 = vadd.f32 %v2333_v9, %v2204_v1 }
 0x4b6   : > { %v2335_v12 = vpop.permute.xlu1 %2334 }
 0x4b7   : > { %8989 = vst.msk [vmem:[%s12569_s18 + $0x80] sm:$0xff] %vm1346_vm0, %v13182_v21  ;;  %v13189_v15 = vadd.f32 %v2335_v12, %v2205_v28 }
 0x4b8   : > { %v2337_v23 = vpop.permute.xlu0 %2336 }
 0x4b9   : > { %8990 = vst.msk [vmem:[%s12569_s18 + $0x88] sm:$0xff] %vm1346_vm0, %v13189_v15  ;;  %v2413_v37 = vpack.c.bf16 %v13189_v15, %v13182_v21  ;;  %v13198_v16 = vadd.f32 %v2337_v23, %v2206_v62  ;;  %v9008_v62 = vld [vmem:[%s12701_s7 + $0x98] sm:$0xff] }
 0x4ba   : > { %v2339_v39 = vpop.permute.xlu1 %2338 }
 0x4bb   : > { %8991 = vst.msk [vmem:[%s12569_s18 + $0x90] sm:$0xff] %vm1346_vm0, %v13198_v16  ;;  %v13205_v29 = vadd.f32 %v2339_v39, %v2207_v36  ;;  %10103 = vmatprep.mubr.msk.bf16.mxu0 %vm1346_vm0, %v2413_v37  ;;  %v9005_v36 = vld [vmem:[%s12701_s7 + $0x80] sm:$0xff]  ;;  %v9006_v37 = vld [vmem:[%s12701_s7 + $0x88] sm:$0xff] }
 0x4bc   : > { %v2341_v40 = vpop.permute.xlu0 %2340 }
 0x4bd   : > { %8992 = vst.msk [vmem:[%s12569_s18 + $0x98] sm:$0xff] %vm1346_vm0, %v13205_v29  ;;  %v2414_v31 = vpack.c.bf16 %v13205_v29, %v13198_v16  ;;  %v13215_v56 = vadd.f32 %v2341_v40, %v2208_v38 }
 0x4be   : > { %v2343_v41 = vpop.permute.xlu1 %2342 }
 0x4bf   : > { %8993 = vst.msk [vmem:[%s12569_s18 + $0xa0] sm:$0xff] %vm1346_vm0, %v13215_v56  ;;  %v13222_v0 = vadd.f32 %v2343_v41, %v2209_v43  ;;  %10104 = vmatmul.mubr.msk.bf16.vlgmr.msra.gmra.mrb[32].mxu0 %vm1346_vm0, %v2414_v31 }
 0x4c0   : > { %v2345_v42 = vpop.permute.xlu0 %2344  ;;  %10144 = vmatpush3.bf16.msra.mxu0 %v13228_v6 }
 0x4c1   : > { %8994 = vst.msk [vmem:[%s12569_s18 + $0xa8] sm:$0xff] %vm1346_vm0, %v13222_v0  ;;  %v2415_v45 = vpack.c.bf16 %v13222_v0, %v13215_v56  ;;  %v13238_v25 = vadd.f32 %v2345_v42, %v2210_v2  ;;  %10145 = vmatprep.subr.bf16.mxu0 %v11593_v58 }
 0x4c2   : > { %v2347_v59 = vpop.permute.xlu1 %2346 }
 0x4c3   : > { %8995 = vst.msk [vmem:[%s12569_s18 + $0xb0] sm:$0xff] %vm1346_vm0, %v13238_v25  ;;  %v13246_v20 = vadd.f32 %v2347_v59, %v2211_v18  ;;  %10107 = vmatprep.mubr.msk.bf16.mxu0 %vm1346_vm0, %v2415_v45  ;;  %v9011_v18 = vld [vmem:[%s12701_s7 + $0xb0] sm:$0xff] }
 0x4c4   : > { %10146 = vmatpush3.bf16.msra.mxu0 %v11593_v58  ;;  %v9012_v58 = vld [vmem:[%s12701_s7 + $0xb8] sm:$0xff] }
 0x4c5   : > { %8996 = vst.msk [vmem:[%s12569_s18 + $0xb8] sm:$0xff] %vm1346_vm0, %v13246_v20  ;;  %v2416_v33 = vpack.c.bf16 %v13246_v20, %v13238_v25  ;;  %v2349_v19 = vpop.permute.xlu0 %2348  ;;  %10147 = vmatprep.subr.bf16.mxu0 %v11594_v63 }
 0x4c6   : > { %v13261_v30 = vadd.f32 %v2349_v19, %v2212_v46  ;;  %v9009_v46 = vld [vmem:[%s12701_s7 + $0xa0] sm:$0xff] }
 0x4c7   : > { %v2351_v47 = vpop.permute.xlu1 %2350  ;;  %10108 = vmatmul.mubr.msk.bf16.gmra.mrb[36].mxu0 %vm1346_vm0, %v2416_v33  ;;  %v9010_v33 = vld [vmem:[%s12701_s7 + $0xa8] sm:$0xff] }
 0x4c8   : > { %8997 = vst.msk [vmem:[%s12569_s18 + $0xc0] sm:$0xff] %vm1346_vm0, %v13261_v30  ;;  %v13269_v5 = vadd.f32 %v2351_v47, %v2213_v14  ;;  %10148 = vmatpush3.bf16.msra.mxu0 %v11594_v63 }
 0x4c9   : > { %v2353_v34 = vpop.permute.xlu0 %2352  ;;  %10149 = vmatprep.subr.bf16.mxu0 %v11595_v48 }
 0x4ca   : > { %8998 = vst.msk [vmem:[%s12569_s18 + $0xc8] sm:$0xff] %vm1346_vm0, %v13269_v5  ;;  %v2417_v49 = vpack.c.bf16 %v13269_v5, %v13261_v30  ;;  %v13281_v17 = vadd.f32 %v2353_v34, %v2214_v10 }
 0x4cb   : > { %v2355_v24 = vpop.permute.xlu1 %2354 }
 0x4cc   : > { %8999 = vst.msk [vmem:[%s12569_s18 + $0xd0] sm:$0xff] %vm1346_vm0, %v13281_v17  ;;  %v13288_v61 = vadd.f32 %v2355_v24, %v2215_v27  ;;  %10111 = vmatprep.mubr.msk.bf16.mxu0 %vm1346_vm0, %v2417_v49  ;;  %10150 = vmatpush3.bf16.msra.mxu0 %v11595_v48  ;;  %v9015_v49 = vld [vmem:[%s12701_s7 + $0xd0] sm:$0xff] }
 0x4cd   : > { %v2357_v50 = vpop.permute.xlu0 %2356  ;;  %10191 = vmatprep.subr.bf16.mxu0 %v13294_v32 }
 0x4ce   : > { %9000 = vst.msk [vmem:[%s12569_s18 + $0xd8] sm:$0xff] %vm1346_vm0, %v13288_v61  ;;  %v2418_v26 = vpack.c.bf16 %v13288_v61, %v13281_v17  ;;  %v13304_v35 = vadd.f32 %v2357_v50, %v2216_v55  ;;  %v9013_v50 = vld [vmem:[%s12701_s7 + $0xc0] sm:$0xff] }
 0x4cf   : > { %v2359_v22 = vpop.permute.xlu1 %2358 }
 0x4d0   : > { %9001 = vst.msk [vmem:[%s12569_s18 + $0xe0] sm:$0xff] %vm1346_vm0, %v13304_v35  ;;  %v13311_v1 = vadd.f32 %v2359_v22, %v2217_v51  ;;  %10112 = vmatmul.mubr.msk.bf16.gmra.mrb[40].mxu0 %vm1346_vm0, %v2418_v26  ;;  %v9014_v51 = vld [vmem:[%s12701_s7 + $0xc8] sm:$0xff] }
 0x4d1   : > { %v2361_v52 = vpop.permute.xlu0 %2360 }
 0x4d2   : > { %9002 = vst.msk [vmem:[%s12569_s18 + $0xe8] sm:$0xff] %vm1346_vm0, %v13311_v1  ;;  %v2419_v53 = vpack.c.bf16 %v13311_v1, %v13304_v35  ;;  %v13321_v60 = vadd.f32 %v2361_v52, %v2218_v7 }
 0x4d3   : > { %v2363_v9 = vpop.permute.xlu1 %2362 }
 0x4d4   : > { %9003 = vst.msk [vmem:[%s12569_s18 + $0xf0] sm:$0xff] %vm1346_vm0, %v13321_v60  ;;  %v13326_v28 = vadd.f32 %v2363_v9, %v2219_v57  ;;  %10115 = vmatprep.mubr.msk.bf16.mxu0 %vm1346_vm0, %v2419_v53 }
 0x4d6   : > { %9004 = vst.msk [vmem:[%s12569_s18 + $0xf8] sm:$0xff] %vm1346_vm0, %v13326_v28  ;;  %v2420_v54 = vpack.c.bf16 %v13326_v28, %v13321_v60 }
 0x4d8   : > { %10116 = vmatmul.mubr.msk.bf16.gmra.mrb[44].mxu0 %vm1346_vm0, %v2420_v54  ;;  %v9019_v54 = vld [vmem:[%s12701_s7 + $0xf0] sm:$0xff] }
 0x592   : > { %v10105_v12 = vpop.f32.mrb[32].mxu0 }
 0x593   : > { %v2496_v23 = vpop.f32.mrb[33].mxu0  ;;  %v2505_v38 = vadd.f32 %v10105_v12, %v9007_v44 }
 0x594   : > { %v10106_v39 = vpop.f32.mrb[34].mxu0  ;;  %v2497_v31 = vadd.f32 %v9005_v36, %v2496_v23  ;;  %v9018_v23 = vld [vmem:[%s12701_s7 + $0xe8] sm:$0xff] }
 0x595   : > { %v2508_v40 = vadd.f32 %v10106_v39, %v9008_v62  ;;  %v2499_v43 = vpop.f32.mrb[35].mxu0  ;;  %v9017_v62 = vld [vmem:[%s12701_s7 + $0xe0] sm:$0xff] }
 0x596   : > { %v2500_v41 = vadd.f32 %v9006_v37, %v2499_v43 }
 0x597   : > { %v2560_v2 = vpack.c.bf16 %v2508_v40, %v2505_v38 }
 0x598   : > { %v2559_v42 = vpack.c.bf16 %v2500_v41, %v2497_v31  ;;  %v11597_v41 = vld [vmem:[%s17091_s5 + $0x10] sm:$0xff] }
 0x59a   : > { %v10109_v45 = vpop.f32.mrb[36].mxu0  ;;  %10127 = vmatprep.mubr.msk.bf16.mxu1 %vm1552_vm1, %v2559_v42 }
 0x59b   : > { %v2512_v59 = vpop.f32.mrb[37].mxu0  ;;  %10128 = vmatmul.mubr.msk.bf16.vlgmr.msra.gmra.mrb[32].mxu1 %vm1552_vm1, %v2560_v2  ;;  %v2521_v63 = vadd.f32 %v10109_v45, %v9011_v18  ;;  %v11598_v18 = vld [vmem:[%s17091_s5] sm:$0xff] }
 0x59c   : > { %v10110_v19 = vpop.f32.mrb[38].mxu0  ;;  %10168 = vmatpush3.bf16.msra.mxu1 %v12871_v4  ;;  %v2513_v10 = vadd.f32 %v9009_v46, %v2512_v59  ;;  %v9016_v4 = vld [vmem:[%s12701_s7 + $0xd8] sm:$0xff] }
 0x59d   : > { %v2524_v14 = vadd.f32 %v10110_v19, %v9012_v58  ;;  %v2515_v47 = vpop.f32.mrb[39].mxu0  ;;  %10169 = vmatprep.subr.bf16.mxu1 %v12878_v3  ;;  %v11599_v46 = vld [vmem:[%s17091_s5 + $0x18] sm:$0xff] }
 0x59e   : > { %v2516_v34 = vadd.f32 %v9010_v33, %v2515_v47 }
 0x59f   : > { %v2562_v48 = vpack.c.bf16 %v2524_v14, %v2521_v63  ;;  %v11600_v14 = vld [vmem:[%s17091_s5 + $0x8] sm:$0xff] }
 0x5a0   : > { %v2561_v27 = vpack.c.bf16 %v2516_v34, %v2513_v10  ;;  %10170 = vmatpush3.bf16.msra.mxu1 %v12878_v3 }
 0x5a1   : > { %10171 = vmatprep.subr.bf16.mxu1 %v12885_v8 }
 0x5a2   : > { %10131 = vmatprep.mubr.msk.bf16.mxu1 %vm1552_vm1, %v2561_v27  ;;  %v11601_v27 = vld [vmem:[%s17091_s5 + $0x30] sm:$0xff] }
 0x5a3   : > { %v10113_v24 = vpop.f32.mrb[40].mxu0  ;;  %10132 = vmatmul.mubr.msk.bf16.gmra.mrb[36].mxu1 %vm1552_vm1, %v2562_v48 }
 0x5a4   : > { %v2528_v55 = vpop.f32.mrb[41].mxu0  ;;  %10172 = vmatpush3.bf16.msra.mxu1 %v12885_v8  ;;  %v2537_v3 = vadd.f32 %v10113_v24, %v9015_v49  ;;  %v9020_v8 = vld [vmem:[%s12701_s7 + $0xf8] sm:$0xff] }
 0x5a5   : > { %v10114_v26 = vpop.f32.mrb[42].mxu0  ;;  %10173 = vmatprep.subr.bf16.mxu1 %v12892_v13  ;;  %v2529_v52 = vadd.f32 %v9013_v50, %v2528_v55 }
 0x5a6   : > { %v2540_v22 = vadd.f32 %v10114_v26, %v9016_v4  ;;  %v2531_v7 = vpop.f32.mrb[43].mxu0  ;;  %v11602_v4 = vld [vmem:[%s17091_s5 + $0x20] sm:$0xff]  ;;  %v11603_v26 = vld [vmem:[%s17091_s5 + $0x38] sm:$0xff] }
 0x5a7   : > { %v2532_v57 = vadd.f32 %v9014_v51, %v2531_v7 }
 0x5a8   : > { %v2564_v53 = vpack.c.bf16 %v2540_v22, %v2537_v3  ;;  %10174 = vmatpush3.bf16.msra.mxu1 %v12892_v13 }
 0x5a9   : > { %v2563_v9 = vpack.c.bf16 %v2532_v57, %v2529_v52  ;;  %10211 = vmatprep.subr.bf16.mxu1 %v13037_v11  ;;  %v11604_v52 = vld [vmem:[%s17091_s5 + $0x28] sm:$0xff] }
 0x5ab   : > { %v10117_v44 = vpop.f32.mrb[44].mxu0  ;;  %10135 = vmatprep.mubr.msk.bf16.mxu1 %vm1552_vm1, %v2563_v9 }
 0x5ac   : > { %v2544_v12 = vpop.f32.mrb[45].mxu0  ;;  %10136 = vmatmul.mubr.msk.bf16.gmra.mrb[40].mxu1 %vm1552_vm1, %v2564_v53  ;;  %v2553_v37 = vadd.f32 %v10117_v44, %v9019_v54 }
 0x5ad   : > { %v10118_v36 = vpop.f32.mrb[46].mxu0  ;;  %v2545_v40 = vadd.f32 %v9017_v62, %v2544_v12 }
 0x5ae   : > { %v2556_v39 = vadd.f32 %v10118_v36, %v9020_v8  ;;  %v2547_v38 = vpop.f32.mrb[47].mxu0 }
 0x5af   : > { %v2548_v43 = vadd.f32 %v9018_v23, %v2547_v38 }
 0x5b0   : > { %v2566_v13 = vpack.c.bf16 %v2556_v39, %v2553_v37  ;;  %v11605_v39 = vld [vmem:[%s17091_s5 + $0x50] sm:$0xff] }
 0x5b1   : > { %v2565_v31 = vpack.c.bf16 %v2548_v43, %v2545_v40 }
 0x5b3   : > { %10139 = vmatprep.mubr.msk.bf16.mxu1 %vm1552_vm1, %v2565_v31 }
 0x5b4   : > { %10140 = vmatmul.mubr.msk.bf16.gmra.mrb[44].mxu1 %vm1552_vm1, %v2566_v13  ;;  %v11606_v13 = vld [vmem:[%s17091_s5 + $0x40] sm:$0xff] }
 0x66e   : > { %v10129_v11 = vpop.f32.mrb[32].mxu1 }
 0x66f   : > { %v13370_v2 = vadd.f32 %v11597_v41, %v10129_v11  ;;  %v2625_v42 = vpop.f32.mrb[33].mxu1 }
 0x670   : > { %v13375_v45 = vadd.f32 %v11598_v18, %v2625_v42  ;;  %v10130_v58 = vpop.f32.mrb[34].mxu1  ;;  %v11607_v42 = vld [vmem:[%s17091_s5 + $0x58] sm:$0xff] }
 0x671   : > { %v9039_v59 = vmul.f32 -1.442695, %v13370_v2  ;;  %v13381_v33 = vadd.f32 %v11599_v46, %v10130_v58  ;;  %v2628_v19 = vpop.f32.mrb[35].mxu1  ;;  %v11608_v46 = vld [vmem:[%s17091_s5 + $0x48] sm:$0xff] }
 0x672   : > { %v9037_v63 = vmul.f32 -1.442695, %v13375_v45  ;;  %v13387_v47 = vadd.f32 %v11600_v14, %v2628_v19 }
 0x673   : > { %10822 = vpow2.f32 %v9039_v59  ;;  %v9040_v10 = vmul.f32 -1.442695, %v13381_v33 }
 0x674   : > { %10824 = vpow2.f32 %v9037_v63  ;;  %v9038_v34 = vmul.f32 -1.442695, %v13387_v47 }
 0x675   : > { %10826 = vpow2.f32 %v9040_v10 }
 0x676   : > { %10828 = vpow2.f32 %v9038_v34  ;;  %v10133_v48 = vpop.f32.mrb[36].mxu1 }
 0x677   : > { %v13394_v49 = vadd.f32 %v11601_v27, %v10133_v48  ;;  %v2641_v24 = vpop.f32.mrb[37].mxu1 }
 0x678   : > { %v13399_v55 = vadd.f32 %v11602_v4, %v2641_v24  ;;  %v10134_v50 = vpop.f32.mrb[38].mxu1 }
 0x679   : > { %v9043_v51 = vmul.f32 -1.442695, %v13394_v49  ;;  %v13405_v3 = vadd.f32 %v11603_v26, %v10134_v50  ;;  %v2644_v22 = vpop.f32.mrb[39].mxu1  ;;  %v11609_v26 = vld [vmem:[%s17091_s5 + $0x70] sm:$0xff] }
 0x67a   : > { %v9041_v7 = vmul.f32 -1.442695, %v13399_v55  ;;  %v13411_v57 = vadd.f32 %v11604_v52, %v2644_v22 }
 0x67b   : > { %10830 = vpow2.f32 %v9043_v51  ;;  %v9044_v53 = vmul.f32 -1.442695, %v13405_v3 }
 0x67c   : > { %10832 = vpow2.f32 %v9041_v7  ;;  %v9042_v9 = vmul.f32 -1.442695, %v13411_v57 }
 0x67d   : > { %v10823_v54 = vpop.eup %10822  ;;  %10834 = vpow2.f32 %v9044_v53  ;;  %v11610_v53 = vld [vmem:[%s17091_s5 + $0x60] sm:$0xff] }
 0x67e   : > { %v10825_v44 = vpop.eup %10824  ;;  %v2738_v8 = vadd.f32 1.0, %v10823_v54  ;;  %10836 = vpow2.f32 %v9042_v9 }
 0x67f   : > { %v10827_v12 = vpop.eup %10826  ;;  %v2736_v62 = vadd.f32 1.0, %v10825_v44  ;;  %v10137_v23 = vpop.f32.mrb[40].mxu1 }
 0x680   : > { %v10829_v36 = vpop.eup %10828  ;;  %10838 = vrcp.f32 %v2738_v8  ;;  %v2739_v37 = vadd.f32 1.0, %v10827_v12  ;;  %v13418_v38 = vadd.f32 %v11605_v39, %v10137_v23  ;;  %v2657_v40 = vpop.f32.mrb[41].mxu1  ;;  %v11611_v12 = vld [vmem:[%s17091_s5 + $0x78] sm:$0xff]  ;;  %v11612_v39 = vld [vmem:[%s17091_s5 + $0x68] sm:$0xff] }
 0x681   : > { %10840 = vrcp.f32 %v2736_v62  ;;  %v2737_v43 = vadd.f32 1.0, %v10829_v36  ;;  %v13423_v31 = vadd.f32 %v11606_v13, %v2657_v40  ;;  %v10138_v11 = vpop.f32.mrb[42].mxu1 }
 0x682   : > { %10842 = vrcp.f32 %v2739_v37  ;;  %v9047_v41 = vmul.f32 -1.442695, %v13418_v38  ;;  %v13429_v18 = vadd.f32 %v11607_v42, %v10138_v11  ;;  %v2660_v58 = vpop.f32.mrb[43].mxu1 }
 0x683   : > { %10844 = vrcp.f32 %v2737_v43  ;;  %v9045_v59 = vmul.f32 -1.442695, %v13423_v31  ;;  %v13435_v19 = vadd.f32 %v11608_v46, %v2660_v58 }
 0x684   : > { %10846 = vpow2.f32 %v9047_v41  ;;  %v9048_v63 = vmul.f32 -1.442695, %v13429_v18 }
 0x685   : > { %v10831_v14 = vpop.eup %10830  ;;  %10848 = vpow2.f32 %v9045_v59  ;;  %v9046_v10 = vmul.f32 -1.442695, %v13435_v19 }
 0x686   : > { %v10833_v34 = vpop.eup %10832  ;;  %v2742_v48 = vadd.f32 1.0, %v10831_v14  ;;  %10850 = vpow2.f32 %v9048_v63 }
 0x687   : > { %v10835_v27 = vpop.eup %10834  ;;  %v2740_v24 = vadd.f32 1.0, %v10833_v34  ;;  %10852 = vpow2.f32 %v9046_v10  ;;  %v10141_v4 = vpop.f32.mrb[44].mxu1 }
 0x688   : > { %v10837_v50 = vpop.eup %10836  ;;  %10854 = vrcp.f32 %v2742_v48  ;;  %v2743_v51 = vadd.f32 1.0, %v10835_v27  ;;  %v13442_v22 = vadd.f32 %v11609_v26, %v10141_v4  ;;  %v2673_v7 = vpop.f32.mrb[45].mxu1 }
 0x689   : > { %10856 = vrcp.f32 %v2740_v24  ;;  %v2741_v52 = vadd.f32 1.0, %v10837_v50  ;;  %v13447_v9 = vadd.f32 %v11610_v53, %v2673_v7  ;;  %v10142_v54 = vpop.f32.mrb[46].mxu1 }
 0x68a   : > { %v10839_v44 = vpop.eup %10838  ;;  %10858 = vrcp.f32 %v2743_v51  ;;  %v9051_v8 = vmul.f32 -1.442695, %v13442_v22  ;;  %v13453_v62 = vadd.f32 %v11611_v12, %v10142_v54  ;;  %v2676_v23 = vpop.f32.mrb[47].mxu1 }
 0x68b   : > { %v10841_v36 = vpop.eup %10840  ;;  %10860 = vrcp.f32 %v2741_v52  ;;  %v9049_v37 = vmul.f32 -1.442695, %v13447_v9  ;;  %v13459_v40 = vadd.f32 %v11612_v39, %v2676_v23  ;;  %v2786_v41 = vmul.f32 %v10839_v44, %v13370_v2  ;;  %v11613_v52 = vld [vmem:[%s17089_s3 + $0x8] sm:$0xff]  }
 0x68c   : > { %v10843_v43 = vpop.eup %10842  ;;  %10862 = vpow2.f32 %v9051_v8  ;;  %v9052_v13 = vmul.f32 -1.442695, %v13453_v62  ;;  %v2784_v46 = vmul.f32 %v10841_v36, %v13375_v45 }
 0x68d   : > { %v10845_v11 = vpop.eup %10844  ;;  %v2787_v42 = vmul.f32 %v10843_v43, %v13381_v33  ;;  %10864 = vpow2.f32 %v9049_v37  ;;  %v9050_v58 = vmul.f32 -1.442695, %v13459_v40 }
 0x68e   : > { %v10847_v59 = vpop.eup %10846  ;;  %v2785_v63 = vmul.f32 %v10845_v11, %v13387_v47  ;;  %10866 = vpow2.f32 %v9052_v13 }
 0x68f   : > { %v10849_v14 = vpop.eup %10848  ;;  %v2801_v10 = vpack.c.bf16 %v2787_v42, %v2786_v41  ;;  %v2746_v34 = vadd.f32 1.0, %v10847_v59  ;;  %10868 = vpow2.f32 %v9050_v58 }
 0x690   : > { %v10851_v48 = vpop.eup %10850  ;;  %v2800_v27 = vpack.c.bf16 %v2785_v63, %v2784_v46  ;;  %v2744_v24 = vadd.f32 1.0, %v10849_v14 }
 0x691   : > { %v10853_v4 = vpop.eup %10852  ;;  %10870 = vrcp.f32 %v2746_v34  ;;  %v2747_v2 = vadd.f32 1.0, %v10851_v48 }
 0x692   : > { %v10855_v33 = vpop.eup %10854  ;;  %10872 = vrcp.f32 %v2744_v24  ;;  %v2745_v50 = vadd.f32 1.0, %v10853_v4  ;;  %10151 = vmatprep.mubr.msk.bf16.mxu0 %vm1552_vm1, %v2800_v27  ;;  %v9085_v27 = vld [vmem:[%s12898_s21 + $0x80] sm:$0xff]  ;;  %v9086_v24 = vld [vmem:[%s12898_s21 + $0x88] sm:$0xff]  ;;  %v9091_v4 = vld [vmem:[%s12898_s21 + $0xb0] sm:$0xff] }
 0x693   : > { %v10857_v51 = vpop.eup %10856  ;;  %10874 = vrcp.f32 %v2747_v2  ;;  %10152 = vmatmul.mubr.msk.bf16.vlgmr.msra.gmra.mrb[48].mxu0 %vm1552_vm1, %v2801_v10  ;;  %v2790_v26 = vmul.f32 %v10855_v33, %v13394_v49  ;;  %3219 = vrot.lane.b32.xlu0 %v9085_v27, %s11978_s8  ;;  %v9092_v2 = vld [vmem:[%s12898_s21 + $0xb8] sm:$0xff]  ;;  %v9093_v33 = vld [vmem:[%s12898_s21 + $0xc0] sm:$0xff] }
 0x694   : > { %v10859_v45 = vpop.eup %10858  ;;  %10876 = vrcp.f32 %v2745_v50  ;;  %10192 = vmatpush3.bf16.msra.mxu0 %v13294_v32  ;;  %v2788_v54 = vmul.f32 %v10857_v51, %v13399_v55  ;;  %3221 = vrot.lane.b32.xlu1 %v9086_v24, %s11978_s8  ;;  %v9094_v50 = vld [vmem:[%s12898_s21 + $0xc8] sm:$0xff]  ;;  %v9095_v51 = vld [vmem:[%s12898_s21 + $0xd0] sm:$0xff] }
 0x695   : > { %v10861_v47 = vpop.eup %10860  ;;  %v2791_v7 = vmul.f32 %v10859_v45, %v13405_v3  ;;  %10193 = vmatprep.subr.bf16.mxu0 %v11613_v52  ;;  %v9096_v45 = vld [vmem:[%s12898_s21 + $0xd8] sm:$0xff] }
 0x696   : > { %v10863_v53 = vpop.eup %10862  ;;  %v2789_v44 = vmul.f32 %v10861_v47, %v13411_v57  ;;  %v9097_v47 = vld [vmem:[%s12898_s21 + $0xe0] sm:$0xff] }
 0x697   : > { %v10865_v8 = vpop.eup %10864  ;;  %v2803_v12 = vpack.c.bf16 %v2791_v7, %v2790_v26  ;;  %v2750_v23 = vadd.f32 1.0, %v10863_v53  ;;  %v9098_v26 = vld [vmem:[%s12898_s21 + $0xe8] sm:$0xff]  ;;  %v9099_v7 = vld [vmem:[%s12898_s21 + $0xf0] sm:$0xff] }
 0x698   : > { %v10867_v36 = vpop.eup %10866  ;;  %v2802_v32 = vpack.c.bf16 %v2789_v44, %v2788_v54  ;;  %v2748_v37 = vadd.f32 1.0, %v10865_v8  ;;  %10194 = vmatpush3.bf16.msra.mxu0 %v11613_v52  ;;  %v9100_v52 = vld [vmem:[%s12898_s21 + $0xf8] sm:$0xff]  ;;  %v11614_v54 = vld [vmem:[%s17091_s5 + $0x90] sm:$0xff] }
 0x699   : > { %v10869_v49 = vpop.eup %10868  ;;  %10878 = vrcp.f32 %v2750_v23  ;;  %v2751_v3 = vadd.f32 1.0, %v10867_v36  ;;  %10235 = vmatprep.subr.bf16.mxu0 %v13228_v6 }
 0x69a   : > { %10880 = vrcp.f32 %v2748_v37  ;;  %v2749_v39 = vadd.f32 1.0, %v10869_v49  ;;  %10155 = vmatprep.mubr.msk.bf16.mxu0 %vm1552_vm1, %v2802_v32  ;;  %v11616_v37 = vld [vmem:[%s17091_s5 + $0x98] sm:$0xff] }
 0x69b   : > { %v10871_v43 = vpop.eup %10870  ;;  %10882 = vrcp.f32 %v2751_v3  ;;  %10156 = vmatmul.mubr.msk.bf16.gmra.mrb[52].mxu0 %vm1552_vm1, %v2803_v12  ;;  %v11615_v12 = vld [vmem:[%s17091_s5 + $0x80] sm:$0xff] }
 0x69c   : > { %v10873_v55 = vpop.eup %10872  ;;  %10884 = vrcp.f32 %v2749_v39  ;;  %v2794_v11 = vmul.f32 %v10871_v43, %v13418_v38  ;;  %v11617_v43 = vld [vmem:[%s17091_s5 + $0x88] sm:$0xff] }
 0x69d   : > { %v10875_v57 = vpop.eup %10874  ;;  %v2792_v42 = vmul.f32 %v10873_v55, %v13423_v31 }
 0x69e   : > { %v10877_v13 = vpop.eup %10876  ;;  %v2795_v41 = vmul.f32 %v10875_v57, %v13429_v18 }
 0x69f   : > { %v2793_v6 = vmul.f32 %v10877_v13, %v13435_v19 }
 0x6a0   : > { %v2805_v58 = vpack.c.bf16 %v2795_v41, %v2794_v11  ;;  %v11618_v41 = vld [vmem:[%s17091_s5 + $0xb0] sm:$0xff] }
 0x6a1   : > { %v2804_v59 = vpack.c.bf16 %v2793_v6, %v2792_v42 }
 0x6a3   : > { %v10879_v46 = vpop.eup %10878  ;;  %10159 = vmatprep.mubr.msk.bf16.mxu0 %vm1552_vm1, %v2804_v59 }
 0x6a4   : > { %v10881_v63 = vpop.eup %10880  ;;  %10160 = vmatmul.mubr.msk.bf16.gmra.mrb[56].mxu0 %vm1552_vm1, %v2805_v58  ;;  %v2798_v18 = vmul.f32 %v10879_v46, %v13442_v22  ;;  %v9087_v22 = vld [vmem:[%s12898_s21 + $0x90] sm:$0xff]  ;;  %v11619_v58 = vld [vmem:[%s17091_s5 + $0xa0] sm:$0xff] }
 0x6a5   : > { %v10883_v14 = vpop.eup %10882  ;;  %v2796_v19 = vmul.f32 %v10881_v63, %v13447_v9  ;;  %v9088_v9 = vld [vmem:[%s12898_s21 + $0x98] sm:$0xff]  ;;  %3223 = vrot.lane.b32.xlu0 %v9087_v22, %s11978_s8 }
 0x6a6   : > { %v10885_v38 = vpop.eup %10884  ;;  %v2799_v31 = vmul.f32 %v10883_v14, %v13453_v62  ;;  %3225 = vrot.lane.b32.xlu1 %v9088_v9, %s11978_s8  ;;  %v9089_v62 = vld [vmem:[%s12898_s21 + $0xa0] sm:$0xff]  ;;  %v11620_v14 = vld [vmem:[%s17091_s5 + $0xb8] sm:$0xff] }
 0x6a7   : > { %v2797_v10 = vmul.f32 %v10885_v38, %v13459_v40  ;;  %v9090_v40 = vld [vmem:[%s12898_s21 + $0xa8] sm:$0xff] }
 0x6a8   : > { %v2807_v34 = vpack.c.bf16 %v2799_v31, %v2798_v18 }
 0x6a9   : > { %v2806_v48 = vpack.c.bf16 %v2797_v10, %v2796_v19  ;;  %3227 = vrot.lane.b32.xlu0 %v9089_v62, %s11978_s8  ;;  %v11621_v19 = vld [vmem:[%s17091_s5 + $0xa8] sm:$0xff] }
 0x6aa   : > { %3229 = vrot.lane.b32.xlu1 %v9090_v40, %s11978_s8 }
 0x6ab   : > { %10163 = vmatprep.mubr.msk.bf16.mxu0 %vm1552_vm1, %v2806_v48 }
 0x6ac   : > { %10164 = vmatmul.mubr.msk.bf16.gmra.mrb[60].mxu0 %vm1552_vm1, %v2807_v34 }
 0x6ad   : > { %3231 = vrot.lane.b32.xlu0 %v9091_v4, %s11978_s8 }
 0x6ae   : > { %3233 = vrot.lane.b32.xlu1 %v9092_v2, %s11978_s8 }
 0x6b1   : > { %3235 = vrot.lane.b32.xlu0 %v9093_v33, %s11978_s8  ;;  %v11622_v33 = vld [vmem:[%s17091_s5 + $0xd0] sm:$0xff] }
 0x6b2   : > { %3237 = vrot.lane.b32.xlu1 %v9094_v50, %s11978_s8 }
 0x6b5   : > { %3239 = vrot.lane.b32.xlu0 %v9095_v51, %s11978_s8 }
 0x6b6   : > { %3241 = vrot.lane.b32.xlu1 %v9096_v45, %s11978_s8 }
 0x6b9   : > { %3243 = vrot.lane.b32.xlu0 %v9097_v47, %s11978_s8  ;;  %v11623_v47 = vld [vmem:[%s17091_s5 + $0xc0] sm:$0xff] }
 0x6ba   : > { %3245 = vrot.lane.b32.xlu1 %v9098_v26, %s11978_s8 }
 0x6bd   : > { %3247 = vrot.lane.b32.xlu0 %v9099_v7, %s11978_s8 }
 0x6be   : > { %3249 = vrot.lane.b32.xlu1 %v9100_v52, %s11978_s8 }
 0x766   : > { %v10153_v53 = vpop.f32.mrb[48].mxu0 }
 0x767   : > { %v13527_v44 = vadd.f32 %v11614_v54, %v10153_v53  ;;  %v2866_v8 = vpop.f32.mrb[49].mxu0  ;;  %v11624_v53 = vld [vmem:[%s17091_s5 + $0xd8] sm:$0xff] }
 0x768   : > { %v13532_v23 = vadd.f32 %v11615_v12, %v2866_v8  ;;  %v10154_v36 = vpop.f32.mrb[50].mxu0 }
 0x769   : > { %v9063_v32 = vmul.f32 -1.442695, %v13527_v44  ;;  %v13538_v49 = vadd.f32 %v11616_v37, %v10154_v36  ;;  %v2869_v3 = vpop.f32.mrb[51].mxu0  ;;  %v11625_v36 = vld [vmem:[%s17091_s5 + $0xc8] sm:$0xff] }
 0x76a   : > { %v9061_v39 = vmul.f32 -1.442695, %v13532_v23  ;;  %v13544_v55 = vadd.f32 %v11617_v43, %v2869_v3 }
 0x76b   : > { %10886 = vpow2.f32 %v9063_v32  ;;  %v9064_v57 = vmul.f32 -1.442695, %v13538_v49 }
 0x76c   : > { %10888 = vpow2.f32 %v9061_v39  ;;  %v9062_v13 = vmul.f32 -1.442695, %v13544_v55 }
 0x76d   : > { %10890 = vpow2.f32 %v9064_v57 }
 0x76e   : > { %10892 = vpow2.f32 %v9062_v13  ;;  %v10157_v11 = vpop.f32.mrb[52].mxu0 }
 0x76f   : > { %v13551_v42 = vadd.f32 %v11618_v41, %v10157_v11  ;;  %v2882_v6 = vpop.f32.mrb[53].mxu0 }
 0x770   : > { %v13556_v59 = vadd.f32 %v11619_v58, %v2882_v6  ;;  %v10158_v46 = vpop.f32.mrb[54].mxu0 }
 0x771   : > { %v9067_v63 = vmul.f32 -1.442695, %v13551_v42  ;;  %v13562_v38 = vadd.f32 %v11620_v14, %v10158_v46  ;;  %v2885_v18 = vpop.f32.mrb[55].mxu0  ;;  %v11626_v46 = vld [vmem:[%s17091_s5 + $0xf0] sm:$0xff] }
 0x772   : > { %v9065_v31 = vmul.f32 -1.442695, %v13556_v59  ;;  %v13568_v10 = vadd.f32 %v11621_v19, %v2885_v18 }
 0x773   : > { %10894 = vpow2.f32 %v9067_v63  ;;  %v9068_v34 = vmul.f32 -1.442695, %v13562_v38 }
 0x774   : > { %10896 = vpow2.f32 %v9065_v31  ;;  %v9066_v48 = vmul.f32 -1.442695, %v13568_v10  ;;  %v11627_v31 = vld [vmem:[%s17091_s5 + $0xe0] sm:$0xff] }
 0x775   : > { %v10887_v27 = vpop.eup %10886  ;;  %10898 = vpow2.f32 %v9068_v34 }
 0x776   : > { %v10889_v24 = vpop.eup %10888  ;;  %v2979_v22 = vadd.f32 1.0, %v10887_v27  ;;  %10900 = vpow2.f32 %v9066_v48 }
 0x777   : > { %v10891_v9 = vpop.eup %10890  ;;  %v2977_v62 = vadd.f32 1.0, %v10889_v24  ;;  %v10161_v40 = vpop.f32.mrb[56].mxu0  ;;  %v11628_v24 = vld [vmem:[%s17091_s5 + $0xf8] sm:$0xff] }
 0x778   : > { %v10893_v4 = vpop.eup %10892  ;;  %10902 = vrcp.f32 %v2979_v22  ;;  %v2980_v2 = vadd.f32 1.0, %v10891_v9  ;;  %v13575_v50 = vadd.f32 %v11622_v33, %v10161_v40  ;;  %v2898_v51 = vpop.f32.mrb[57].mxu0 }
 0x779   : > { %10904 = vrcp.f32 %v2977_v62  ;;  %v2978_v45 = vadd.f32 1.0, %v10893_v4  ;;  %v13580_v26 = vadd.f32 %v11623_v47, %v2898_v51  ;;  %v10162_v7 = vpop.f32.mrb[58].mxu0  ;;  %v11629_v4 = vld [vmem:[%s17091_s5 + $0xe8] sm:$0xff] }
 0x77a   : > { %10906 = vrcp.f32 %v2980_v2  ;;  %v9071_v52 = vmul.f32 -1.442695, %v13575_v50  ;;  %v13586_v54 = vadd.f32 %v11624_v53, %v10162_v7  ;;  %v2901_v8 = vpop.f32.mrb[59].mxu0 }
 0x77b   : > { %10908 = vrcp.f32 %v2978_v45  ;;  %v9069_v12 = vmul.f32 -1.442695, %v13580_v26  ;;  %v13592_v32 = vadd.f32 %v11625_v36, %v2901_v8 }
 0x77c   : > { %10910 = vpow2.f32 %v9071_v52  ;;  %v9072_v37 = vmul.f32 -1.442695, %v13586_v54 }
 0x77d   : > { %v10895_v3 = vpop.eup %10894  ;;  %10912 = vpow2.f32 %v9069_v12  ;;  %v9070_v39 = vmul.f32 -1.442695, %v13592_v32 }
 0x77e   : > { %v10897_v43 = vpop.eup %10896  ;;  %v2983_v57 = vadd.f32 1.0, %v10895_v3  ;;  %10914 = vpow2.f32 %v9072_v37 }
 0x77f   : > { %v10899_v13 = vpop.eup %10898  ;;  %v2981_v11 = vadd.f32 1.0, %v10897_v43  ;;  %10916 = vpow2.f32 %v9070_v39  ;;  %v10165_v41 = vpop.f32.mrb[60].mxu0 }
 0x780   : > { %v10901_v6 = vpop.eup %10900  ;;  %10918 = vrcp.f32 %v2983_v57  ;;  %v2984_v58 = vadd.f32 1.0, %v10899_v13  ;;  %v13599_v63 = vadd.f32 %v11626_v46, %v10165_v41  ;;  %v2914_v14 = vpop.f32.mrb[61].mxu0 }
 0x781   : > { %10920 = vrcp.f32 %v2981_v11  ;;  %v2982_v18 = vadd.f32 1.0, %v10901_v6  ;;  %v13604_v19 = vadd.f32 %v11627_v31, %v2914_v14  ;;  %v10166_v34 = vpop.f32.mrb[62].mxu0  ;;  %v11631_v14 = vld [vmem:[%s17090_s4 + $0x8] sm:$0xff]  }
 0x782   : > { %v10903_v48 = vpop.eup %10902  ;;  %10922 = vrcp.f32 %v2984_v58  ;;  %v9075_v27 = vmul.f32 -1.442695, %v13599_v63  ;;  %v13610_v22 = vadd.f32 %v11628_v24, %v10166_v34  ;;  %v2917_v9 = vpop.f32.mrb[63].mxu0 }
 0x783   : > { %v10905_v62 = vpop.eup %10904  ;;  %10924 = vrcp.f32 %v2982_v18  ;;  %v9073_v40 = vmul.f32 -1.442695, %v13604_v19  ;;  %v13616_v2 = vadd.f32 %v11629_v4, %v2917_v9  ;;  %v3027_v47 = vmul.f32 %v10903_v48, %v13527_v44  ;;  %v11632_v4 = vld [vmem:[%s17090_s4 + $0x10] sm:$0xff]  }
 0x784   : > { %v10907_v33 = vpop.eup %10906  ;;  %10926 = vpow2.f32 %v9075_v27  ;;  %v9076_v51 = vmul.f32 -1.442695, %v13610_v22  ;;  %v3025_v8 = vmul.f32 %v10905_v62, %v13532_v23 }
 0x785   : > { %v10909_v45 = vpop.eup %10908  ;;  %v3028_v7 = vmul.f32 %v10907_v33, %v13538_v49  ;;  %10928 = vpow2.f32 %v9073_v40  ;;  %v9074_v52 = vmul.f32 -1.442695, %v13616_v2 }
 0x786   : > { %v10911_v53 = vpop.eup %10910  ;;  %v3026_v12 = vmul.f32 %v10909_v45, %v13544_v55  ;;  %10930 = vpow2.f32 %v9076_v51  ;;  %v13629_v55 = vld [vmem:[%s17090_s4] sm:$0xff]   ;;  %v11633_v45 = vld [vmem:[%s17090_s4 + $0x18] sm:$0xff]  }
 0x787   : > { %v10913_v36 = vpop.eup %10912  ;;  %v3042_v37 = vpack.c.bf16 %v3028_v7, %v3027_v47  ;;  %v2987_v3 = vadd.f32 1.0, %v10911_v53  ;;  %10932 = vpow2.f32 %v9074_v52 }
 0x788   : > { %v10915_v39 = vpop.eup %10914  ;;  %v3041_v43 = vpack.c.bf16 %v3026_v12, %v3025_v8  ;;  %v2985_v57 = vadd.f32 1.0, %v10913_v36 }
 0x789   : > { %v10917_v13 = vpop.eup %10916  ;;  %10934 = vrcp.f32 %v2987_v3  ;;  %v2988_v44 = vadd.f32 1.0, %v10915_v39 }
 0x78a   : > { %v10919_v49 = vpop.eup %10918  ;;  %10936 = vrcp.f32 %v2985_v57  ;;  %v2986_v11 = vadd.f32 1.0, %v10917_v13  ;;  %10175 = vmatprep.mubr.msk.bf16.mxu1 %vm1552_vm1, %v3041_v43 }
 0x78b   : > { %v10921_v41 = vpop.eup %10920  ;;  %10938 = vrcp.f32 %v2988_v44  ;;  %10176 = vmatmul.mubr.msk.bf16.vlgmr.msra.gmra.mrb[48].mxu1 %vm1552_vm1, %v3042_v37  ;;  %v3031_v58 = vmul.f32 %v10919_v49, %v13551_v42  ;;  %v13654_v37 = vld [vmem:[%s17090_s4 + $0x40] sm:$0xff]   ;;  %v3220_v49 = vpop.permute.xlu0 %3219 }
 0x78c   : > { %v10923_v23 = vpop.eup %10922  ;;  %10940 = vrcp.f32 %v2986_v11  ;;  %10212 = vmatpush3.bf16.msra.mxu1 %v13629_v55  ;;  %v3029_v31 = vmul.f32 %v10921_v41, %v13556_v59  ;;  %v3222_v11 = vpop.permute.xlu1 %3221 }
 0x78d   : > { %v10925_v6 = vpop.eup %10924  ;;  %v3032_v46 = vmul.f32 %v10923_v23, %v13562_v38  ;;  %10213 = vmatprep.subr.bf16.mxu1 %v11631_v14 }
 0x78e   : > { %v10927_v18 = vpop.eup %10926  ;;  %v3030_v34 = vmul.f32 %v10925_v6, %v13568_v10 }
 0x78f   : > { %v10929_v48 = vpop.eup %10928  ;;  %v3044_v27 = vpack.c.bf16 %v3032_v46, %v3031_v58  ;;  %v2991_v24 = vadd.f32 1.0, %v10927_v18  ;;  %v3224_v41 = vpop.permute.xlu0 %3223  ;;  %v11636_v18 = vld [vmem:[%s17091_s5 + $0x110] sm:$0xff] }
 0x790   : > { %v10931_v9 = vpop.eup %10930  ;;  %v3043_v62 = vpack.c.bf16 %v3030_v34, %v3029_v31  ;;  %v2989_v40 = vadd.f32 1.0, %v10929_v48  ;;  %10214 = vmatpush3.bf16.msra.mxu1 %v11631_v14  ;;  %v3226_v23 = vpop.permute.xlu1 %3225  ;;  %v11637_v48 = vld [vmem:[%s17091_s5 + $0x108] sm:$0xff] }
 0x791   : > { %v10933_v42 = vpop.eup %10932  ;;  %10942 = vrcp.f32 %v2991_v24  ;;  %v2992_v38 = vadd.f32 1.0, %v10931_v9  ;;  %10215 = vmatprep.subr.bf16.mxu1 %v11632_v4  ;;  %v11638_v24 = vld [vmem:[%s17091_s5 + $0x118] sm:$0xff] }
 0x792   : > { %10944 = vrcp.f32 %v2989_v40  ;;  %v2990_v33 = vadd.f32 1.0, %v10933_v42  ;;  %10179 = vmatprep.mubr.msk.bf16.mxu1 %vm1552_vm1, %v3043_v62 }
 0x793   : > { %v10935_v59 = vpop.eup %10934  ;;  %10946 = vrcp.f32 %v2992_v38  ;;  %10180 = vmatmul.mubr.msk.bf16.gmra.mrb[52].mxu1 %vm1552_vm1, %v3044_v27  ;;  %v3228_v58 = vpop.permute.xlu0 %3227 }
 0x794   : > { %v10937_v10 = vpop.eup %10936  ;;  %10948 = vrcp.f32 %v2990_v33  ;;  %10216 = vmatpush3.bf16.msra.mxu1 %v11632_v4  ;;  %v3035_v7 = vmul.f32 %v10935_v59, %v13575_v50 }
 0x795   : > { %v10939_v51 = vpop.eup %10938  ;;  %10217 = vmatprep.subr.bf16.mxu1 %v11633_v45  ;;  %v3033_v53 = vmul.f32 %v10937_v10, %v13580_v26  ;;  %v11639_v10 = vld [vmem:[%s17091_s5 + $0x120] sm:$0xff] }
 0x796   : > { %v10941_v47 = vpop.eup %10940  ;;  %v3036_v52 = vmul.f32 %v10939_v51, %v13586_v54 }
 0x797   : > { %v3034_v8 = vmul.f32 %v10941_v47, %v13592_v32  ;;  %v3232_v40 = vpop.permute.xlu0 %3231 }
 0x798   : > { %v3046_v12 = vpack.c.bf16 %v3036_v52, %v3035_v7  ;;  %10218 = vmatpush3.bf16.msra.mxu1 %v11633_v45  ;;  %v11640_v7 = vld [vmem:[%s17091_s5 + $0x130] sm:$0xff] }
 0x799   : > { %v3045_v36 = vpack.c.bf16 %v3034_v8, %v3033_v53  ;;  %10259 = vmatprep.subr.bf16.mxu1 %v13654_v37  ;;  %v11641_v8 = vld [vmem:[%s17091_s5 + $0x128] sm:$0xff] }
 0x79b   : > { %v10943_v3 = vpop.eup %10942  ;;  %10183 = vmatprep.mubr.msk.bf16.mxu1 %vm1552_vm1, %v3045_v36  ;;  %v3236_v36 = vpop.permute.xlu0 %3235 }
 0x79c   : > { %v10945_v50 = vpop.eup %10944  ;;  %10184 = vmatmul.mubr.msk.bf16.gmra.mrb[56].mxu1 %vm1552_vm1, %v3046_v12  ;;  %v3039_v32 = vmul.f32 %v10943_v3, %v13599_v63  ;;  %v11635_v63 = vld [vmem:[%s17091_s5 + $0x100] sm:$0xff]  ;;  %v11642_v3 = vld [vmem:[%s17091_s5 + $0x138] sm:$0xff] }
 0x79d   : > { %v10947_v54 = vpop.eup %10946  ;;  %v3037_v43 = vmul.f32 %v10945_v50, %v13604_v19 }
 0x79e   : > { %v10949_v26 = vpop.eup %10948  ;;  %v3040_v39 = vmul.f32 %v10947_v54, %v13610_v22 }
 0x79f   : > { %v3038_v57 = vmul.f32 %v10949_v26, %v13616_v2  ;;  %v3230_v2 = vpop.permute.xlu1 %3229 }
 0x7a0   : > { %v3048_v13 = vpack.c.bf16 %v3040_v39, %v3039_v32 }
 0x7a1   : > { %v3047_v44 = vpack.c.bf16 %v3038_v57, %v3037_v43 }
 0x7a3   : > { %10187 = vmatprep.mubr.msk.bf16.mxu1 %vm1552_vm1, %v3047_v44  ;;  %v3234_v4 = vpop.permute.xlu1 %3233  ;;  %v11643_v44 = vld [vmem:[%s17091_s5 + $0x140] sm:$0xff] }
 0x7a4   : > { %10188 = vmatmul.mubr.msk.bf16.gmra.mrb[60].mxu1 %vm1552_vm1, %v3048_v13  ;;  %v3240_v13 = vpop.permute.xlu0 %3239 }
 0x7a7   : > { %v3238_v26 = vpop.permute.xlu1 %3237 }
 0x85e   : > { %v10177_v6 = vpop.f32.mrb[48].mxu1 }
 0x85f   : > { %v3107_v46 = vpop.f32.mrb[49].mxu1  ;;  %v13673_v31 = vadd.f32 %v11636_v18, %v10177_v6  ;;  %v11644_v6 = vld [vmem:[%s17091_s5 + $0x150] sm:$0xff] }
 0x860   : > { %v13668_v19 = vadd.f32 %v11635_v63, %v3107_v46  ;;  %v10178_v22 = vpop.f32.mrb[50].mxu1  ;;  %v11645_v63 = vld [vmem:[%s17091_s5 + $0x148] sm:$0xff] }
 0x861   : > { %v3110_v14 = vpop.f32.mrb[51].mxu1  ;;  %v13684_v9 = vadd.f32 %v11638_v24, %v10178_v22  ;;  %v3269_v42 = vmul.f32 %v3224_v41, %v13673_v31 }
 0x862   : > { %v3267_v34 = vmul.f32 %v3220_v49, %v13668_v19  ;;  %v13679_v27 = vadd.f32 %v11637_v48, %v3110_v14 }
 0x863   : > { %v3270_v59 = vmul.f32 %v3226_v23, %v13684_v9  ;;  %v3242_v23 = vpop.permute.xlu1 %3241 }
 0x864   : > { %v3268_v62 = vmul.f32 %v3222_v11, %v13679_v27  ;;  %3299 = vrot.lane.b32.xlu0 %v3267_v34, %s11979_s27  ;;  %v3244_v34 = vpop.permute.xlu0 %3243 }
 0x866   : > { %v10181_v38 = vpop.f32.mrb[52].mxu1  ;;  %3301 = vrot.lane.b32.xlu1 %v3268_v62, %s11979_s27 }
 0x867   : > { %v3123_v33 = vpop.f32.mrb[53].mxu1  ;;  %v13700_v52 = vadd.f32 %v11640_v7, %v10181_v38  ;;  %v3246_v62 = vpop.permute.xlu1 %3245  ;;  %v11647_v38 = vld [vmem:[%s17091_s5 + $0x160] sm:$0xff]  ;;  %v11649_v7 = vld [vmem:[%s17091_s5 + $0x168] sm:$0xff] }
 0x868   : > { %v13694_v51 = vadd.f32 %v11639_v10, %v3123_v33  ;;  %v10182_v45 = vpop.f32.mrb[54].mxu1  ;;  %3303 = vrot.lane.b32.xlu0 %v3269_v42, %s11979_s27  ;;  %v11648_v10 = vld [vmem:[%s17091_s5 + $0x170] sm:$0xff] }
 0x869   : > { %v3126_v47 = vpop.f32.mrb[55].mxu1  ;;  %v13712_v50 = vadd.f32 %v11642_v3, %v10182_v45  ;;  %v3273_v32 = vmul.f32 %v3232_v40, %v13700_v52 }
 0x86a   : > { %v3271_v53 = vmul.f32 %v3228_v58, %v13694_v51  ;;  %v13706_v12 = vadd.f32 %v11641_v8, %v3126_v47  ;;  %3305 = vrot.lane.b32.xlu1 %v3270_v59, %s11979_s27  ;;  %v3248_v8 = vpop.permute.xlu0 %3247 }
 0x86b   : > { %v3274_v43 = vmul.f32 %v3234_v4, %v13712_v50 }
 0x86c   : > { %v3272_v54 = vmul.f32 %v3230_v2, %v13706_v12  ;;  %3307 = vrot.lane.b32.xlu0 %v3271_v53, %s11979_s27  ;;  %v11646_v2 = vld [vmem:[%s17091_s5 + $0x158] sm:$0xff] }
 0x86e   : > { %3309 = vrot.lane.b32.xlu1 %v3272_v54, %s11979_s27 }
 0x86f   : > { %v10185_v39 = vpop.f32.mrb[56].mxu1 }
 0x870   : > { %v3139_v57 = vpop.f32.mrb[57].mxu1  ;;  %3311 = vrot.lane.b32.xlu0 %v3273_v32, %s11979_s27  ;;  %v13729_v58 = vadd.f32 %v11644_v6, %v10185_v39 }
 0x871   : > { %v13723_v49 = vadd.f32 %v11643_v44, %v3139_v57  ;;  %v10186_v11 = vpop.f32.mrb[58].mxu1 }
 0x872   : > { %v3142_v41 = vpop.f32.mrb[59].mxu1  ;;  %3313 = vrot.lane.b32.xlu1 %v3274_v43, %s11979_s27  ;;  %v13740_v14 = vadd.f32 %v11646_v2, %v10186_v11  ;;  %v3277_v48 = vmul.f32 %v3240_v13, %v13729_v58  ;;  %v3170_v43 = vadd.f32 %v13668_v19, %v13182_v21  ;;  %v3171_v13 = vadd.f32 %v13679_v27, %v13189_v15 }
 0x873   : > { %v3275_v46 = vmul.f32 %v3236_v36, %v13723_v49  ;;  %v13735_v22 = vadd.f32 %v11645_v63, %v3142_v41  ;;  %v11650_v36 = vld [vmem:[%s17091_s5 + $0x178] sm:$0xff]  ;;  %v3172_v41 = vadd.f32 %v13673_v31, %v13198_v16  ;;  %v3173_v21 = vadd.f32 %v13684_v9, %v13205_v29 }
 0x874   : > { %v3278_v42 = vmul.f32 %v3242_v23, %v13740_v14  ;;  %v3174_v16 = vadd.f32 %v13694_v51, %v13215_v56  ;;  %v3175_v9 = vadd.f32 %v13706_v12, %v13222_v0  ;;  %v3176_v51 = vadd.f32 %v13700_v52, %v13238_v25  ;;  %v13827_v12 = vld [vmem:[%s17090_s4 + $0x20] sm:$0xff]  }
 0x875   : > { %v3276_v18 = vmul.f32 %v3238_v26, %v13735_v22  ;;  %3315 = vrot.lane.b32.xlu0 %v3275_v46, %s11979_s27  ;;  %v3250_v26 = vpop.permute.xlu1 %3249 }
 0x877   : > { %v10189_v24 = vpop.f32.mrb[60].mxu1  ;;  %3317 = vrot.lane.b32.xlu1 %v3276_v18, %s11979_s27  ;;  %v3177_v18 = vadd.f32 %v13712_v50, %v13246_v20  ;;  %v3178_v20 = vadd.f32 %v13723_v49, %v13261_v30  ;;  %v3180_v49 = vadd.f32 %v13729_v58, %v13281_v17 }
 0x878   : > { %v3155_v40 = vpop.f32.mrb[61].mxu1  ;;  %v13756_v45 = vadd.f32 %v11648_v10, %v10189_v24 }
 0x879   : > { %v13750_v4 = vadd.f32 %v11647_v38, %v3155_v40  ;;  %v10190_v33 = vpop.f32.mrb[62].mxu1  ;;  %3319 = vrot.lane.b32.xlu0 %v3277_v48, %s11979_s27  ;;  %v11653_v40 = vld [vmem:[%s17090_s4 + $0x30] sm:$0xff]  }
 0x87a   : > { %v3158_v59 = vpop.f32.mrb[63].mxu1  ;;  %v13768_v3 = vadd.f32 %v11650_v36, %v10190_v33  ;;  %v3281_v32 = vmul.f32 %v3248_v8, %v13756_v45 }
 0x87b   : > { %v3279_v47 = vmul.f32 %v3244_v34, %v13750_v4  ;;  %v13762_v53 = vadd.f32 %v11649_v7, %v3158_v59  ;;  %3321 = vrot.lane.b32.xlu1 %v3278_v42, %s11979_s27  ;;  %v11652_v34 = vld [vmem:[%s17090_s4 + $0x28] sm:$0xff]   ;;  %v3179_v42 = vadd.f32 %v13735_v22, %v13269_v5  ;;  %v11654_v5 = vld [vmem:[%s17090_s4 + $0x38] sm:$0xff]   ;;  %v3181_v22 = vadd.f32 %v13740_v14, %v13288_v61  ;;  %v13893_v14 = vld [vmem:[%s17089_s3] sm:$0xff]  }
 0x87c   : > { %v3282_v39 = vmul.f32 %v3250_v26, %v13768_v3 }
 0x87d   : > { %v3280_v54 = vmul.f32 %v3246_v62, %v13762_v53  ;;  %3323 = vrot.lane.b32.xlu0 %v3279_v47, %s11979_s27  ;;  %v3182_v47 = vadd.f32 %v13750_v4, %v13304_v35  ;;  %v3183_v35 = vadd.f32 %v13762_v53, %v13311_v1  ;;  %v3185_v53 = vadd.f32 %v13768_v3, %v13326_v28  ;;  %v9119_v3 = vld [vmem:[%s12701_s7 + $0x110] sm:$0xff] }
 0x87f   : > { %3325 = vrot.lane.b32.xlu1 %v3280_v54, %s11979_s27  ;;  %v3184_v54 = vadd.f32 %v13756_v45, %v13321_v60 }
 0x881   : > { %3327 = vrot.lane.b32.xlu0 %v3281_v32, %s11979_s27 }
 0x883   : > { %3329 = vrot.lane.b32.xlu1 %v3282_v39, %s11979_s27 }
 0x8d6   : > { %v3300_v57 = vpop.permute.xlu0 %3299 }
 0x8d7   : > { %v13781_v44 = vadd.f32 %v3300_v57, %v3170_v43  ;;  %v9120_v57 = vld [vmem:[%s12701_s7 + $0x118] sm:$0xff] }
 0x8d8   : > { %v3302_v11 = vpop.permute.xlu1 %3301 }
 0x8d9   : > { %9101 = vst.msk [vmem:[%s12569_s18 + $0x100] sm:$0xff] %vm1346_vm0, %v13781_v44  ;;  %v13788_v23 = vadd.f32 %v3302_v11, %v3171_v13  ;;  %v9117_v11 = vld [vmem:[%s12701_s7 + $0x100] sm:$0xff] }
 0x8da   : > { %v3304_v6 = vpop.permute.xlu0 %3303 }
 0x8db   : > { %9102 = vst.msk [vmem:[%s12569_s18 + $0x108] sm:$0xff] %vm1346_vm0, %v13788_v23  ;;  %v3380_v15 = vpack.c.bf16 %v13788_v23, %v13781_v44  ;;  %v13797_v19 = vadd.f32 %v3304_v6, %v3172_v41  ;;  %v9118_v41 = vld [vmem:[%s12701_s7 + $0x108] sm:$0xff] }
 0x8dc   : > { %v3306_v27 = vpop.permute.xlu1 %3305 }
 0x8dd   : > { %9103 = vst.msk [vmem:[%s12569_s18 + $0x110] sm:$0xff] %vm1346_vm0, %v13797_v19  ;;  %v13804_v31 = vadd.f32 %v3306_v27, %v3173_v21  ;;  %10195 = vmatprep.mubr.msk.bf16.mxu0 %vm1346_vm0, %v3380_v15 }
 0x8de   : > { %v3308_v29 = vpop.permute.xlu0 %3307 }
 0x8df   : > { %9104 = vst.msk [vmem:[%s12569_s18 + $0x118] sm:$0xff] %vm1346_vm0, %v13804_v31  ;;  %v3381_v46 = vpack.c.bf16 %v13804_v31, %v13797_v19  ;;  %v13814_v63 = vadd.f32 %v3308_v29, %v3174_v16 }
 0x8e0   : > { %v3310_v56 = vpop.permute.xlu1 %3309 }
 0x8e1   : > { %9105 = vst.msk [vmem:[%s12569_s18 + $0x120] sm:$0xff] %vm1346_vm0, %v13814_v63  ;;  %v13821_v2 = vadd.f32 %v3310_v56, %v3175_v9  ;;  %10196 = vmatmul.mubr.msk.bf16.vlgmr.msra.gmra.mrb[64].mxu0 %vm1346_vm0, %v3381_v46  ;;  %v9123_v56 = vld [vmem:[%s12701_s7 + $0x130] sm:$0xff] }
 0x8e2   : > { %v3312_v0 = vpop.permute.xlu0 %3311  ;;  %10236 = vmatpush3.bf16.msra.mxu0 %v13827_v12 }
 0x8e3   : > { %9106 = vst.msk [vmem:[%s12569_s18 + $0x128] sm:$0xff] %vm1346_vm0, %v13821_v2  ;;  %v3382_v25 = vpack.c.bf16 %v13821_v2, %v13814_v63  ;;  %v13837_v52 = vadd.f32 %v3312_v0, %v3176_v51  ;;  %10237 = vmatprep.subr.bf16.mxu0 %v11652_v34  ;;  %v9124_v0 = vld [vmem:[%s12701_s7 + $0x138] sm:$0xff] }
 0x8e4   : > { %v3314_v48 = vpop.permute.xlu1 %3313 }
 0x8e5   : > { %9107 = vst.msk [vmem:[%s12569_s18 + $0x130] sm:$0xff] %vm1346_vm0, %v13837_v52  ;;  %v13845_v24 = vadd.f32 %v3314_v48, %v3177_v18  ;;  %10199 = vmatprep.mubr.msk.bf16.mxu0 %vm1346_vm0, %v3382_v25  ;;  %v9121_v25 = vld [vmem:[%s12701_s7 + $0x120] sm:$0xff] }
 0x8e6   : > { %10238 = vmatpush3.bf16.msra.mxu0 %v11652_v34  ;;  %v9122_v34 = vld [vmem:[%s12701_s7 + $0x128] sm:$0xff] }
 0x8e7   : > { %9108 = vst.msk [vmem:[%s12569_s18 + $0x138] sm:$0xff] %vm1346_vm0, %v13845_v24  ;;  %v3383_v50 = vpack.c.bf16 %v13845_v24, %v13837_v52  ;;  %v3316_v62 = vpop.permute.xlu0 %3315  ;;  %10239 = vmatprep.subr.bf16.mxu0 %v11653_v40 }
 0x8e8   : > { %v13860_v38 = vadd.f32 %v3316_v62, %v3178_v20 }
 0x8e9   : > { %v3318_v30 = vpop.permute.xlu1 %3317  ;;  %10200 = vmatmul.mubr.msk.bf16.gmra.mrb[68].mxu0 %vm1346_vm0, %v3383_v50 }
 0x8ea   : > { %9109 = vst.msk [vmem:[%s12569_s18 + $0x140] sm:$0xff] %vm1346_vm0, %v13860_v38  ;;  %v13868_v33 = vadd.f32 %v3318_v30, %v3179_v42  ;;  %10240 = vmatpush3.bf16.msra.mxu0 %v11653_v40  ;;  %v11656_v40 = vld [vmem:[%s17090_s4 + $0x48] sm:$0xff]  }
 0x8eb   : > { %v3320_v59 = vpop.permute.xlu0 %3319  ;;  %10241 = vmatprep.subr.bf16.mxu0 %v11654_v5 }
 0x8ec   : > { %9110 = vst.msk [vmem:[%s12569_s18 + $0x148] sm:$0xff] %vm1346_vm0, %v13868_v33  ;;  %v3384_v17 = vpack.c.bf16 %v13868_v33, %v13860_v38  ;;  %v13880_v58 = vadd.f32 %v3320_v59, %v3180_v49 }
 0x8ed   : > { %v3322_v10 = vpop.permute.xlu1 %3321 }
 0x8ee   : > { %9111 = vst.msk [vmem:[%s12569_s18 + $0x150] sm:$0xff] %vm1346_vm0, %v13880_v58  ;;  %v13887_v7 = vadd.f32 %v3322_v10, %v3181_v22  ;;  %10203 = vmatprep.mubr.msk.bf16.mxu0 %vm1346_vm0, %v3384_v17  ;;  %10242 = vmatpush3.bf16.msra.mxu0 %v11654_v5  ;;  %v9127_v5 = vld [vmem:[%s12701_s7 + $0x150] sm:$0xff]  ;;  %v9128_v17 = vld [vmem:[%s12701_s7 + $0x158] sm:$0xff] }
 0x8ef   : > { %v3324_v61 = vpop.permute.xlu0 %3323  ;;  %10283 = vmatprep.subr.bf16.mxu0 %v13893_v14 }
 0x8f0   : > { %9112 = vst.msk [vmem:[%s12569_s18 + $0x158] sm:$0xff] %vm1346_vm0, %v13887_v7  ;;  %v3385_v4 = vpack.c.bf16 %v13887_v7, %v13880_v58  ;;  %v13903_v8 = vadd.f32 %v3324_v61, %v3182_v47  ;;  %v9125_v47 = vld [vmem:[%s12701_s7 + $0x140] sm:$0xff]  ;;  %v9126_v61 = vld [vmem:[%s12701_s7 + $0x148] sm:$0xff] }
 0x8f1   : > { %v3326_v36 = vpop.permute.xlu1 %3325 }
 0x8f2   : > { %9113 = vst.msk [vmem:[%s12569_s18 + $0x160] sm:$0xff] %vm1346_vm0, %v13903_v8  ;;  %v13910_v26 = vadd.f32 %v3326_v36, %v3183_v35  ;;  %10204 = vmatmul.mubr.msk.bf16.gmra.mrb[72].mxu0 %vm1346_vm0, %v3385_v4  ;;  %v11658_v4 = vld [vmem:[%s17090_s4 + $0x58] sm:$0xff]  }
 0x8f3   : > { %v3328_v1 = vpop.permute.xlu0 %3327 }
 0x8f4   : > { %9114 = vst.msk [vmem:[%s12569_s18 + $0x168] sm:$0xff] %vm1346_vm0, %v13910_v26  ;;  %v3386_v60 = vpack.c.bf16 %v13910_v26, %v13903_v8  ;;  %v13920_v45 = vadd.f32 %v3328_v1, %v3184_v54 }
 0x8f5   : > { %v3330_v32 = vpop.permute.xlu1 %3329 }
 0x8f6   : > { %9115 = vst.msk [vmem:[%s12569_s18 + $0x170] sm:$0xff] %vm1346_vm0, %v13920_v45  ;;  %v13925_v39 = vadd.f32 %v3330_v32, %v3185_v53  ;;  %10207 = vmatprep.mubr.msk.bf16.mxu0 %vm1346_vm0, %v3386_v60 }
 0x8f8   : > { %9116 = vst.msk [vmem:[%s12569_s18 + $0x178] sm:$0xff] %vm1346_vm0, %v13925_v39  ;;  %v3387_v28 = vpack.c.bf16 %v13925_v39, %v13920_v45 }
 0x8fa   : > { %10208 = vmatmul.mubr.msk.bf16.gmra.mrb[76].mxu0 %vm1346_vm0, %v3387_v28 }
 0x9b4   : > { %v10197_v43 = vpop.f32.mrb[64].mxu0 }
 0x9b5   : > { %v3463_v13 = vpop.f32.mrb[65].mxu0  ;;  %v3472_v21 = vadd.f32 %v10197_v43, %v9119_v3  ;;  %v9131_v3 = vld [vmem:[%s12701_s7 + $0x170] sm:$0xff] }
 0x9b6   : > { %v10198_v6 = vpop.f32.mrb[66].mxu0  ;;  %v3464_v16 = vadd.f32 %v9117_v11, %v3463_v13  ;;  %v9129_v11 = vld [vmem:[%s12701_s7 + $0x160] sm:$0xff] }
 0x9b7   : > { %v3475_v15 = vadd.f32 %v10198_v6, %v9120_v57  ;;  %v3466_v27 = vpop.f32.mrb[67].mxu0  ;;  %v9132_v57 = vld [vmem:[%s12701_s7 + $0x178] sm:$0xff] }
 0x9b8   : > { %v3467_v29 = vadd.f32 %v9118_v41, %v3466_v27  ;;  %v9130_v41 = vld [vmem:[%s12701_s7 + $0x168] sm:$0xff] }
 0x9b9   : > { %v3527_v9 = vpack.c.bf16 %v3475_v15, %v3472_v21 }
 0x9ba   : > { %v3526_v46 = vpack.c.bf16 %v3467_v29, %v3464_v16 }
 0x9bc   : > { %v10201_v51 = vpop.f32.mrb[68].mxu0  ;;  %10219 = vmatprep.mubr.msk.bf16.mxu1 %vm1552_vm1, %v3526_v46 }
 0x9bd   : > { %v3479_v18 = vpop.f32.mrb[69].mxu0  ;;  %10220 = vmatmul.mubr.msk.bf16.vlgmr.msra.gmra.mrb[64].mxu1 %vm1552_vm1, %v3527_v9  ;;  %v3488_v20 = vadd.f32 %v10201_v51, %v9123_v56  ;;  %v11659_v56 = vld [vmem:[%s17091_s5 + $0x10] sm:$0xff] }
 0x9be   : > { %v10202_v48 = vpop.f32.mrb[70].mxu0  ;;  %10260 = vmatpush3.bf16.msra.mxu1 %v13654_v37  ;;  %v3480_v42 = vadd.f32 %v9121_v25, %v3479_v18  ;;  %v11657_v37 = vld [vmem:[%s17090_s4 + $0x50] sm:$0xff]   ;;  %v11660_v18 = vld [vmem:[%s17091_s5] sm:$0xff] }
 0x9bf   : > { %v3491_v50 = vadd.f32 %v10202_v48, %v9124_v0  ;;  %v3482_v62 = vpop.f32.mrb[71].mxu0  ;;  %10261 = vmatprep.subr.bf16.mxu1 %v11656_v40 }
 0x9c0   : > { %v3483_v30 = vadd.f32 %v9122_v34, %v3482_v62 }
 0x9c1   : > { %v3529_v49 = vpack.c.bf16 %v3491_v50, %v3488_v20  ;;  %v11661_v20 = vld [vmem:[%s17091_s5 + $0x18] sm:$0xff] }
 0x9c2   : > { %v3528_v59 = vpack.c.bf16 %v3483_v30, %v3480_v42  ;;  %10262 = vmatpush3.bf16.msra.mxu1 %v11656_v40  ;;  %v11662_v42 = vld [vmem:[%s17091_s5 + $0x8] sm:$0xff] }
 0x9c3   : > { %10263 = vmatprep.subr.bf16.mxu1 %v11657_v37 }
 0x9c4   : > { %10223 = vmatprep.mubr.msk.bf16.mxu1 %vm1552_vm1, %v3528_v59 }
 0x9c5   : > { %v10205_v22 = vpop.f32.mrb[72].mxu0  ;;  %10224 = vmatmul.mubr.msk.bf16.gmra.mrb[68].mxu1 %vm1552_vm1, %v3529_v49 }
 0x9c6   : > { %v3495_v10 = vpop.f32.mrb[73].mxu0  ;;  %10264 = vmatpush3.bf16.msra.mxu1 %v11657_v37  ;;  %v3504_v36 = vadd.f32 %v10205_v22, %v9127_v5  ;;  %v11663_v5 = vld [vmem:[%s17091_s5 + $0x30] sm:$0xff] }
 0x9c7   : > { %v10206_v35 = vpop.f32.mrb[74].mxu0  ;;  %10265 = vmatprep.subr.bf16.mxu1 %v11658_v4  ;;  %v3496_v53 = vadd.f32 %v9125_v47, %v3495_v10  ;;  %v11664_v10 = vld [vmem:[%s17091_s5 + $0x20] sm:$0xff] }
 0x9c8   : > { %v3507_v54 = vadd.f32 %v10206_v35, %v9128_v17  ;;  %v3498_v1 = vpop.f32.mrb[75].mxu0 }
 0x9c9   : > { %v3499_v60 = vadd.f32 %v9126_v61, %v3498_v1 }
 0x9ca   : > { %v3531_v32 = vpack.c.bf16 %v3507_v54, %v3504_v36  ;;  %10266 = vmatpush3.bf16.msra.mxu1 %v11658_v4  ;;  %v11665_v4 = vld [vmem:[%s17091_s5 + $0x38] sm:$0xff] }
 0x9cb   : > { %v3530_v28 = vpack.c.bf16 %v3499_v60, %v3496_v53  ;;  %10303 = vmatprep.subr.bf16.mxu1 %v13629_v55  ;;  %v11666_v53 = vld [vmem:[%s17091_s5 + $0x28] sm:$0xff] }
 0x9cd   : > { %v10209_v43 = vpop.f32.mrb[76].mxu0  ;;  %10227 = vmatprep.mubr.msk.bf16.mxu1 %vm1552_vm1, %v3530_v28 }
 0x9ce   : > { %v3511_v13 = vpop.f32.mrb[77].mxu0  ;;  %10228 = vmatmul.mubr.msk.bf16.gmra.mrb[72].mxu1 %vm1552_vm1, %v3531_v32  ;;  %v3520_v21 = vadd.f32 %v10209_v43, %v9131_v3 }
 0x9cf   : > { %v10210_v6 = vpop.f32.mrb[78].mxu0  ;;  %v3512_v16 = vadd.f32 %v9129_v11, %v3511_v13 }
 0x9d0   : > { %v3523_v15 = vadd.f32 %v10210_v6, %v9132_v57  ;;  %v3514_v27 = vpop.f32.mrb[79].mxu0 }
 0x9d1   : > { %v3515_v29 = vadd.f32 %v9130_v41, %v3514_v27 }
 0x9d2   : > { %v3533_v9 = vpack.c.bf16 %v3523_v15, %v3520_v21  ;;  %v11667_v15 = vld [vmem:[%s17091_s5 + $0x50] sm:$0xff] }
 0x9d3   : > { %v3532_v46 = vpack.c.bf16 %v3515_v29, %v3512_v16 }
 0x9d5   : > { %10231 = vmatprep.mubr.msk.bf16.mxu1 %vm1552_vm1, %v3532_v46 }
 0x9d6   : > { %10232 = vmatmul.mubr.msk.bf16.gmra.mrb[76].mxu1 %vm1552_vm1, %v3533_v9  ;;  %v11668_v9 = vld [vmem:[%s17091_s5 + $0x40] sm:$0xff] }
 0xa90   : > { %v10221_v55 = vpop.f32.mrb[64].mxu1 }
 0xa91   : > { %v13972_v51 = vadd.f32 %v11659_v56, %v10221_v55  ;;  %v3592_v0 = vpop.f32.mrb[65].mxu1 }
 0xa92   : > { %v13977_v25 = vadd.f32 %v11660_v18, %v3592_v0  ;;  %v10222_v34 = vpop.f32.mrb[66].mxu1  ;;  %v11669_v0 = vld [vmem:[%s17091_s5 + $0x58] sm:$0xff] }
 0xa93   : > { %v9151_v48 = vmul.f32 -1.442695, %v13972_v51  ;;  %v13983_v50 = vadd.f32 %v11661_v20, %v10222_v34  ;;  %v3595_v62 = vpop.f32.mrb[67].mxu1  ;;  %v11670_v20 = vld [vmem:[%s17091_s5 + $0x48] sm:$0xff] }
 0xa94   : > { %v9149_v40 = vmul.f32 -1.442695, %v13977_v25  ;;  %v13989_v30 = vadd.f32 %v11662_v42, %v3595_v62 }
 0xa95   : > { %10950 = vpow2.f32 %v9151_v48  ;;  %v9152_v49 = vmul.f32 -1.442695, %v13983_v50 }
 0xa96   : > { %10952 = vpow2.f32 %v9149_v40  ;;  %v9150_v59 = vmul.f32 -1.442695, %v13989_v30 }
 0xa97   : > { %10954 = vpow2.f32 %v9152_v49 }
 0xa98   : > { %10956 = vpow2.f32 %v9150_v59  ;;  %v10225_v37 = vpop.f32.mrb[68].mxu1 }
 0xa99   : > { %v13996_v22 = vadd.f32 %v11663_v5, %v10225_v37  ;;  %v3608_v17 = vpop.f32.mrb[69].mxu1 }
 0xa9a   : > { %v14001_v47 = vadd.f32 %v11664_v10, %v3608_v17  ;;  %v10226_v61 = vpop.f32.mrb[70].mxu1 }
 0xa9b   : > { %v9155_v35 = vmul.f32 -1.442695, %v13996_v22  ;;  %v14007_v36 = vadd.f32 %v11665_v4, %v10226_v61  ;;  %v3611_v54 = vpop.f32.mrb[71].mxu1  ;;  %v11671_v4 = vld [vmem:[%s17091_s5 + $0x70] sm:$0xff] }
 0xa9c   : > { %v9153_v1 = vmul.f32 -1.442695, %v14001_v47  ;;  %v14013_v60 = vadd.f32 %v11666_v53, %v3611_v54 }
 0xa9d   : > { %10958 = vpow2.f32 %v9155_v35  ;;  %v9156_v32 = vmul.f32 -1.442695, %v14007_v36 }
 0xa9e   : > { %10960 = vpow2.f32 %v9153_v1  ;;  %v9154_v28 = vmul.f32 -1.442695, %v14013_v60 }
 0xa9f   : > { %v10951_v3 = vpop.eup %10950  ;;  %10962 = vpow2.f32 %v9156_v32  ;;  %v11672_v32 = vld [vmem:[%s17091_s5 + $0x60] sm:$0xff] }
 0xaa0   : > { %v10953_v43 = vpop.eup %10952  ;;  %v3705_v57 = vadd.f32 1.0, %v10951_v3  ;;  %10964 = vpow2.f32 %v9154_v28 }
 0xaa1   : > { %v10955_v13 = vpop.eup %10954  ;;  %v3703_v11 = vadd.f32 1.0, %v10953_v43  ;;  %v10229_v41 = vpop.f32.mrb[72].mxu1 }
 0xaa2   : > { %v10957_v6 = vpop.eup %10956  ;;  %10966 = vrcp.f32 %v3705_v57  ;;  %v3706_v21 = vadd.f32 1.0, %v10955_v13  ;;  %v14020_v27 = vadd.f32 %v11667_v15, %v10229_v41  ;;  %v3624_v16 = vpop.f32.mrb[73].mxu1  ;;  %v11673_v13 = vld [vmem:[%s17091_s5 + $0x78] sm:$0xff]  ;;  %v11674_v15 = vld [vmem:[%s17091_s5 + $0x68] sm:$0xff] }
 0xaa3   : > { %10968 = vrcp.f32 %v3703_v11  ;;  %v3704_v29 = vadd.f32 1.0, %v10957_v6  ;;  %v14025_v46 = vadd.f32 %v11668_v9, %v3624_v16  ;;  %v10230_v55 = vpop.f32.mrb[74].mxu1 }
 0xaa4   : > { %10970 = vrcp.f32 %v3706_v21  ;;  %v9159_v56 = vmul.f32 -1.442695, %v14020_v27  ;;  %v14031_v18 = vadd.f32 %v11669_v0, %v10230_v55  ;;  %v3627_v34 = vpop.f32.mrb[75].mxu1 }
 0xaa5   : > { %10972 = vrcp.f32 %v3704_v29  ;;  %v9157_v48 = vmul.f32 -1.442695, %v14025_v46  ;;  %v14037_v62 = vadd.f32 %v11670_v20, %v3627_v34 }
 0xaa6   : > { %10974 = vpow2.f32 %v9159_v56  ;;  %v9160_v40 = vmul.f32 -1.442695, %v14031_v18 }
 0xaa7   : > { %v10959_v42 = vpop.eup %10958  ;;  %10976 = vpow2.f32 %v9157_v48  ;;  %v9158_v49 = vmul.f32 -1.442695, %v14037_v62 }
 0xaa8   : > { %v10961_v59 = vpop.eup %10960  ;;  %v3709_v37 = vadd.f32 1.0, %v10959_v42  ;;  %10978 = vpow2.f32 %v9160_v40 }
 0xaa9   : > { %v10963_v5 = vpop.eup %10962  ;;  %v3707_v17 = vadd.f32 1.0, %v10961_v59  ;;  %10980 = vpow2.f32 %v9158_v49  ;;  %v10233_v10 = vpop.f32.mrb[76].mxu1 }
 0xaaa   : > { %v10965_v61 = vpop.eup %10964  ;;  %10982 = vrcp.f32 %v3709_v37  ;;  %v3710_v35 = vadd.f32 1.0, %v10963_v5  ;;  %v14044_v54 = vadd.f32 %v11671_v4, %v10233_v10  ;;  %v3640_v1 = vpop.f32.mrb[77].mxu1 }
 0xaab   : > { %10984 = vrcp.f32 %v3707_v17  ;;  %v3708_v53 = vadd.f32 1.0, %v10965_v61  ;;  %v14049_v28 = vadd.f32 %v11672_v32, %v3640_v1  ;;  %v10234_v3 = vpop.f32.mrb[78].mxu1 }
 0xaac   : > { %v10967_v43 = vpop.eup %10966  ;;  %10986 = vrcp.f32 %v3710_v35  ;;  %v9163_v57 = vmul.f32 -1.442695, %v14044_v54  ;;  %v14055_v11 = vadd.f32 %v11673_v13, %v10234_v3  ;;  %v3643_v41 = vpop.f32.mrb[79].mxu1 }
 0xaad   : > { %v10969_v6 = vpop.eup %10968  ;;  %10988 = vrcp.f32 %v3708_v53  ;;  %v9161_v21 = vmul.f32 -1.442695, %v14049_v28  ;;  %v14061_v16 = vadd.f32 %v11674_v15, %v3643_v41  ;;  %v3753_v56 = vmul.f32 %v10967_v43, %v13972_v51  ;;  %v11675_v53 = vld [vmem:[%s17089_s3 + $0x8] sm:$0xff]  }
 0xaae   : > { %v10971_v29 = vpop.eup %10970  ;;  %10990 = vpow2.f32 %v9163_v57  ;;  %v9164_v9 = vmul.f32 -1.442695, %v14055_v11  ;;  %v3751_v20 = vmul.f32 %v10969_v6, %v13977_v25 }
 0xaaf   : > { %v10973_v55 = vpop.eup %10972  ;;  %v3754_v0 = vmul.f32 %v10971_v29, %v13983_v50  ;;  %10992 = vpow2.f32 %v9161_v21  ;;  %v9162_v34 = vmul.f32 -1.442695, %v14061_v16 }
 0xab0   : > { %v10975_v48 = vpop.eup %10974  ;;  %v3752_v40 = vmul.f32 %v10973_v55, %v13989_v30  ;;  %10994 = vpow2.f32 %v9164_v9 }
 0xab1   : > { %v10977_v42 = vpop.eup %10976  ;;  %v3768_v49 = vpack.c.bf16 %v3754_v0, %v3753_v56  ;;  %v3713_v59 = vadd.f32 1.0, %v10975_v48  ;;  %10996 = vpow2.f32 %v9162_v34 }
 0xab2   : > { %v10979_v37 = vpop.eup %10978  ;;  %v3767_v5 = vpack.c.bf16 %v3752_v40, %v3751_v20  ;;  %v3711_v17 = vadd.f32 1.0, %v10977_v42 }
 0xab3   : > { %v10981_v10 = vpop.eup %10980  ;;  %10998 = vrcp.f32 %v3713_v59  ;;  %v3714_v51 = vadd.f32 1.0, %v10979_v37 }
 0xab4   : > { %v10983_v50 = vpop.eup %10982  ;;  %11000 = vrcp.f32 %v3711_v17  ;;  %v3712_v61 = vadd.f32 1.0, %v10981_v10  ;;  %10243 = vmatprep.mubr.msk.bf16.mxu0 %vm1552_vm1, %v3767_v5  ;;  %v9197_v5 = vld [vmem:[%s12898_s21 + $0x100] sm:$0xff]  ;;  %v9198_v17 = vld [vmem:[%s12898_s21 + $0x108] sm:$0xff]  ;;  %v9203_v10 = vld [vmem:[%s12898_s21 + $0x130] sm:$0xff] }
 0xab5   : > { %v10985_v35 = vpop.eup %10984  ;;  %11002 = vrcp.f32 %v3714_v51  ;;  %10244 = vmatmul.mubr.msk.bf16.vlgmr.msra.gmra.mrb[80].mxu0 %vm1552_vm1, %v3768_v49  ;;  %v3757_v4 = vmul.f32 %v10983_v50, %v13996_v22  ;;  %4186 = vrot.lane.b32.xlu0 %v9197_v5, %s11978_s8  ;;  %v9204_v51 = vld [vmem:[%s12898_s21 + $0x138] sm:$0xff]  ;;  %v9205_v50 = vld [vmem:[%s12898_s21 + $0x140] sm:$0xff] }
 0xab6   : > { %v10987_v25 = vpop.eup %10986  ;;  %11004 = vrcp.f32 %v3712_v61  ;;  %10284 = vmatpush3.bf16.msra.mxu0 %v13893_v14  ;;  %v3755_v3 = vmul.f32 %v10985_v35, %v14001_v47  ;;  %4188 = vrot.lane.b32.xlu1 %v9198_v17, %s11978_s8  ;;  %v9206_v61 = vld [vmem:[%s12898_s21 + $0x148] sm:$0xff]  ;;  %v9207_v35 = vld [vmem:[%s12898_s21 + $0x150] sm:$0xff] }
 0xab7   : > { %v10989_v30 = vpop.eup %10988  ;;  %v3758_v1 = vmul.f32 %v10987_v25, %v14007_v36  ;;  %10285 = vmatprep.subr.bf16.mxu0 %v11675_v53  ;;  %v9208_v25 = vld [vmem:[%s12898_s21 + $0x158] sm:$0xff] }
 0xab8   : > { %v10991_v32 = vpop.eup %10990  ;;  %v3756_v43 = vmul.f32 %v10989_v30, %v14013_v60  ;;  %v9209_v30 = vld [vmem:[%s12898_s21 + $0x160] sm:$0xff] }
 0xab9   : > { %v10993_v57 = vpop.eup %10992  ;;  %v3770_v13 = vpack.c.bf16 %v3758_v1, %v3757_v4  ;;  %v3717_v41 = vadd.f32 1.0, %v10991_v32  ;;  %v9210_v4 = vld [vmem:[%s12898_s21 + $0x168] sm:$0xff]  ;;  %v9211_v1 = vld [vmem:[%s12898_s21 + $0x170] sm:$0xff] }
 0xaba   : > { %v10995_v6 = vpop.eup %10994  ;;  %v3769_v14 = vpack.c.bf16 %v3756_v43, %v3755_v3  ;;  %v3715_v21 = vadd.f32 1.0, %v10993_v57  ;;  %10286 = vmatpush3.bf16.msra.mxu0 %v11675_v53  ;;  %v9212_v53 = vld [vmem:[%s12898_s21 + $0x178] sm:$0xff]  ;;  %v11676_v3 = vld [vmem:[%s17091_s5 + $0x90] sm:$0xff] }
 0xabb   : > { %v10997_v22 = vpop.eup %10996  ;;  %11006 = vrcp.f32 %v3717_v41  ;;  %v3718_v36 = vadd.f32 1.0, %v10995_v6  ;;  %10327 = vmatprep.subr.bf16.mxu0 %v13827_v12 }
 0xabc   : > { %11008 = vrcp.f32 %v3715_v21  ;;  %v3716_v15 = vadd.f32 1.0, %v10997_v22  ;;  %10247 = vmatprep.mubr.msk.bf16.mxu0 %vm1552_vm1, %v3769_v14  ;;  %v11678_v21 = vld [vmem:[%s17091_s5 + $0x98] sm:$0xff] }
 0xabd   : > { %v10999_v29 = vpop.eup %10998  ;;  %11010 = vrcp.f32 %v3718_v36  ;;  %10248 = vmatmul.mubr.msk.bf16.gmra.mrb[84].mxu0 %vm1552_vm1, %v3770_v13  ;;  %v11677_v13 = vld [vmem:[%s17091_s5 + $0x80] sm:$0xff] }
 0xabe   : > { %v11001_v47 = vpop.eup %11000  ;;  %11012 = vrcp.f32 %v3716_v15  ;;  %v3761_v55 = vmul.f32 %v10999_v29, %v14020_v27  ;;  %v11679_v29 = vld [vmem:[%s17091_s5 + $0x88] sm:$0xff] }
 0xabf   : > { %v11003_v60 = vpop.eup %11002  ;;  %v3759_v0 = vmul.f32 %v11001_v47, %v14025_v46 }
 0xac0   : > { %v11005_v9 = vpop.eup %11004  ;;  %v3762_v56 = vmul.f32 %v11003_v60, %v14031_v18 }
 0xac1   : > { %v3760_v12 = vmul.f32 %v11005_v9, %v14037_v62 }
 0xac2   : > { %v3772_v34 = vpack.c.bf16 %v3762_v56, %v3761_v55  ;;  %v11680_v56 = vld [vmem:[%s17091_s5 + $0xb0] sm:$0xff] }
 0xac3   : > { %v3771_v48 = vpack.c.bf16 %v3760_v12, %v3759_v0 }
 0xac5   : > { %v11007_v20 = vpop.eup %11006  ;;  %10251 = vmatprep.mubr.msk.bf16.mxu0 %vm1552_vm1, %v3771_v48 }
 0xac6   : > { %v11009_v40 = vpop.eup %11008  ;;  %10252 = vmatmul.mubr.msk.bf16.gmra.mrb[88].mxu0 %vm1552_vm1, %v3772_v34  ;;  %v3765_v18 = vmul.f32 %v11007_v20, %v14044_v54  ;;  %v9199_v54 = vld [vmem:[%s12898_s21 + $0x110] sm:$0xff]  ;;  %v11681_v34 = vld [vmem:[%s17091_s5 + $0xa0] sm:$0xff] }
 0xac7   : > { %v11011_v42 = vpop.eup %11010  ;;  %v3763_v62 = vmul.f32 %v11009_v40, %v14049_v28  ;;  %v9200_v28 = vld [vmem:[%s12898_s21 + $0x118] sm:$0xff]  ;;  %4190 = vrot.lane.b32.xlu0 %v9199_v54, %s11978_s8 }
 0xac8   : > { %v11013_v27 = vpop.eup %11012  ;;  %v3766_v46 = vmul.f32 %v11011_v42, %v14055_v11  ;;  %4192 = vrot.lane.b32.xlu1 %v9200_v28, %s11978_s8  ;;  %v9201_v11 = vld [vmem:[%s12898_s21 + $0x120] sm:$0xff]  ;;  %v11682_v42 = vld [vmem:[%s17091_s5 + $0xb8] sm:$0xff] }
 0xac9   : > { %v3764_v49 = vmul.f32 %v11013_v27, %v14061_v16  ;;  %v9202_v16 = vld [vmem:[%s12898_s21 + $0x128] sm:$0xff] }
 0xaca   : > { %v3774_v59 = vpack.c.bf16 %v3766_v46, %v3765_v18 }
 0xacb   : > { %v3773_v37 = vpack.c.bf16 %v3764_v49, %v3763_v62  ;;  %4194 = vrot.lane.b32.xlu0 %v9201_v11, %s11978_s8  ;;  %v11683_v62 = vld [vmem:[%s17091_s5 + $0xa8] sm:$0xff] }
 0xacc   : > { %4196 = vrot.lane.b32.xlu1 %v9202_v16, %s11978_s8 }
 0xacd   : > { %10255 = vmatprep.mubr.msk.bf16.mxu0 %vm1552_vm1, %v3773_v37 }
 0xace   : > { %10256 = vmatmul.mubr.msk.bf16.gmra.mrb[92].mxu0 %vm1552_vm1, %v3774_v59 }
 0xacf   : > { %4198 = vrot.lane.b32.xlu0 %v9203_v10, %s11978_s8 }
 0xad0   : > { %4200 = vrot.lane.b32.xlu1 %v9204_v51, %s11978_s8 }
 0xad3   : > { %4202 = vrot.lane.b32.xlu0 %v9205_v50, %s11978_s8  ;;  %v11684_v50 = vld [vmem:[%s17091_s5 + $0xd0] sm:$0xff] }
 0xad4   : > { %4204 = vrot.lane.b32.xlu1 %v9206_v61, %s11978_s8 }
 0xad7   : > { %4206 = vrot.lane.b32.xlu0 %v9207_v35, %s11978_s8 }
 0xad8   : > { %4208 = vrot.lane.b32.xlu1 %v9208_v25, %s11978_s8 }
 0xadb   : > { %4210 = vrot.lane.b32.xlu0 %v9209_v30, %s11978_s8  ;;  %v11685_v30 = vld [vmem:[%s17091_s5 + $0xc0] sm:$0xff] }
 0xadc   : > { %4212 = vrot.lane.b32.xlu1 %v9210_v4, %s11978_s8 }
 0xadf   : > { %4214 = vrot.lane.b32.xlu0 %v9211_v1, %s11978_s8 }
 0xae0   : > { %4216 = vrot.lane.b32.xlu1 %v9212_v53, %s11978_s8 }
 0xb88   : > { %v10245_v32 = vpop.f32.mrb[80].mxu0 }
 0xb89   : > { %v14129_v43 = vadd.f32 %v11676_v3, %v10245_v32  ;;  %v3833_v57 = vpop.f32.mrb[81].mxu0  ;;  %v11686_v32 = vld [vmem:[%s17091_s5 + $0xd8] sm:$0xff] }
 0xb8a   : > { %v14134_v41 = vadd.f32 %v11677_v13, %v3833_v57  ;;  %v10246_v6 = vpop.f32.mrb[82].mxu0 }
 0xb8b   : > { %v9175_v14 = vmul.f32 -1.442695, %v14129_v43  ;;  %v14140_v22 = vadd.f32 %v11678_v21, %v10246_v6  ;;  %v3836_v36 = vpop.f32.mrb[83].mxu0  ;;  %v11687_v6 = vld [vmem:[%s17091_s5 + $0xc8] sm:$0xff] }
 0xb8c   : > { %v9173_v15 = vmul.f32 -1.442695, %v14134_v41  ;;  %v14146_v47 = vadd.f32 %v11679_v29, %v3836_v36 }
 0xb8d   : > { %11014 = vpow2.f32 %v9175_v14  ;;  %v9176_v60 = vmul.f32 -1.442695, %v14140_v22 }
 0xb8e   : > { %11016 = vpow2.f32 %v9173_v15  ;;  %v9174_v9 = vmul.f32 -1.442695, %v14146_v47 }
 0xb8f   : > { %11018 = vpow2.f32 %v9176_v60 }
 0xb90   : > { %11020 = vpow2.f32 %v9174_v9  ;;  %v10249_v55 = vpop.f32.mrb[84].mxu0 }
 0xb91   : > { %v14153_v0 = vadd.f32 %v11680_v56, %v10249_v55  ;;  %v3849_v12 = vpop.f32.mrb[85].mxu0 }
 0xb92   : > { %v14158_v48 = vadd.f32 %v11681_v34, %v3849_v12  ;;  %v10250_v20 = vpop.f32.mrb[86].mxu0 }
 0xb93   : > { %v9179_v40 = vmul.f32 -1.442695, %v14153_v0  ;;  %v14164_v27 = vadd.f32 %v11682_v42, %v10250_v20  ;;  %v3852_v18 = vpop.f32.mrb[87].mxu0  ;;  %v11688_v20 = vld [vmem:[%s17091_s5 + $0xf0] sm:$0xff] }
 0xb94   : > { %v9177_v46 = vmul.f32 -1.442695, %v14158_v48  ;;  %v14170_v49 = vadd.f32 %v11683_v62, %v3852_v18 }
 0xb95   : > { %11022 = vpow2.f32 %v9179_v40  ;;  %v9180_v59 = vmul.f32 -1.442695, %v14164_v27 }
 0xb96   : > { %11024 = vpow2.f32 %v9177_v46  ;;  %v9178_v37 = vmul.f32 -1.442695, %v14170_v49  ;;  %v11689_v46 = vld [vmem:[%s17091_s5 + $0xe0] sm:$0xff] }
 0xb97   : > { %v11015_v5 = vpop.eup %11014  ;;  %11026 = vpow2.f32 %v9180_v59 }
 0xb98   : > { %v11017_v17 = vpop.eup %11016  ;;  %v3946_v54 = vadd.f32 1.0, %v11015_v5  ;;  %11028 = vpow2.f32 %v9178_v37 }
 0xb99   : > { %v11019_v28 = vpop.eup %11018  ;;  %v3944_v11 = vadd.f32 1.0, %v11017_v17  ;;  %v10253_v16 = vpop.f32.mrb[88].mxu0  ;;  %v11690_v17 = vld [vmem:[%s17091_s5 + $0xf8] sm:$0xff] }
 0xb9a   : > { %v11021_v10 = vpop.eup %11020  ;;  %11030 = vrcp.f32 %v3946_v54  ;;  %v3947_v51 = vadd.f32 1.0, %v11019_v28  ;;  %v14177_v61 = vadd.f32 %v11684_v50, %v10253_v16  ;;  %v3865_v35 = vpop.f32.mrb[89].mxu0 }
 0xb9b   : > { %11032 = vrcp.f32 %v3944_v11  ;;  %v3945_v25 = vadd.f32 1.0, %v11021_v10  ;;  %v14182_v4 = vadd.f32 %v11685_v30, %v3865_v35  ;;  %v10254_v1 = vpop.f32.mrb[90].mxu0  ;;  %v11691_v10 = vld [vmem:[%s17091_s5 + $0xe8] sm:$0xff] }
 0xb9c   : > { %11034 = vrcp.f32 %v3947_v51  ;;  %v9183_v53 = vmul.f32 -1.442695, %v14177_v61  ;;  %v14188_v3 = vadd.f32 %v11686_v32, %v10254_v1  ;;  %v3868_v57 = vpop.f32.mrb[91].mxu0 }
 0xb9d   : > { %11036 = vrcp.f32 %v3945_v25  ;;  %v9181_v13 = vmul.f32 -1.442695, %v14182_v4  ;;  %v14194_v14 = vadd.f32 %v11687_v6, %v3868_v57 }
 0xb9e   : > { %11038 = vpow2.f32 %v9183_v53  ;;  %v9184_v21 = vmul.f32 -1.442695, %v14188_v3 }
 0xb9f   : > { %v11023_v36 = vpop.eup %11022  ;;  %11040 = vpow2.f32 %v9181_v13  ;;  %v9182_v15 = vmul.f32 -1.442695, %v14194_v14 }
 0xba0   : > { %v11025_v29 = vpop.eup %11024  ;;  %v3950_v60 = vadd.f32 1.0, %v11023_v36  ;;  %11042 = vpow2.f32 %v9184_v21 }
 0xba1   : > { %v11027_v9 = vpop.eup %11026  ;;  %v3948_v55 = vadd.f32 1.0, %v11025_v29  ;;  %11044 = vpow2.f32 %v9182_v15  ;;  %v10257_v56 = vpop.f32.mrb[92].mxu0 }
 0xba2   : > { %v11029_v12 = vpop.eup %11028  ;;  %11046 = vrcp.f32 %v3950_v60  ;;  %v3951_v34 = vadd.f32 1.0, %v11027_v9  ;;  %v14201_v40 = vadd.f32 %v11688_v20, %v10257_v56  ;;  %v3881_v42 = vpop.f32.mrb[93].mxu0 }
 0xba3   : > { %11048 = vrcp.f32 %v3948_v55  ;;  %v3949_v18 = vadd.f32 1.0, %v11029_v12  ;;  %v14206_v62 = vadd.f32 %v11689_v46, %v3881_v42  ;;  %v10258_v59 = vpop.f32.mrb[94].mxu0  ;;  %v11693_v42 = vld [vmem:[%s17090_s4 + $0x8] sm:$0xff]  }
 0xba4   : > { %v11031_v37 = vpop.eup %11030  ;;  %11050 = vrcp.f32 %v3951_v34  ;;  %v9187_v5 = vmul.f32 -1.442695, %v14201_v40  ;;  %v14212_v54 = vadd.f32 %v11690_v17, %v10258_v59  ;;  %v3884_v28 = vpop.f32.mrb[95].mxu0 }
 0xba5   : > { %v11033_v11 = vpop.eup %11032  ;;  %11052 = vrcp.f32 %v3949_v18  ;;  %v9185_v16 = vmul.f32 -1.442695, %v14206_v62  ;;  %v14218_v51 = vadd.f32 %v11691_v10, %v3884_v28  ;;  %v3994_v30 = vmul.f32 %v11031_v37, %v14129_v43  ;;  %v11694_v10 = vld [vmem:[%s17090_s4 + $0x10] sm:$0xff]  }
 0xba6   : > { %v11035_v50 = vpop.eup %11034  ;;  %11054 = vpow2.f32 %v9187_v5  ;;  %v9188_v35 = vmul.f32 -1.442695, %v14212_v54  ;;  %v3992_v57 = vmul.f32 %v11033_v11, %v14134_v41 }
 0xba7   : > { %v11037_v25 = vpop.eup %11036  ;;  %v3995_v1 = vmul.f32 %v11035_v50, %v14140_v22  ;;  %11056 = vpow2.f32 %v9185_v16  ;;  %v9186_v53 = vmul.f32 -1.442695, %v14218_v51 }
 0xba8   : > { %v11039_v32 = vpop.eup %11038  ;;  %v3993_v13 = vmul.f32 %v11037_v25, %v14146_v47  ;;  %11058 = vpow2.f32 %v9188_v35  ;;  %v14231_v47 = vld [vmem:[%s17090_s4] sm:$0xff]   ;;  %v11695_v25 = vld [vmem:[%s17090_s4 + $0x18] sm:$0xff]  }
 0xba9   : > { %v11041_v6 = vpop.eup %11040  ;;  %v4009_v21 = vpack.c.bf16 %v3995_v1, %v3994_v30  ;;  %v3954_v36 = vadd.f32 1.0, %v11039_v32  ;;  %11060 = vpow2.f32 %v9186_v53 }
 0xbaa   : > { %v11043_v15 = vpop.eup %11042  ;;  %v4008_v29 = vpack.c.bf16 %v3993_v13, %v3992_v57  ;;  %v3952_v60 = vadd.f32 1.0, %v11041_v6 }
 0xbab   : > { %v11045_v9 = vpop.eup %11044  ;;  %11062 = vrcp.f32 %v3954_v36  ;;  %v3955_v43 = vadd.f32 1.0, %v11043_v15 }
 0xbac   : > { %v11047_v22 = vpop.eup %11046  ;;  %11064 = vrcp.f32 %v3952_v60  ;;  %v3953_v55 = vadd.f32 1.0, %v11045_v9  ;;  %10267 = vmatprep.mubr.msk.bf16.mxu1 %vm1552_vm1, %v4008_v29 }
 0xbad   : > { %v11049_v56 = vpop.eup %11048  ;;  %11066 = vrcp.f32 %v3955_v43  ;;  %10268 = vmatmul.mubr.msk.bf16.vlgmr.msra.gmra.mrb[80].mxu1 %vm1552_vm1, %v4009_v21  ;;  %v3998_v34 = vmul.f32 %v11047_v22, %v14153_v0  ;;  %v14256_v21 = vld [vmem:[%s17090_s4 + $0x40] sm:$0xff]   ;;  %v4187_v22 = vpop.permute.xlu0 %4186 }
 0xbae   : > { %v11051_v41 = vpop.eup %11050  ;;  %11068 = vrcp.f32 %v3953_v55  ;;  %10304 = vmatpush3.bf16.msra.mxu1 %v14231_v47  ;;  %v3996_v46 = vmul.f32 %v11049_v56, %v14158_v48  ;;  %v4189_v55 = vpop.permute.xlu1 %4188 }
 0xbaf   : > { %v11053_v12 = vpop.eup %11052  ;;  %v3999_v20 = vmul.f32 %v11051_v41, %v14164_v27  ;;  %10305 = vmatprep.subr.bf16.mxu1 %v11693_v42 }
 0xbb0   : > { %v11055_v18 = vpop.eup %11054  ;;  %v3997_v59 = vmul.f32 %v11053_v12, %v14170_v49 }
 0xbb1   : > { %v11057_v37 = vpop.eup %11056  ;;  %v4011_v5 = vpack.c.bf16 %v3999_v20, %v3998_v34  ;;  %v3958_v17 = vadd.f32 1.0, %v11055_v18  ;;  %v4191_v56 = vpop.permute.xlu0 %4190  ;;  %v11698_v18 = vld [vmem:[%s17091_s5 + $0x110] sm:$0xff] }
 0xbb2   : > { %v11059_v28 = vpop.eup %11058  ;;  %v4010_v11 = vpack.c.bf16 %v3997_v59, %v3996_v46  ;;  %v3956_v16 = vadd.f32 1.0, %v11057_v37  ;;  %10306 = vmatpush3.bf16.msra.mxu1 %v11693_v42  ;;  %v4193_v41 = vpop.permute.xlu1 %4192  ;;  %v11699_v37 = vld [vmem:[%s17091_s5 + $0x108] sm:$0xff] }
 0xbb3   : > { %v11061_v0 = vpop.eup %11060  ;;  %11070 = vrcp.f32 %v3958_v17  ;;  %v3959_v27 = vadd.f32 1.0, %v11059_v28  ;;  %10307 = vmatprep.subr.bf16.mxu1 %v11694_v10  ;;  %v11700_v17 = vld [vmem:[%s17091_s5 + $0x118] sm:$0xff] }
 0xbb4   : > { %11072 = vrcp.f32 %v3956_v16  ;;  %v3957_v50 = vadd.f32 1.0, %v11061_v0  ;;  %10271 = vmatprep.mubr.msk.bf16.mxu1 %vm1552_vm1, %v4010_v11 }
 0xbb5   : > { %v11063_v48 = vpop.eup %11062  ;;  %11074 = vrcp.f32 %v3959_v27  ;;  %10272 = vmatmul.mubr.msk.bf16.gmra.mrb[84].mxu1 %vm1552_vm1, %v4011_v5  ;;  %v4195_v34 = vpop.permute.xlu0 %4194 }
 0xbb6   : > { %v11065_v49 = vpop.eup %11064  ;;  %11076 = vrcp.f32 %v3957_v50  ;;  %10308 = vmatpush3.bf16.msra.mxu1 %v11694_v10  ;;  %v4002_v1 = vmul.f32 %v11063_v48, %v14177_v61 }
 0xbb7   : > { %v11067_v35 = vpop.eup %11066  ;;  %10309 = vmatprep.subr.bf16.mxu1 %v11695_v25  ;;  %v4000_v32 = vmul.f32 %v11065_v49, %v14182_v4  ;;  %v11701_v49 = vld [vmem:[%s17091_s5 + $0x120] sm:$0xff] }
 0xbb8   : > { %v11069_v30 = vpop.eup %11068  ;;  %v4003_v53 = vmul.f32 %v11067_v35, %v14188_v3 }
 0xbb9   : > { %v4001_v57 = vmul.f32 %v11069_v30, %v14194_v14  ;;  %v4199_v16 = vpop.permute.xlu0 %4198 }
 0xbba   : > { %v4013_v13 = vpack.c.bf16 %v4003_v53, %v4002_v1  ;;  %10310 = vmatpush3.bf16.msra.mxu1 %v11695_v25  ;;  %v11702_v1 = vld [vmem:[%s17091_s5 + $0x130] sm:$0xff] }
 0xbbb   : > { %v4012_v6 = vpack.c.bf16 %v4001_v57, %v4000_v32  ;;  %10351 = vmatprep.subr.bf16.mxu1 %v14256_v21  ;;  %v11703_v57 = vld [vmem:[%s17091_s5 + $0x128] sm:$0xff] }
 0xbbd   : > { %v11071_v36 = vpop.eup %11070  ;;  %10275 = vmatprep.mubr.msk.bf16.mxu1 %vm1552_vm1, %v4012_v6  ;;  %v4203_v6 = vpop.permute.xlu0 %4202 }
 0xbbe   : > { %v11073_v61 = vpop.eup %11072  ;;  %10276 = vmatmul.mubr.msk.bf16.gmra.mrb[88].mxu1 %vm1552_vm1, %v4013_v13  ;;  %v4006_v14 = vmul.f32 %v11071_v36, %v14201_v40  ;;  %v11697_v40 = vld [vmem:[%s17091_s5 + $0x100] sm:$0xff]  ;;  %v11704_v36 = vld [vmem:[%s17091_s5 + $0x138] sm:$0xff] }
 0xbbf   : > { %v11075_v3 = vpop.eup %11074  ;;  %v4004_v29 = vmul.f32 %v11073_v61, %v14206_v62 }
 0xbc0   : > { %v11077_v4 = vpop.eup %11076  ;;  %v4007_v15 = vmul.f32 %v11075_v3, %v14212_v54 }
 0xbc1   : > { %v4005_v60 = vmul.f32 %v11077_v4, %v14218_v51  ;;  %v4197_v51 = vpop.permute.xlu1 %4196 }
 0xbc2   : > { %v4015_v9 = vpack.c.bf16 %v4007_v15, %v4006_v14 }
 0xbc3   : > { %v4014_v43 = vpack.c.bf16 %v4005_v60, %v4004_v29 }
 0xbc5   : > { %10279 = vmatprep.mubr.msk.bf16.mxu1 %vm1552_vm1, %v4014_v43  ;;  %v4201_v10 = vpop.permute.xlu1 %4200  ;;  %v11705_v43 = vld [vmem:[%s17091_s5 + $0x140] sm:$0xff] }
 0xbc6   : > { %10280 = vmatmul.mubr.msk.bf16.gmra.mrb[92].mxu1 %vm1552_vm1, %v4015_v9  ;;  %v4207_v9 = vpop.permute.xlu0 %4206 }
 0xbc9   : > { %v4205_v4 = vpop.permute.xlu1 %4204 }
 0xc80   : > { %v10269_v12 = vpop.f32.mrb[80].mxu1 }
 0xc81   : > { %v4074_v20 = vpop.f32.mrb[81].mxu1  ;;  %v14275_v46 = vadd.f32 %v11698_v18, %v10269_v12  ;;  %v11706_v12 = vld [vmem:[%s17091_s5 + $0x150] sm:$0xff] }
 0xc82   : > { %v14270_v62 = vadd.f32 %v11697_v40, %v4074_v20  ;;  %v10270_v54 = vpop.f32.mrb[82].mxu1  ;;  %v11707_v40 = vld [vmem:[%s17091_s5 + $0x148] sm:$0xff] }
 0xc83   : > { %v4077_v42 = vpop.f32.mrb[83].mxu1  ;;  %v14286_v28 = vadd.f32 %v11700_v17, %v10270_v54  ;;  %v4236_v0 = vmul.f32 %v4191_v56, %v14275_v46 }
 0xc84   : > { %v4234_v59 = vmul.f32 %v4187_v22, %v14270_v62  ;;  %v14281_v5 = vadd.f32 %v11699_v37, %v4077_v42 }
 0xc85   : > { %v4237_v48 = vmul.f32 %v4193_v41, %v14286_v28  ;;  %v4209_v41 = vpop.permute.xlu1 %4208 }
 0xc86   : > { %v4235_v11 = vmul.f32 %v4189_v55, %v14281_v5  ;;  %4266 = vrot.lane.b32.xlu0 %v4234_v59, %s11979_s27  ;;  %v4211_v59 = vpop.permute.xlu0 %4210 }
 0xc88   : > { %v10273_v27 = vpop.f32.mrb[84].mxu1  ;;  %4268 = vrot.lane.b32.xlu1 %v4235_v11, %s11979_s27 }
 0xc89   : > { %v4090_v50 = vpop.f32.mrb[85].mxu1  ;;  %v14302_v53 = vadd.f32 %v11702_v1, %v10273_v27  ;;  %v4213_v11 = vpop.permute.xlu1 %4212  ;;  %v11709_v27 = vld [vmem:[%s17091_s5 + $0x160] sm:$0xff]  ;;  %v11711_v1 = vld [vmem:[%s17091_s5 + $0x168] sm:$0xff] }
 0xc8a   : > { %v14296_v35 = vadd.f32 %v11701_v49, %v4090_v50  ;;  %v10274_v25 = vpop.f32.mrb[86].mxu1  ;;  %4270 = vrot.lane.b32.xlu0 %v4236_v0, %s11979_s27  ;;  %v11710_v49 = vld [vmem:[%s17091_s5 + $0x170] sm:$0xff] }
 0xc8b   : > { %v4093_v30 = vpop.f32.mrb[87].mxu1  ;;  %v14314_v61 = vadd.f32 %v11704_v36, %v10274_v25  ;;  %v4240_v14 = vmul.f32 %v4199_v16, %v14302_v53 }
 0xc8c   : > { %v4238_v32 = vmul.f32 %v4195_v34, %v14296_v35  ;;  %v14308_v13 = vadd.f32 %v11703_v57, %v4093_v30  ;;  %4272 = vrot.lane.b32.xlu1 %v4237_v48, %s11979_s27  ;;  %v4215_v57 = vpop.permute.xlu0 %4214 }
 0xc8d   : > { %v4241_v29 = vmul.f32 %v4201_v10, %v14314_v61 }
 0xc8e   : > { %v4239_v3 = vmul.f32 %v4197_v51, %v14308_v13  ;;  %4274 = vrot.lane.b32.xlu0 %v4238_v32, %s11979_s27  ;;  %v11708_v51 = vld [vmem:[%s17091_s5 + $0x158] sm:$0xff] }
 0xc90   : > { %4276 = vrot.lane.b32.xlu1 %v4239_v3, %s11979_s27 }
 0xc91   : > { %v10277_v15 = vpop.f32.mrb[88].mxu1 }
 0xc92   : > { %v4106_v60 = vpop.f32.mrb[89].mxu1  ;;  %4278 = vrot.lane.b32.xlu0 %v4240_v14, %s11979_s27  ;;  %v14331_v34 = vadd.f32 %v11706_v12, %v10277_v15 }
 0xc93   : > { %v14325_v22 = vadd.f32 %v11705_v43, %v4106_v60  ;;  %v10278_v55 = vpop.f32.mrb[90].mxu1 }
 0xc94   : > { %v4109_v56 = vpop.f32.mrb[91].mxu1  ;;  %4280 = vrot.lane.b32.xlu1 %v4241_v29, %s11979_s27  ;;  %v14342_v42 = vadd.f32 %v11708_v51, %v10278_v55  ;;  %v4244_v37 = vmul.f32 %v4207_v9, %v14331_v34  ;;  %v4137_v29 = vadd.f32 %v14270_v62, %v13781_v44  ;;  %v4138_v9 = vadd.f32 %v14281_v5, %v13788_v23 }
 0xc95   : > { %v4242_v20 = vmul.f32 %v4203_v6, %v14325_v22  ;;  %v14337_v54 = vadd.f32 %v11707_v40, %v4109_v56  ;;  %v11712_v6 = vld [vmem:[%s17091_s5 + $0x178] sm:$0xff]  ;;  %v4139_v56 = vadd.f32 %v14275_v46, %v13797_v19  ;;  %v4140_v44 = vadd.f32 %v14286_v28, %v13804_v31 }
 0xc96   : > { %v4245_v0 = vmul.f32 %v4209_v41, %v14342_v42  ;;  %v4141_v19 = vadd.f32 %v14296_v35, %v13814_v63  ;;  %v4142_v28 = vadd.f32 %v14308_v13, %v13821_v2  ;;  %v4143_v35 = vadd.f32 %v14302_v53, %v13837_v52  ;;  %v14429_v13 = vld [vmem:[%s17090_s4 + $0x20] sm:$0xff]  }
 0xc97   : > { %v4243_v18 = vmul.f32 %v4205_v4, %v14337_v54  ;;  %4282 = vrot.lane.b32.xlu0 %v4242_v20, %s11979_s27  ;;  %v4217_v4 = vpop.permute.xlu1 %4216 }
 0xc99   : > { %v10281_v17 = vpop.f32.mrb[92].mxu1  ;;  %4284 = vrot.lane.b32.xlu1 %v4243_v18, %s11979_s27  ;;  %v4144_v18 = vadd.f32 %v14314_v61, %v13845_v24  ;;  %v4145_v24 = vadd.f32 %v14325_v22, %v13860_v38  ;;  %v4147_v22 = vadd.f32 %v14331_v34, %v13880_v58 }
 0xc9a   : > { %v4122_v16 = vpop.f32.mrb[93].mxu1  ;;  %v14358_v25 = vadd.f32 %v11710_v49, %v10281_v17 }
 0xc9b   : > { %v14352_v10 = vadd.f32 %v11709_v27, %v4122_v16  ;;  %v10282_v50 = vpop.f32.mrb[94].mxu1  ;;  %4286 = vrot.lane.b32.xlu0 %v4244_v37, %s11979_s27  ;;  %v11715_v16 = vld [vmem:[%s17090_s4 + $0x30] sm:$0xff]  }
 0xc9c   : > { %v4125_v48 = vpop.f32.mrb[95].mxu1  ;;  %v14370_v36 = vadd.f32 %v11712_v6, %v10282_v50  ;;  %v4248_v14 = vmul.f32 %v4215_v57, %v14358_v25 }
 0xc9d   : > { %v4246_v30 = vmul.f32 %v4211_v59, %v14352_v10  ;;  %v14364_v32 = vadd.f32 %v11711_v1, %v4125_v48  ;;  %4288 = vrot.lane.b32.xlu1 %v4245_v0, %s11979_s27  ;;  %v11714_v59 = vld [vmem:[%s17090_s4 + $0x28] sm:$0xff]   ;;  %v4146_v0 = vadd.f32 %v14337_v54, %v13868_v33  ;;  %v11716_v33 = vld [vmem:[%s17090_s4 + $0x38] sm:$0xff]   ;;  %v4148_v54 = vadd.f32 %v14342_v42, %v13887_v7  ;;  %v14495_v42 = vld [vmem:[%s17089_s3] sm:$0xff]  }
 0xc9e   : > { %v4249_v15 = vmul.f32 %v4217_v4, %v14370_v36 }
 0xc9f   : > { %v4247_v3 = vmul.f32 %v4213_v11, %v14364_v32  ;;  %4290 = vrot.lane.b32.xlu0 %v4246_v30, %s11979_s27  ;;  %v4149_v30 = vadd.f32 %v14352_v10, %v13903_v8  ;;  %v4150_v8 = vadd.f32 %v14364_v32, %v13910_v26  ;;  %v4152_v32 = vadd.f32 %v14370_v36, %v13925_v39  ;;  %v9231_v36 = vld [vmem:[%s12701_s7 + $0x190] sm:$0xff] }
 0xca1   : > { %4292 = vrot.lane.b32.xlu1 %v4247_v3, %s11979_s27  ;;  %v4151_v3 = vadd.f32 %v14358_v25, %v13920_v45 }
 0xca3   : > { %4294 = vrot.lane.b32.xlu0 %v4248_v14, %s11979_s27 }
 0xca5   : > { %4296 = vrot.lane.b32.xlu1 %v4249_v15, %s11979_s27 }
 0xcf8   : > { %v4267_v60 = vpop.permute.xlu0 %4266 }
 0xcf9   : > { %v14383_v43 = vadd.f32 %v4267_v60, %v4137_v29  ;;  %v9232_v60 = vld [vmem:[%s12701_s7 + $0x198] sm:$0xff] }
 0xcfa   : > { %v4269_v55 = vpop.permute.xlu1 %4268 }
 0xcfb   : > { %9213 = vst.msk [vmem:[%s12569_s18 + $0x180] sm:$0xff] %vm1346_vm0, %v14383_v43  ;;  %v14390_v41 = vadd.f32 %v4269_v55, %v4138_v9  ;;  %v9229_v55 = vld [vmem:[%s12701_s7 + $0x180] sm:$0xff] }
 0xcfc   : > { %v4271_v12 = vpop.permute.xlu0 %4270 }
 0xcfd   : > { %9214 = vst.msk [vmem:[%s12569_s18 + $0x188] sm:$0xff] %vm1346_vm0, %v14390_v41  ;;  %v4347_v23 = vpack.c.bf16 %v14390_v41, %v14383_v43  ;;  %v14399_v62 = vadd.f32 %v4271_v12, %v4139_v56  ;;  %v9230_v56 = vld [vmem:[%s12701_s7 + $0x188] sm:$0xff] }
 0xcfe   : > { %v4273_v5 = vpop.permute.xlu1 %4272 }
 0xcff   : > { %9215 = vst.msk [vmem:[%s12569_s18 + $0x190] sm:$0xff] %vm1346_vm0, %v14399_v62  ;;  %v14406_v46 = vadd.f32 %v4273_v5, %v4140_v44  ;;  %10287 = vmatprep.mubr.msk.bf16.mxu0 %vm1346_vm0, %v4347_v23 }
 0xd00   : > { %v4275_v31 = vpop.permute.xlu0 %4274 }
 0xd01   : > { %9216 = vst.msk [vmem:[%s12569_s18 + $0x198] sm:$0xff] %vm1346_vm0, %v14406_v46  ;;  %v4348_v20 = vpack.c.bf16 %v14406_v46, %v14399_v62  ;;  %v14416_v40 = vadd.f32 %v4275_v31, %v4141_v19 }
 0xd02   : > { %v4277_v63 = vpop.permute.xlu1 %4276 }
 0xd03   : > { %9217 = vst.msk [vmem:[%s12569_s18 + $0x1a0] sm:$0xff] %vm1346_vm0, %v14416_v40  ;;  %v14423_v51 = vadd.f32 %v4277_v63, %v4142_v28  ;;  %10288 = vmatmul.mubr.msk.bf16.vlgmr.msra.gmra.mrb[96].mxu0 %vm1346_vm0, %v4348_v20  ;;  %v9235_v63 = vld [vmem:[%s12701_s7 + $0x1b0] sm:$0xff] }
 0xd04   : > { %v4279_v2 = vpop.permute.xlu0 %4278  ;;  %10328 = vmatpush3.bf16.msra.mxu0 %v14429_v13 }
 0xd05   : > { %9218 = vst.msk [vmem:[%s12569_s18 + $0x1a8] sm:$0xff] %vm1346_vm0, %v14423_v51  ;;  %v4349_v52 = vpack.c.bf16 %v14423_v51, %v14416_v40  ;;  %v14439_v53 = vadd.f32 %v4279_v2, %v4143_v35  ;;  %10329 = vmatprep.subr.bf16.mxu0 %v11714_v59  ;;  %v9236_v2 = vld [vmem:[%s12701_s7 + $0x1b8] sm:$0xff] }
 0xd06   : > { %v4281_v37 = vpop.permute.xlu1 %4280 }
 0xd07   : > { %9219 = vst.msk [vmem:[%s12569_s18 + $0x1b0] sm:$0xff] %vm1346_vm0, %v14439_v53  ;;  %v14447_v17 = vadd.f32 %v4281_v37, %v4144_v18  ;;  %10291 = vmatprep.mubr.msk.bf16.mxu0 %vm1346_vm0, %v4349_v52  ;;  %v9233_v52 = vld [vmem:[%s12701_s7 + $0x1a0] sm:$0xff] }
 0xd08   : > { %10330 = vmatpush3.bf16.msra.mxu0 %v11714_v59  ;;  %v9234_v59 = vld [vmem:[%s12701_s7 + $0x1a8] sm:$0xff] }
 0xd09   : > { %9220 = vst.msk [vmem:[%s12569_s18 + $0x1b8] sm:$0xff] %vm1346_vm0, %v14447_v17  ;;  %v4350_v61 = vpack.c.bf16 %v14447_v17, %v14439_v53  ;;  %v4283_v11 = vpop.permute.xlu0 %4282  ;;  %10331 = vmatprep.subr.bf16.mxu0 %v11715_v16 }
 0xd0a   : > { %v14462_v27 = vadd.f32 %v4283_v11, %v4145_v24 }
 0xd0b   : > { %v4285_v38 = vpop.permute.xlu1 %4284  ;;  %10292 = vmatmul.mubr.msk.bf16.gmra.mrb[100].mxu0 %vm1346_vm0, %v4350_v61 }
 0xd0c   : > { %9221 = vst.msk [vmem:[%s12569_s18 + $0x1c0] sm:$0xff] %vm1346_vm0, %v14462_v27  ;;  %v14470_v50 = vadd.f32 %v4285_v38, %v4146_v0  ;;  %10332 = vmatpush3.bf16.msra.mxu0 %v11715_v16  ;;  %v11718_v16 = vld [vmem:[%s17090_s4 + $0x48] sm:$0xff]  }
 0xd0d   : > { %v4287_v48 = vpop.permute.xlu0 %4286  ;;  %10333 = vmatprep.subr.bf16.mxu0 %v11716_v33 }
 0xd0e   : > { %9222 = vst.msk [vmem:[%s12569_s18 + $0x1c8] sm:$0xff] %vm1346_vm0, %v14470_v50  ;;  %v4351_v58 = vpack.c.bf16 %v14470_v50, %v14462_v27  ;;  %v14482_v34 = vadd.f32 %v4287_v48, %v4147_v22 }
 0xd0f   : > { %v4289_v49 = vpop.permute.xlu1 %4288 }
 0xd10   : > { %9223 = vst.msk [vmem:[%s12569_s18 + $0x1d0] sm:$0xff] %vm1346_vm0, %v14482_v34  ;;  %v14489_v1 = vadd.f32 %v4289_v49, %v4148_v54  ;;  %10295 = vmatprep.mubr.msk.bf16.mxu0 %vm1346_vm0, %v4351_v58  ;;  %10334 = vmatpush3.bf16.msra.mxu0 %v11716_v33  ;;  %v9239_v33 = vld [vmem:[%s12701_s7 + $0x1d0] sm:$0xff]  ;;  %v9240_v58 = vld [vmem:[%s12701_s7 + $0x1d8] sm:$0xff] }
 0xd11   : > { %v4291_v7 = vpop.permute.xlu0 %4290  ;;  %10375 = vmatprep.subr.bf16.mxu0 %v14495_v42 }
 0xd12   : > { %9224 = vst.msk [vmem:[%s12569_s18 + $0x1d8] sm:$0xff] %vm1346_vm0, %v14489_v1  ;;  %v4352_v10 = vpack.c.bf16 %v14489_v1, %v14482_v34  ;;  %v14505_v57 = vadd.f32 %v4291_v7, %v4149_v30  ;;  %v9237_v30 = vld [vmem:[%s12701_s7 + $0x1c0] sm:$0xff]  ;;  %v9238_v7 = vld [vmem:[%s12701_s7 + $0x1c8] sm:$0xff] }
 0xd13   : > { %v4293_v6 = vpop.permute.xlu1 %4292 }
 0xd14   : > { %9225 = vst.msk [vmem:[%s12569_s18 + $0x1e0] sm:$0xff] %vm1346_vm0, %v14505_v57  ;;  %v14512_v4 = vadd.f32 %v4293_v6, %v4150_v8  ;;  %10296 = vmatmul.mubr.msk.bf16.gmra.mrb[104].mxu0 %vm1346_vm0, %v4352_v10  ;;  %v11720_v10 = vld [vmem:[%s17090_s4 + $0x58] sm:$0xff]  }
 0xd15   : > { %v4295_v26 = vpop.permute.xlu0 %4294 }
 0xd16   : > { %9226 = vst.msk [vmem:[%s12569_s18 + $0x1e8] sm:$0xff] %vm1346_vm0, %v14512_v4  ;;  %v4353_v45 = vpack.c.bf16 %v14512_v4, %v14505_v57  ;;  %v14522_v25 = vadd.f32 %v4295_v26, %v4151_v3 }
 0xd17   : > { %v4297_v14 = vpop.permute.xlu1 %4296 }
 0xd18   : > { %9227 = vst.msk [vmem:[%s12569_s18 + $0x1f0] sm:$0xff] %vm1346_vm0, %v14522_v25  ;;  %v14527_v15 = vadd.f32 %v4297_v14, %v4152_v32  ;;  %10299 = vmatprep.mubr.msk.bf16.mxu0 %vm1346_vm0, %v4353_v45 }
 0xd1a   : > { %9228 = vst.msk [vmem:[%s12569_s18 + $0x1f8] sm:$0xff] %vm1346_vm0, %v14527_v15  ;;  %v4354_v39 = vpack.c.bf16 %v14527_v15, %v14522_v25 }
 0xd1c   : > { %10300 = vmatmul.mubr.msk.bf16.gmra.mrb[108].mxu0 %vm1346_vm0, %v4354_v39 }
 0xdd6   : > { %v10289_v29 = vpop.f32.mrb[96].mxu0 }
 0xdd7   : > { %v4430_v9 = vpop.f32.mrb[97].mxu0  ;;  %v4439_v44 = vadd.f32 %v10289_v29, %v9231_v36  ;;  %v9243_v36 = vld [vmem:[%s12701_s7 + $0x1f0] sm:$0xff] }
 0xdd8   : > { %v10290_v12 = vpop.f32.mrb[98].mxu0  ;;  %v4431_v19 = vadd.f32 %v9229_v55, %v4430_v9  ;;  %v9241_v55 = vld [vmem:[%s12701_s7 + $0x1e0] sm:$0xff] }
 0xdd9   : > { %v4442_v23 = vadd.f32 %v10290_v12, %v9232_v60  ;;  %v4433_v5 = vpop.f32.mrb[99].mxu0  ;;  %v9244_v60 = vld [vmem:[%s12701_s7 + $0x1f8] sm:$0xff] }
 0xdda   : > { %v4434_v31 = vadd.f32 %v9230_v56, %v4433_v5  ;;  %v9242_v56 = vld [vmem:[%s12701_s7 + $0x1e8] sm:$0xff] }
 0xddb   : > { %v4494_v28 = vpack.c.bf16 %v4442_v23, %v4439_v44 }
 0xddc   : > { %v4493_v20 = vpack.c.bf16 %v4434_v31, %v4431_v19 }
 0xdde   : > { %v10293_v35 = vpop.f32.mrb[100].mxu0  ;;  %10311 = vmatprep.mubr.msk.bf16.mxu1 %vm1552_vm1, %v4493_v20 }
 0xddf   : > { %v4446_v18 = vpop.f32.mrb[101].mxu0  ;;  %10312 = vmatmul.mubr.msk.bf16.vlgmr.msra.gmra.mrb[96].mxu1 %vm1552_vm1, %v4494_v28  ;;  %v4455_v24 = vadd.f32 %v10293_v35, %v9235_v63  ;;  %v11721_v63 = vld [vmem:[%s17091_s5 + $0x10] sm:$0xff] }
 0xde0   : > { %v10294_v37 = vpop.f32.mrb[102].mxu0  ;;  %10352 = vmatpush3.bf16.msra.mxu1 %v14256_v21  ;;  %v4447_v0 = vadd.f32 %v9233_v52, %v4446_v18  ;;  %v11719_v21 = vld [vmem:[%s17090_s4 + $0x50] sm:$0xff]   ;;  %v11722_v18 = vld [vmem:[%s17091_s5] sm:$0xff] }
 0xde1   : > { %v4458_v61 = vadd.f32 %v10294_v37, %v9236_v2  ;;  %v4449_v11 = vpop.f32.mrb[103].mxu0  ;;  %10353 = vmatprep.subr.bf16.mxu1 %v11718_v16 }
 0xde2   : > { %v4450_v38 = vadd.f32 %v9234_v59, %v4449_v11 }
 0xde3   : > { %v4496_v22 = vpack.c.bf16 %v4458_v61, %v4455_v24  ;;  %v11723_v24 = vld [vmem:[%s17091_s5 + $0x18] sm:$0xff] }
 0xde4   : > { %v4495_v48 = vpack.c.bf16 %v4450_v38, %v4447_v0  ;;  %10354 = vmatpush3.bf16.msra.mxu1 %v11718_v16  ;;  %v11724_v0 = vld [vmem:[%s17091_s5 + $0x8] sm:$0xff] }
 0xde5   : > { %10355 = vmatprep.subr.bf16.mxu1 %v11719_v21 }
 0xde6   : > { %10315 = vmatprep.mubr.msk.bf16.mxu1 %vm1552_vm1, %v4495_v48 }
 0xde7   : > { %v10297_v54 = vpop.f32.mrb[104].mxu0  ;;  %10316 = vmatmul.mubr.msk.bf16.gmra.mrb[100].mxu1 %vm1552_vm1, %v4496_v22 }
 0xde8   : > { %v4462_v49 = vpop.f32.mrb[105].mxu0  ;;  %10356 = vmatpush3.bf16.msra.mxu1 %v11719_v21  ;;  %v4471_v6 = vadd.f32 %v10297_v54, %v9239_v33  ;;  %v11725_v33 = vld [vmem:[%s17091_s5 + $0x30] sm:$0xff] }
 0xde9   : > { %v10298_v8 = vpop.f32.mrb[106].mxu0  ;;  %10357 = vmatprep.subr.bf16.mxu1 %v11720_v10  ;;  %v4463_v32 = vadd.f32 %v9237_v30, %v4462_v49  ;;  %v11726_v49 = vld [vmem:[%s17091_s5 + $0x20] sm:$0xff] }
 0xdea   : > { %v4474_v3 = vadd.f32 %v10298_v8, %v9240_v58  ;;  %v4465_v26 = vpop.f32.mrb[107].mxu0 }
 0xdeb   : > { %v4466_v45 = vadd.f32 %v9238_v7, %v4465_v26 }
 0xdec   : > { %v4498_v14 = vpack.c.bf16 %v4474_v3, %v4471_v6  ;;  %10358 = vmatpush3.bf16.msra.mxu1 %v11720_v10  ;;  %v11727_v10 = vld [vmem:[%s17091_s5 + $0x38] sm:$0xff] }
 0xded   : > { %v4497_v39 = vpack.c.bf16 %v4466_v45, %v4463_v32  ;;  %10395 = vmatprep.subr.bf16.mxu1 %v14231_v47  ;;  %v11728_v32 = vld [vmem:[%s17091_s5 + $0x28] sm:$0xff] }
 0xdef   : > { %v10301_v29 = vpop.f32.mrb[108].mxu0  ;;  %10319 = vmatprep.mubr.msk.bf16.mxu1 %vm1552_vm1, %v4497_v39 }
 0xdf0   : > { %v4478_v9 = vpop.f32.mrb[109].mxu0  ;;  %10320 = vmatmul.mubr.msk.bf16.gmra.mrb[104].mxu1 %vm1552_vm1, %v4498_v14  ;;  %v4487_v44 = vadd.f32 %v10301_v29, %v9243_v36 }
 0xdf1   : > { %v10302_v12 = vpop.f32.mrb[110].mxu0  ;;  %v4479_v19 = vadd.f32 %v9241_v55, %v4478_v9 }
 0xdf2   : > { %v4490_v23 = vadd.f32 %v10302_v12, %v9244_v60  ;;  %v4481_v5 = vpop.f32.mrb[111].mxu0 }
 0xdf3   : > { %v4482_v31 = vadd.f32 %v9242_v56, %v4481_v5 }
 0xdf4   : > { %v4500_v28 = vpack.c.bf16 %v4490_v23, %v4487_v44  ;;  %v11729_v23 = vld [vmem:[%s17091_s5 + $0x50] sm:$0xff] }
 0xdf5   : > { %v4499_v20 = vpack.c.bf16 %v4482_v31, %v4479_v19 }
 0xdf7   : > { %10323 = vmatprep.mubr.msk.bf16.mxu1 %vm1552_vm1, %v4499_v20 }
 0xdf8   : > { %10324 = vmatmul.mubr.msk.bf16.gmra.mrb[108].mxu1 %vm1552_vm1, %v4500_v28  ;;  %v11730_v28 = vld [vmem:[%s17091_s5 + $0x40] sm:$0xff] }
 0xeb2   : > { %v10313_v47 = vpop.f32.mrb[96].mxu1 }
 0xeb3   : > { %v14574_v35 = vadd.f32 %v11721_v63, %v10313_v47  ;;  %v4559_v2 = vpop.f32.mrb[97].mxu1 }
 0xeb4   : > { %v14579_v52 = vadd.f32 %v11722_v18, %v4559_v2  ;;  %v10314_v59 = vpop.f32.mrb[98].mxu1  ;;  %v11731_v2 = vld [vmem:[%s17091_s5 + $0x58] sm:$0xff] }
 0xeb5   : > { %v9263_v37 = vmul.f32 -1.442695, %v14574_v35  ;;  %v14585_v61 = vadd.f32 %v11723_v24, %v10314_v59  ;;  %v4562_v11 = vpop.f32.mrb[99].mxu1  ;;  %v11732_v24 = vld [vmem:[%s17091_s5 + $0x48] sm:$0xff] }
 0xeb6   : > { %v9261_v16 = vmul.f32 -1.442695, %v14579_v52  ;;  %v14591_v38 = vadd.f32 %v11724_v0, %v4562_v11 }
 0xeb7   : > { %11078 = vpow2.f32 %v9263_v37  ;;  %v9264_v22 = vmul.f32 -1.442695, %v14585_v61 }
 0xeb8   : > { %11080 = vpow2.f32 %v9261_v16  ;;  %v9262_v48 = vmul.f32 -1.442695, %v14591_v38 }
 0xeb9   : > { %11082 = vpow2.f32 %v9264_v22 }
 0xeba   : > { %11084 = vpow2.f32 %v9262_v48  ;;  %v10317_v21 = vpop.f32.mrb[100].mxu1 }
 0xebb   : > { %v14598_v54 = vadd.f32 %v11725_v33, %v10317_v21  ;;  %v4575_v58 = vpop.f32.mrb[101].mxu1 }
 0xebc   : > { %v14603_v30 = vadd.f32 %v11726_v49, %v4575_v58  ;;  %v10318_v7 = vpop.f32.mrb[102].mxu1 }
 0xebd   : > { %v9267_v8 = vmul.f32 -1.442695, %v14598_v54  ;;  %v14609_v6 = vadd.f32 %v11727_v10, %v10318_v7  ;;  %v4578_v3 = vpop.f32.mrb[103].mxu1  ;;  %v11733_v10 = vld [vmem:[%s17091_s5 + $0x70] sm:$0xff] }
 0xebe   : > { %v9265_v26 = vmul.f32 -1.442695, %v14603_v30  ;;  %v14615_v45 = vadd.f32 %v11728_v32, %v4578_v3 }
 0xebf   : > { %11086 = vpow2.f32 %v9267_v8  ;;  %v9268_v14 = vmul.f32 -1.442695, %v14609_v6 }
 0xec0   : > { %11088 = vpow2.f32 %v9265_v26  ;;  %v9266_v39 = vmul.f32 -1.442695, %v14615_v45 }
 0xec1   : > { %v11079_v36 = vpop.eup %11078  ;;  %11090 = vpow2.f32 %v9268_v14  ;;  %v11734_v14 = vld [vmem:[%s17091_s5 + $0x60] sm:$0xff] }
 0xec2   : > { %v11081_v29 = vpop.eup %11080  ;;  %v4672_v60 = vadd.f32 1.0, %v11079_v36  ;;  %11092 = vpow2.f32 %v9266_v39 }
 0xec3   : > { %v11083_v9 = vpop.eup %11082  ;;  %v4670_v55 = vadd.f32 1.0, %v11081_v29  ;;  %v10321_v56 = vpop.f32.mrb[104].mxu1 }
 0xec4   : > { %v11085_v12 = vpop.eup %11084  ;;  %11094 = vrcp.f32 %v4672_v60  ;;  %v4673_v44 = vadd.f32 1.0, %v11083_v9  ;;  %v14622_v5 = vadd.f32 %v11729_v23, %v10321_v56  ;;  %v4591_v19 = vpop.f32.mrb[105].mxu1  ;;  %v11735_v9 = vld [vmem:[%s17091_s5 + $0x78] sm:$0xff]  ;;  %v11736_v23 = vld [vmem:[%s17091_s5 + $0x68] sm:$0xff] }
 0xec5   : > { %11096 = vrcp.f32 %v4670_v55  ;;  %v4671_v31 = vadd.f32 1.0, %v11085_v12  ;;  %v14627_v20 = vadd.f32 %v11730_v28, %v4591_v19  ;;  %v10322_v47 = vpop.f32.mrb[106].mxu1 }
 0xec6   : > { %11098 = vrcp.f32 %v4673_v44  ;;  %v9271_v63 = vmul.f32 -1.442695, %v14622_v5  ;;  %v14633_v18 = vadd.f32 %v11731_v2, %v10322_v47  ;;  %v4594_v59 = vpop.f32.mrb[107].mxu1 }
 0xec7   : > { %11100 = vrcp.f32 %v4671_v31  ;;  %v9269_v37 = vmul.f32 -1.442695, %v14627_v20  ;;  %v14639_v11 = vadd.f32 %v11732_v24, %v4594_v59 }
 0xec8   : > { %11102 = vpow2.f32 %v9271_v63  ;;  %v9272_v16 = vmul.f32 -1.442695, %v14633_v18 }
 0xec9   : > { %v11087_v0 = vpop.eup %11086  ;;  %11104 = vpow2.f32 %v9269_v37  ;;  %v9270_v22 = vmul.f32 -1.442695, %v14639_v11 }
 0xeca   : > { %v11089_v48 = vpop.eup %11088  ;;  %v4676_v21 = vadd.f32 1.0, %v11087_v0  ;;  %11106 = vpow2.f32 %v9272_v16 }
 0xecb   : > { %v11091_v33 = vpop.eup %11090  ;;  %v4674_v58 = vadd.f32 1.0, %v11089_v48  ;;  %11108 = vpow2.f32 %v9270_v22  ;;  %v10325_v49 = vpop.f32.mrb[108].mxu1 }
 0xecc   : > { %v11093_v7 = vpop.eup %11092  ;;  %11110 = vrcp.f32 %v4676_v21  ;;  %v4677_v8 = vadd.f32 1.0, %v11091_v33  ;;  %v14646_v3 = vadd.f32 %v11733_v10, %v10325_v49  ;;  %v4607_v26 = vpop.f32.mrb[109].mxu1 }
 0xecd   : > { %11112 = vrcp.f32 %v4674_v58  ;;  %v4675_v32 = vadd.f32 1.0, %v11093_v7  ;;  %v14651_v39 = vadd.f32 %v11734_v14, %v4607_v26  ;;  %v10326_v36 = vpop.f32.mrb[110].mxu1 }
 0xece   : > { %v11095_v29 = vpop.eup %11094  ;;  %11114 = vrcp.f32 %v4677_v8  ;;  %v9275_v60 = vmul.f32 -1.442695, %v14646_v3  ;;  %v14657_v55 = vadd.f32 %v11735_v9, %v10326_v36  ;;  %v4610_v56 = vpop.f32.mrb[111].mxu1 }
 0xecf   : > { %v11097_v12 = vpop.eup %11096  ;;  %11116 = vrcp.f32 %v4675_v32  ;;  %v9273_v44 = vmul.f32 -1.442695, %v14651_v39  ;;  %v14663_v19 = vadd.f32 %v11736_v23, %v4610_v56  ;;  %v4720_v63 = vmul.f32 %v11095_v29, %v14574_v35  ;;  %v11737_v32 = vld [vmem:[%s17089_s3 + $0x8] sm:$0xff]  }
 0xed0   : > { %v11099_v31 = vpop.eup %11098  ;;  %11118 = vpow2.f32 %v9275_v60  ;;  %v9276_v28 = vmul.f32 -1.442695, %v14657_v55  ;;  %v4718_v24 = vmul.f32 %v11097_v12, %v14579_v52 }
 0xed1   : > { %v11101_v47 = vpop.eup %11100  ;;  %v4721_v2 = vmul.f32 %v11099_v31, %v14585_v61  ;;  %11120 = vpow2.f32 %v9273_v44  ;;  %v9274_v59 = vmul.f32 -1.442695, %v14663_v19 }
 0xed2   : > { %v11103_v37 = vpop.eup %11102  ;;  %v4719_v16 = vmul.f32 %v11101_v47, %v14591_v38  ;;  %11122 = vpow2.f32 %v9276_v28 }
 0xed3   : > { %v11105_v0 = vpop.eup %11104  ;;  %v4735_v22 = vpack.c.bf16 %v4721_v2, %v4720_v63  ;;  %v4680_v48 = vadd.f32 1.0, %v11103_v37  ;;  %11124 = vpow2.f32 %v9274_v59 }
 0xed4   : > { %v11107_v21 = vpop.eup %11106  ;;  %v4734_v33 = vpack.c.bf16 %v4719_v16, %v4718_v24  ;;  %v4678_v58 = vadd.f32 1.0, %v11105_v0 }
 0xed5   : > { %v11109_v49 = vpop.eup %11108  ;;  %11126 = vrcp.f32 %v4680_v48  ;;  %v4681_v35 = vadd.f32 1.0, %v11107_v21 }
 0xed6   : > { %v11111_v61 = vpop.eup %11110  ;;  %11128 = vrcp.f32 %v4678_v58  ;;  %v4679_v7 = vadd.f32 1.0, %v11109_v49  ;;  %10335 = vmatprep.mubr.msk.bf16.mxu0 %vm1552_vm1, %v4734_v33  ;;  %v9309_v33 = vld [vmem:[%s12898_s21 + $0x180] sm:$0xff]  ;;  %v9310_v58 = vld [vmem:[%s12898_s21 + $0x188] sm:$0xff]  ;;  %v9315_v49 = vld [vmem:[%s12898_s21 + $0x1b0] sm:$0xff] }
 0xed7   : > { %v11113_v8 = vpop.eup %11112  ;;  %11130 = vrcp.f32 %v4681_v35  ;;  %10336 = vmatmul.mubr.msk.bf16.vlgmr.msra.gmra.mrb[112].mxu0 %vm1552_vm1, %v4735_v22  ;;  %v4724_v10 = vmul.f32 %v11111_v61, %v14598_v54  ;;  %5153 = vrot.lane.b32.xlu0 %v9309_v33, %s11978_s8  ;;  %v9316_v35 = vld [vmem:[%s12898_s21 + $0x1b8] sm:$0xff]  ;;  %v9317_v61 = vld [vmem:[%s12898_s21 + $0x1c0] sm:$0xff] }
 0xed8   : > { %v11115_v52 = vpop.eup %11114  ;;  %11132 = vrcp.f32 %v4679_v7  ;;  %10376 = vmatpush3.bf16.msra.mxu0 %v14495_v42  ;;  %v4722_v36 = vmul.f32 %v11113_v8, %v14603_v30  ;;  %5155 = vrot.lane.b32.xlu1 %v9310_v58, %s11978_s8  ;;  %v9318_v7 = vld [vmem:[%s12898_s21 + $0x1c8] sm:$0xff]  ;;  %v9319_v8 = vld [vmem:[%s12898_s21 + $0x1d0] sm:$0xff] }
 0xed9   : > { %v11117_v38 = vpop.eup %11116  ;;  %v4725_v26 = vmul.f32 %v11115_v52, %v14609_v6  ;;  %10377 = vmatprep.subr.bf16.mxu0 %v11737_v32  ;;  %v9320_v52 = vld [vmem:[%s12898_s21 + $0x1d8] sm:$0xff] }
 0xeda   : > { %v11119_v14 = vpop.eup %11118  ;;  %v4723_v29 = vmul.f32 %v11117_v38, %v14615_v45  ;;  %v9321_v38 = vld [vmem:[%s12898_s21 + $0x1e0] sm:$0xff] }
 0xedb   : > { %v11121_v60 = vpop.eup %11120  ;;  %v4737_v9 = vpack.c.bf16 %v4725_v26, %v4724_v10  ;;  %v4684_v56 = vadd.f32 1.0, %v11119_v14  ;;  %v9322_v10 = vld [vmem:[%s12898_s21 + $0x1e8] sm:$0xff]  ;;  %v9323_v26 = vld [vmem:[%s12898_s21 + $0x1f0] sm:$0xff] }
 0xedc   : > { %v11123_v12 = vpop.eup %11122  ;;  %v4736_v42 = vpack.c.bf16 %v4723_v29, %v4722_v36  ;;  %v4682_v44 = vadd.f32 1.0, %v11121_v60  ;;  %10378 = vmatpush3.bf16.msra.mxu0 %v11737_v32  ;;  %v9324_v32 = vld [vmem:[%s12898_s21 + $0x1f8] sm:$0xff]  ;;  %v11738_v36 = vld [vmem:[%s17091_s5 + $0x90] sm:$0xff] }
 0xedd   : > { %v11125_v54 = vpop.eup %11124  ;;  %11134 = vrcp.f32 %v4684_v56  ;;  %v4685_v6 = vadd.f32 1.0, %v11123_v12  ;;  %10419 = vmatprep.subr.bf16.mxu0 %v14429_v13 }
 0xede   : > { %11136 = vrcp.f32 %v4682_v44  ;;  %v4683_v23 = vadd.f32 1.0, %v11125_v54  ;;  %10339 = vmatprep.mubr.msk.bf16.mxu0 %vm1552_vm1, %v4736_v42  ;;  %v11740_v44 = vld [vmem:[%s17091_s5 + $0x98] sm:$0xff] }
 0xedf   : > { %v11127_v31 = vpop.eup %11126  ;;  %11138 = vrcp.f32 %v4685_v6  ;;  %10340 = vmatmul.mubr.msk.bf16.gmra.mrb[116].mxu0 %vm1552_vm1, %v4737_v9  ;;  %v11739_v9 = vld [vmem:[%s17091_s5 + $0x80] sm:$0xff] }
 0xee0   : > { %v11129_v30 = vpop.eup %11128  ;;  %11140 = vrcp.f32 %v4683_v23  ;;  %v4728_v47 = vmul.f32 %v11127_v31, %v14622_v5  ;;  %v11741_v31 = vld [vmem:[%s17091_s5 + $0x88] sm:$0xff] }
 0xee1   : > { %v11131_v45 = vpop.eup %11130  ;;  %v4726_v2 = vmul.f32 %v11129_v30, %v14627_v20 }
 0xee2   : > { %v11133_v28 = vpop.eup %11132  ;;  %v4729_v63 = vmul.f32 %v11131_v45, %v14633_v18 }
 0xee3   : > { %v4727_v13 = vmul.f32 %v11133_v28, %v14639_v11 }
 0xee4   : > { %v4739_v59 = vpack.c.bf16 %v4729_v63, %v4728_v47  ;;  %v11742_v63 = vld [vmem:[%s17091_s5 + $0xb0] sm:$0xff] }
 0xee5   : > { %v4738_v37 = vpack.c.bf16 %v4727_v13, %v4726_v2 }
 0xee7   : > { %v11135_v24 = vpop.eup %11134  ;;  %10343 = vmatprep.mubr.msk.bf16.mxu0 %vm1552_vm1, %v4738_v37 }
 0xee8   : > { %v11137_v16 = vpop.eup %11136  ;;  %10344 = vmatmul.mubr.msk.bf16.gmra.mrb[120].mxu0 %vm1552_vm1, %v4739_v59  ;;  %v4732_v18 = vmul.f32 %v11135_v24, %v14646_v3  ;;  %v9311_v3 = vld [vmem:[%s12898_s21 + $0x190] sm:$0xff]  ;;  %v11743_v59 = vld [vmem:[%s17091_s5 + $0xa0] sm:$0xff] }
 0xee9   : > { %v11139_v0 = vpop.eup %11138  ;;  %v4730_v11 = vmul.f32 %v11137_v16, %v14651_v39  ;;  %v9312_v39 = vld [vmem:[%s12898_s21 + $0x198] sm:$0xff]  ;;  %5157 = vrot.lane.b32.xlu0 %v9311_v3, %s11978_s8 }
 0xeea   : > { %v11141_v5 = vpop.eup %11140  ;;  %v4733_v20 = vmul.f32 %v11139_v0, %v14657_v55  ;;  %5159 = vrot.lane.b32.xlu1 %v9312_v39, %s11978_s8  ;;  %v9313_v55 = vld [vmem:[%s12898_s21 + $0x1a0] sm:$0xff]  ;;  %v11744_v0 = vld [vmem:[%s17091_s5 + $0xb8] sm:$0xff] }
 0xeeb   : > { %v4731_v22 = vmul.f32 %v11141_v5, %v14663_v19  ;;  %v9314_v19 = vld [vmem:[%s12898_s21 + $0x1a8] sm:$0xff] }
 0xeec   : > { %v4741_v48 = vpack.c.bf16 %v4733_v20, %v4732_v18 }
 0xeed   : > { %v4740_v21 = vpack.c.bf16 %v4731_v22, %v4730_v11  ;;  %5161 = vrot.lane.b32.xlu0 %v9313_v55, %s11978_s8  ;;  %v11745_v11 = vld [vmem:[%s17091_s5 + $0xa8] sm:$0xff] }
 0xeee   : > { %5163 = vrot.lane.b32.xlu1 %v9314_v19, %s11978_s8 }
 0xeef   : > { %10347 = vmatprep.mubr.msk.bf16.mxu0 %vm1552_vm1, %v4740_v21 }
 0xef0   : > { %10348 = vmatmul.mubr.msk.bf16.gmra.mrb[124].mxu0 %vm1552_vm1, %v4741_v48 }
 0xef1   : > { %5165 = vrot.lane.b32.xlu0 %v9315_v49, %s11978_s8 }
 0xef2   : > { %5167 = vrot.lane.b32.xlu1 %v9316_v35, %s11978_s8 }
 0xef5   : > { %5169 = vrot.lane.b32.xlu0 %v9317_v61, %s11978_s8  ;;  %v11746_v61 = vld [vmem:[%s17091_s5 + $0xd0] sm:$0xff] }
 0xef6   : > { %5171 = vrot.lane.b32.xlu1 %v9318_v7, %s11978_s8 }
 0xef9   : > { %5173 = vrot.lane.b32.xlu0 %v9319_v8, %s11978_s8 }
 0xefa   : > { %5175 = vrot.lane.b32.xlu1 %v9320_v52, %s11978_s8 }
 0xefd   : > { %5177 = vrot.lane.b32.xlu0 %v9321_v38, %s11978_s8  ;;  %v11747_v38 = vld [vmem:[%s17091_s5 + $0xc0] sm:$0xff] }
 0xefe   : > { %5179 = vrot.lane.b32.xlu1 %v9322_v10, %s11978_s8 }
 0xf01   : > { %5181 = vrot.lane.b32.xlu0 %v9323_v26, %s11978_s8 }
 0xf02   : > { %5183 = vrot.lane.b32.xlu1 %v9324_v32, %s11978_s8 }
 0xfaa   : > { %v10337_v14 = vpop.f32.mrb[112].mxu0 }
 0xfab   : > { %v14731_v29 = vadd.f32 %v11738_v36, %v10337_v14  ;;  %v4800_v60 = vpop.f32.mrb[113].mxu0  ;;  %v11748_v14 = vld [vmem:[%s17091_s5 + $0xd8] sm:$0xff] }
 0xfac   : > { %v14736_v56 = vadd.f32 %v11739_v9, %v4800_v60  ;;  %v10338_v12 = vpop.f32.mrb[114].mxu0 }
 0xfad   : > { %v9287_v42 = vmul.f32 -1.442695, %v14731_v29  ;;  %v14742_v54 = vadd.f32 %v11740_v44, %v10338_v12  ;;  %v4803_v6 = vpop.f32.mrb[115].mxu0  ;;  %v11749_v12 = vld [vmem:[%s17091_s5 + $0xc8] sm:$0xff] }
 0xfae   : > { %v9285_v23 = vmul.f32 -1.442695, %v14736_v56  ;;  %v14748_v30 = vadd.f32 %v11741_v31, %v4803_v6 }
 0xfaf   : > { %11142 = vpow2.f32 %v9287_v42  ;;  %v9288_v45 = vmul.f32 -1.442695, %v14742_v54 }
 0xfb0   : > { %11144 = vpow2.f32 %v9285_v23  ;;  %v9286_v28 = vmul.f32 -1.442695, %v14748_v30 }
 0xfb1   : > { %11146 = vpow2.f32 %v9288_v45 }
 0xfb2   : > { %11148 = vpow2.f32 %v9286_v28  ;;  %v10341_v47 = vpop.f32.mrb[116].mxu0 }
 0xfb3   : > { %v14755_v2 = vadd.f32 %v11742_v63, %v10341_v47  ;;  %v4816_v13 = vpop.f32.mrb[117].mxu0 }
 0xfb4   : > { %v14760_v37 = vadd.f32 %v11743_v59, %v4816_v13  ;;  %v10342_v24 = vpop.f32.mrb[118].mxu0 }
 0xfb5   : > { %v9291_v16 = vmul.f32 -1.442695, %v14755_v2  ;;  %v14766_v5 = vadd.f32 %v11744_v0, %v10342_v24  ;;  %v4819_v18 = vpop.f32.mrb[119].mxu0  ;;  %v11750_v24 = vld [vmem:[%s17091_s5 + $0xf0] sm:$0xff] }
 0xfb6   : > { %v9289_v20 = vmul.f32 -1.442695, %v14760_v37  ;;  %v14772_v22 = vadd.f32 %v11745_v11, %v4819_v18 }
 0xfb7   : > { %11150 = vpow2.f32 %v9291_v16  ;;  %v9292_v48 = vmul.f32 -1.442695, %v14766_v5 }
 0xfb8   : > { %11152 = vpow2.f32 %v9289_v20  ;;  %v9290_v21 = vmul.f32 -1.442695, %v14772_v22  ;;  %v11751_v20 = vld [vmem:[%s17091_s5 + $0xe0] sm:$0xff] }
 0xfb9   : > { %v11143_v33 = vpop.eup %11142  ;;  %11154 = vpow2.f32 %v9292_v48 }
 0xfba   : > { %v11145_v58 = vpop.eup %11144  ;;  %v4913_v3 = vadd.f32 1.0, %v11143_v33  ;;  %11156 = vpow2.f32 %v9290_v21 }
 0xfbb   : > { %v11147_v39 = vpop.eup %11146  ;;  %v4911_v55 = vadd.f32 1.0, %v11145_v58  ;;  %v10345_v19 = vpop.f32.mrb[120].mxu0  ;;  %v11752_v58 = vld [vmem:[%s17091_s5 + $0xf8] sm:$0xff] }
 0xfbc   : > { %v11149_v49 = vpop.eup %11148  ;;  %11158 = vrcp.f32 %v4913_v3  ;;  %v4914_v35 = vadd.f32 1.0, %v11147_v39  ;;  %v14779_v7 = vadd.f32 %v11746_v61, %v10345_v19  ;;  %v4832_v8 = vpop.f32.mrb[121].mxu0 }
 0xfbd   : > { %11160 = vrcp.f32 %v4911_v55  ;;  %v4912_v52 = vadd.f32 1.0, %v11149_v49  ;;  %v14784_v10 = vadd.f32 %v11747_v38, %v4832_v8  ;;  %v10346_v26 = vpop.f32.mrb[122].mxu0  ;;  %v11753_v49 = vld [vmem:[%s17091_s5 + $0xe8] sm:$0xff] }
 0xfbe   : > { %11162 = vrcp.f32 %v4914_v35  ;;  %v9295_v32 = vmul.f32 -1.442695, %v14779_v7  ;;  %v14790_v36 = vadd.f32 %v11748_v14, %v10346_v26  ;;  %v4835_v60 = vpop.f32.mrb[123].mxu0 }
 0xfbf   : > { %11164 = vrcp.f32 %v4912_v52  ;;  %v9293_v9 = vmul.f32 -1.442695, %v14784_v10  ;;  %v14796_v42 = vadd.f32 %v11749_v12, %v4835_v60 }
 0xfc0   : > { %11166 = vpow2.f32 %v9295_v32  ;;  %v9296_v44 = vmul.f32 -1.442695, %v14790_v36 }
 0xfc1   : > { %v11151_v6 = vpop.eup %11150  ;;  %11168 = vpow2.f32 %v9293_v9  ;;  %v9294_v23 = vmul.f32 -1.442695, %v14796_v42 }
 0xfc2   : > { %v11153_v31 = vpop.eup %11152  ;;  %v4917_v45 = vadd.f32 1.0, %v11151_v6  ;;  %11170 = vpow2.f32 %v9296_v44 }
 0xfc3   : > { %v11155_v28 = vpop.eup %11154  ;;  %v4915_v47 = vadd.f32 1.0, %v11153_v31  ;;  %11172 = vpow2.f32 %v9294_v23  ;;  %v10349_v63 = vpop.f32.mrb[124].mxu0 }
 0xfc4   : > { %v11157_v13 = vpop.eup %11156  ;;  %11174 = vrcp.f32 %v4917_v45  ;;  %v4918_v59 = vadd.f32 1.0, %v11155_v28  ;;  %v14803_v16 = vadd.f32 %v11750_v24, %v10349_v63  ;;  %v4848_v0 = vpop.f32.mrb[125].mxu0 }
 0xfc5   : > { %11176 = vrcp.f32 %v4915_v47  ;;  %v4916_v18 = vadd.f32 1.0, %v11157_v13  ;;  %v14808_v11 = vadd.f32 %v11751_v20, %v4848_v0  ;;  %v10350_v48 = vpop.f32.mrb[126].mxu0  ;;  %v11755_v0 = vld [vmem:[%s17090_s4 + $0x8] sm:$0xff]  }
 0xfc6   : > { %v11159_v21 = vpop.eup %11158  ;;  %11178 = vrcp.f32 %v4918_v59  ;;  %v9299_v33 = vmul.f32 -1.442695, %v14803_v16  ;;  %v14814_v3 = vadd.f32 %v11752_v58, %v10350_v48  ;;  %v4851_v39 = vpop.f32.mrb[127].mxu0 }
 0xfc7   : > { %v11161_v55 = vpop.eup %11160  ;;  %11180 = vrcp.f32 %v4916_v18  ;;  %v9297_v19 = vmul.f32 -1.442695, %v14808_v11  ;;  %v14820_v35 = vadd.f32 %v11753_v49, %v4851_v39  ;;  %v4961_v38 = vmul.f32 %v11159_v21, %v14731_v29  ;;  %v11756_v49 = vld [vmem:[%s17090_s4 + $0x10] sm:$0xff]  }
 0xfc8   : > { %v11163_v61 = vpop.eup %11162  ;;  %11182 = vpow2.f32 %v9299_v33  ;;  %v9300_v8 = vmul.f32 -1.442695, %v14814_v3  ;;  %v4959_v60 = vmul.f32 %v11161_v55, %v14736_v56 }
 0xfc9   : > { %v11165_v52 = vpop.eup %11164  ;;  %v4962_v26 = vmul.f32 %v11163_v61, %v14742_v54  ;;  %11184 = vpow2.f32 %v9297_v19  ;;  %v9298_v32 = vmul.f32 -1.442695, %v14820_v35 }
 0xfca   : > { %v11167_v14 = vpop.eup %11166  ;;  %v4960_v9 = vmul.f32 %v11165_v52, %v14748_v30  ;;  %11186 = vpow2.f32 %v9300_v8  ;;  %v14833_v30 = vld [vmem:[%s17090_s4] sm:$0xff]   ;;  %v11757_v52 = vld [vmem:[%s17090_s4 + $0x18] sm:$0xff]  }
 0xfcb   : > { %v11169_v12 = vpop.eup %11168  ;;  %v4976_v44 = vpack.c.bf16 %v4962_v26, %v4961_v38  ;;  %v4921_v6 = vadd.f32 1.0, %v11167_v14  ;;  %11188 = vpow2.f32 %v9298_v32 }
 0xfcc   : > { %v11171_v23 = vpop.eup %11170  ;;  %v4975_v31 = vpack.c.bf16 %v4960_v9, %v4959_v60  ;;  %v4919_v45 = vadd.f32 1.0, %v11169_v12 }
 0xfcd   : > { %v11173_v28 = vpop.eup %11172  ;;  %11190 = vrcp.f32 %v4921_v6  ;;  %v4922_v29 = vadd.f32 1.0, %v11171_v23 }
 0xfce   : > { %v11175_v54 = vpop.eup %11174  ;;  %11192 = vrcp.f32 %v4919_v45  ;;  %v4920_v47 = vadd.f32 1.0, %v11173_v28  ;;  %10359 = vmatprep.mubr.msk.bf16.mxu1 %vm1552_vm1, %v4975_v31 }
 0xfcf   : > { %v11177_v63 = vpop.eup %11176  ;;  %11194 = vrcp.f32 %v4922_v29  ;;  %10360 = vmatmul.mubr.msk.bf16.vlgmr.msra.gmra.mrb[112].mxu1 %vm1552_vm1, %v4976_v44  ;;  %v4965_v59 = vmul.f32 %v11175_v54, %v14755_v2  ;;  %v14858_v44 = vld [vmem:[%s17090_s4 + $0x40] sm:$0xff]   ;;  %v5154_v54 = vpop.permute.xlu0 %5153 }
 0xfd0   : > { %v11179_v56 = vpop.eup %11178  ;;  %11196 = vrcp.f32 %v4920_v47  ;;  %10396 = vmatpush3.bf16.msra.mxu1 %v14833_v30  ;;  %v4963_v20 = vmul.f32 %v11177_v63, %v14760_v37  ;;  %v5156_v47 = vpop.permute.xlu1 %5155 }
 0xfd1   : > { %v11181_v13 = vpop.eup %11180  ;;  %v4966_v24 = vmul.f32 %v11179_v56, %v14766_v5  ;;  %10397 = vmatprep.subr.bf16.mxu1 %v11755_v0 }
 0xfd2   : > { %v11183_v18 = vpop.eup %11182  ;;  %v4964_v48 = vmul.f32 %v11181_v13, %v14772_v22 }
 0xfd3   : > { %v11185_v21 = vpop.eup %11184  ;;  %v4978_v33 = vpack.c.bf16 %v4966_v24, %v4965_v59  ;;  %v4925_v58 = vadd.f32 1.0, %v11183_v18  ;;  %v5158_v63 = vpop.permute.xlu0 %5157  ;;  %v11760_v18 = vld [vmem:[%s17091_s5 + $0x110] sm:$0xff] }
 0xfd4   : > { %v11187_v39 = vpop.eup %11186  ;;  %v4977_v55 = vpack.c.bf16 %v4964_v48, %v4963_v20  ;;  %v4923_v19 = vadd.f32 1.0, %v11185_v21  ;;  %10398 = vmatpush3.bf16.msra.mxu1 %v11755_v0  ;;  %v5160_v56 = vpop.permute.xlu1 %5159  ;;  %v11761_v21 = vld [vmem:[%s17091_s5 + $0x108] sm:$0xff] }
 0xfd5   : > { %v11189_v2 = vpop.eup %11188  ;;  %11198 = vrcp.f32 %v4925_v58  ;;  %v4926_v5 = vadd.f32 1.0, %v11187_v39  ;;  %10399 = vmatprep.subr.bf16.mxu1 %v11756_v49  ;;  %v11762_v58 = vld [vmem:[%s17091_s5 + $0x118] sm:$0xff] }
 0xfd6   : > { %11200 = vrcp.f32 %v4923_v19  ;;  %v4924_v61 = vadd.f32 1.0, %v11189_v2  ;;  %10363 = vmatprep.mubr.msk.bf16.mxu1 %vm1552_vm1, %v4977_v55 }
 0xfd7   : > { %v11191_v37 = vpop.eup %11190  ;;  %11202 = vrcp.f32 %v4926_v5  ;;  %10364 = vmatmul.mubr.msk.bf16.gmra.mrb[116].mxu1 %vm1552_vm1, %v4978_v33  ;;  %v5162_v59 = vpop.permute.xlu0 %5161 }
 0xfd8   : > { %v11193_v22 = vpop.eup %11192  ;;  %11204 = vrcp.f32 %v4924_v61  ;;  %10400 = vmatpush3.bf16.msra.mxu1 %v11756_v49  ;;  %v4969_v26 = vmul.f32 %v11191_v37, %v14779_v7 }
 0xfd9   : > { %v11195_v8 = vpop.eup %11194  ;;  %10401 = vmatprep.subr.bf16.mxu1 %v11757_v52  ;;  %v4967_v14 = vmul.f32 %v11193_v22, %v14784_v10  ;;  %v11763_v22 = vld [vmem:[%s17091_s5 + $0x120] sm:$0xff] }
 0xfda   : > { %v11197_v38 = vpop.eup %11196  ;;  %v4970_v32 = vmul.f32 %v11195_v8, %v14790_v36 }
 0xfdb   : > { %v4968_v60 = vmul.f32 %v11197_v38, %v14796_v42  ;;  %v5166_v19 = vpop.permute.xlu0 %5165 }
 0xfdc   : > { %v4980_v9 = vpack.c.bf16 %v4970_v32, %v4969_v26  ;;  %10402 = vmatpush3.bf16.msra.mxu1 %v11757_v52  ;;  %v11764_v26 = vld [vmem:[%s17091_s5 + $0x130] sm:$0xff] }
 0xfdd   : > { %v4979_v12 = vpack.c.bf16 %v4968_v60, %v4967_v14  ;;  %10443 = vmatprep.subr.bf16.mxu1 %v14858_v44  ;;  %v11765_v60 = vld [vmem:[%s17091_s5 + $0x128] sm:$0xff] }
 0xfdf   : > { %v11199_v6 = vpop.eup %11198  ;;  %10367 = vmatprep.mubr.msk.bf16.mxu1 %vm1552_vm1, %v4979_v12  ;;  %v5170_v12 = vpop.permute.xlu0 %5169 }
 0xfe0   : > { %v11201_v7 = vpop.eup %11200  ;;  %10368 = vmatmul.mubr.msk.bf16.gmra.mrb[120].mxu1 %vm1552_vm1, %v4980_v9  ;;  %v4973_v42 = vmul.f32 %v11199_v6, %v14803_v16  ;;  %v11759_v16 = vld [vmem:[%s17091_s5 + $0x100] sm:$0xff]  ;;  %v11766_v6 = vld [vmem:[%s17091_s5 + $0x138] sm:$0xff] }
 0xfe1   : > { %v11203_v36 = vpop.eup %11202  ;;  %v4971_v31 = vmul.f32 %v11201_v7, %v14808_v11 }
 0xfe2   : > { %v11205_v10 = vpop.eup %11204  ;;  %v4974_v23 = vmul.f32 %v11203_v36, %v14814_v3 }
 0xfe3   : > { %v4972_v45 = vmul.f32 %v11205_v10, %v14820_v35  ;;  %v5164_v35 = vpop.permute.xlu1 %5163 }
 0xfe4   : > { %v4982_v28 = vpack.c.bf16 %v4974_v23, %v4973_v42 }
 0xfe5   : > { %v4981_v29 = vpack.c.bf16 %v4972_v45, %v4971_v31 }
 0xfe7   : > { %10371 = vmatprep.mubr.msk.bf16.mxu1 %vm1552_vm1, %v4981_v29  ;;  %v5168_v49 = vpop.permute.xlu1 %5167  ;;  %v11767_v29 = vld [vmem:[%s17091_s5 + $0x140] sm:$0xff] }
 0xfe8   : > { %10372 = vmatmul.mubr.msk.bf16.gmra.mrb[124].mxu1 %vm1552_vm1, %v4982_v28  ;;  %v5174_v28 = vpop.permute.xlu0 %5173 }
 0xfeb   : > { %v5172_v10 = vpop.permute.xlu1 %5171 }
0x10a2   : > { %v10361_v13 = vpop.f32.mrb[112].mxu1 }
0x10a3   : > { %v5041_v24 = vpop.f32.mrb[113].mxu1  ;;  %v14877_v20 = vadd.f32 %v11760_v18, %v10361_v13  ;;  %v11768_v13 = vld [vmem:[%s17091_s5 + $0x150] sm:$0xff] }
0x10a4   : > { %v14872_v11 = vadd.f32 %v11759_v16, %v5041_v24  ;;  %v10362_v3 = vpop.f32.mrb[114].mxu1  ;;  %v11769_v16 = vld [vmem:[%s17091_s5 + $0x148] sm:$0xff] }
0x10a5   : > { %v5044_v0 = vpop.f32.mrb[115].mxu1  ;;  %v14888_v39 = vadd.f32 %v11762_v58, %v10362_v3  ;;  %v5203_v2 = vmul.f32 %v5158_v63, %v14877_v20 }
0x10a6   : > { %v5201_v48 = vmul.f32 %v5154_v54, %v14872_v11  ;;  %v14883_v33 = vadd.f32 %v11761_v21, %v5044_v0 }
0x10a7   : > { %v5204_v37 = vmul.f32 %v5160_v56, %v14888_v39  ;;  %v5176_v56 = vpop.permute.xlu1 %5175 }
0x10a8   : > { %v5202_v55 = vmul.f32 %v5156_v47, %v14883_v33  ;;  %5233 = vrot.lane.b32.xlu0 %v5201_v48, %s11979_s27  ;;  %v5178_v48 = vpop.permute.xlu0 %5177 }
0x10aa   : > { %v10365_v5 = vpop.f32.mrb[116].mxu1  ;;  %5235 = vrot.lane.b32.xlu1 %v5202_v55, %s11979_s27 }
0x10ab   : > { %v5057_v61 = vpop.f32.mrb[117].mxu1  ;;  %v14904_v32 = vadd.f32 %v11764_v26, %v10365_v5  ;;  %v5180_v55 = vpop.permute.xlu1 %5179  ;;  %v11771_v5 = vld [vmem:[%s17091_s5 + $0x160] sm:$0xff]  ;;  %v11773_v26 = vld [vmem:[%s17091_s5 + $0x168] sm:$0xff] }
0x10ac   : > { %v14898_v8 = vadd.f32 %v11763_v22, %v5057_v61  ;;  %v10366_v52 = vpop.f32.mrb[118].mxu1  ;;  %5237 = vrot.lane.b32.xlu0 %v5203_v2, %s11979_s27  ;;  %v11772_v22 = vld [vmem:[%s17091_s5 + $0x170] sm:$0xff] }
0x10ad   : > { %v5060_v38 = vpop.f32.mrb[119].mxu1  ;;  %v14916_v7 = vadd.f32 %v11766_v6, %v10366_v52  ;;  %v5207_v42 = vmul.f32 %v5166_v19, %v14904_v32 }
0x10ae   : > { %v5205_v14 = vmul.f32 %v5162_v59, %v14898_v8  ;;  %v14910_v9 = vadd.f32 %v11765_v60, %v5060_v38  ;;  %5239 = vrot.lane.b32.xlu1 %v5204_v37, %s11979_s27  ;;  %v5182_v60 = vpop.permute.xlu0 %5181 }
0x10af   : > { %v5208_v31 = vmul.f32 %v5168_v49, %v14916_v7 }
0x10b0   : > { %v5206_v36 = vmul.f32 %v5164_v35, %v14910_v9  ;;  %5241 = vrot.lane.b32.xlu0 %v5205_v14, %s11979_s27  ;;  %v11770_v35 = vld [vmem:[%s17091_s5 + $0x158] sm:$0xff] }
0x10b2   : > { %5243 = vrot.lane.b32.xlu1 %v5206_v36, %s11979_s27 }
0x10b3   : > { %v10369_v23 = vpop.f32.mrb[120].mxu1 }
0x10b4   : > { %v5073_v45 = vpop.f32.mrb[121].mxu1  ;;  %5245 = vrot.lane.b32.xlu0 %v5207_v42, %s11979_s27  ;;  %v14933_v59 = vadd.f32 %v11768_v13, %v10369_v23 }
0x10b5   : > { %v14927_v54 = vadd.f32 %v11767_v29, %v5073_v45  ;;  %v10370_v47 = vpop.f32.mrb[122].mxu1 }
0x10b6   : > { %v5076_v63 = vpop.f32.mrb[123].mxu1  ;;  %5247 = vrot.lane.b32.xlu1 %v5208_v31, %s11979_s27  ;;  %v14944_v0 = vadd.f32 %v11770_v35, %v10370_v47  ;;  %v5211_v21 = vmul.f32 %v5174_v28, %v14933_v59  ;;  %v5104_v31 = vadd.f32 %v14872_v11, %v14383_v43  ;;  %v5105_v28 = vadd.f32 %v14883_v33, %v14390_v41 }
0x10b7   : > { %v5209_v24 = vmul.f32 %v5170_v12, %v14927_v54  ;;  %v14939_v3 = vadd.f32 %v11769_v16, %v5076_v63  ;;  %v11774_v12 = vld [vmem:[%s17091_s5 + $0x178] sm:$0xff]  ;;  %v5106_v63 = vadd.f32 %v14877_v20, %v14399_v62  ;;  %v5107_v43 = vadd.f32 %v14888_v39, %v14406_v46 }
0x10b8   : > { %v5212_v2 = vmul.f32 %v5176_v56, %v14944_v0  ;;  %v5108_v62 = vadd.f32 %v14898_v8, %v14416_v40  ;;  %v5109_v39 = vadd.f32 %v14910_v9, %v14423_v51  ;;  %v5110_v8 = vadd.f32 %v14904_v32, %v14439_v53  ;;  %v15031_v9 = vld [vmem:[%s17090_s4 + $0x20] sm:$0xff]  }
0x10b9   : > { %v5210_v18 = vmul.f32 %v5172_v10, %v14939_v3  ;;  %5249 = vrot.lane.b32.xlu0 %v5209_v24, %s11979_s27  ;;  %v5184_v10 = vpop.permute.xlu1 %5183 }
0x10bb   : > { %v10373_v58 = vpop.f32.mrb[124].mxu1  ;;  %5251 = vrot.lane.b32.xlu1 %v5210_v18, %s11979_s27  ;;  %v5111_v18 = vadd.f32 %v14916_v7, %v14447_v17  ;;  %v5112_v17 = vadd.f32 %v14927_v54, %v14462_v27  ;;  %v5114_v54 = vadd.f32 %v14933_v59, %v14482_v34 }
0x10bc   : > { %v5089_v19 = vpop.f32.mrb[125].mxu1  ;;  %v14960_v52 = vadd.f32 %v11772_v22, %v10373_v58 }
0x10bd   : > { %v14954_v49 = vadd.f32 %v11771_v5, %v5089_v19  ;;  %v10374_v61 = vpop.f32.mrb[126].mxu1  ;;  %5253 = vrot.lane.b32.xlu0 %v5211_v21, %s11979_s27  ;;  %v11777_v19 = vld [vmem:[%s17090_s4 + $0x30] sm:$0xff]  }
0x10be   : > { %v5092_v37 = vpop.f32.mrb[127].mxu1  ;;  %v14972_v6 = vadd.f32 %v11774_v12, %v10374_v61  ;;  %v5215_v42 = vmul.f32 %v5182_v60, %v14960_v52 }
0x10bf   : > { %v5213_v38 = vmul.f32 %v5178_v48, %v14954_v49  ;;  %v14966_v14 = vadd.f32 %v11773_v26, %v5092_v37  ;;  %5255 = vrot.lane.b32.xlu1 %v5212_v2, %s11979_s27  ;;  %v11776_v48 = vld [vmem:[%s17090_s4 + $0x28] sm:$0xff]   ;;  %v5113_v2 = vadd.f32 %v14939_v3, %v14470_v50  ;;  %v11778_v50 = vld [vmem:[%s17090_s4 + $0x38] sm:$0xff]   ;;  %v5115_v3 = vadd.f32 %v14944_v0, %v14489_v1  ;;  %v15097_v0 = vld [vmem:[%s17089_s3] sm:$0xff]  }
0x10c0   : > { %v5216_v23 = vmul.f32 %v5184_v10, %v14972_v6 }
0x10c1   : > { %v5214_v36 = vmul.f32 %v5180_v55, %v14966_v14  ;;  %5257 = vrot.lane.b32.xlu0 %v5213_v38, %s11979_s27  ;;  %v5116_v38 = vadd.f32 %v14954_v49, %v14505_v57  ;;  %v5117_v57 = vadd.f32 %v14966_v14, %v14512_v4  ;;  %v5118_v4 = vadd.f32 %v14960_v52, %v14522_v25  ;;  %v9343_v52 = vld [vmem:[%s12701_s7 + $0x210] sm:$0xff] }
0x10c3   : > { %5259 = vrot.lane.b32.xlu1 %v5214_v36, %s11979_s27 }
0x10c5   : > { %5261 = vrot.lane.b32.xlu0 %v5215_v42, %s11979_s27 }
0x10c7   : > { %5263 = vrot.lane.b32.xlu1 %v5216_v23, %s11979_s27  ;;  %v5119_v23 = vadd.f32 %v14972_v6, %v14527_v15  ;;  %v9344_v15 = vld [vmem:[%s12701_s7 + $0x218] sm:$0xff] }
0x111a   : > { %v5234_v45 = vpop.permute.xlu0 %5233 }
0x111b   : > { %v14985_v29 = vadd.f32 %v5234_v45, %v5104_v31 }
0x111c   : > { %v5236_v47 = vpop.permute.xlu1 %5235 }
0x111d   : > { %9325 = vst.msk [vmem:[%s12569_s18 + $0x200] sm:$0xff] %vm1346_vm0, %v14985_v29  ;;  %v14992_v56 = vadd.f32 %v5236_v47, %v5105_v28  ;;  %v9341_v47 = vld [vmem:[%s12701_s7 + $0x200] sm:$0xff] }
0x111e   : > { %v5238_v13 = vpop.permute.xlu0 %5237 }
0x111f   : > { %9326 = vst.msk [vmem:[%s12569_s18 + $0x208] sm:$0xff] %vm1346_vm0, %v14992_v56  ;;  %v5314_v41 = vpack.c.bf16 %v14992_v56, %v14985_v29  ;;  %v15001_v11 = vadd.f32 %v5238_v13, %v5106_v63  ;;  %v9342_v63 = vld [vmem:[%s12701_s7 + $0x208] sm:$0xff] }
0x1120   : > { %v5240_v33 = vpop.permute.xlu1 %5239 }
0x1121   : > { %9327 = vst.msk [vmem:[%s12569_s18 + $0x210] sm:$0xff] %vm1346_vm0, %v15001_v11  ;;  %v15008_v20 = vadd.f32 %v5240_v33, %v5107_v43  ;;  %10379 = vmatprep.mubr.msk.bf16.mxu0 %vm1346_vm0, %v5314_v41 }
0x1122   : > { %v5242_v46 = vpop.permute.xlu0 %5241 }
0x1123   : > { %9328 = vst.msk [vmem:[%s12569_s18 + $0x218] sm:$0xff] %vm1346_vm0, %v15008_v20  ;;  %v5315_v24 = vpack.c.bf16 %v15008_v20, %v15001_v11  ;;  %v15018_v16 = vadd.f32 %v5242_v46, %v5108_v62 }
0x1124   : > { %v5244_v40 = vpop.permute.xlu1 %5243 }
0x1125   : > { %9329 = vst.msk [vmem:[%s12569_s18 + $0x220] sm:$0xff] %vm1346_vm0, %v15018_v16  ;;  %v15025_v35 = vadd.f32 %v5244_v40, %v5109_v39  ;;  %10380 = vmatmul.mubr.msk.bf16.vlgmr.msra.gmra.mrb[128].mxu0 %vm1346_vm0, %v5315_v24  ;;  %v9347_v40 = vld [vmem:[%s12701_s7 + $0x230] sm:$0xff] }
0x1126   : > { %v5246_v51 = vpop.permute.xlu0 %5245  ;;  %10420 = vmatpush3.bf16.msra.mxu0 %v15031_v9 }
0x1127   : > { %9330 = vst.msk [vmem:[%s12569_s18 + $0x228] sm:$0xff] %vm1346_vm0, %v15025_v35  ;;  %v5316_v53 = vpack.c.bf16 %v15025_v35, %v15018_v16  ;;  %v15041_v32 = vadd.f32 %v5246_v51, %v5110_v8  ;;  %10421 = vmatprep.subr.bf16.mxu0 %v11776_v48  ;;  %v9348_v51 = vld [vmem:[%s12701_s7 + $0x238] sm:$0xff] }
0x1128   : > { %v5248_v21 = vpop.permute.xlu1 %5247 }
0x1129   : > { %9331 = vst.msk [vmem:[%s12569_s18 + $0x230] sm:$0xff] %vm1346_vm0, %v15041_v32  ;;  %v15049_v58 = vadd.f32 %v5248_v21, %v5111_v18  ;;  %10383 = vmatprep.mubr.msk.bf16.mxu0 %vm1346_vm0, %v5316_v53  ;;  %v9345_v53 = vld [vmem:[%s12701_s7 + $0x220] sm:$0xff] }
0x112a   : > { %10422 = vmatpush3.bf16.msra.mxu0 %v11776_v48  ;;  %v9346_v48 = vld [vmem:[%s12701_s7 + $0x228] sm:$0xff] }
0x112b   : > { %9332 = vst.msk [vmem:[%s12569_s18 + $0x238] sm:$0xff] %vm1346_vm0, %v15049_v58  ;;  %v5317_v7 = vpack.c.bf16 %v15049_v58, %v15041_v32  ;;  %v5250_v55 = vpop.permute.xlu0 %5249  ;;  %10423 = vmatprep.subr.bf16.mxu0 %v11777_v19 }
0x112c   : > { %v15064_v5 = vadd.f32 %v5250_v55, %v5112_v17 }
0x112d   : > { %v5252_v27 = vpop.permute.xlu1 %5251  ;;  %10384 = vmatmul.mubr.msk.bf16.gmra.mrb[132].mxu0 %vm1346_vm0, %v5317_v7 }
0x112e   : > { %9333 = vst.msk [vmem:[%s12569_s18 + $0x240] sm:$0xff] %vm1346_vm0, %v15064_v5  ;;  %v15072_v61 = vadd.f32 %v5252_v27, %v5113_v2  ;;  %10424 = vmatpush3.bf16.msra.mxu0 %v11777_v19  ;;  %v11780_v19 = vld [vmem:[%s17090_s4 + $0x48] sm:$0xff]  }
0x112f   : > { %v5254_v37 = vpop.permute.xlu0 %5253  ;;  %10425 = vmatprep.subr.bf16.mxu0 %v11778_v50 }
0x1130   : > { %9334 = vst.msk [vmem:[%s12569_s18 + $0x248] sm:$0xff] %vm1346_vm0, %v15072_v61  ;;  %v5318_v34 = vpack.c.bf16 %v15072_v61, %v15064_v5  ;;  %v15084_v59 = vadd.f32 %v5254_v37, %v5114_v54 }
0x1131   : > { %v5256_v22 = vpop.permute.xlu1 %5255 }
0x1132   : > { %9335 = vst.msk [vmem:[%s12569_s18 + $0x250] sm:$0xff] %vm1346_vm0, %v15084_v59  ;;  %v15091_v26 = vadd.f32 %v5256_v22, %v5115_v3  ;;  %10387 = vmatprep.mubr.msk.bf16.mxu0 %vm1346_vm0, %v5318_v34  ;;  %10426 = vmatpush3.bf16.msra.mxu0 %v11778_v50  ;;  %v9351_v50 = vld [vmem:[%s12701_s7 + $0x250] sm:$0xff]  ;;  %v9352_v34 = vld [vmem:[%s12701_s7 + $0x258] sm:$0xff] }
0x1133   : > { %v5258_v1 = vpop.permute.xlu0 %5257  ;;  %10467 = vmatprep.subr.bf16.mxu0 %v15097_v0 }
0x1134   : > { %9336 = vst.msk [vmem:[%s12569_s18 + $0x258] sm:$0xff] %vm1346_vm0, %v15091_v26  ;;  %v5319_v49 = vpack.c.bf16 %v15091_v26, %v15084_v59  ;;  %v15107_v60 = vadd.f32 %v5258_v1, %v5116_v38  ;;  %v9349_v38 = vld [vmem:[%s12701_s7 + $0x240] sm:$0xff]  ;;  %v9350_v1 = vld [vmem:[%s12701_s7 + $0x248] sm:$0xff] }
0x1135   : > { %v5260_v12 = vpop.permute.xlu1 %5259 }
0x1136   : > { %9337 = vst.msk [vmem:[%s12569_s18 + $0x260] sm:$0xff] %vm1346_vm0, %v15107_v60  ;;  %v15112_v36 = vadd.f32 %v5260_v12, %v5117_v57  ;;  %10388 = vmatmul.mubr.msk.bf16.gmra.mrb[136].mxu0 %vm1346_vm0, %v5319_v49  ;;  %v11782_v49 = vld [vmem:[%s17090_s4 + $0x58] sm:$0xff]  }
0x1137   : > { %v5262_v14 = vpop.permute.xlu0 %5261 }
0x1138   : > { %9338 = vst.msk [vmem:[%s12569_s18 + $0x268] sm:$0xff] %vm1346_vm0, %v15112_v36  ;;  %v5320_v10 = vpack.c.bf16 %v15112_v36, %v15107_v60  ;;  %v15122_v42 = vadd.f32 %v5262_v14, %v5118_v4 }
0x1139   : > { %v5264_v31 = vpop.permute.xlu1 %5263 }
0x113a   : > { %9339 = vst.msk [vmem:[%s12569_s18 + $0x270] sm:$0xff] %vm1346_vm0, %v15122_v42  ;;  %v15129_v45 = vadd.f32 %v5264_v31, %v5119_v23  ;;  %10391 = vmatprep.mubr.msk.bf16.mxu0 %vm1346_vm0, %v5320_v10 }
0x113c   : > { %9340 = vst.msk [vmem:[%s12569_s18 + $0x278] sm:$0xff] %vm1346_vm0, %v15129_v45  ;;  %v5321_v25 = vpack.c.bf16 %v15129_v45, %v15122_v42 }
0x113e   : > { %10392 = vmatmul.mubr.msk.bf16.gmra.mrb[140].mxu0 %vm1346_vm0, %v5321_v25 }
0x11f8   : > { %v10381_v28 = vpop.f32.mrb[128].mxu0 }
0x11f9   : > { %v5397_v6 = vpop.f32.mrb[129].mxu0  ;;  %v5406_v43 = vadd.f32 %v10381_v28, %v9343_v52  ;;  %v9355_v52 = vld [vmem:[%s12701_s7 + $0x270] sm:$0xff] }
0x11fa   : > { %v10382_v13 = vpop.f32.mrb[130].mxu0  ;;  %v5398_v62 = vadd.f32 %v9341_v47, %v5397_v6  ;;  %v9353_v47 = vld [vmem:[%s12701_s7 + $0x260] sm:$0xff] }
0x11fb   : > { %v5409_v41 = vadd.f32 %v10382_v13, %v9344_v15  ;;  %v5400_v33 = vpop.f32.mrb[131].mxu0  ;;  %v9356_v15 = vld [vmem:[%s12701_s7 + $0x278] sm:$0xff] }
0x11fc   : > { %v5401_v46 = vadd.f32 %v9342_v63, %v5400_v33  ;;  %v9354_v63 = vld [vmem:[%s12701_s7 + $0x268] sm:$0xff] }
0x11fd   : > { %v5461_v39 = vpack.c.bf16 %v5409_v41, %v5406_v43 }
0x11fe   : > { %v5460_v24 = vpack.c.bf16 %v5401_v46, %v5398_v62 }
0x1200   : > { %v10385_v8 = vpop.f32.mrb[132].mxu0  ;;  %10403 = vmatprep.mubr.msk.bf16.mxu1 %vm1552_vm1, %v5460_v24 }
0x1201   : > { %v5413_v18 = vpop.f32.mrb[133].mxu0  ;;  %10404 = vmatmul.mubr.msk.bf16.vlgmr.msra.gmra.mrb[128].mxu1 %vm1552_vm1, %v5461_v39  ;;  %v5422_v17 = vadd.f32 %v10385_v8, %v9347_v40  ;;  %v11783_v40 = vld [vmem:[%s17091_s5 + $0x10] sm:$0xff] }
0x1202   : > { %v10386_v21 = vpop.f32.mrb[134].mxu0  ;;  %10444 = vmatpush3.bf16.msra.mxu1 %v14858_v44  ;;  %v5414_v2 = vadd.f32 %v9345_v53, %v5413_v18  ;;  %v11781_v44 = vld [vmem:[%s17090_s4 + $0x50] sm:$0xff]   ;;  %v11784_v18 = vld [vmem:[%s17091_s5] sm:$0xff] }
0x1203   : > { %v5425_v7 = vadd.f32 %v10386_v21, %v9348_v51  ;;  %v5416_v55 = vpop.f32.mrb[135].mxu0  ;;  %10445 = vmatprep.subr.bf16.mxu1 %v11780_v19 }
0x1204   : > { %v5417_v27 = vadd.f32 %v9346_v48, %v5416_v55 }
0x1205   : > { %v5463_v54 = vpack.c.bf16 %v5425_v7, %v5422_v17  ;;  %v11785_v17 = vld [vmem:[%s17091_s5 + $0x18] sm:$0xff] }
0x1206   : > { %v5462_v37 = vpack.c.bf16 %v5417_v27, %v5414_v2  ;;  %10446 = vmatpush3.bf16.msra.mxu1 %v11780_v19  ;;  %v11786_v2 = vld [vmem:[%s17091_s5 + $0x8] sm:$0xff] }
0x1207   : > { %10447 = vmatprep.subr.bf16.mxu1 %v11781_v44 }
0x1208   : > { %10407 = vmatprep.mubr.msk.bf16.mxu1 %vm1552_vm1, %v5462_v37 }
0x1209   : > { %v10389_v3 = vpop.f32.mrb[136].mxu0  ;;  %10408 = vmatmul.mubr.msk.bf16.gmra.mrb[132].mxu1 %vm1552_vm1, %v5463_v54 }
0x120a   : > { %v5429_v22 = vpop.f32.mrb[137].mxu0  ;;  %10448 = vmatpush3.bf16.msra.mxu1 %v11781_v44  ;;  %v5438_v12 = vadd.f32 %v10389_v3, %v9351_v50  ;;  %v11787_v50 = vld [vmem:[%s17091_s5 + $0x30] sm:$0xff] }
0x120b   : > { %v10390_v57 = vpop.f32.mrb[138].mxu0  ;;  %10449 = vmatprep.subr.bf16.mxu1 %v11782_v49  ;;  %v5430_v10 = vadd.f32 %v9349_v38, %v5429_v22  ;;  %v11788_v22 = vld [vmem:[%s17091_s5 + $0x20] sm:$0xff] }
0x120c   : > { %v5441_v4 = vadd.f32 %v10390_v57, %v9352_v34  ;;  %v5432_v14 = vpop.f32.mrb[139].mxu0 }
0x120d   : > { %v5433_v23 = vadd.f32 %v9350_v1, %v5432_v14 }
0x120e   : > { %v5465_v31 = vpack.c.bf16 %v5441_v4, %v5438_v12  ;;  %10450 = vmatpush3.bf16.msra.mxu1 %v11782_v49  ;;  %v11789_v49 = vld [vmem:[%s17091_s5 + $0x38] sm:$0xff] }
0x120f   : > { %v5464_v25 = vpack.c.bf16 %v5433_v23, %v5430_v10  ;;  %10487 = vmatprep.subr.bf16.mxu1 %v14833_v30  ;;  %v11790_v10 = vld [vmem:[%s17091_s5 + $0x28] sm:$0xff] }
0x1211   : > { %v10393_v28 = vpop.f32.mrb[140].mxu0  ;;  %10411 = vmatprep.mubr.msk.bf16.mxu1 %vm1552_vm1, %v5464_v25 }
0x1212   : > { %v5445_v6 = vpop.f32.mrb[141].mxu0  ;;  %10412 = vmatmul.mubr.msk.bf16.gmra.mrb[136].mxu1 %vm1552_vm1, %v5465_v31  ;;  %v5454_v43 = vadd.f32 %v10393_v28, %v9355_v52 }
0x1213   : > { %v10394_v13 = vpop.f32.mrb[142].mxu0  ;;  %v5446_v62 = vadd.f32 %v9353_v47, %v5445_v6 }
0x1214   : > { %v5457_v41 = vadd.f32 %v10394_v13, %v9356_v15  ;;  %v5448_v33 = vpop.f32.mrb[143].mxu0 }
0x1215   : > { %v5449_v46 = vadd.f32 %v9354_v63, %v5448_v33 }
0x1216   : > { %v5467_v39 = vpack.c.bf16 %v5457_v41, %v5454_v43  ;;  %v11791_v41 = vld [vmem:[%s17091_s5 + $0x50] sm:$0xff] }
0x1217   : > { %v5466_v24 = vpack.c.bf16 %v5449_v46, %v5446_v62 }
0x1219   : > { %10415 = vmatprep.mubr.msk.bf16.mxu1 %vm1552_vm1, %v5466_v24 }
0x121a   : > { %10416 = vmatmul.mubr.msk.bf16.gmra.mrb[140].mxu1 %vm1552_vm1, %v5467_v39  ;;  %v11792_v39 = vld [vmem:[%s17091_s5 + $0x40] sm:$0xff] }
0x12d4   : > { %v10405_v30 = vpop.f32.mrb[128].mxu1 }
0x12d5   : > { %v15176_v8 = vadd.f32 %v11783_v40, %v10405_v30  ;;  %v5526_v51 = vpop.f32.mrb[129].mxu1 }
0x12d6   : > { %v15181_v53 = vadd.f32 %v11784_v18, %v5526_v51  ;;  %v10406_v48 = vpop.f32.mrb[130].mxu1  ;;  %v11793_v51 = vld [vmem:[%s17091_s5 + $0x58] sm:$0xff] }
0x12d7   : > { %v9375_v21 = vmul.f32 -1.442695, %v15176_v8  ;;  %v15187_v7 = vadd.f32 %v11785_v17, %v10406_v48  ;;  %v5529_v55 = vpop.f32.mrb[131].mxu1  ;;  %v11794_v17 = vld [vmem:[%s17091_s5 + $0x48] sm:$0xff] }
0x12d8   : > { %v9373_v19 = vmul.f32 -1.442695, %v15181_v53  ;;  %v15193_v27 = vadd.f32 %v11786_v2, %v5529_v55 }
0x12d9   : > { %11206 = vpow2.f32 %v9375_v21  ;;  %v9376_v54 = vmul.f32 -1.442695, %v15187_v7 }
0x12da   : > { %11208 = vpow2.f32 %v9373_v19  ;;  %v9374_v37 = vmul.f32 -1.442695, %v15193_v27 }
0x12db   : > { %11210 = vpow2.f32 %v9376_v54 }
0x12dc   : > { %11212 = vpow2.f32 %v9374_v37  ;;  %v10409_v44 = vpop.f32.mrb[132].mxu1 }
0x12dd   : > { %v15200_v3 = vadd.f32 %v11787_v50, %v10409_v44  ;;  %v5542_v34 = vpop.f32.mrb[133].mxu1 }
0x12de   : > { %v15205_v38 = vadd.f32 %v11788_v22, %v5542_v34  ;;  %v10410_v1 = vpop.f32.mrb[134].mxu1 }
0x12df   : > { %v9379_v57 = vmul.f32 -1.442695, %v15200_v3  ;;  %v15211_v12 = vadd.f32 %v11789_v49, %v10410_v1  ;;  %v5545_v4 = vpop.f32.mrb[135].mxu1  ;;  %v11795_v49 = vld [vmem:[%s17091_s5 + $0x70] sm:$0xff] }
0x12e0   : > { %v9377_v14 = vmul.f32 -1.442695, %v15205_v38  ;;  %v15217_v23 = vadd.f32 %v11790_v10, %v5545_v4 }
0x12e1   : > { %11214 = vpow2.f32 %v9379_v57  ;;  %v9380_v31 = vmul.f32 -1.442695, %v15211_v12 }
0x12e2   : > { %11216 = vpow2.f32 %v9377_v14  ;;  %v9378_v25 = vmul.f32 -1.442695, %v15217_v23 }
0x12e3   : > { %v11207_v52 = vpop.eup %11206  ;;  %11218 = vpow2.f32 %v9380_v31  ;;  %v11796_v31 = vld [vmem:[%s17091_s5 + $0x60] sm:$0xff] }
0x12e4   : > { %v11209_v28 = vpop.eup %11208  ;;  %v5639_v15 = vadd.f32 1.0, %v11207_v52  ;;  %11220 = vpow2.f32 %v9378_v25 }
0x12e5   : > { %v11211_v6 = vpop.eup %11210  ;;  %v5637_v47 = vadd.f32 1.0, %v11209_v28  ;;  %v10413_v63 = vpop.f32.mrb[136].mxu1 }
0x12e6   : > { %v11213_v13 = vpop.eup %11212  ;;  %11222 = vrcp.f32 %v5639_v15  ;;  %v5640_v43 = vadd.f32 1.0, %v11211_v6  ;;  %v15224_v33 = vadd.f32 %v11791_v41, %v10413_v63  ;;  %v5558_v62 = vpop.f32.mrb[137].mxu1  ;;  %v11797_v6 = vld [vmem:[%s17091_s5 + $0x78] sm:$0xff]  ;;  %v11798_v41 = vld [vmem:[%s17091_s5 + $0x68] sm:$0xff] }
0x12e7   : > { %11224 = vrcp.f32 %v5637_v47  ;;  %v5638_v46 = vadd.f32 1.0, %v11213_v13  ;;  %v15229_v24 = vadd.f32 %v11792_v39, %v5558_v62  ;;  %v10414_v30 = vpop.f32.mrb[138].mxu1 }
0x12e8   : > { %11226 = vrcp.f32 %v5640_v43  ;;  %v9383_v40 = vmul.f32 -1.442695, %v15224_v33  ;;  %v15235_v18 = vadd.f32 %v11793_v51, %v10414_v30  ;;  %v5561_v48 = vpop.f32.mrb[139].mxu1 }
0x12e9   : > { %11228 = vrcp.f32 %v5638_v46  ;;  %v9381_v21 = vmul.f32 -1.442695, %v15229_v24  ;;  %v15241_v55 = vadd.f32 %v11794_v17, %v5561_v48 }
0x12ea   : > { %11230 = vpow2.f32 %v9383_v40  ;;  %v9384_v19 = vmul.f32 -1.442695, %v15235_v18 }
0x12eb   : > { %v11215_v2 = vpop.eup %11214  ;;  %11232 = vpow2.f32 %v9381_v21  ;;  %v9382_v54 = vmul.f32 -1.442695, %v15241_v55 }
0x12ec   : > { %v11217_v37 = vpop.eup %11216  ;;  %v5643_v44 = vadd.f32 1.0, %v11215_v2  ;;  %11234 = vpow2.f32 %v9384_v19 }
0x12ed   : > { %v11219_v50 = vpop.eup %11218  ;;  %v5641_v34 = vadd.f32 1.0, %v11217_v37  ;;  %11236 = vpow2.f32 %v9382_v54  ;;  %v10417_v22 = vpop.f32.mrb[140].mxu1 }
0x12ee   : > { %v11221_v1 = vpop.eup %11220  ;;  %11238 = vrcp.f32 %v5643_v44  ;;  %v5644_v57 = vadd.f32 1.0, %v11219_v50  ;;  %v15248_v4 = vadd.f32 %v11795_v49, %v10417_v22  ;;  %v5574_v14 = vpop.f32.mrb[141].mxu1 }
0x12ef   : > { %11240 = vrcp.f32 %v5641_v34  ;;  %v5642_v10 = vadd.f32 1.0, %v11221_v1  ;;  %v15253_v25 = vadd.f32 %v11796_v31, %v5574_v14  ;;  %v10418_v52 = vpop.f32.mrb[142].mxu1 }
0x12f0   : > { %v11223_v28 = vpop.eup %11222  ;;  %11242 = vrcp.f32 %v5644_v57  ;;  %v9387_v15 = vmul.f32 -1.442695, %v15248_v4  ;;  %v15259_v47 = vadd.f32 %v11797_v6, %v10418_v52  ;;  %v5577_v63 = vpop.f32.mrb[143].mxu1 }
0x12f1   : > { %v11225_v13 = vpop.eup %11224  ;;  %11244 = vrcp.f32 %v5642_v10  ;;  %v9385_v43 = vmul.f32 -1.442695, %v15253_v25  ;;  %v15265_v62 = vadd.f32 %v11798_v41, %v5577_v63  ;;  %v5687_v40 = vmul.f32 %v11223_v28, %v15176_v8  ;;  %v11799_v10 = vld [vmem:[%s17089_s3 + $0x8] sm:$0xff]  }
0x12f2   : > { %v11227_v46 = vpop.eup %11226  ;;  %11246 = vpow2.f32 %v9387_v15  ;;  %v9388_v39 = vmul.f32 -1.442695, %v15259_v47  ;;  %v5685_v17 = vmul.f32 %v11225_v13, %v15181_v53 }
0x12f3   : > { %v11229_v30 = vpop.eup %11228  ;;  %v5688_v51 = vmul.f32 %v11227_v46, %v15187_v7  ;;  %11248 = vpow2.f32 %v9385_v43  ;;  %v9386_v48 = vmul.f32 -1.442695, %v15265_v62 }
0x12f4   : > { %v11231_v21 = vpop.eup %11230  ;;  %v5686_v19 = vmul.f32 %v11229_v30, %v15193_v27  ;;  %11250 = vpow2.f32 %v9388_v39 }
0x12f5   : > { %v11233_v2 = vpop.eup %11232  ;;  %v5702_v54 = vpack.c.bf16 %v5688_v51, %v5687_v40  ;;  %v5647_v37 = vadd.f32 1.0, %v11231_v21  ;;  %11252 = vpow2.f32 %v9386_v48 }
0x12f6   : > { %v11235_v44 = vpop.eup %11234  ;;  %v5701_v50 = vpack.c.bf16 %v5686_v19, %v5685_v17  ;;  %v5645_v34 = vadd.f32 1.0, %v11233_v2 }
0x12f7   : > { %v11237_v22 = vpop.eup %11236  ;;  %11254 = vrcp.f32 %v5647_v37  ;;  %v5648_v8 = vadd.f32 1.0, %v11235_v44 }
0x12f8   : > { %v11239_v7 = vpop.eup %11238  ;;  %11256 = vrcp.f32 %v5645_v34  ;;  %v5646_v1 = vadd.f32 1.0, %v11237_v22  ;;  %10427 = vmatprep.mubr.msk.bf16.mxu0 %vm1552_vm1, %v5701_v50  ;;  %v9421_v50 = vld [vmem:[%s12898_s21 + $0x200] sm:$0xff]  ;;  %v9422_v34 = vld [vmem:[%s12898_s21 + $0x208] sm:$0xff]  ;;  %v9427_v22 = vld [vmem:[%s12898_s21 + $0x230] sm:$0xff] }
0x12f9   : > { %v11241_v57 = vpop.eup %11240  ;;  %11258 = vrcp.f32 %v5648_v8  ;;  %10428 = vmatmul.mubr.msk.bf16.vlgmr.msra.gmra.mrb[144].mxu0 %vm1552_vm1, %v5702_v54  ;;  %v5691_v49 = vmul.f32 %v11239_v7, %v15200_v3  ;;  %6120 = vrot.lane.b32.xlu0 %v9421_v50, %s11978_s8  ;;  %v9428_v8 = vld [vmem:[%s12898_s21 + $0x238] sm:$0xff]  ;;  %v9429_v7 = vld [vmem:[%s12898_s21 + $0x240] sm:$0xff] }
0x12fa   : > { %v11243_v53 = vpop.eup %11242  ;;  %11260 = vrcp.f32 %v5646_v1  ;;  %10468 = vmatpush3.bf16.msra.mxu0 %v15097_v0  ;;  %v5689_v52 = vmul.f32 %v11241_v57, %v15205_v38  ;;  %6122 = vrot.lane.b32.xlu1 %v9422_v34, %s11978_s8  ;;  %v9430_v1 = vld [vmem:[%s12898_s21 + $0x248] sm:$0xff]  ;;  %v9431_v57 = vld [vmem:[%s12898_s21 + $0x250] sm:$0xff] }
0x12fb   : > { %v11245_v27 = vpop.eup %11244  ;;  %v5692_v14 = vmul.f32 %v11243_v53, %v15211_v12  ;;  %10469 = vmatprep.subr.bf16.mxu0 %v11799_v10  ;;  %v9432_v53 = vld [vmem:[%s12898_s21 + $0x258] sm:$0xff] }
0x12fc   : > { %v11247_v31 = vpop.eup %11246  ;;  %v5690_v28 = vmul.f32 %v11245_v27, %v15217_v23  ;;  %v9433_v27 = vld [vmem:[%s12898_s21 + $0x260] sm:$0xff] }
0x12fd   : > { %v11249_v15 = vpop.eup %11248  ;;  %v5704_v6 = vpack.c.bf16 %v5692_v14, %v5691_v49  ;;  %v5651_v63 = vadd.f32 1.0, %v11247_v31  ;;  %v9434_v49 = vld [vmem:[%s12898_s21 + $0x268] sm:$0xff]  ;;  %v9435_v14 = vld [vmem:[%s12898_s21 + $0x270] sm:$0xff] }
0x12fe   : > { %v11251_v13 = vpop.eup %11250  ;;  %v5703_v0 = vpack.c.bf16 %v5690_v28, %v5689_v52  ;;  %v5649_v43 = vadd.f32 1.0, %v11249_v15  ;;  %10470 = vmatpush3.bf16.msra.mxu0 %v11799_v10  ;;  %v9436_v10 = vld [vmem:[%s12898_s21 + $0x278] sm:$0xff]  ;;  %v11800_v52 = vld [vmem:[%s17091_s5 + $0x90] sm:$0xff] }
0x12ff   : > { %v11253_v3 = vpop.eup %11252  ;;  %11262 = vrcp.f32 %v5651_v63  ;;  %v5652_v12 = vadd.f32 1.0, %v11251_v13  ;;  %10511 = vmatprep.subr.bf16.mxu0 %v15031_v9 }
0x1300   : > { %11264 = vrcp.f32 %v5649_v43  ;;  %v5650_v41 = vadd.f32 1.0, %v11253_v3  ;;  %10431 = vmatprep.mubr.msk.bf16.mxu0 %vm1552_vm1, %v5703_v0  ;;  %v11802_v43 = vld [vmem:[%s17091_s5 + $0x98] sm:$0xff] }
0x1301   : > { %v11255_v46 = vpop.eup %11254  ;;  %11266 = vrcp.f32 %v5652_v12  ;;  %10432 = vmatmul.mubr.msk.bf16.gmra.mrb[148].mxu0 %vm1552_vm1, %v5704_v6  ;;  %v11801_v6 = vld [vmem:[%s17091_s5 + $0x80] sm:$0xff] }
0x1302   : > { %v11257_v38 = vpop.eup %11256  ;;  %11268 = vrcp.f32 %v5650_v41  ;;  %v5695_v30 = vmul.f32 %v11255_v46, %v15224_v33  ;;  %v11803_v46 = vld [vmem:[%s17091_s5 + $0x88] sm:$0xff] }
0x1303   : > { %v11259_v23 = vpop.eup %11258  ;;  %v5693_v51 = vmul.f32 %v11257_v38, %v15229_v24 }
0x1304   : > { %v11261_v39 = vpop.eup %11260  ;;  %v5696_v40 = vmul.f32 %v11259_v23, %v15235_v18 }
0x1305   : > { %v5694_v9 = vmul.f32 %v11261_v39, %v15241_v55 }
0x1306   : > { %v5706_v48 = vpack.c.bf16 %v5696_v40, %v5695_v30  ;;  %v11804_v40 = vld [vmem:[%s17091_s5 + $0xb0] sm:$0xff] }
0x1307   : > { %v5705_v21 = vpack.c.bf16 %v5694_v9, %v5693_v51 }
0x1309   : > { %v11263_v17 = vpop.eup %11262  ;;  %10435 = vmatprep.mubr.msk.bf16.mxu0 %vm1552_vm1, %v5705_v21 }
0x130a   : > { %v11265_v19 = vpop.eup %11264  ;;  %10436 = vmatmul.mubr.msk.bf16.gmra.mrb[152].mxu0 %vm1552_vm1, %v5706_v48  ;;  %v5699_v18 = vmul.f32 %v11263_v17, %v15248_v4  ;;  %v9423_v4 = vld [vmem:[%s12898_s21 + $0x210] sm:$0xff]  ;;  %v11805_v48 = vld [vmem:[%s17091_s5 + $0xa0] sm:$0xff] }
0x130b   : > { %v11267_v2 = vpop.eup %11266  ;;  %v5697_v55 = vmul.f32 %v11265_v19, %v15253_v25  ;;  %v9424_v25 = vld [vmem:[%s12898_s21 + $0x218] sm:$0xff]  ;;  %6124 = vrot.lane.b32.xlu0 %v9423_v4, %s11978_s8 }
0x130c   : > { %v11269_v33 = vpop.eup %11268  ;;  %v5700_v24 = vmul.f32 %v11267_v2, %v15259_v47  ;;  %6126 = vrot.lane.b32.xlu1 %v9424_v25, %s11978_s8  ;;  %v9425_v47 = vld [vmem:[%s12898_s21 + $0x220] sm:$0xff]  ;;  %v11806_v2 = vld [vmem:[%s17091_s5 + $0xb8] sm:$0xff] }
0x130d   : > { %v5698_v54 = vmul.f32 %v11269_v33, %v15265_v62  ;;  %v9426_v62 = vld [vmem:[%s12898_s21 + $0x228] sm:$0xff] }
0x130e   : > { %v5708_v37 = vpack.c.bf16 %v5700_v24, %v5699_v18 }
0x130f   : > { %v5707_v44 = vpack.c.bf16 %v5698_v54, %v5697_v55  ;;  %6128 = vrot.lane.b32.xlu0 %v9425_v47, %s11978_s8  ;;  %v11807_v55 = vld [vmem:[%s17091_s5 + $0xa8] sm:$0xff] }
0x1310   : > { %6130 = vrot.lane.b32.xlu1 %v9426_v62, %s11978_s8 }
0x1311   : > { %10439 = vmatprep.mubr.msk.bf16.mxu0 %vm1552_vm1, %v5707_v44 }
0x1312   : > { %10440 = vmatmul.mubr.msk.bf16.gmra.mrb[156].mxu0 %vm1552_vm1, %v5708_v37 }
0x1313   : > { %6132 = vrot.lane.b32.xlu0 %v9427_v22, %s11978_s8 }
0x1314   : > { %6134 = vrot.lane.b32.xlu1 %v9428_v8, %s11978_s8 }
0x1317   : > { %6136 = vrot.lane.b32.xlu0 %v9429_v7, %s11978_s8  ;;  %v11808_v7 = vld [vmem:[%s17091_s5 + $0xd0] sm:$0xff] }
0x1318   : > { %6138 = vrot.lane.b32.xlu1 %v9430_v1, %s11978_s8 }
0x131b   : > { %6140 = vrot.lane.b32.xlu0 %v9431_v57, %s11978_s8 }
0x131c   : > { %6142 = vrot.lane.b32.xlu1 %v9432_v53, %s11978_s8 }
0x131f   : > { %6144 = vrot.lane.b32.xlu0 %v9433_v27, %s11978_s8  ;;  %v11809_v27 = vld [vmem:[%s17091_s5 + $0xc0] sm:$0xff] }
0x1320   : > { %6146 = vrot.lane.b32.xlu1 %v9434_v49, %s11978_s8 }
0x1323   : > { %6148 = vrot.lane.b32.xlu0 %v9435_v14, %s11978_s8 }
0x1324   : > { %6150 = vrot.lane.b32.xlu1 %v9436_v10, %s11978_s8 }
0x13cc   : > { %v10429_v31 = vpop.f32.mrb[144].mxu0 }
0x13cd   : > { %v15333_v28 = vadd.f32 %v11800_v52, %v10429_v31  ;;  %v5767_v15 = vpop.f32.mrb[145].mxu0  ;;  %v11810_v31 = vld [vmem:[%s17091_s5 + $0xd8] sm:$0xff] }
0x13ce   : > { %v15338_v63 = vadd.f32 %v11801_v6, %v5767_v15  ;;  %v10430_v13 = vpop.f32.mrb[146].mxu0 }
0x13cf   : > { %v9399_v0 = vmul.f32 -1.442695, %v15333_v28  ;;  %v15344_v3 = vadd.f32 %v11802_v43, %v10430_v13  ;;  %v5770_v12 = vpop.f32.mrb[147].mxu0  ;;  %v11811_v13 = vld [vmem:[%s17091_s5 + $0xc8] sm:$0xff] }
0x13d0   : > { %v9397_v41 = vmul.f32 -1.442695, %v15338_v63  ;;  %v15350_v38 = vadd.f32 %v11803_v46, %v5770_v12 }
0x13d1   : > { %11270 = vpow2.f32 %v9399_v0  ;;  %v9400_v23 = vmul.f32 -1.442695, %v15344_v3 }
0x13d2   : > { %11272 = vpow2.f32 %v9397_v41  ;;  %v9398_v39 = vmul.f32 -1.442695, %v15350_v38 }
0x13d3   : > { %11274 = vpow2.f32 %v9400_v23 }
0x13d4   : > { %11276 = vpow2.f32 %v9398_v39  ;;  %v10433_v30 = vpop.f32.mrb[148].mxu0 }
0x13d5   : > { %v15357_v51 = vadd.f32 %v11804_v40, %v10433_v30  ;;  %v5783_v9 = vpop.f32.mrb[149].mxu0 }
0x13d6   : > { %v15362_v21 = vadd.f32 %v11805_v48, %v5783_v9  ;;  %v10434_v17 = vpop.f32.mrb[150].mxu0 }
0x13d7   : > { %v9403_v19 = vmul.f32 -1.442695, %v15357_v51  ;;  %v15368_v33 = vadd.f32 %v11806_v2, %v10434_v17  ;;  %v5786_v18 = vpop.f32.mrb[151].mxu0  ;;  %v11812_v17 = vld [vmem:[%s17091_s5 + $0xf0] sm:$0xff] }
0x13d8   : > { %v9401_v24 = vmul.f32 -1.442695, %v15362_v21  ;;  %v15374_v54 = vadd.f32 %v11807_v55, %v5786_v18 }
0x13d9   : > { %11278 = vpow2.f32 %v9403_v19  ;;  %v9404_v37 = vmul.f32 -1.442695, %v15368_v33 }
0x13da   : > { %11280 = vpow2.f32 %v9401_v24  ;;  %v9402_v44 = vmul.f32 -1.442695, %v15374_v54  ;;  %v11813_v24 = vld [vmem:[%s17091_s5 + $0xe0] sm:$0xff] }
0x13db   : > { %v11271_v50 = vpop.eup %11270  ;;  %11282 = vpow2.f32 %v9404_v37 }
0x13dc   : > { %v11273_v34 = vpop.eup %11272  ;;  %v5880_v4 = vadd.f32 1.0, %v11271_v50  ;;  %11284 = vpow2.f32 %v9402_v44 }
0x13dd   : > { %v11275_v25 = vpop.eup %11274  ;;  %v5878_v47 = vadd.f32 1.0, %v11273_v34  ;;  %v10437_v62 = vpop.f32.mrb[152].mxu0  ;;  %v11814_v34 = vld [vmem:[%s17091_s5 + $0xf8] sm:$0xff] }
0x13de   : > { %v11277_v22 = vpop.eup %11276  ;;  %11286 = vrcp.f32 %v5880_v4  ;;  %v5881_v8 = vadd.f32 1.0, %v11275_v25  ;;  %v15381_v1 = vadd.f32 %v11808_v7, %v10437_v62  ;;  %v5799_v57 = vpop.f32.mrb[153].mxu0 }
0x13df   : > { %11288 = vrcp.f32 %v5878_v47  ;;  %v5879_v53 = vadd.f32 1.0, %v11277_v22  ;;  %v15386_v49 = vadd.f32 %v11809_v27, %v5799_v57  ;;  %v10438_v14 = vpop.f32.mrb[154].mxu0  ;;  %v11815_v22 = vld [vmem:[%s17091_s5 + $0xe8] sm:$0xff] }
0x13e0   : > { %11290 = vrcp.f32 %v5881_v8  ;;  %v9407_v10 = vmul.f32 -1.442695, %v15381_v1  ;;  %v15392_v52 = vadd.f32 %v11810_v31, %v10438_v14  ;;  %v5802_v15 = vpop.f32.mrb[155].mxu0 }
0x13e1   : > { %11292 = vrcp.f32 %v5879_v53  ;;  %v9405_v6 = vmul.f32 -1.442695, %v15386_v49  ;;  %v15398_v0 = vadd.f32 %v11811_v13, %v5802_v15 }
0x13e2   : > { %11294 = vpow2.f32 %v9407_v10  ;;  %v9408_v43 = vmul.f32 -1.442695, %v15392_v52 }
0x13e3   : > { %v11279_v12 = vpop.eup %11278  ;;  %11296 = vpow2.f32 %v9405_v6  ;;  %v9406_v41 = vmul.f32 -1.442695, %v15398_v0 }
0x13e4   : > { %v11281_v46 = vpop.eup %11280  ;;  %v5884_v23 = vadd.f32 1.0, %v11279_v12  ;;  %11298 = vpow2.f32 %v9408_v43 }
0x13e5   : > { %v11283_v39 = vpop.eup %11282  ;;  %v5882_v30 = vadd.f32 1.0, %v11281_v46  ;;  %11300 = vpow2.f32 %v9406_v41  ;;  %v10441_v40 = vpop.f32.mrb[156].mxu0 }
0x13e6   : > { %v11285_v9 = vpop.eup %11284  ;;  %11302 = vrcp.f32 %v5884_v23  ;;  %v5885_v48 = vadd.f32 1.0, %v11283_v39  ;;  %v15405_v19 = vadd.f32 %v11812_v17, %v10441_v40  ;;  %v5815_v2 = vpop.f32.mrb[157].mxu0 }
0x13e7   : > { %11304 = vrcp.f32 %v5882_v30  ;;  %v5883_v18 = vadd.f32 1.0, %v11285_v9  ;;  %v15410_v55 = vadd.f32 %v11813_v24, %v5815_v2  ;;  %v10442_v37 = vpop.f32.mrb[158].mxu0  ;;  %v11817_v2 = vld [vmem:[%s17090_s4 + $0x8] sm:$0xff]  }
0x13e8   : > { %v11287_v44 = vpop.eup %11286  ;;  %11306 = vrcp.f32 %v5885_v48  ;;  %v9411_v50 = vmul.f32 -1.442695, %v15405_v19  ;;  %v15416_v4 = vadd.f32 %v11814_v34, %v10442_v37  ;;  %v5818_v25 = vpop.f32.mrb[159].mxu0 }
0x13e9   : > { %v11289_v47 = vpop.eup %11288  ;;  %11308 = vrcp.f32 %v5883_v18  ;;  %v9409_v62 = vmul.f32 -1.442695, %v15410_v55  ;;  %v15422_v8 = vadd.f32 %v11815_v22, %v5818_v25  ;;  %v5928_v27 = vmul.f32 %v11287_v44, %v15333_v28  ;;  %v11818_v22 = vld [vmem:[%s17090_s4 + $0x10] sm:$0xff]  }
0x13ea   : > { %v11291_v7 = vpop.eup %11290  ;;  %11310 = vpow2.f32 %v9411_v50  ;;  %v9412_v57 = vmul.f32 -1.442695, %v15416_v4  ;;  %v5926_v15 = vmul.f32 %v11289_v47, %v15338_v63 }
0x13eb   : > { %v11293_v53 = vpop.eup %11292  ;;  %v5929_v14 = vmul.f32 %v11291_v7, %v15344_v3  ;;  %11312 = vpow2.f32 %v9409_v62  ;;  %v9410_v10 = vmul.f32 -1.442695, %v15422_v8 }
0x13ec   : > { %v11295_v31 = vpop.eup %11294  ;;  %v5927_v6 = vmul.f32 %v11293_v53, %v15350_v38  ;;  %11314 = vpow2.f32 %v9412_v57  ;;  %v15435_v38 = vld [vmem:[%s17090_s4] sm:$0xff]   ;;  %v11819_v53 = vld [vmem:[%s17090_s4 + $0x18] sm:$0xff]  }
0x13ed   : > { %v11297_v13 = vpop.eup %11296  ;;  %v5943_v43 = vpack.c.bf16 %v5929_v14, %v5928_v27  ;;  %v5888_v12 = vadd.f32 1.0, %v11295_v31  ;;  %11316 = vpow2.f32 %v9410_v10 }
0x13ee   : > { %v11299_v41 = vpop.eup %11298  ;;  %v5942_v46 = vpack.c.bf16 %v5927_v6, %v5926_v15  ;;  %v5886_v23 = vadd.f32 1.0, %v11297_v13 }
0x13ef   : > { %v11301_v39 = vpop.eup %11300  ;;  %11318 = vrcp.f32 %v5888_v12  ;;  %v5889_v28 = vadd.f32 1.0, %v11299_v41 }
0x13f0   : > { %v11303_v3 = vpop.eup %11302  ;;  %11320 = vrcp.f32 %v5886_v23  ;;  %v5887_v30 = vadd.f32 1.0, %v11301_v39  ;;  %10451 = vmatprep.mubr.msk.bf16.mxu1 %vm1552_vm1, %v5942_v46 }
0x13f1   : > { %v11305_v40 = vpop.eup %11304  ;;  %11322 = vrcp.f32 %v5889_v28  ;;  %10452 = vmatmul.mubr.msk.bf16.vlgmr.msra.gmra.mrb[144].mxu1 %vm1552_vm1, %v5943_v43  ;;  %v5932_v48 = vmul.f32 %v11303_v3, %v15357_v51  ;;  %v15460_v43 = vld [vmem:[%s17090_s4 + $0x40] sm:$0xff]   ;;  %v6121_v3 = vpop.permute.xlu0 %6120 }
0x13f2   : > { %v11307_v63 = vpop.eup %11306  ;;  %11324 = vrcp.f32 %v5887_v30  ;;  %10488 = vmatpush3.bf16.msra.mxu1 %v15435_v38  ;;  %v5930_v24 = vmul.f32 %v11305_v40, %v15362_v21  ;;  %v6123_v30 = vpop.permute.xlu1 %6122 }
0x13f3   : > { %v11309_v9 = vpop.eup %11308  ;;  %v5933_v17 = vmul.f32 %v11307_v63, %v15368_v33  ;;  %10489 = vmatprep.subr.bf16.mxu1 %v11817_v2 }
0x13f4   : > { %v11311_v18 = vpop.eup %11310  ;;  %v5931_v37 = vmul.f32 %v11309_v9, %v15374_v54 }
0x13f5   : > { %v11313_v44 = vpop.eup %11312  ;;  %v5945_v50 = vpack.c.bf16 %v5933_v17, %v5932_v48  ;;  %v5892_v34 = vadd.f32 1.0, %v11311_v18  ;;  %v6125_v40 = vpop.permute.xlu0 %6124  ;;  %v11822_v18 = vld [vmem:[%s17091_s5 + $0x110] sm:$0xff] }
0x13f6   : > { %v11315_v25 = vpop.eup %11314  ;;  %v5944_v47 = vpack.c.bf16 %v5931_v37, %v5930_v24  ;;  %v5890_v62 = vadd.f32 1.0, %v11313_v44  ;;  %10490 = vmatpush3.bf16.msra.mxu1 %v11817_v2  ;;  %v6127_v63 = vpop.permute.xlu1 %6126  ;;  %v11823_v44 = vld [vmem:[%s17091_s5 + $0x108] sm:$0xff] }
0x13f7   : > { %v11317_v51 = vpop.eup %11316  ;;  %11326 = vrcp.f32 %v5892_v34  ;;  %v5893_v33 = vadd.f32 1.0, %v11315_v25  ;;  %10491 = vmatprep.subr.bf16.mxu1 %v11818_v22  ;;  %v11824_v34 = vld [vmem:[%s17091_s5 + $0x118] sm:$0xff] }
0x13f8   : > { %11328 = vrcp.f32 %v5890_v62  ;;  %v5891_v7 = vadd.f32 1.0, %v11317_v51  ;;  %10455 = vmatprep.mubr.msk.bf16.mxu1 %vm1552_vm1, %v5944_v47 }
0x13f9   : > { %v11319_v21 = vpop.eup %11318  ;;  %11330 = vrcp.f32 %v5893_v33  ;;  %10456 = vmatmul.mubr.msk.bf16.gmra.mrb[148].mxu1 %vm1552_vm1, %v5945_v50  ;;  %v6129_v48 = vpop.permute.xlu0 %6128 }
0x13fa   : > { %v11321_v54 = vpop.eup %11320  ;;  %11332 = vrcp.f32 %v5891_v7  ;;  %10492 = vmatpush3.bf16.msra.mxu1 %v11818_v22  ;;  %v5936_v14 = vmul.f32 %v11319_v21, %v15381_v1 }
0x13fb   : > { %v11323_v57 = vpop.eup %11322  ;;  %10493 = vmatprep.subr.bf16.mxu1 %v11819_v53  ;;  %v5934_v31 = vmul.f32 %v11321_v54, %v15386_v49  ;;  %v11825_v54 = vld [vmem:[%s17091_s5 + $0x120] sm:$0xff] }
0x13fc   : > { %v11325_v27 = vpop.eup %11324  ;;  %v5937_v10 = vmul.f32 %v11323_v57, %v15392_v52 }
0x13fd   : > { %v5935_v15 = vmul.f32 %v11325_v27, %v15398_v0  ;;  %v6133_v62 = vpop.permute.xlu0 %6132 }
0x13fe   : > { %v5947_v6 = vpack.c.bf16 %v5937_v10, %v5936_v14  ;;  %10494 = vmatpush3.bf16.msra.mxu1 %v11819_v53  ;;  %v11826_v14 = vld [vmem:[%s17091_s5 + $0x130] sm:$0xff] }
0x13ff   : > { %v5946_v13 = vpack.c.bf16 %v5935_v15, %v5934_v31  ;;  %10535 = vmatprep.subr.bf16.mxu1 %v15460_v43  ;;  %v11827_v15 = vld [vmem:[%s17091_s5 + $0x128] sm:$0xff] }
0x1401   : > { %v11327_v12 = vpop.eup %11326  ;;  %10459 = vmatprep.mubr.msk.bf16.mxu1 %vm1552_vm1, %v5946_v13  ;;  %v6137_v13 = vpop.permute.xlu0 %6136 }
0x1402   : > { %v11329_v1 = vpop.eup %11328  ;;  %10460 = vmatmul.mubr.msk.bf16.gmra.mrb[152].mxu1 %vm1552_vm1, %v5947_v6  ;;  %v5940_v0 = vmul.f32 %v11327_v12, %v15405_v19  ;;  %v11821_v19 = vld [vmem:[%s17091_s5 + $0x100] sm:$0xff]  ;;  %v11828_v12 = vld [vmem:[%s17091_s5 + $0x138] sm:$0xff] }
0x1403   : > { %v11331_v52 = vpop.eup %11330  ;;  %v5938_v46 = vmul.f32 %v11329_v1, %v15410_v55 }
0x1404   : > { %v11333_v49 = vpop.eup %11332  ;;  %v5941_v41 = vmul.f32 %v11331_v52, %v15416_v4 }
0x1405   : > { %v5939_v23 = vmul.f32 %v11333_v49, %v15422_v8  ;;  %v6131_v8 = vpop.permute.xlu1 %6130 }
0x1406   : > { %v5949_v39 = vpack.c.bf16 %v5941_v41, %v5940_v0 }
0x1407   : > { %v5948_v28 = vpack.c.bf16 %v5939_v23, %v5938_v46 }
0x1409   : > { %10463 = vmatprep.mubr.msk.bf16.mxu1 %vm1552_vm1, %v5948_v28  ;;  %v6135_v22 = vpop.permute.xlu1 %6134  ;;  %v11829_v28 = vld [vmem:[%s17091_s5 + $0x140] sm:$0xff] }
0x140a   : > { %10464 = vmatmul.mubr.msk.bf16.gmra.mrb[156].mxu1 %vm1552_vm1, %v5949_v39  ;;  %v6141_v39 = vpop.permute.xlu0 %6140 }
0x140d   : > { %v6139_v49 = vpop.permute.xlu1 %6138 }
0x14c4   : > { %v10453_v9 = vpop.f32.mrb[144].mxu1 }
0x14c5   : > { %v6008_v17 = vpop.f32.mrb[145].mxu1  ;;  %v15479_v24 = vadd.f32 %v11822_v18, %v10453_v9  ;;  %v11830_v9 = vld [vmem:[%s17091_s5 + $0x150] sm:$0xff] }
0x14c6   : > { %v15474_v55 = vadd.f32 %v11821_v19, %v6008_v17  ;;  %v10454_v4 = vpop.f32.mrb[146].mxu1  ;;  %v11831_v19 = vld [vmem:[%s17091_s5 + $0x148] sm:$0xff] }
0x14c7   : > { %v6011_v2 = vpop.f32.mrb[147].mxu1  ;;  %v15490_v25 = vadd.f32 %v11824_v34, %v10454_v4  ;;  %v6170_v51 = vmul.f32 %v6125_v40, %v15479_v24 }
0x14c8   : > { %v6168_v37 = vmul.f32 %v6121_v3, %v15474_v55  ;;  %v15485_v50 = vadd.f32 %v11823_v44, %v6011_v2 }
0x14c9   : > { %v6171_v21 = vmul.f32 %v6127_v63, %v15490_v25  ;;  %v6143_v63 = vpop.permute.xlu1 %6142 }
0x14ca   : > { %v6169_v47 = vmul.f32 %v6123_v30, %v15485_v50  ;;  %6200 = vrot.lane.b32.xlu0 %v6168_v37, %s11979_s27  ;;  %v6145_v37 = vpop.permute.xlu0 %6144 }
0x14cc   : > { %v10457_v33 = vpop.f32.mrb[148].mxu1  ;;  %6202 = vrot.lane.b32.xlu1 %v6169_v47, %s11979_s27 }
0x14cd   : > { %v6024_v7 = vpop.f32.mrb[149].mxu1  ;;  %v15506_v10 = vadd.f32 %v11826_v14, %v10457_v33  ;;  %v6147_v47 = vpop.permute.xlu1 %6146  ;;  %v11833_v33 = vld [vmem:[%s17091_s5 + $0x160] sm:$0xff]  ;;  %v11835_v14 = vld [vmem:[%s17091_s5 + $0x168] sm:$0xff] }
0x14ce   : > { %v15500_v57 = vadd.f32 %v11825_v54, %v6024_v7  ;;  %v10458_v53 = vpop.f32.mrb[150].mxu1  ;;  %6204 = vrot.lane.b32.xlu0 %v6170_v51, %s11979_s27  ;;  %v11834_v54 = vld [vmem:[%s17091_s5 + $0x170] sm:$0xff] }
0x14cf   : > { %v6027_v27 = vpop.f32.mrb[151].mxu1  ;;  %v15518_v1 = vadd.f32 %v11828_v12, %v10458_v53  ;;  %v6174_v0 = vmul.f32 %v6133_v62, %v15506_v10 }
0x14d0   : > { %v6172_v31 = vmul.f32 %v6129_v48, %v15500_v57  ;;  %v15512_v6 = vadd.f32 %v11827_v15, %v6027_v27  ;;  %6206 = vrot.lane.b32.xlu1 %v6171_v21, %s11979_s27  ;;  %v6149_v15 = vpop.permute.xlu0 %6148 }
0x14d1   : > { %v6175_v46 = vmul.f32 %v6135_v22, %v15518_v1 }
0x14d2   : > { %v6173_v52 = vmul.f32 %v6131_v8, %v15512_v6  ;;  %6208 = vrot.lane.b32.xlu0 %v6172_v31, %s11979_s27  ;;  %v11832_v8 = vld [vmem:[%s17091_s5 + $0x158] sm:$0xff] }
0x14d4   : > { %6210 = vrot.lane.b32.xlu1 %v6173_v52, %s11979_s27 }
0x14d5   : > { %v10461_v41 = vpop.f32.mrb[152].mxu1 }
0x14d6   : > { %v6040_v23 = vpop.f32.mrb[153].mxu1  ;;  %6212 = vrot.lane.b32.xlu0 %v6174_v0, %s11979_s27  ;;  %v15535_v48 = vadd.f32 %v11830_v9, %v10461_v41 }
0x14d7   : > { %v15529_v3 = vadd.f32 %v11829_v28, %v6040_v23  ;;  %v10462_v30 = vpop.f32.mrb[154].mxu1  ;;  %v6072_v28 = vadd.f32 %v15485_v50, %v14992_v56  ;;  %v6074_v56 = vadd.f32 %v15490_v25, %v15008_v20  ;;  %v6076_v25 = vadd.f32 %v15512_v6, %v15025_v35 }
0x14d8   : > { %v6043_v40 = vpop.f32.mrb[155].mxu1  ;;  %6214 = vrot.lane.b32.xlu1 %v6175_v46, %s11979_s27  ;;  %v15546_v2 = vadd.f32 %v11832_v8, %v10462_v30  ;;  %v6178_v44 = vmul.f32 %v6141_v39, %v15535_v48  ;;  %v6071_v46 = vadd.f32 %v15474_v55, %v14985_v29 }
0x14d9   : > { %v6176_v17 = vmul.f32 %v6137_v13, %v15529_v3  ;;  %v15541_v4 = vadd.f32 %v11831_v19, %v6043_v40  ;;  %v11836_v13 = vld [vmem:[%s17091_s5 + $0x178] sm:$0xff] }
0x14da   : > { %v6179_v51 = vmul.f32 %v6143_v63, %v15546_v2  ;;  %v6073_v63 = vadd.f32 %v15479_v24, %v15001_v11  ;;  %v6075_v11 = vadd.f32 %v15500_v57, %v15018_v16  ;;  %v6077_v16 = vadd.f32 %v15506_v10, %v15041_v32  ;;  %v11838_v10 = vld [vmem:[%s17090_s4 + $0x28] sm:$0xff]  }
0x14db   : > { %v6177_v18 = vmul.f32 %v6139_v49, %v15541_v4  ;;  %6216 = vrot.lane.b32.xlu0 %v6176_v17, %s11979_s27  ;;  %v6151_v49 = vpop.permute.xlu1 %6150  ;;  %v6078_v32 = vadd.f32 %v15518_v1, %v15049_v58 }
0x14dd   : > { %v10465_v34 = vpop.f32.mrb[156].mxu1  ;;  %6218 = vrot.lane.b32.xlu1 %v6177_v18, %s11979_s27 }
0x14de   : > { %v6056_v62 = vpop.f32.mrb[157].mxu1  ;;  %v15562_v53 = vadd.f32 %v11834_v54, %v10465_v34  ;;  %v11840_v54 = vld [vmem:[%s17090_s4 + $0x38] sm:$0xff]  }
0x14df   : > { %v15556_v22 = vadd.f32 %v11833_v33, %v6056_v62  ;;  %v10466_v7 = vpop.f32.mrb[158].mxu1  ;;  %6220 = vrot.lane.b32.xlu0 %v6178_v44, %s11979_s27  ;;  %v11839_v62 = vld [vmem:[%s17090_s4 + $0x30] sm:$0xff]  }
0x14e0   : > { %v6059_v21 = vpop.f32.mrb[159].mxu1  ;;  %v15574_v12 = vadd.f32 %v11836_v13, %v10466_v7  ;;  %v6182_v0 = vmul.f32 %v6149_v15, %v15562_v53  ;;  %v6081_v7 = vadd.f32 %v15535_v48, %v15084_v59  ;;  %v6082_v59 = vadd.f32 %v15546_v2, %v15091_v26  ;;  %v15699_v13 = vld [vmem:[%s17089_s3] sm:$0xff]  }
0x14e1   : > { %v6180_v27 = vmul.f32 %v6145_v37, %v15556_v22  ;;  %v15568_v31 = vadd.f32 %v11835_v14, %v6059_v21  ;;  %6222 = vrot.lane.b32.xlu1 %v6179_v51, %s11979_s27  ;;  %v15633_v37 = vld [vmem:[%s17090_s4 + $0x20] sm:$0xff]   ;;  %v6083_v14 = vadd.f32 %v15556_v22, %v15107_v60 }
0x14e2   : > { %v6183_v41 = vmul.f32 %v6151_v49, %v15574_v12  ;;  %v6085_v49 = vadd.f32 %v15562_v53, %v15122_v42  ;;  %v9455_v53 = vld [vmem:[%s12701_s7 + $0x290] sm:$0xff] }
0x14e3   : > { %v6181_v52 = vmul.f32 %v6147_v47, %v15568_v31  ;;  %6224 = vrot.lane.b32.xlu0 %v6180_v27, %s11979_s27  ;;  %v6079_v47 = vadd.f32 %v15529_v3, %v15064_v5  ;;  %v6080_v5 = vadd.f32 %v15541_v4, %v15072_v61  ;;  %v6084_v60 = vadd.f32 %v15568_v31, %v15112_v36 }
0x14e5   : > { %6226 = vrot.lane.b32.xlu1 %v6181_v52, %s11979_s27 }
0x14e7   : > { %6228 = vrot.lane.b32.xlu0 %v6182_v0, %s11979_s27 }
0x14e9   : > { %6230 = vrot.lane.b32.xlu1 %v6183_v41, %s11979_s27  ;;  %v6086_v41 = vadd.f32 %v15574_v12, %v15129_v45  ;;  %v9456_v45 = vld [vmem:[%s12701_s7 + $0x298] sm:$0xff] }
0x153c   : > { %v6201_v23 = vpop.permute.xlu0 %6200 }
0x153d   : > { %v15585_v39 = vadd.f32 %v6201_v23, %v6071_v46 }
0x153e   : > { %v6203_v30 = vpop.permute.xlu1 %6202 }
0x153f   : > { %9437 = vst.msk [vmem:[%s12569_s18 + $0x280] sm:$0xff] %vm1346_vm0, %v15585_v39  ;;  %v15592_v40 = vadd.f32 %v6203_v30, %v6072_v28  ;;  %v9453_v30 = vld [vmem:[%s12701_s7 + $0x280] sm:$0xff] }
0x1540   : > { %v6205_v9 = vpop.permute.xlu0 %6204 }
0x1541   : > { %9438 = vst.msk [vmem:[%s12569_s18 + $0x288] sm:$0xff] %vm1346_vm0, %v15592_v40  ;;  %v6281_v29 = vpack.c.bf16 %v15592_v40, %v15585_v39  ;;  %v15601_v55 = vadd.f32 %v6205_v9, %v6073_v63  ;;  %v9454_v63 = vld [vmem:[%s12701_s7 + $0x288] sm:$0xff] }
0x1542   : > { %v6207_v50 = vpop.permute.xlu1 %6206 }
0x1543   : > { %9439 = vst.msk [vmem:[%s12569_s18 + $0x290] sm:$0xff] %vm1346_vm0, %v15601_v55  ;;  %v15608_v17 = vadd.f32 %v6207_v50, %v6074_v56  ;;  %10471 = vmatprep.mubr.msk.bf16.mxu0 %vm1346_vm0, %v6281_v29 }
0x1544   : > { %v6209_v24 = vpop.permute.xlu0 %6208 }
0x1545   : > { %9440 = vst.msk [vmem:[%s12569_s18 + $0x298] sm:$0xff] %vm1346_vm0, %v15608_v17  ;;  %v6282_v19 = vpack.c.bf16 %v15608_v17, %v15601_v55  ;;  %v15618_v20 = vadd.f32 %v6209_v24, %v6075_v11 }
0x1546   : > { %v6211_v8 = vpop.permute.xlu1 %6210 }
0x1547   : > { %9441 = vst.msk [vmem:[%s12569_s18 + $0x2a0] sm:$0xff] %vm1346_vm0, %v15618_v20  ;;  %v15625_v18 = vadd.f32 %v6211_v8, %v6076_v25  ;;  %10472 = vmatmul.mubr.msk.bf16.vlgmr.msra.gmra.mrb[160].mxu0 %vm1346_vm0, %v6282_v19  ;;  %v9459_v8 = vld [vmem:[%s12701_s7 + $0x2b0] sm:$0xff] }
0x1548   : > { %v6213_v57 = vpop.permute.xlu0 %6212  ;;  %10512 = vmatpush3.bf16.msra.mxu0 %v15633_v37 }
0x1549   : > { %9442 = vst.msk [vmem:[%s12569_s18 + $0x2a8] sm:$0xff] %vm1346_vm0, %v15625_v18  ;;  %v6283_v35 = vpack.c.bf16 %v15625_v18, %v15618_v20  ;;  %v15641_v6 = vadd.f32 %v6213_v57, %v6077_v16  ;;  %10513 = vmatprep.subr.bf16.mxu0 %v11838_v10  ;;  %v9460_v57 = vld [vmem:[%s12701_s7 + $0x2b8] sm:$0xff] }
0x154a   : > { %v6215_v44 = vpop.permute.xlu1 %6214 }
0x154b   : > { %9443 = vst.msk [vmem:[%s12569_s18 + $0x2b0] sm:$0xff] %vm1346_vm0, %v15641_v6  ;;  %v15651_v34 = vadd.f32 %v6215_v44, %v6078_v32  ;;  %10475 = vmatprep.mubr.msk.bf16.mxu0 %vm1346_vm0, %v6283_v35  ;;  %v9457_v32 = vld [vmem:[%s12701_s7 + $0x2a0] sm:$0xff] }
0x154c   : > { %10514 = vmatpush3.bf16.msra.mxu0 %v11838_v10  ;;  %v9458_v10 = vld [vmem:[%s12701_s7 + $0x2a8] sm:$0xff] }
0x154d   : > { %9444 = vst.msk [vmem:[%s12569_s18 + $0x2b8] sm:$0xff] %vm1346_vm0, %v15651_v34  ;;  %v6284_v58 = vpack.c.bf16 %v15651_v34, %v15641_v6  ;;  %v6217_v1 = vpop.permute.xlu0 %6216  ;;  %10515 = vmatprep.subr.bf16.mxu0 %v11839_v62 }
0x154e   : > { %v15664_v51 = vadd.f32 %v6217_v1, %v6079_v47 }
0x154f   : > { %v6219_v3 = vpop.permute.xlu1 %6218  ;;  %10476 = vmatmul.mubr.msk.bf16.gmra.mrb[164].mxu0 %vm1346_vm0, %v6284_v58 }
0x1550   : > { %9445 = vst.msk [vmem:[%s12569_s18 + $0x2c0] sm:$0xff] %vm1346_vm0, %v15664_v51  ;;  %v15672_v33 = vadd.f32 %v6219_v3, %v6080_v5  ;;  %10516 = vmatpush3.bf16.msra.mxu0 %v11839_v62  ;;  %v11842_v62 = vld [vmem:[%s17090_s4 + $0x48] sm:$0xff]  }
0x1551   : > { %v6221_v21 = vpop.permute.xlu0 %6220  ;;  %10517 = vmatprep.subr.bf16.mxu0 %v11840_v54 }
0x1552   : > { %9446 = vst.msk [vmem:[%s12569_s18 + $0x2c8] sm:$0xff] %vm1346_vm0, %v15672_v33  ;;  %v6285_v61 = vpack.c.bf16 %v15672_v33, %v15664_v51  ;;  %v15684_v4 = vadd.f32 %v6221_v21, %v6081_v7 }
0x1553   : > { %v6223_v48 = vpop.permute.xlu1 %6222 }
0x1554   : > { %9447 = vst.msk [vmem:[%s12569_s18 + $0x2d0] sm:$0xff] %vm1346_vm0, %v15684_v4  ;;  %v15691_v27 = vadd.f32 %v6223_v48, %v6082_v59  ;;  %10479 = vmatprep.mubr.msk.bf16.mxu0 %vm1346_vm0, %v6285_v61  ;;  %10518 = vmatpush3.bf16.msra.mxu0 %v11840_v54  ;;  %v9463_v54 = vld [vmem:[%s12701_s7 + $0x2d0] sm:$0xff]  ;;  %v9464_v59 = vld [vmem:[%s12701_s7 + $0x2d8] sm:$0xff] }
0x1555   : > { %v6225_v15 = vpop.permute.xlu0 %6224  ;;  %10559 = vmatprep.subr.bf16.mxu0 %v15699_v13 }
0x1556   : > { %9448 = vst.msk [vmem:[%s12569_s18 + $0x2d8] sm:$0xff] %vm1346_vm0, %v15691_v27  ;;  %v6286_v26 = vpack.c.bf16 %v15691_v27, %v15684_v4  ;;  %v15707_v2 = vadd.f32 %v6225_v15, %v6083_v14  ;;  %v9461_v14 = vld [vmem:[%s12701_s7 + $0x2c0] sm:$0xff]  ;;  %v9462_v15 = vld [vmem:[%s12701_s7 + $0x2c8] sm:$0xff] }
0x1557   : > { %v6227_v22 = vpop.permute.xlu1 %6226 }
0x1558   : > { %9449 = vst.msk [vmem:[%s12569_s18 + $0x2e0] sm:$0xff] %vm1346_vm0, %v15707_v2  ;;  %v15714_v52 = vadd.f32 %v6227_v22, %v6084_v60  ;;  %10480 = vmatmul.mubr.msk.bf16.gmra.mrb[168].mxu0 %vm1346_vm0, %v6286_v26  ;;  %v11844_v60 = vld [vmem:[%s17090_s4 + $0x58] sm:$0xff]  }
0x1559   : > { %v6229_v0 = vpop.permute.xlu0 %6228 }
0x155a   : > { %9450 = vst.msk [vmem:[%s12569_s18 + $0x2e8] sm:$0xff] %vm1346_vm0, %v15714_v52  ;;  %v6287_v36 = vpack.c.bf16 %v15714_v52, %v15707_v2  ;;  %v15724_v31 = vadd.f32 %v6229_v0, %v6085_v49 }
0x155b   : > { %v6231_v46 = vpop.permute.xlu1 %6230 }
0x155c   : > { %9451 = vst.msk [vmem:[%s12569_s18 + $0x2f0] sm:$0xff] %vm1346_vm0, %v15724_v31  ;;  %v15731_v23 = vadd.f32 %v6231_v46, %v6086_v41  ;;  %10483 = vmatprep.mubr.msk.bf16.mxu0 %vm1346_vm0, %v6287_v36 }
0x155e   : > { %9452 = vst.msk [vmem:[%s12569_s18 + $0x2f8] sm:$0xff] %vm1346_vm0, %v15731_v23  ;;  %v6288_v42 = vpack.c.bf16 %v15731_v23, %v15724_v31 }
0x1560   : > { %10484 = vmatmul.mubr.msk.bf16.gmra.mrb[172].mxu0 %vm1346_vm0, %v6288_v42 }
0x161a   : > { %v10473_v28 = vpop.f32.mrb[160].mxu0 }
0x161b   : > { %v6364_v12 = vpop.f32.mrb[161].mxu0  ;;  %v6373_v29 = vadd.f32 %v10473_v28, %v9455_v53  ;;  %v9467_v53 = vld [vmem:[%s12701_s7 + $0x2f0] sm:$0xff] }
0x161c   : > { %v10474_v9 = vpop.f32.mrb[162].mxu0  ;;  %v6365_v11 = vadd.f32 %v9453_v30, %v6364_v12  ;;  %v9465_v30 = vld [vmem:[%s12701_s7 + $0x2e0] sm:$0xff] }
0x161d   : > { %v6376_v56 = vadd.f32 %v10474_v9, %v9456_v45  ;;  %v6367_v50 = vpop.f32.mrb[163].mxu0  ;;  %v9468_v45 = vld [vmem:[%s12701_s7 + $0x2f8] sm:$0xff] }
0x161e   : > { %v6368_v24 = vadd.f32 %v9454_v63, %v6367_v50  ;;  %v9466_v63 = vld [vmem:[%s12701_s7 + $0x2e8] sm:$0xff] }
0x161f   : > { %v6428_v19 = vpack.c.bf16 %v6376_v56, %v6373_v29 }
0x1620   : > { %v6427_v25 = vpack.c.bf16 %v6368_v24, %v6365_v11 }
0x1622   : > { %v10477_v16 = vpop.f32.mrb[164].mxu0  ;;  %10495 = vmatprep.mubr.msk.bf16.mxu1 %vm1552_vm1, %v6427_v25 }
0x1623   : > { %v6380_v35 = vpop.f32.mrb[165].mxu0  ;;  %10496 = vmatmul.mubr.msk.bf16.vlgmr.msra.gmra.mrb[160].mxu1 %vm1552_vm1, %v6428_v19  ;;  %v6389_v47 = vadd.f32 %v10477_v16, %v9459_v8  ;;  %v11845_v8 = vld [vmem:[%s17091_s5 + $0x10] sm:$0xff] }
0x1624   : > { %v10478_v44 = vpop.f32.mrb[166].mxu0  ;;  %10536 = vmatpush3.bf16.msra.mxu1 %v15460_v43  ;;  %v6381_v5 = vadd.f32 %v9457_v32, %v6380_v35  ;;  %v11843_v43 = vld [vmem:[%s17090_s4 + $0x50] sm:$0xff]   ;;  %v11846_v35 = vld [vmem:[%s17091_s5] sm:$0xff] }
0x1625   : > { %v6392_v58 = vadd.f32 %v10478_v44, %v9460_v57  ;;  %v6383_v1 = vpop.f32.mrb[167].mxu0  ;;  %10537 = vmatprep.subr.bf16.mxu1 %v11842_v62 }
0x1626   : > { %v6384_v3 = vadd.f32 %v9458_v10, %v6383_v1 }
0x1627   : > { %v6430_v7 = vpack.c.bf16 %v6392_v58, %v6389_v47  ;;  %v11847_v47 = vld [vmem:[%s17091_s5 + $0x18] sm:$0xff] }
0x1628   : > { %v6429_v21 = vpack.c.bf16 %v6384_v3, %v6381_v5  ;;  %10538 = vmatpush3.bf16.msra.mxu1 %v11842_v62  ;;  %v11848_v5 = vld [vmem:[%s17091_s5 + $0x8] sm:$0xff] }
0x1629   : > { %10539 = vmatprep.subr.bf16.mxu1 %v11843_v43 }
0x162a   : > { %10499 = vmatprep.mubr.msk.bf16.mxu1 %vm1552_vm1, %v6429_v21 }
0x162b   : > { %v10481_v61 = vpop.f32.mrb[168].mxu0  ;;  %10500 = vmatmul.mubr.msk.bf16.gmra.mrb[164].mxu1 %vm1552_vm1, %v6430_v7 }
0x162c   : > { %v6396_v48 = vpop.f32.mrb[169].mxu0  ;;  %10540 = vmatpush3.bf16.msra.mxu1 %v11843_v43  ;;  %v6405_v22 = vadd.f32 %v10481_v61, %v9463_v54  ;;  %v11849_v54 = vld [vmem:[%s17091_s5 + $0x30] sm:$0xff] }
0x162d   : > { %v10482_v26 = vpop.f32.mrb[170].mxu0  ;;  %10541 = vmatprep.subr.bf16.mxu1 %v11844_v60  ;;  %v6397_v36 = vadd.f32 %v9461_v14, %v6396_v48  ;;  %v11850_v48 = vld [vmem:[%s17091_s5 + $0x20] sm:$0xff] }
0x162e   : > { %v6408_v49 = vadd.f32 %v10482_v26, %v9464_v59  ;;  %v6399_v0 = vpop.f32.mrb[171].mxu0 }
0x162f   : > { %v6400_v41 = vadd.f32 %v9462_v15, %v6399_v0 }
0x1630   : > { %v6432_v46 = vpack.c.bf16 %v6408_v49, %v6405_v22  ;;  %10542 = vmatpush3.bf16.msra.mxu1 %v11844_v60  ;;  %v11851_v60 = vld [vmem:[%s17091_s5 + $0x38] sm:$0xff] }
0x1631   : > { %v6431_v42 = vpack.c.bf16 %v6400_v41, %v6397_v36  ;;  %10579 = vmatprep.subr.bf16.mxu1 %v15435_v38  ;;  %v11852_v36 = vld [vmem:[%s17091_s5 + $0x28] sm:$0xff] }
0x1633   : > { %v10485_v28 = vpop.f32.mrb[172].mxu0  ;;  %10503 = vmatprep.mubr.msk.bf16.mxu1 %vm1552_vm1, %v6431_v42 }
0x1634   : > { %v6412_v12 = vpop.f32.mrb[173].mxu0  ;;  %10504 = vmatmul.mubr.msk.bf16.gmra.mrb[168].mxu1 %vm1552_vm1, %v6432_v46  ;;  %v6421_v29 = vadd.f32 %v10485_v28, %v9467_v53 }
0x1635   : > { %v10486_v9 = vpop.f32.mrb[174].mxu0  ;;  %v6413_v11 = vadd.f32 %v9465_v30, %v6412_v12 }
0x1636   : > { %v6424_v56 = vadd.f32 %v10486_v9, %v9468_v45  ;;  %v6415_v50 = vpop.f32.mrb[175].mxu0 }
0x1637   : > { %v6416_v24 = vadd.f32 %v9466_v63, %v6415_v50 }
0x1638   : > { %v6434_v19 = vpack.c.bf16 %v6424_v56, %v6421_v29  ;;  %v11853_v56 = vld [vmem:[%s17091_s5 + $0x50] sm:$0xff] }
0x1639   : > { %v6433_v25 = vpack.c.bf16 %v6416_v24, %v6413_v11 }
0x163b   : > { %10507 = vmatprep.mubr.msk.bf16.mxu1 %vm1552_vm1, %v6433_v25 }
0x163c   : > { %10508 = vmatmul.mubr.msk.bf16.gmra.mrb[172].mxu1 %vm1552_vm1, %v6434_v19  ;;  %v11854_v19 = vld [vmem:[%s17091_s5 + $0x40] sm:$0xff] }
0x16f6   : > { %v10497_v38 = vpop.f32.mrb[160].mxu1 }
0x16f7   : > { %v15778_v16 = vadd.f32 %v11845_v8, %v10497_v38  ;;  %v6493_v57 = vpop.f32.mrb[161].mxu1 }
0x16f8   : > { %v15783_v32 = vadd.f32 %v11846_v35, %v6493_v57  ;;  %v10498_v10 = vpop.f32.mrb[162].mxu1  ;;  %v11855_v57 = vld [vmem:[%s17091_s5 + $0x58] sm:$0xff] }
0x16f9   : > { %v9487_v44 = vmul.f32 -1.442695, %v15778_v16  ;;  %v15789_v58 = vadd.f32 %v11847_v47, %v10498_v10  ;;  %v6496_v1 = vpop.f32.mrb[163].mxu1  ;;  %v11856_v47 = vld [vmem:[%s17091_s5 + $0x48] sm:$0xff] }
0x16fa   : > { %v9485_v62 = vmul.f32 -1.442695, %v15783_v32  ;;  %v15795_v3 = vadd.f32 %v11848_v5, %v6496_v1 }
0x16fb   : > { %11334 = vpow2.f32 %v9487_v44  ;;  %v9488_v7 = vmul.f32 -1.442695, %v15789_v58 }
0x16fc   : > { %11336 = vpow2.f32 %v9485_v62  ;;  %v9486_v21 = vmul.f32 -1.442695, %v15795_v3 }
0x16fd   : > { %11338 = vpow2.f32 %v9488_v7 }
0x16fe   : > { %11340 = vpow2.f32 %v9486_v21  ;;  %v10501_v43 = vpop.f32.mrb[164].mxu1 }
0x16ff   : > { %v15802_v61 = vadd.f32 %v11849_v54, %v10501_v43  ;;  %v6509_v59 = vpop.f32.mrb[165].mxu1 }
0x1700   : > { %v15807_v14 = vadd.f32 %v11850_v48, %v6509_v59  ;;  %v10502_v15 = vpop.f32.mrb[166].mxu1 }
0x1701   : > { %v9491_v26 = vmul.f32 -1.442695, %v15802_v61  ;;  %v15813_v22 = vadd.f32 %v11851_v60, %v10502_v15  ;;  %v6512_v49 = vpop.f32.mrb[167].mxu1  ;;  %v11857_v60 = vld [vmem:[%s17091_s5 + $0x70] sm:$0xff] }
0x1702   : > { %v9489_v0 = vmul.f32 -1.442695, %v15807_v14  ;;  %v15819_v41 = vadd.f32 %v11852_v36, %v6512_v49 }
0x1703   : > { %11342 = vpow2.f32 %v9491_v26  ;;  %v9492_v46 = vmul.f32 -1.442695, %v15813_v22 }
0x1704   : > { %11344 = vpow2.f32 %v9489_v0  ;;  %v9490_v42 = vmul.f32 -1.442695, %v15819_v41 }
0x1705   : > { %v11335_v53 = vpop.eup %11334  ;;  %11346 = vpow2.f32 %v9492_v46  ;;  %v11858_v46 = vld [vmem:[%s17091_s5 + $0x60] sm:$0xff] }
0x1706   : > { %v11337_v28 = vpop.eup %11336  ;;  %v6606_v45 = vadd.f32 1.0, %v11335_v53  ;;  %11348 = vpow2.f32 %v9490_v42 }
0x1707   : > { %v11339_v12 = vpop.eup %11338  ;;  %v6604_v30 = vadd.f32 1.0, %v11337_v28  ;;  %v10505_v63 = vpop.f32.mrb[168].mxu1 }
0x1708   : > { %v11341_v9 = vpop.eup %11340  ;;  %11350 = vrcp.f32 %v6606_v45  ;;  %v6607_v29 = vadd.f32 1.0, %v11339_v12  ;;  %v15826_v50 = vadd.f32 %v11853_v56, %v10505_v63  ;;  %v6525_v11 = vpop.f32.mrb[169].mxu1  ;;  %v11859_v12 = vld [vmem:[%s17091_s5 + $0x78] sm:$0xff]  ;;  %v11860_v56 = vld [vmem:[%s17091_s5 + $0x68] sm:$0xff] }
0x1709   : > { %11352 = vrcp.f32 %v6604_v30  ;;  %v6605_v24 = vadd.f32 1.0, %v11341_v9  ;;  %v15831_v25 = vadd.f32 %v11854_v19, %v6525_v11  ;;  %v10506_v38 = vpop.f32.mrb[170].mxu1 }
0x170a   : > { %11354 = vrcp.f32 %v6607_v29  ;;  %v9495_v8 = vmul.f32 -1.442695, %v15826_v50  ;;  %v15837_v35 = vadd.f32 %v11855_v57, %v10506_v38  ;;  %v6528_v10 = vpop.f32.mrb[171].mxu1 }
0x170b   : > { %11356 = vrcp.f32 %v6605_v24  ;;  %v9493_v44 = vmul.f32 -1.442695, %v15831_v25  ;;  %v15843_v1 = vadd.f32 %v11856_v47, %v6528_v10 }
0x170c   : > { %11358 = vpow2.f32 %v9495_v8  ;;  %v9496_v62 = vmul.f32 -1.442695, %v15837_v35 }
0x170d   : > { %v11343_v5 = vpop.eup %11342  ;;  %11360 = vpow2.f32 %v9493_v44  ;;  %v9494_v7 = vmul.f32 -1.442695, %v15843_v1 }
0x170e   : > { %v11345_v21 = vpop.eup %11344  ;;  %v6610_v43 = vadd.f32 1.0, %v11343_v5  ;;  %11362 = vpow2.f32 %v9496_v62 }
0x170f   : > { %v11347_v54 = vpop.eup %11346  ;;  %v6608_v59 = vadd.f32 1.0, %v11345_v21  ;;  %11364 = vpow2.f32 %v9494_v7  ;;  %v10509_v48 = vpop.f32.mrb[172].mxu1 }
0x1710   : > { %v11349_v15 = vpop.eup %11348  ;;  %11366 = vrcp.f32 %v6610_v43  ;;  %v6611_v26 = vadd.f32 1.0, %v11347_v54  ;;  %v15850_v49 = vadd.f32 %v11857_v60, %v10509_v48  ;;  %v6541_v0 = vpop.f32.mrb[173].mxu1 }
0x1711   : > { %11368 = vrcp.f32 %v6608_v59  ;;  %v6609_v36 = vadd.f32 1.0, %v11349_v15  ;;  %v15855_v42 = vadd.f32 %v11858_v46, %v6541_v0  ;;  %v10510_v53 = vpop.f32.mrb[174].mxu1 }
0x1712   : > { %v11351_v28 = vpop.eup %11350  ;;  %11370 = vrcp.f32 %v6611_v26  ;;  %v9499_v45 = vmul.f32 -1.442695, %v15850_v49  ;;  %v15861_v30 = vadd.f32 %v11859_v12, %v10510_v53  ;;  %v6544_v63 = vpop.f32.mrb[175].mxu1 }
0x1713   : > { %v11353_v9 = vpop.eup %11352  ;;  %11372 = vrcp.f32 %v6609_v36  ;;  %v9497_v29 = vmul.f32 -1.442695, %v15855_v42  ;;  %v15867_v11 = vadd.f32 %v11860_v56, %v6544_v63  ;;  %v6654_v8 = vmul.f32 %v11351_v28, %v15778_v16  ;;  %v11861_v36 = vld [vmem:[%s17089_s3 + $0x8] sm:$0xff]  }
0x1714   : > { %v11355_v24 = vpop.eup %11354  ;;  %11374 = vpow2.f32 %v9499_v45  ;;  %v9500_v19 = vmul.f32 -1.442695, %v15861_v30  ;;  %v6652_v47 = vmul.f32 %v11353_v9, %v15783_v32 }
0x1715   : > { %v11357_v38 = vpop.eup %11356  ;;  %v6655_v57 = vmul.f32 %v11355_v24, %v15789_v58  ;;  %11376 = vpow2.f32 %v9497_v29  ;;  %v9498_v10 = vmul.f32 -1.442695, %v15867_v11 }
0x1716   : > { %v11359_v44 = vpop.eup %11358  ;;  %v6653_v62 = vmul.f32 %v11357_v38, %v15795_v3  ;;  %11378 = vpow2.f32 %v9500_v19 }
0x1717   : > { %v11361_v5 = vpop.eup %11360  ;;  %v6669_v7 = vpack.c.bf16 %v6655_v57, %v6654_v8  ;;  %v6614_v21 = vadd.f32 1.0, %v11359_v44  ;;  %11380 = vpow2.f32 %v9498_v10 }
0x1718   : > { %v11363_v43 = vpop.eup %11362  ;;  %v6668_v54 = vpack.c.bf16 %v6653_v62, %v6652_v47  ;;  %v6612_v59 = vadd.f32 1.0, %v11361_v5 }
0x1719   : > { %v11365_v48 = vpop.eup %11364  ;;  %11382 = vrcp.f32 %v6614_v21  ;;  %v6615_v16 = vadd.f32 1.0, %v11363_v43 }
0x171a   : > { %v11367_v58 = vpop.eup %11366  ;;  %11384 = vrcp.f32 %v6612_v59  ;;  %v6613_v15 = vadd.f32 1.0, %v11365_v48  ;;  %10519 = vmatprep.mubr.msk.bf16.mxu0 %vm1552_vm1, %v6668_v54  ;;  %v9533_v54 = vld [vmem:[%s12898_s21 + $0x280] sm:$0xff]  ;;  %v9534_v59 = vld [vmem:[%s12898_s21 + $0x288] sm:$0xff]  ;;  %v9539_v48 = vld [vmem:[%s12898_s21 + $0x2b0] sm:$0xff] }
0x171b   : > { %v11369_v26 = vpop.eup %11368  ;;  %11386 = vrcp.f32 %v6615_v16  ;;  %10520 = vmatmul.mubr.msk.bf16.vlgmr.msra.gmra.mrb[176].mxu0 %vm1552_vm1, %v6669_v7  ;;  %v6658_v60 = vmul.f32 %v11367_v58, %v15802_v61  ;;  %7087 = vrot.lane.b32.xlu0 %v9533_v54, %s11978_s8  ;;  %v9540_v16 = vld [vmem:[%s12898_s21 + $0x2b8] sm:$0xff]  ;;  %v9541_v58 = vld [vmem:[%s12898_s21 + $0x2c0] sm:$0xff] }
0x171c   : > { %v11371_v32 = vpop.eup %11370  ;;  %11388 = vrcp.f32 %v6613_v15  ;;  %10560 = vmatpush3.bf16.msra.mxu0 %v15699_v13  ;;  %v6656_v53 = vmul.f32 %v11369_v26, %v15807_v14  ;;  %7089 = vrot.lane.b32.xlu1 %v9534_v59, %s11978_s8  ;;  %v9542_v15 = vld [vmem:[%s12898_s21 + $0x2c8] sm:$0xff]  ;;  %v9543_v26 = vld [vmem:[%s12898_s21 + $0x2d0] sm:$0xff] }
0x171d   : > { %v11373_v3 = vpop.eup %11372  ;;  %v6659_v0 = vmul.f32 %v11371_v32, %v15813_v22  ;;  %10561 = vmatprep.subr.bf16.mxu0 %v11861_v36  ;;  %v9544_v32 = vld [vmem:[%s12898_s21 + $0x2d8] sm:$0xff] }
0x171e   : > { %v11375_v46 = vpop.eup %11374  ;;  %v6657_v28 = vmul.f32 %v11373_v3, %v15819_v41  ;;  %v9545_v3 = vld [vmem:[%s12898_s21 + $0x2e0] sm:$0xff] }
0x171f   : > { %v11377_v45 = vpop.eup %11376  ;;  %v6671_v12 = vpack.c.bf16 %v6659_v0, %v6658_v60  ;;  %v6618_v63 = vadd.f32 1.0, %v11375_v46  ;;  %v9546_v60 = vld [vmem:[%s12898_s21 + $0x2e8] sm:$0xff]  ;;  %v9547_v0 = vld [vmem:[%s12898_s21 + $0x2f0] sm:$0xff] }
0x1720   : > { %v11379_v9 = vpop.eup %11378  ;;  %v6670_v13 = vpack.c.bf16 %v6657_v28, %v6656_v53  ;;  %v6616_v29 = vadd.f32 1.0, %v11377_v45  ;;  %10562 = vmatpush3.bf16.msra.mxu0 %v11861_v36  ;;  %v9548_v36 = vld [vmem:[%s12898_s21 + $0x2f8] sm:$0xff]  ;;  %v11862_v53 = vld [vmem:[%s17091_s5 + $0x90] sm:$0xff] }
0x1721   : > { %v11381_v61 = vpop.eup %11380  ;;  %11390 = vrcp.f32 %v6618_v63  ;;  %v6619_v22 = vadd.f32 1.0, %v11379_v9  ;;  %10603 = vmatprep.subr.bf16.mxu0 %v15633_v37 }
0x1722   : > { %11392 = vrcp.f32 %v6616_v29  ;;  %v6617_v56 = vadd.f32 1.0, %v11381_v61  ;;  %10523 = vmatprep.mubr.msk.bf16.mxu0 %vm1552_vm1, %v6670_v13  ;;  %v11864_v29 = vld [vmem:[%s17091_s5 + $0x98] sm:$0xff] }
0x1723   : > { %v11383_v24 = vpop.eup %11382  ;;  %11394 = vrcp.f32 %v6619_v22  ;;  %10524 = vmatmul.mubr.msk.bf16.gmra.mrb[180].mxu0 %vm1552_vm1, %v6671_v12  ;;  %v11863_v12 = vld [vmem:[%s17091_s5 + $0x80] sm:$0xff] }
0x1724   : > { %v11385_v14 = vpop.eup %11384  ;;  %11396 = vrcp.f32 %v6617_v56  ;;  %v6662_v38 = vmul.f32 %v11383_v24, %v15826_v50  ;;  %v11865_v24 = vld [vmem:[%s17091_s5 + $0x88] sm:$0xff] }
0x1725   : > { %v11387_v41 = vpop.eup %11386  ;;  %v6660_v57 = vmul.f32 %v11385_v14, %v15831_v25 }
0x1726   : > { %v11389_v19 = vpop.eup %11388  ;;  %v6663_v8 = vmul.f32 %v11387_v41, %v15837_v35 }
0x1727   : > { %v6661_v37 = vmul.f32 %v11389_v19, %v15843_v1 }
0x1728   : > { %v6673_v10 = vpack.c.bf16 %v6663_v8, %v6662_v38  ;;  %v11866_v8 = vld [vmem:[%s17091_s5 + $0xb0] sm:$0xff] }
0x1729   : > { %v6672_v44 = vpack.c.bf16 %v6661_v37, %v6660_v57 }
0x172b   : > { %v11391_v47 = vpop.eup %11390  ;;  %10527 = vmatprep.mubr.msk.bf16.mxu0 %vm1552_vm1, %v6672_v44 }
0x172c   : > { %v11393_v62 = vpop.eup %11392  ;;  %10528 = vmatmul.mubr.msk.bf16.gmra.mrb[184].mxu0 %vm1552_vm1, %v6673_v10  ;;  %v6666_v35 = vmul.f32 %v11391_v47, %v15850_v49  ;;  %v9535_v49 = vld [vmem:[%s12898_s21 + $0x290] sm:$0xff]  ;;  %v11867_v10 = vld [vmem:[%s17091_s5 + $0xa0] sm:$0xff] }
0x172d   : > { %v11395_v5 = vpop.eup %11394  ;;  %v6664_v1 = vmul.f32 %v11393_v62, %v15855_v42  ;;  %v9536_v42 = vld [vmem:[%s12898_s21 + $0x298] sm:$0xff]  ;;  %7091 = vrot.lane.b32.xlu0 %v9535_v49, %s11978_s8 }
0x172e   : > { %v11397_v50 = vpop.eup %11396  ;;  %v6667_v25 = vmul.f32 %v11395_v5, %v15861_v30  ;;  %7093 = vrot.lane.b32.xlu1 %v9536_v42, %s11978_s8  ;;  %v9537_v30 = vld [vmem:[%s12898_s21 + $0x2a0] sm:$0xff]  ;;  %v11868_v5 = vld [vmem:[%s17091_s5 + $0xb8] sm:$0xff] }
0x172f   : > { %v6665_v7 = vmul.f32 %v11397_v50, %v15867_v11  ;;  %v9538_v11 = vld [vmem:[%s12898_s21 + $0x2a8] sm:$0xff] }
0x1730   : > { %v6675_v21 = vpack.c.bf16 %v6667_v25, %v6666_v35 }
0x1731   : > { %v6674_v43 = vpack.c.bf16 %v6665_v7, %v6664_v1  ;;  %7095 = vrot.lane.b32.xlu0 %v9537_v30, %s11978_s8  ;;  %v11869_v1 = vld [vmem:[%s17091_s5 + $0xa8] sm:$0xff] }
0x1732   : > { %7097 = vrot.lane.b32.xlu1 %v9538_v11, %s11978_s8 }
0x1733   : > { %10531 = vmatprep.mubr.msk.bf16.mxu0 %vm1552_vm1, %v6674_v43 }
0x1734   : > { %10532 = vmatmul.mubr.msk.bf16.gmra.mrb[188].mxu0 %vm1552_vm1, %v6675_v21 }
0x1735   : > { %7099 = vrot.lane.b32.xlu0 %v9539_v48, %s11978_s8 }
0x1736   : > { %7101 = vrot.lane.b32.xlu1 %v9540_v16, %s11978_s8 }
0x1739   : > { %7103 = vrot.lane.b32.xlu0 %v9541_v58, %s11978_s8  ;;  %v11870_v58 = vld [vmem:[%s17091_s5 + $0xd0] sm:$0xff] }
0x173a   : > { %7105 = vrot.lane.b32.xlu1 %v9542_v15, %s11978_s8 }
0x173d   : > { %7107 = vrot.lane.b32.xlu0 %v9543_v26, %s11978_s8 }
0x173e   : > { %7109 = vrot.lane.b32.xlu1 %v9544_v32, %s11978_s8 }
0x1741   : > { %7111 = vrot.lane.b32.xlu0 %v9545_v3, %s11978_s8  ;;  %v11871_v3 = vld [vmem:[%s17091_s5 + $0xc0] sm:$0xff] }
0x1742   : > { %7113 = vrot.lane.b32.xlu1 %v9546_v60, %s11978_s8 }
0x1745   : > { %7115 = vrot.lane.b32.xlu0 %v9547_v0, %s11978_s8 }
0x1746   : > { %7117 = vrot.lane.b32.xlu1 %v9548_v36, %s11978_s8 }
0x17ee   : > { %v10521_v46 = vpop.f32.mrb[176].mxu0 }
0x17ef   : > { %v15935_v28 = vadd.f32 %v11862_v53, %v10521_v46  ;;  %v6734_v45 = vpop.f32.mrb[177].mxu0  ;;  %v11872_v46 = vld [vmem:[%s17091_s5 + $0xd8] sm:$0xff] }
0x17f0   : > { %v15940_v63 = vadd.f32 %v11863_v12, %v6734_v45  ;;  %v10522_v9 = vpop.f32.mrb[178].mxu0 }
0x17f1   : > { %v9511_v13 = vmul.f32 -1.442695, %v15935_v28  ;;  %v15946_v61 = vadd.f32 %v11864_v29, %v10522_v9  ;;  %v6737_v22 = vpop.f32.mrb[179].mxu0  ;;  %v11873_v9 = vld [vmem:[%s17091_s5 + $0xc8] sm:$0xff] }
0x17f2   : > { %v9509_v56 = vmul.f32 -1.442695, %v15940_v63  ;;  %v15952_v14 = vadd.f32 %v11865_v24, %v6737_v22 }
0x17f3   : > { %11398 = vpow2.f32 %v9511_v13  ;;  %v9512_v41 = vmul.f32 -1.442695, %v15946_v61 }
0x17f4   : > { %11400 = vpow2.f32 %v9509_v56  ;;  %v9510_v19 = vmul.f32 -1.442695, %v15952_v14 }
0x17f5   : > { %11402 = vpow2.f32 %v9512_v41 }
0x17f6   : > { %11404 = vpow2.f32 %v9510_v19  ;;  %v10525_v38 = vpop.f32.mrb[180].mxu0 }
0x17f7   : > { %v15959_v57 = vadd.f32 %v11866_v8, %v10525_v38  ;;  %v6750_v37 = vpop.f32.mrb[181].mxu0 }
0x17f8   : > { %v15964_v44 = vadd.f32 %v11867_v10, %v6750_v37  ;;  %v10526_v47 = vpop.f32.mrb[182].mxu0 }
0x17f9   : > { %v9515_v62 = vmul.f32 -1.442695, %v15959_v57  ;;  %v15970_v50 = vadd.f32 %v11868_v5, %v10526_v47  ;;  %v6753_v35 = vpop.f32.mrb[183].mxu0  ;;  %v11874_v47 = vld [vmem:[%s17091_s5 + $0xf0] sm:$0xff] }
0x17fa   : > { %v9513_v25 = vmul.f32 -1.442695, %v15964_v44  ;;  %v15976_v7 = vadd.f32 %v11869_v1, %v6753_v35 }
0x17fb   : > { %11406 = vpow2.f32 %v9515_v62  ;;  %v9516_v21 = vmul.f32 -1.442695, %v15970_v50 }
0x17fc   : > { %11408 = vpow2.f32 %v9513_v25  ;;  %v9514_v43 = vmul.f32 -1.442695, %v15976_v7  ;;  %v11875_v25 = vld [vmem:[%s17091_s5 + $0xe0] sm:$0xff] }
0x17fd   : > { %v11399_v54 = vpop.eup %11398  ;;  %11410 = vpow2.f32 %v9516_v21 }
0x17fe   : > { %v11401_v59 = vpop.eup %11400  ;;  %v6847_v49 = vadd.f32 1.0, %v11399_v54  ;;  %11412 = vpow2.f32 %v9514_v43 }
0x17ff   : > { %v11403_v42 = vpop.eup %11402  ;;  %v6845_v30 = vadd.f32 1.0, %v11401_v59  ;;  %v10529_v11 = vpop.f32.mrb[184].mxu0  ;;  %v11876_v59 = vld [vmem:[%s17091_s5 + $0xf8] sm:$0xff] }
0x1800   : > { %v11405_v48 = vpop.eup %11404  ;;  %11414 = vrcp.f32 %v6847_v49  ;;  %v6848_v16 = vadd.f32 1.0, %v11403_v42  ;;  %v15983_v15 = vadd.f32 %v11870_v58, %v10529_v11  ;;  %v6766_v26 = vpop.f32.mrb[185].mxu0 }
0x1801   : > { %11416 = vrcp.f32 %v6845_v30  ;;  %v6846_v32 = vadd.f32 1.0, %v11405_v48  ;;  %v15988_v60 = vadd.f32 %v11871_v3, %v6766_v26  ;;  %v10530_v0 = vpop.f32.mrb[186].mxu0  ;;  %v11877_v48 = vld [vmem:[%s17091_s5 + $0xe8] sm:$0xff] }
0x1802   : > { %11418 = vrcp.f32 %v6848_v16  ;;  %v9519_v36 = vmul.f32 -1.442695, %v15983_v15  ;;  %v15994_v53 = vadd.f32 %v11872_v46, %v10530_v0  ;;  %v6769_v45 = vpop.f32.mrb[187].mxu0 }
0x1803   : > { %11420 = vrcp.f32 %v6846_v32  ;;  %v9517_v12 = vmul.f32 -1.442695, %v15988_v60  ;;  %v16000_v13 = vadd.f32 %v11873_v9, %v6769_v45 }
0x1804   : > { %11422 = vpow2.f32 %v9519_v36  ;;  %v9520_v29 = vmul.f32 -1.442695, %v15994_v53 }
0x1805   : > { %v11407_v22 = vpop.eup %11406  ;;  %11424 = vpow2.f32 %v9517_v12  ;;  %v9518_v56 = vmul.f32 -1.442695, %v16000_v13 }
0x1806   : > { %v11409_v24 = vpop.eup %11408  ;;  %v6851_v41 = vadd.f32 1.0, %v11407_v22  ;;  %11426 = vpow2.f32 %v9520_v29 }
0x1807   : > { %v11411_v19 = vpop.eup %11410  ;;  %v6849_v38 = vadd.f32 1.0, %v11409_v24  ;;  %11428 = vpow2.f32 %v9518_v56  ;;  %v10533_v8 = vpop.f32.mrb[188].mxu0 }
0x1808   : > { %v11413_v37 = vpop.eup %11412  ;;  %11430 = vrcp.f32 %v6851_v41  ;;  %v6852_v10 = vadd.f32 1.0, %v11411_v19  ;;  %v16007_v62 = vadd.f32 %v11874_v47, %v10533_v8  ;;  %v6782_v5 = vpop.f32.mrb[189].mxu0 }
0x1809   : > { %11432 = vrcp.f32 %v6849_v38  ;;  %v6850_v35 = vadd.f32 1.0, %v11413_v37  ;;  %v16012_v1 = vadd.f32 %v11875_v25, %v6782_v5  ;;  %v10534_v21 = vpop.f32.mrb[190].mxu0  ;;  %v11879_v5 = vld [vmem:[%s17090_s4 + $0x8] sm:$0xff]  }
0x180a   : > { %v11415_v43 = vpop.eup %11414  ;;  %11434 = vrcp.f32 %v6852_v10  ;;  %v9523_v54 = vmul.f32 -1.442695, %v16007_v62  ;;  %v16018_v49 = vadd.f32 %v11876_v59, %v10534_v21  ;;  %v6785_v42 = vpop.f32.mrb[191].mxu0 }
0x180b   : > { %v11417_v30 = vpop.eup %11416  ;;  %11436 = vrcp.f32 %v6850_v35  ;;  %v9521_v11 = vmul.f32 -1.442695, %v16012_v1  ;;  %v16024_v16 = vadd.f32 %v11877_v48, %v6785_v42  ;;  %v6895_v3 = vmul.f32 %v11415_v43, %v15935_v28  ;;  %v11880_v48 = vld [vmem:[%s17090_s4 + $0x10] sm:$0xff]  }
0x180c   : > { %v11419_v58 = vpop.eup %11418  ;;  %11438 = vpow2.f32 %v9523_v54  ;;  %v9524_v26 = vmul.f32 -1.442695, %v16018_v49  ;;  %v6893_v45 = vmul.f32 %v11417_v30, %v15940_v63 }
0x180d   : > { %v11421_v32 = vpop.eup %11420  ;;  %v6896_v0 = vmul.f32 %v11419_v58, %v15946_v61  ;;  %11440 = vpow2.f32 %v9521_v11  ;;  %v9522_v36 = vmul.f32 -1.442695, %v16024_v16 }
0x180e   : > { %v11423_v46 = vpop.eup %11422  ;;  %v6894_v12 = vmul.f32 %v11421_v32, %v15952_v14  ;;  %11442 = vpow2.f32 %v9524_v26  ;;  %v11878_v14 = vld [vmem:[%s17090_s4] sm:$0xff]   ;;  %v11881_v32 = vld [vmem:[%s17090_s4 + $0x18] sm:$0xff]  }
0x180f   : > { %v11425_v9 = vpop.eup %11424  ;;  %v6910_v29 = vpack.c.bf16 %v6896_v0, %v6895_v3  ;;  %v6855_v22 = vadd.f32 1.0, %v11423_v46  ;;  %11444 = vpow2.f32 %v9522_v36 }
0x1810   : > { %v11427_v56 = vpop.eup %11426  ;;  %v6909_v24 = vpack.c.bf16 %v6894_v12, %v6893_v45  ;;  %v6853_v41 = vadd.f32 1.0, %v11425_v9 }
0x1811   : > { %v11429_v19 = vpop.eup %11428  ;;  %11446 = vrcp.f32 %v6855_v22  ;;  %v6856_v28 = vadd.f32 1.0, %v11427_v56 }
0x1812   : > { %v11431_v61 = vpop.eup %11430  ;;  %11448 = vrcp.f32 %v6853_v41  ;;  %v6854_v38 = vadd.f32 1.0, %v11429_v19  ;;  %10543 = vmatprep.mubr.msk.bf16.mxu1 %vm1552_vm1, %v6909_v24 }
0x1813   : > { %v11433_v8 = vpop.eup %11432  ;;  %11450 = vrcp.f32 %v6856_v28  ;;  %10544 = vmatmul.mubr.msk.bf16.vlgmr.msra.gmra.mrb[176].mxu1 %vm1552_vm1, %v6910_v29  ;;  %v6899_v10 = vmul.f32 %v11431_v61, %v15959_v57  ;;  %v16059_v29 = vld [vmem:[%s17090_s4 + $0x40] sm:$0xff]   ;;  %v7088_v61 = vpop.permute.xlu0 %7087 }
0x1814   : > { %v11435_v63 = vpop.eup %11434  ;;  %11452 = vrcp.f32 %v6854_v38  ;;  %10580 = vmatpush3.bf16.msra.mxu1 %v11878_v14  ;;  %v6897_v25 = vmul.f32 %v11433_v8, %v15964_v44  ;;  %v7090_v38 = vpop.permute.xlu1 %7089 }
0x1815   : > { %v11437_v37 = vpop.eup %11436  ;;  %v6900_v47 = vmul.f32 %v11435_v63, %v15970_v50  ;;  %10581 = vmatprep.subr.bf16.mxu1 %v11879_v5 }
0x1816   : > { %v11439_v35 = vpop.eup %11438  ;;  %v6898_v21 = vmul.f32 %v11437_v37, %v15976_v7 }
0x1817   : > { %v11441_v43 = vpop.eup %11440  ;;  %v6912_v54 = vpack.c.bf16 %v6900_v47, %v6899_v10  ;;  %v6859_v59 = vadd.f32 1.0, %v11439_v35  ;;  %v7092_v8 = vpop.permute.xlu0 %7091 }
0x1818   : > { %v11443_v42 = vpop.eup %11442  ;;  %v6911_v30 = vpack.c.bf16 %v6898_v21, %v6897_v25  ;;  %v6857_v11 = vadd.f32 1.0, %v11441_v43  ;;  %10582 = vmatpush3.bf16.msra.mxu1 %v11879_v5  ;;  %v7094_v63 = vpop.permute.xlu1 %7093  ;;  %v11884_v5 = vld [vmem:[%s17091_s5 + $0x110] sm:$0xff]  ;;  %v11885_v21 = vld [vmem:[%s17091_s5 + $0x108] sm:$0xff] }
0x1819   : > { %v11445_v57 = vpop.eup %11444  ;;  %11454 = vrcp.f32 %v6859_v59  ;;  %v6860_v50 = vadd.f32 1.0, %v11443_v42  ;;  %10583 = vmatprep.subr.bf16.mxu1 %v11880_v48 }
0x181a   : > { %11456 = vrcp.f32 %v6857_v11  ;;  %v6858_v58 = vadd.f32 1.0, %v11445_v57  ;;  %10547 = vmatprep.mubr.msk.bf16.mxu1 %vm1552_vm1, %v6911_v30 }
0x181b   : > { %v11447_v44 = vpop.eup %11446  ;;  %11458 = vrcp.f32 %v6860_v50  ;;  %10548 = vmatmul.mubr.msk.bf16.gmra.mrb[180].mxu1 %vm1552_vm1, %v6912_v54  ;;  %v7096_v37 = vpop.permute.xlu0 %7095  ;;  %v11886_v54 = vld [vmem:[%s17091_s5 + $0x118] sm:$0xff] }
0x181c   : > { %v11449_v7 = vpop.eup %11448  ;;  %11460 = vrcp.f32 %v6858_v58  ;;  %10584 = vmatpush3.bf16.msra.mxu1 %v11880_v48  ;;  %v6903_v0 = vmul.f32 %v11447_v44, %v15983_v15  ;;  %v11887_v44 = vld [vmem:[%s17091_s5 + $0x120] sm:$0xff] }
0x181d   : > { %v11451_v26 = vpop.eup %11450  ;;  %10585 = vmatprep.subr.bf16.mxu1 %v11881_v32  ;;  %v6901_v46 = vmul.f32 %v11449_v7, %v15988_v60 }
0x181e   : > { %v11453_v3 = vpop.eup %11452  ;;  %v6904_v36 = vmul.f32 %v11451_v26, %v15994_v53 }
0x181f   : > { %v6902_v45 = vmul.f32 %v11453_v3, %v16000_v13  ;;  %v7100_v30 = vpop.permute.xlu0 %7099  ;;  %v11888_v3 = vld [vmem:[%s17091_s5 + $0x130] sm:$0xff] }
0x1820   : > { %v6914_v12 = vpack.c.bf16 %v6904_v36, %v6903_v0  ;;  %10586 = vmatpush3.bf16.msra.mxu1 %v11881_v32 }
0x1821   : > { %v6913_v9 = vpack.c.bf16 %v6902_v45, %v6901_v46  ;;  %10627 = vmatprep.subr.bf16.mxu1 %v16059_v29  ;;  %v11889_v46 = vld [vmem:[%s17091_s5 + $0x128] sm:$0xff] }
0x1823   : > { %v11455_v22 = vpop.eup %11454  ;;  %10551 = vmatprep.mubr.msk.bf16.mxu1 %vm1552_vm1, %v6913_v9  ;;  %v11890_v9 = vld [vmem:[%s17091_s5 + $0x138] sm:$0xff] }
0x1824   : > { %v11457_v15 = vpop.eup %11456  ;;  %10552 = vmatmul.mubr.msk.bf16.gmra.mrb[184].mxu1 %vm1552_vm1, %v6914_v12  ;;  %v6907_v13 = vmul.f32 %v11455_v22, %v16007_v62  ;;  %v11883_v62 = vld [vmem:[%s17091_s5 + $0x100] sm:$0xff]  ;;  %v7104_v12 = vpop.permute.xlu0 %7103 }
0x1825   : > { %v11459_v53 = vpop.eup %11458  ;;  %v6905_v24 = vmul.f32 %v11457_v15, %v16012_v1 }
0x1826   : > { %v11461_v60 = vpop.eup %11460  ;;  %v6908_v56 = vmul.f32 %v11459_v53, %v16018_v49 }
0x1827   : > { %v6906_v41 = vmul.f32 %v11461_v60, %v16024_v16  ;;  %v7098_v16 = vpop.permute.xlu1 %7097 }
0x1828   : > { %v6916_v19 = vpack.c.bf16 %v6908_v56, %v6907_v13 }
0x1829   : > { %v6915_v28 = vpack.c.bf16 %v6906_v41, %v6905_v24  ;;  %v7108_v41 = vpop.permute.xlu0 %7107 }
0x182b   : > { %10555 = vmatprep.mubr.msk.bf16.mxu1 %vm1552_vm1, %v6915_v28  ;;  %v7102_v50 = vpop.permute.xlu1 %7101 }
0x182c   : > { %10556 = vmatmul.mubr.msk.bf16.gmra.mrb[188].mxu1 %vm1552_vm1, %v6916_v19  ;;  %v11891_v19 = vld [vmem:[%s17091_s5 + $0x140] sm:$0xff] }
0x182f   : > { %v7106_v53 = vpop.permute.xlu1 %7105 }
0x18e6   : > { %v10545_v14 = vpop.f32.mrb[176].mxu1 }
0x18e7   : > { %v6975_v10 = vpop.f32.mrb[177].mxu1  ;;  %v16078_v35 = vadd.f32 %v11884_v5, %v10545_v14  ;;  %v7112_v5 = vpop.permute.xlu0 %7111 }
0x18e8   : > { %v16073_v1 = vadd.f32 %v11883_v62, %v6975_v10  ;;  %v10546_v49 = vpop.f32.mrb[178].mxu1  ;;  %v11893_v10 = vld [vmem:[%s17091_s5 + $0x148] sm:$0xff] }
0x18e9   : > { %v6978_v47 = vpop.f32.mrb[179].mxu1  ;;  %v16089_v59 = vadd.f32 %v11886_v54, %v10546_v49  ;;  %v7137_v11 = vmul.f32 %v7092_v8, %v16078_v35  ;;  %v7110_v8 = vpop.permute.xlu1 %7109  ;;  %v11894_v49 = vld [vmem:[%s17091_s5 + $0x158] sm:$0xff] }
0x18ea   : > { %v7135_v25 = vmul.f32 %v7088_v61, %v16073_v1  ;;  %v16084_v43 = vadd.f32 %v11885_v21, %v6978_v47 }
0x18eb   : > { %v7138_v58 = vmul.f32 %v7094_v63, %v16089_v59  ;;  %v11892_v63 = vld [vmem:[%s17091_s5 + $0x150] sm:$0xff] }
0x18ec   : > { %v7136_v42 = vmul.f32 %v7090_v38, %v16084_v43  ;;  %7167 = vrot.lane.b32.xlu0 %v7135_v25, %s11979_s27 }
0x18ed   : > { %v7114_v54 = vpop.permute.xlu1 %7113 }
0x18ee   : > { %v10549_v57 = vpop.f32.mrb[180].mxu1  ;;  %7169 = vrot.lane.b32.xlu1 %v7136_v42, %s11979_s27 }
0x18ef   : > { %v6991_v48 = vpop.f32.mrb[181].mxu1  ;;  %v16105_v0 = vadd.f32 %v11888_v3, %v10549_v57 }
0x18f0   : > { %v16099_v7 = vadd.f32 %v11887_v44, %v6991_v48  ;;  %v10550_v26 = vpop.f32.mrb[182].mxu1  ;;  %7171 = vrot.lane.b32.xlu0 %v7137_v11, %s11979_s27  ;;  %v11895_v11 = vld [vmem:[%s17091_s5 + $0x160] sm:$0xff] }
0x18f1   : > { %v6994_v32 = vpop.f32.mrb[183].mxu1  ;;  %v16117_v22 = vadd.f32 %v11890_v9, %v10550_v26  ;;  %v7141_v60 = vmul.f32 %v7100_v30, %v16105_v0 }
0x18f2   : > { %v7139_v36 = vmul.f32 %v7096_v37, %v16099_v7  ;;  %v16111_v45 = vadd.f32 %v11889_v46, %v6994_v32  ;;  %7173 = vrot.lane.b32.xlu1 %v7138_v58, %s11979_s27  ;;  %v11896_v58 = vld [vmem:[%s17091_s5 + $0x170] sm:$0xff]  ;;  %v11897_v32 = vld [vmem:[%s17091_s5 + $0x168] sm:$0xff]  ;;  %v11898_v46 = vld [vmem:[%s17091_s5 + $0x178] sm:$0xff] }
0x18f3   : > { %v7142_v56 = vmul.f32 %v7102_v50, %v16117_v22 }
0x18f4   : > { %v7140_v15 = vmul.f32 %v7098_v16, %v16111_v45  ;;  %7175 = vrot.lane.b32.xlu0 %v7139_v36, %s11979_s27  ;;  %v7116_v36 = vpop.permute.xlu0 %7115 }
0x18f6   : > { %7177 = vrot.lane.b32.xlu1 %v7140_v15, %s11979_s27  ;;  %v7118_v15 = vpop.permute.xlu1 %7117 }
0x18f7   : > { %v10553_v13 = vpop.f32.mrb[184].mxu1 }
0x18f8   : > { %v7007_v24 = vpop.f32.mrb[185].mxu1  ;;  %7179 = vrot.lane.b32.xlu0 %v7141_v60, %s11979_s27  ;;  %v16134_v14 = vadd.f32 %v11892_v63, %v10553_v13  ;;  %v7038_v13 = vadd.f32 %v16073_v1, %v15585_v39 }
0x18f9   : > { %v16128_v28 = vadd.f32 %v11891_v19, %v7007_v24  ;;  %v10554_v61 = vpop.f32.mrb[186].mxu1 }
0x18fa   : > { %v7010_v38 = vpop.f32.mrb[187].mxu1  ;;  %7181 = vrot.lane.b32.xlu1 %v7142_v56, %s11979_s27  ;;  %v16145_v16 = vadd.f32 %v11894_v49, %v10554_v61  ;;  %v7145_v25 = vmul.f32 %v7108_v41, %v16134_v14  ;;  %v7039_v41 = vadd.f32 %v16084_v43, %v15592_v40  ;;  %v7041_v40 = vadd.f32 %v16089_v59, %v15608_v17 }
0x18fb   : > { %v7143_v37 = vmul.f32 %v7104_v12, %v16128_v28  ;;  %v16140_v62 = vadd.f32 %v11893_v10, %v7010_v38  ;;  %v7040_v38 = vadd.f32 %v16078_v35, %v15601_v55  ;;  %v7042_v55 = vadd.f32 %v16099_v7, %v15618_v20 }
0x18fc   : > { %v7146_v30 = vmul.f32 %v7110_v8, %v16145_v16  ;;  %v7043_v59 = vadd.f32 %v16111_v45, %v15625_v18  ;;  %v7044_v20 = vadd.f32 %v16105_v0, %v15641_v6  ;;  %v11900_v6 = vld [vmem:[%s17090_s4 + $0x28] sm:$0xff]  }
0x18fd   : > { %v7144_v47 = vmul.f32 %v7106_v53, %v16140_v62  ;;  %7183 = vrot.lane.b32.xlu0 %v7143_v37, %s11979_s27 }
0x18ff   : > { %v10557_v21 = vpop.f32.mrb[188].mxu1  ;;  %7185 = vrot.lane.b32.xlu1 %v7144_v47, %s11979_s27  ;;  %v11899_v47 = vld [vmem:[%s17090_s4 + $0x20] sm:$0xff]  }
0x1900   : > { %v7023_v42 = vpop.f32.mrb[189].mxu1  ;;  %v16161_v44 = vadd.f32 %v11896_v58, %v10557_v21  ;;  %v7046_v21 = vadd.f32 %v16128_v28, %v15664_v51  ;;  %v7047_v51 = vadd.f32 %v16140_v62, %v15672_v33 }
0x1901   : > { %v16155_v57 = vadd.f32 %v11895_v11, %v7023_v42  ;;  %v10558_v50 = vpop.f32.mrb[190].mxu1  ;;  %7187 = vrot.lane.b32.xlu0 %v7145_v25, %s11979_s27  ;;  %v7048_v11 = vadd.f32 %v16134_v14, %v15684_v4  ;;  %v7049_v4 = vadd.f32 %v16145_v16, %v15691_v27 }
0x1902   : > { %v7026_v48 = vpop.f32.mrb[191].mxu1  ;;  %v16173_v12 = vadd.f32 %v11898_v46, %v10558_v50  ;;  %v7149_v53 = vmul.f32 %v7116_v36, %v16161_v44 }
0x1903   : > { %v7147_v26 = vmul.f32 %v7112_v5, %v16155_v57  ;;  %v16167_v3 = vadd.f32 %v11897_v32, %v7026_v48  ;;  %7189 = vrot.lane.b32.xlu1 %v7146_v30, %s11979_s27  ;;  %v7045_v5 = vadd.f32 %v16117_v22, %v15651_v34  ;;  %v11902_v48 = vld [vmem:[%s17090_s4 + $0x38] sm:$0xff]  }
0x1904   : > { %v7150_v60 = vmul.f32 %v7118_v15, %v16173_v12  ;;  %v7053_v15 = vadd.f32 %v16173_v12, %v15731_v23  ;;  %v9568_v23 = vld [vmem:[%s12701_s7 + $0x318] sm:$0xff] }
0x1905   : > { %v7148_v9 = vmul.f32 %v7114_v54, %v16167_v3  ;;  %7191 = vrot.lane.b32.xlu0 %v7147_v26, %s11979_s27  ;;  %v11901_v54 = vld [vmem:[%s17090_s4 + $0x30] sm:$0xff]   ;;  %v7050_v26 = vadd.f32 %v16155_v57, %v15707_v2  ;;  %v7051_v36 = vadd.f32 %v16167_v3, %v15714_v52  ;;  %v7052_v57 = vadd.f32 %v16161_v44, %v15724_v31 }
0x1906   : > { %v9567_v44 = vld [vmem:[%s12701_s7 + $0x310] sm:$0xff] }
0x1907   : > { %7193 = vrot.lane.b32.xlu1 %v7148_v9, %s11979_s27 }
0x1909   : > { %7195 = vrot.lane.b32.xlu0 %v7149_v53, %s11979_s27 }
0x190b   : > { %7197 = vrot.lane.b32.xlu1 %v7150_v60, %s11979_s27 }
0x195e   : > { %v7168_v56 = vpop.permute.xlu0 %7167 }
0x195f   : > { %v16184_v24 = vadd.f32 %v7168_v56, %v7038_v13  ;;  %v9565_v56 = vld [vmem:[%s12701_s7 + $0x300] sm:$0xff] }
0x1960   : > { %v7170_v19 = vpop.permute.xlu1 %7169 }
0x1961   : > { %9549 = vst.msk [vmem:[%s12569_s18 + $0x300] sm:$0xff] %vm1346_vm0, %v16184_v24  ;;  %v16191_v61 = vadd.f32 %v7170_v19, %v7039_v41  ;;  %v9566_v41 = vld [vmem:[%s12701_s7 + $0x308] sm:$0xff] }
0x1962   : > { %v7172_v8 = vpop.permute.xlu0 %7171 }
0x1963   : > { %9550 = vst.msk [vmem:[%s12569_s18 + $0x308] sm:$0xff] %vm1346_vm0, %v16191_v61  ;;  %v7248_v39 = vpack.c.bf16 %v16191_v61, %v16184_v24  ;;  %v16200_v1 = vadd.f32 %v7172_v8, %v7040_v38 }
0x1964   : > { %v7174_v43 = vpop.permute.xlu1 %7173 }
0x1965   : > { %9551 = vst.msk [vmem:[%s12569_s18 + $0x310] sm:$0xff] %vm1346_vm0, %v16200_v1  ;;  %v16207_v63 = vadd.f32 %v7174_v43, %v7041_v40  ;;  %10563 = vmatprep.mubr.msk.bf16.mxu0 %vm1346_vm0, %v7248_v39 }
0x1966   : > { %v7176_v35 = vpop.permute.xlu0 %7175 }
0x1967   : > { %9552 = vst.msk [vmem:[%s12569_s18 + $0x318] sm:$0xff] %vm1346_vm0, %v16207_v63  ;;  %v7249_v37 = vpack.c.bf16 %v16207_v63, %v16200_v1  ;;  %v16217_v17 = vadd.f32 %v7176_v35, %v7042_v55 }
0x1968   : > { %v7178_v10 = vpop.permute.xlu1 %7177 }
0x1969   : > { %9553 = vst.msk [vmem:[%s12569_s18 + $0x320] sm:$0xff] %vm1346_vm0, %v16217_v17  ;;  %v16224_v49 = vadd.f32 %v7178_v10, %v7043_v59  ;;  %10564 = vmatmul.mubr.msk.bf16.vlgmr.msra.gmra.mrb[192].mxu0 %vm1346_vm0, %v7249_v37  ;;  %v9571_v37 = vld [vmem:[%s12701_s7 + $0x330] sm:$0xff]  ;;  %v9572_v10 = vld [vmem:[%s12701_s7 + $0x338] sm:$0xff] }
0x196a   : > { %v7180_v7 = vpop.permute.xlu0 %7179  ;;  %10604 = vmatpush3.bf16.msra.mxu0 %v11899_v47  ;;  %v9570_v47 = vld [vmem:[%s12701_s7 + $0x328] sm:$0xff] }
0x196b   : > { %9554 = vst.msk [vmem:[%s12569_s18 + $0x328] sm:$0xff] %vm1346_vm0, %v16224_v49  ;;  %v7250_v18 = vpack.c.bf16 %v16224_v49, %v16217_v17  ;;  %v16237_v45 = vadd.f32 %v7180_v7, %v7044_v20  ;;  %10605 = vmatprep.subr.bf16.mxu0 %v11900_v6  ;;  %v9569_v7 = vld [vmem:[%s12701_s7 + $0x320] sm:$0xff] }
0x196c   : > { %v7182_v0 = vpop.permute.xlu1 %7181 }
0x196d   : > { %9555 = vst.msk [vmem:[%s12569_s18 + $0x330] sm:$0xff] %vm1346_vm0, %v16237_v45  ;;  %v16247_v25 = vadd.f32 %v7182_v0, %v7045_v5  ;;  %10567 = vmatprep.mubr.msk.bf16.mxu0 %vm1346_vm0, %v7250_v18 }
0x196e   : > { %10606 = vmatpush3.bf16.msra.mxu0 %v11900_v6 }
0x196f   : > { %9556 = vst.msk [vmem:[%s12569_s18 + $0x338] sm:$0xff] %vm1346_vm0, %v16247_v25  ;;  %v7251_v34 = vpack.c.bf16 %v16247_v25, %v16237_v45  ;;  %v7184_v22 = vpop.permute.xlu0 %7183  ;;  %10607 = vmatprep.subr.bf16.mxu0 %v11901_v54 }
0x1970   : > { %v16260_v42 = vadd.f32 %v7184_v22, %v7046_v21  ;;  %v11903_v21 = vld [vmem:[%s17090_s4 + $0x48] sm:$0xff]  }
0x1971   : > { %v7186_v28 = vpop.permute.xlu1 %7185  ;;  %10568 = vmatmul.mubr.msk.bf16.gmra.mrb[196].mxu0 %vm1346_vm0, %v7251_v34 }
0x1972   : > { %9557 = vst.msk [vmem:[%s12569_s18 + $0x340] sm:$0xff] %vm1346_vm0, %v16260_v42  ;;  %v16268_v30 = vadd.f32 %v7186_v28, %v7047_v51  ;;  %10608 = vmatpush3.bf16.msra.mxu0 %v11901_v54  ;;  %v9575_v28 = vld [vmem:[%s12701_s7 + $0x350] sm:$0xff] }
0x1973   : > { %v7188_v50 = vpop.permute.xlu0 %7187  ;;  %10609 = vmatprep.subr.bf16.mxu0 %v11902_v48 }
0x1974   : > { %9558 = vst.msk [vmem:[%s12569_s18 + $0x348] sm:$0xff] %vm1346_vm0, %v16268_v30  ;;  %v7252_v33 = vpack.c.bf16 %v16268_v30, %v16260_v42  ;;  %v16280_v62 = vadd.f32 %v7188_v50, %v7048_v11  ;;  %v9576_v50 = vld [vmem:[%s12701_s7 + $0x358] sm:$0xff] }
0x1975   : > { %v7190_v14 = vpop.permute.xlu1 %7189 }
0x1976   : > { %9559 = vst.msk [vmem:[%s12569_s18 + $0x350] sm:$0xff] %vm1346_vm0, %v16280_v62  ;;  %v16287_v58 = vadd.f32 %v7190_v14, %v7049_v4  ;;  %10571 = vmatprep.mubr.msk.bf16.mxu0 %vm1346_vm0, %v7252_v33  ;;  %10610 = vmatpush3.bf16.msra.mxu0 %v11902_v48  ;;  %v9573_v33 = vld [vmem:[%s12701_s7 + $0x340] sm:$0xff]  ;;  %v9574_v4 = vld [vmem:[%s12701_s7 + $0x348] sm:$0xff] }
0x1977   : > { %v7192_v32 = vpop.permute.xlu0 %7191 }
0x1978   : > { %9560 = vst.msk [vmem:[%s12569_s18 + $0x358] sm:$0xff] %vm1346_vm0, %v16287_v58  ;;  %v7253_v27 = vpack.c.bf16 %v16287_v58, %v16280_v62  ;;  %v16297_v16 = vadd.f32 %v7192_v32, %v7050_v26  ;;  %v11905_v26 = vld [vmem:[%s17090_s4 + $0x58] sm:$0xff]  }
0x1979   : > { %v7194_v46 = vpop.permute.xlu1 %7193 }
0x197a   : > { %9561 = vst.msk [vmem:[%s12569_s18 + $0x360] sm:$0xff] %vm1346_vm0, %v16297_v16  ;;  %v16304_v2 = vadd.f32 %v7194_v46, %v7051_v36  ;;  %10572 = vmatmul.mubr.msk.bf16.gmra.mrb[200].mxu0 %vm1346_vm0, %v7253_v27 }
0x197b   : > { %v7196_v9 = vpop.permute.xlu0 %7195 }
0x197c   : > { %9562 = vst.msk [vmem:[%s12569_s18 + $0x368] sm:$0xff] %vm1346_vm0, %v16304_v2  ;;  %v7254_v52 = vpack.c.bf16 %v16304_v2, %v16297_v16  ;;  %v16314_v3 = vadd.f32 %v7196_v9, %v7052_v57 }
0x197d   : > { %v7198_v53 = vpop.permute.xlu1 %7197 }
0x197e   : > { %9563 = vst.msk [vmem:[%s12569_s18 + $0x370] sm:$0xff] %vm1346_vm0, %v16314_v3  ;;  %v16321_v60 = vadd.f32 %v7198_v53, %v7053_v15  ;;  %10575 = vmatprep.mubr.msk.bf16.mxu0 %vm1346_vm0, %v7254_v52  ;;  %v9579_v15 = vld [vmem:[%s12701_s7 + $0x370] sm:$0xff] }
0x1980   : > { %9564 = vst.msk [vmem:[%s12569_s18 + $0x378] sm:$0xff] %vm1346_vm0, %v16321_v60  ;;  %v7255_v31 = vpack.c.bf16 %v16321_v60, %v16314_v3 }
0x1982   : > { %10576 = vmatmul.mubr.msk.bf16.gmra.mrb[204].mxu0 %vm1346_vm0, %v7255_v31  ;;  %v9580_v31 = vld [vmem:[%s12701_s7 + $0x378] sm:$0xff] }
0x1a3c   : > { %v10565_v13 = vpop.f32.mrb[192].mxu0 }
0x1a3d   : > { %v7331_v12 = vpop.f32.mrb[193].mxu0  ;;  %v7340_v38 = vadd.f32 %v10565_v13, %v9567_v44  ;;  %v9577_v13 = vld [vmem:[%s12701_s7 + $0x360] sm:$0xff] }
0x1a3e   : > { %v10566_v19 = vpop.f32.mrb[194].mxu0  ;;  %v7332_v40 = vadd.f32 %v9565_v56, %v7331_v12 }
0x1a3f   : > { %v7343_v8 = vadd.f32 %v10566_v19, %v9568_v23  ;;  %v7334_v39 = vpop.f32.mrb[195].mxu0  ;;  %v9578_v23 = vld [vmem:[%s12701_s7 + $0x368] sm:$0xff] }
0x1a40   : > { %v7335_v43 = vadd.f32 %v9566_v41, %v7334_v39 }
0x1a41   : > { %v7395_v55 = vpack.c.bf16 %v7343_v8, %v7340_v38 }
0x1a42   : > { %v7394_v35 = vpack.c.bf16 %v7335_v43, %v7332_v40 }
0x1a44   : > { %v10569_v59 = vpop.f32.mrb[196].mxu0  ;;  %10587 = vmatprep.mubr.msk.bf16.mxu1 %vm1552_vm1, %v7394_v35 }
0x1a45   : > { %v7347_v20 = vpop.f32.mrb[197].mxu0  ;;  %10588 = vmatmul.mubr.msk.bf16.vlgmr.msra.gmra.mrb[192].mxu1 %vm1552_vm1, %v7395_v55  ;;  %v7356_v5 = vadd.f32 %v10569_v59, %v9571_v37  ;;  %v11906_v55 = vld [vmem:[%s17091_s5 + $0x10] sm:$0xff]  ;;  %v11907_v59 = vld [vmem:[%s17091_s5] sm:$0xff] }
0x1a46   : > { %v10570_v18 = vpop.f32.mrb[198].mxu0  ;;  %10628 = vmatpush3.bf16.msra.mxu1 %v16059_v29  ;;  %v7348_v34 = vadd.f32 %v9569_v7, %v7347_v20  ;;  %v11904_v29 = vld [vmem:[%s17090_s4 + $0x50] sm:$0xff]  }
0x1a47   : > { %v7359_v6 = vadd.f32 %v10570_v18, %v9572_v10  ;;  %v7350_v0 = vpop.f32.mrb[199].mxu0  ;;  %10629 = vmatprep.subr.bf16.mxu1 %v11903_v21 }
0x1a48   : > { %v7351_v22 = vadd.f32 %v9570_v47, %v7350_v0  ;;  %v11908_v47 = vld [vmem:[%s17091_s5 + $0x18] sm:$0xff]  ;;  %v11909_v0 = vld [vmem:[%s17091_s5 + $0x8] sm:$0xff] }
0x1a49   : > { %v7397_v54 = vpack.c.bf16 %v7359_v6, %v7356_v5 }
0x1a4a   : > { %v7396_v51 = vpack.c.bf16 %v7351_v22, %v7348_v34  ;;  %10630 = vmatpush3.bf16.msra.mxu1 %v11903_v21 }
0x1a4b   : > { %10631 = vmatprep.subr.bf16.mxu1 %v11904_v29 }
0x1a4c   : > { %10591 = vmatprep.mubr.msk.bf16.mxu1 %vm1552_vm1, %v7396_v51  ;;  %v11910_v51 = vld [vmem:[%s17091_s5 + $0x30] sm:$0xff] }
0x1a4d   : > { %v10573_v11 = vpop.f32.mrb[200].mxu0  ;;  %10592 = vmatmul.mubr.msk.bf16.gmra.mrb[196].mxu1 %vm1552_vm1, %v7397_v54 }
0x1a4e   : > { %v7363_v48 = vpop.f32.mrb[201].mxu0  ;;  %10632 = vmatpush3.bf16.msra.mxu1 %v11904_v29  ;;  %v7372_v32 = vadd.f32 %v10573_v11, %v9575_v28  ;;  %v11911_v11 = vld [vmem:[%s17091_s5 + $0x20] sm:$0xff] }
0x1a4f   : > { %v10574_v14 = vpop.f32.mrb[202].mxu0  ;;  %10633 = vmatprep.subr.bf16.mxu1 %v11905_v26  ;;  %v7364_v46 = vadd.f32 %v9573_v33, %v7363_v48 }
0x1a50   : > { %v7375_v27 = vadd.f32 %v10574_v14, %v9576_v50  ;;  %v7366_v36 = vpop.f32.mrb[203].mxu0 }
0x1a51   : > { %v7367_v57 = vadd.f32 %v9574_v4, %v7366_v36  ;;  %v11912_v4 = vld [vmem:[%s17091_s5 + $0x38] sm:$0xff] }
0x1a52   : > { %v7399_v9 = vpack.c.bf16 %v7375_v27, %v7372_v32  ;;  %10634 = vmatpush3.bf16.msra.mxu1 %v11905_v26  ;;  %v11913_v27 = vld [vmem:[%s17091_s5 + $0x28] sm:$0xff] }
0x1a53   : > { %v7398_v52 = vpack.c.bf16 %v7367_v57, %v7364_v46 }
0x1a55   : > { %v10577_v53 = vpop.f32.mrb[204].mxu0  ;;  %10595 = vmatprep.mubr.msk.bf16.mxu1 %vm1552_vm1, %v7398_v52 }
0x1a56   : > { %v7379_v44 = vpop.f32.mrb[205].mxu0  ;;  %10596 = vmatmul.mubr.msk.bf16.gmra.mrb[200].mxu1 %vm1552_vm1, %v7399_v9  ;;  %v7388_v56 = vadd.f32 %v10577_v53, %v9579_v15 }
0x1a57   : > { %v10578_v12 = vpop.f32.mrb[206].mxu0  ;;  %v7380_v38 = vadd.f32 %v9577_v13, %v7379_v44 }
0x1a58   : > { %v7391_v41 = vadd.f32 %v10578_v12, %v9580_v31  ;;  %v7382_v19 = vpop.f32.mrb[207].mxu0  ;;  %v11914_v12 = vld [vmem:[%s17091_s5 + $0x50] sm:$0xff] }
0x1a59   : > { %v7383_v8 = vadd.f32 %v9578_v23, %v7382_v19 }
0x1a5a   : > { %v7401_v39 = vpack.c.bf16 %v7391_v41, %v7388_v56 }
0x1a5b   : > { %v7400_v40 = vpack.c.bf16 %v7383_v8, %v7380_v38  ;;  %v11915_v38 = vld [vmem:[%s17091_s5 + $0x40] sm:$0xff] }
0x1a5d   : > { %10599 = vmatprep.mubr.msk.bf16.mxu1 %vm1552_vm1, %v7400_v40 }
0x1a5e   : > { %10600 = vmatmul.mubr.msk.bf16.gmra.mrb[204].mxu1 %vm1552_vm1, %v7401_v39 }
0x1b18   : > { %v10589_v43 = vpop.f32.mrb[192].mxu1 }
0x1b19   : > { %v16367_v35 = vadd.f32 %v11906_v55, %v10589_v43  ;;  %v7460_v37 = vpop.f32.mrb[193].mxu1  ;;  %v11916_v43 = vld [vmem:[%s17091_s5 + $0x58] sm:$0xff] }
0x1b1a   : > { %v16372_v10 = vadd.f32 %v11907_v59, %v7460_v37  ;;  %v10590_v20 = vpop.f32.mrb[194].mxu1 }
0x1b1b   : > { %v9599_v7 = vmul.f32 -1.442695, %v16367_v35  ;;  %v16378_v18 = vadd.f32 %v11908_v47, %v10590_v20  ;;  %v7463_v5 = vpop.f32.mrb[195].mxu1  ;;  %v11917_v20 = vld [vmem:[%s17091_s5 + $0x48] sm:$0xff] }
0x1b1c   : > { %v9597_v6 = vmul.f32 -1.442695, %v16372_v10  ;;  %v16384_v21 = vadd.f32 %v11909_v0, %v7463_v5 }
0x1b1d   : > { %11462 = vpow2.f32 %v9599_v7  ;;  %v9600_v34 = vmul.f32 -1.442695, %v16378_v18 }
0x1b1e   : > { %11464 = vpow2.f32 %v9597_v6  ;;  %v9598_v22 = vmul.f32 -1.442695, %v16384_v21 }
0x1b1f   : > { %11466 = vpow2.f32 %v9600_v34 }
0x1b20   : > { %11468 = vpow2.f32 %v9598_v22  ;;  %v10593_v54 = vpop.f32.mrb[196].mxu1 }
0x1b21   : > { %v16391_v29 = vadd.f32 %v11910_v51, %v10593_v54  ;;  %v7476_v28 = vpop.f32.mrb[197].mxu1 }
0x1b22   : > { %v16396_v50 = vadd.f32 %v11911_v11, %v7476_v28  ;;  %v10594_v48 = vpop.f32.mrb[198].mxu1 }
0x1b23   : > { %v9603_v33 = vmul.f32 -1.442695, %v16391_v29  ;;  %v16402_v14 = vadd.f32 %v11912_v4, %v10594_v48  ;;  %v7479_v26 = vpop.f32.mrb[199].mxu1  ;;  %v11918_v48 = vld [vmem:[%s17091_s5 + $0x70] sm:$0xff] }
0x1b24   : > { %v9601_v32 = vmul.f32 -1.442695, %v16396_v50  ;;  %v16408_v36 = vadd.f32 %v11913_v27, %v7479_v26 }
0x1b25   : > { %11470 = vpow2.f32 %v9603_v33  ;;  %v9604_v46 = vmul.f32 -1.442695, %v16402_v14 }
0x1b26   : > { %11472 = vpow2.f32 %v9601_v32  ;;  %v9602_v57 = vmul.f32 -1.442695, %v16408_v36  ;;  %v11919_v32 = vld [vmem:[%s17091_s5 + $0x60] sm:$0xff] }
0x1b27   : > { %v11463_v9 = vpop.eup %11462  ;;  %11474 = vpow2.f32 %v9604_v46 }
0x1b28   : > { %v11465_v52 = vpop.eup %11464  ;;  %v7573_v15 = vadd.f32 1.0, %v11463_v9  ;;  %11476 = vpow2.f32 %v9602_v57 }
0x1b29   : > { %v11467_v53 = vpop.eup %11466  ;;  %v7571_v31 = vadd.f32 1.0, %v11465_v52  ;;  %v10597_v44 = vpop.f32.mrb[200].mxu1  ;;  %v11920_v52 = vld [vmem:[%s17091_s5 + $0x78] sm:$0xff] }
0x1b2a   : > { %v11469_v13 = vpop.eup %11468  ;;  %11478 = vrcp.f32 %v7573_v15  ;;  %v7574_v23 = vadd.f32 1.0, %v11467_v53  ;;  %v16415_v56 = vadd.f32 %v11914_v12, %v10597_v44  ;;  %v7492_v41 = vpop.f32.mrb[201].mxu1 }
0x1b2b   : > { %11480 = vrcp.f32 %v7571_v31  ;;  %v7572_v19 = vadd.f32 1.0, %v11469_v13  ;;  %v16420_v8 = vadd.f32 %v11915_v38, %v7492_v41  ;;  %v10598_v39 = vpop.f32.mrb[202].mxu1  ;;  %v11921_v13 = vld [vmem:[%s17091_s5 + $0x68] sm:$0xff] }
0x1b2c   : > { %11482 = vrcp.f32 %v7574_v23  ;;  %v9607_v40 = vmul.f32 -1.442695, %v16415_v56  ;;  %v16426_v55 = vadd.f32 %v11916_v43, %v10598_v39  ;;  %v7495_v37 = vpop.f32.mrb[203].mxu1 }
0x1b2d   : > { %11484 = vrcp.f32 %v7572_v19  ;;  %v9605_v59 = vmul.f32 -1.442695, %v16420_v8  ;;  %v16432_v7 = vadd.f32 %v11917_v20, %v7495_v37 }
0x1b2e   : > { %11486 = vpow2.f32 %v9607_v40  ;;  %v9608_v47 = vmul.f32 -1.442695, %v16426_v55 }
0x1b2f   : > { %v11471_v5 = vpop.eup %11470  ;;  %11488 = vpow2.f32 %v9605_v59  ;;  %v9606_v6 = vmul.f32 -1.442695, %v16432_v7 }
0x1b30   : > { %v11473_v0 = vpop.eup %11472  ;;  %v7577_v34 = vadd.f32 1.0, %v11471_v5  ;;  %11490 = vpow2.f32 %v9608_v47 }
0x1b31   : > { %v11475_v22 = vpop.eup %11474  ;;  %v7575_v54 = vadd.f32 1.0, %v11473_v0  ;;  %11492 = vpow2.f32 %v9606_v6  ;;  %v10601_v51 = vpop.f32.mrb[204].mxu1 }
0x1b32   : > { %v11477_v28 = vpop.eup %11476  ;;  %11494 = vrcp.f32 %v7577_v34  ;;  %v7578_v11 = vadd.f32 1.0, %v11475_v22  ;;  %v16439_v33 = vadd.f32 %v11918_v48, %v10601_v51  ;;  %v7508_v4 = vpop.f32.mrb[205].mxu1 }
0x1b33   : > { %11496 = vrcp.f32 %v7575_v54  ;;  %v7576_v26 = vadd.f32 1.0, %v11477_v28  ;;  %v16444_v27 = vadd.f32 %v11919_v32, %v7508_v4  ;;  %v10602_v46 = vpop.f32.mrb[206].mxu1 }
0x1b34   : > { %v11479_v57 = vpop.eup %11478  ;;  %11498 = vrcp.f32 %v7578_v11  ;;  %v9611_v9 = vmul.f32 -1.442695, %v16439_v33  ;;  %v16450_v15 = vadd.f32 %v11920_v52, %v10602_v46  ;;  %v7511_v53 = vpop.f32.mrb[207].mxu1 }
0x1b35   : > { %v11481_v31 = vpop.eup %11480  ;;  %11500 = vrcp.f32 %v7576_v26  ;;  %v9609_v44 = vmul.f32 -1.442695, %v16444_v27  ;;  %v16456_v23 = vadd.f32 %v11921_v13, %v7511_v53  ;;  %v7621_v38 = vmul.f32 %v11479_v57, %v16367_v35 }
0x1b36   : > { %v11483_v12 = vpop.eup %11482  ;;  %11502 = vpow2.f32 %v9611_v9  ;;  %v9612_v41 = vmul.f32 -1.442695, %v16450_v15  ;;  %v7619_v37 = vmul.f32 %v11481_v31, %v16372_v10 }
0x1b37   : > { %v11485_v19 = vpop.eup %11484  ;;  %v7622_v39 = vmul.f32 %v11483_v12, %v16378_v18  ;;  %11504 = vpow2.f32 %v9609_v44  ;;  %v9610_v40 = vmul.f32 -1.442695, %v16456_v23 }
0x1b38   : > { %v11487_v43 = vpop.eup %11486  ;;  %v7620_v59 = vmul.f32 %v11485_v19, %v16384_v21  ;;  %11506 = vpow2.f32 %v9612_v41 }
0x1b39   : > { %v11489_v20 = vpop.eup %11488  ;;  %v7636_v47 = vpack.c.bf16 %v7622_v39, %v7621_v38  ;;  %v7581_v5 = vadd.f32 1.0, %v11487_v43  ;;  %11508 = vpow2.f32 %v9610_v40 }
0x1b3a   : > { %v11491_v6 = vpop.eup %11490  ;;  %v7635_v0 = vpack.c.bf16 %v7620_v59, %v7619_v37  ;;  %v7579_v34 = vadd.f32 1.0, %v11489_v20 }
0x1b3b   : > { %v11493_v22 = vpop.eup %11492  ;;  %11510 = vrcp.f32 %v7581_v5  ;;  %v7582_v35 = vadd.f32 1.0, %v11491_v6  ;;  %v9645_v6 = vld [vmem:[%s12898_s21 + $0x300] sm:$0xff] }
0x1b3c   : > { %v11495_v18 = vpop.eup %11494  ;;  %11512 = vrcp.f32 %v7579_v34  ;;  %v7580_v54 = vadd.f32 1.0, %v11493_v22  ;;  %10611 = vmatprep.mubr.msk.bf16.mxu0 %vm1552_vm1, %v7635_v0  ;;  %v9646_v0 = vld [vmem:[%s12898_s21 + $0x308] sm:$0xff]  ;;  %8054 = vrot.lane.b32.xlu0 %v9645_v6, %s11978_s8  ;;  %v9651_v34 = vld [vmem:[%s12898_s21 + $0x330] sm:$0xff]  ;;  %v9652_v22 = vld [vmem:[%s12898_s21 + $0x338] sm:$0xff] }
0x1b3d   : > { %v11497_v51 = vpop.eup %11496  ;;  %11514 = vrcp.f32 %v7582_v35  ;;  %10612 = vmatmul.mubr.msk.bf16.vlgmr.msra.gmra.mrb[208].mxu0 %vm1552_vm1, %v7636_v47  ;;  %v7625_v28 = vmul.f32 %v11495_v18, %v16391_v29  ;;  %8056 = vrot.lane.b32.xlu1 %v9646_v0, %s11978_s8  ;;  %v9653_v35 = vld [vmem:[%s12898_s21 + $0x340] sm:$0xff]  ;;  %v9654_v18 = vld [vmem:[%s12898_s21 + $0x348] sm:$0xff] }
0x1b3e   : > { %v11499_v10 = vpop.eup %11498  ;;  %11516 = vrcp.f32 %v7580_v54  ;;  %v7623_v4 = vmul.f32 %v11497_v51, %v16396_v50  ;;  %v9655_v54 = vld [vmem:[%s12898_s21 + $0x350] sm:$0xff]  ;;  %v9656_v51 = vld [vmem:[%s12898_s21 + $0x358] sm:$0xff] }
0x1b3f   : > { %v11501_v21 = vpop.eup %11500  ;;  %v7626_v11 = vmul.f32 %v11499_v10, %v16402_v14  ;;  %v9657_v10 = vld [vmem:[%s12898_s21 + $0x360] sm:$0xff] }
0x1b40   : > { %v11503_v48 = vpop.eup %11502  ;;  %v7624_v26 = vmul.f32 %v11501_v21, %v16408_v36  ;;  %v9658_v21 = vld [vmem:[%s12898_s21 + $0x368] sm:$0xff] }
0x1b41   : > { %v11505_v32 = vpop.eup %11504  ;;  %v7638_v46 = vpack.c.bf16 %v7626_v11, %v7625_v28  ;;  %v7585_v57 = vadd.f32 1.0, %v11503_v48  ;;  %v9659_v28 = vld [vmem:[%s12898_s21 + $0x370] sm:$0xff]  ;;  %v9660_v11 = vld [vmem:[%s12898_s21 + $0x378] sm:$0xff] }
0x1b42   : > { %v11507_v9 = vpop.eup %11506  ;;  %v7637_v52 = vpack.c.bf16 %v7624_v26, %v7623_v4  ;;  %v7583_v53 = vadd.f32 1.0, %v11505_v32  ;;  %v11922_v4 = vld [vmem:[%s17091_s5 + $0x90] sm:$0xff] }
0x1b43   : > { %v11509_v31 = vpop.eup %11508  ;;  %11518 = vrcp.f32 %v7585_v57  ;;  %v7586_v44 = vadd.f32 1.0, %v11507_v9 }
0x1b44   : > { %11520 = vrcp.f32 %v7583_v53  ;;  %v7584_v13 = vadd.f32 1.0, %v11509_v31  ;;  %10615 = vmatprep.mubr.msk.bf16.mxu0 %vm1552_vm1, %v7637_v52  ;;  %v11924_v53 = vld [vmem:[%s17091_s5 + $0x98] sm:$0xff] }
0x1b45   : > { %v11511_v29 = vpop.eup %11510  ;;  %11522 = vrcp.f32 %v7586_v44  ;;  %10616 = vmatmul.mubr.msk.bf16.gmra.mrb[212].mxu0 %vm1552_vm1, %v7638_v46  ;;  %v11923_v46 = vld [vmem:[%s17091_s5 + $0x80] sm:$0xff] }
0x1b46   : > { %v11513_v50 = vpop.eup %11512  ;;  %11524 = vrcp.f32 %v7584_v13  ;;  %v7629_v12 = vmul.f32 %v11511_v29, %v16415_v56  ;;  %v11925_v29 = vld [vmem:[%s17091_s5 + $0x88] sm:$0xff] }
0x1b47   : > { %v11515_v14 = vpop.eup %11514  ;;  %v7627_v19 = vmul.f32 %v11513_v50, %v16420_v8 }
0x1b48   : > { %v11517_v36 = vpop.eup %11516  ;;  %v7630_v41 = vmul.f32 %v11515_v14, %v16426_v55 }
0x1b49   : > { %v7628_v38 = vmul.f32 %v11517_v36, %v16432_v7 }
0x1b4a   : > { %v7640_v39 = vpack.c.bf16 %v7630_v41, %v7629_v12  ;;  %v11926_v41 = vld [vmem:[%s17091_s5 + $0xb0] sm:$0xff] }
0x1b4b   : > { %v7639_v40 = vpack.c.bf16 %v7628_v38, %v7627_v19 }
0x1b4d   : > { %v11519_v43 = vpop.eup %11518  ;;  %10619 = vmatprep.mubr.msk.bf16.mxu0 %vm1552_vm1, %v7639_v40 }
0x1b4e   : > { %v11521_v37 = vpop.eup %11520  ;;  %10620 = vmatmul.mubr.msk.bf16.gmra.mrb[216].mxu0 %vm1552_vm1, %v7640_v39  ;;  %v7633_v55 = vmul.f32 %v11519_v43, %v16439_v33  ;;  %v9647_v33 = vld [vmem:[%s12898_s21 + $0x310] sm:$0xff]  ;;  %v11927_v39 = vld [vmem:[%s17091_s5 + $0xa0] sm:$0xff] }
0x1b4f   : > { %v11523_v59 = vpop.eup %11522  ;;  %v7631_v7 = vmul.f32 %v11521_v37, %v16444_v27  ;;  %v9648_v27 = vld [vmem:[%s12898_s21 + $0x318] sm:$0xff]  ;;  %8058 = vrot.lane.b32.xlu0 %v9647_v33, %s11978_s8 }
0x1b50   : > { %v11525_v56 = vpop.eup %11524  ;;  %v7634_v8 = vmul.f32 %v11523_v59, %v16450_v15  ;;  %8060 = vrot.lane.b32.xlu1 %v9648_v27, %s11978_s8  ;;  %v9649_v15 = vld [vmem:[%s12898_s21 + $0x320] sm:$0xff]  ;;  %v11928_v59 = vld [vmem:[%s17091_s5 + $0xb8] sm:$0xff] }
0x1b51   : > { %v7632_v20 = vmul.f32 %v11525_v56, %v16456_v23  ;;  %v9650_v23 = vld [vmem:[%s12898_s21 + $0x328] sm:$0xff] }
0x1b52   : > { %v7642_v47 = vpack.c.bf16 %v7634_v8, %v7633_v55 }
0x1b53   : > { %v7641_v5 = vpack.c.bf16 %v7632_v20, %v7631_v7  ;;  %8062 = vrot.lane.b32.xlu0 %v9649_v15, %s11978_s8  ;;  %v11929_v7 = vld [vmem:[%s17091_s5 + $0xa8] sm:$0xff] }
0x1b54   : > { %8064 = vrot.lane.b32.xlu1 %v9650_v23, %s11978_s8 }
0x1b55   : > { %10623 = vmatprep.mubr.msk.bf16.mxu0 %vm1552_vm1, %v7641_v5 }
0x1b56   : > { %10624 = vmatmul.mubr.msk.bf16.gmra.mrb[220].mxu0 %vm1552_vm1, %v7642_v47 }
0x1b57   : > { %8066 = vrot.lane.b32.xlu0 %v9651_v34, %s11978_s8 }
0x1b58   : > { %8068 = vrot.lane.b32.xlu1 %v9652_v22, %s11978_s8 }
0x1b5b   : > { %8070 = vrot.lane.b32.xlu0 %v9653_v35, %s11978_s8  ;;  %v11930_v35 = vld [vmem:[%s17091_s5 + $0xd0] sm:$0xff] }
0x1b5c   : > { %8072 = vrot.lane.b32.xlu1 %v9654_v18, %s11978_s8 }
0x1b5f   : > { %8074 = vrot.lane.b32.xlu0 %v9655_v54, %s11978_s8 }
0x1b60   : > { %8076 = vrot.lane.b32.xlu1 %v9656_v51, %s11978_s8 }
0x1b63   : > { %8078 = vrot.lane.b32.xlu0 %v9657_v10, %s11978_s8  ;;  %v11931_v10 = vld [vmem:[%s17091_s5 + $0xc0] sm:$0xff] }
0x1b64   : > { %8080 = vrot.lane.b32.xlu1 %v9658_v21, %s11978_s8 }
0x1b67   : > { %8082 = vrot.lane.b32.xlu0 %v9659_v28, %s11978_s8 }
0x1b68   : > { %8084 = vrot.lane.b32.xlu1 %v9660_v11, %s11978_s8 }
0x1c10   : > { %v10613_v48 = vpop.f32.mrb[208].mxu0 }
0x1c11   : > { %v16519_v26 = vadd.f32 %v11922_v4, %v10613_v48  ;;  %v7701_v32 = vpop.f32.mrb[209].mxu0  ;;  %v11932_v48 = vld [vmem:[%s17091_s5 + $0xd8] sm:$0xff] }
0x1c12   : > { %v16524_v57 = vadd.f32 %v11923_v46, %v7701_v32  ;;  %v10614_v9 = vpop.f32.mrb[210].mxu0 }
0x1c13   : > { %v9623_v52 = vmul.f32 -1.442695, %v16519_v26  ;;  %v16530_v31 = vadd.f32 %v11924_v53, %v10614_v9  ;;  %v7704_v44 = vpop.f32.mrb[211].mxu0  ;;  %v11933_v9 = vld [vmem:[%s17091_s5 + $0xc8] sm:$0xff] }
0x1c14   : > { %v9621_v13 = vmul.f32 -1.442695, %v16524_v57  ;;  %v16536_v50 = vadd.f32 %v11925_v29, %v7704_v44 }
0x1c15   : > { %11526 = vpow2.f32 %v9623_v52  ;;  %v9624_v14 = vmul.f32 -1.442695, %v16530_v31 }
0x1c16   : > { %11528 = vpow2.f32 %v9621_v13  ;;  %v9622_v36 = vmul.f32 -1.442695, %v16536_v50 }
0x1c17   : > { %11530 = vpow2.f32 %v9624_v14 }
0x1c18   : > { %11532 = vpow2.f32 %v9622_v36  ;;  %v10617_v12 = vpop.f32.mrb[212].mxu0 }
0x1c19   : > { %v16543_v19 = vadd.f32 %v11926_v41, %v10617_v12  ;;  %v7717_v38 = vpop.f32.mrb[213].mxu0 }
0x1c1a   : > { %v16548_v40 = vadd.f32 %v11927_v39, %v7717_v38  ;;  %v10618_v43 = vpop.f32.mrb[214].mxu0 }
0x1c1b   : > { %v9627_v37 = vmul.f32 -1.442695, %v16543_v19  ;;  %v16554_v56 = vadd.f32 %v11928_v59, %v10618_v43  ;;  %v7720_v55 = vpop.f32.mrb[215].mxu0  ;;  %v11934_v43 = vld [vmem:[%s17091_s5 + $0xf0] sm:$0xff] }
0x1c1c   : > { %v9625_v8 = vmul.f32 -1.442695, %v16548_v40  ;;  %v16560_v20 = vadd.f32 %v11929_v7, %v7720_v55 }
0x1c1d   : > { %11534 = vpow2.f32 %v9627_v37  ;;  %v9628_v47 = vmul.f32 -1.442695, %v16554_v56 }
0x1c1e   : > { %11536 = vpow2.f32 %v9625_v8  ;;  %v9626_v5 = vmul.f32 -1.442695, %v16560_v20  ;;  %v11935_v8 = vld [vmem:[%s17091_s5 + $0xe0] sm:$0xff] }
0x1c1f   : > { %v11527_v6 = vpop.eup %11526  ;;  %11538 = vpow2.f32 %v9628_v47 }
0x1c20   : > { %v11529_v0 = vpop.eup %11528  ;;  %v7814_v33 = vadd.f32 1.0, %v11527_v6  ;;  %11540 = vpow2.f32 %v9626_v5 }
0x1c21   : > { %v11531_v27 = vpop.eup %11530  ;;  %v7812_v15 = vadd.f32 1.0, %v11529_v0  ;;  %v10621_v23 = vpop.f32.mrb[216].mxu0  ;;  %v11936_v0 = vld [vmem:[%s17091_s5 + $0xf8] sm:$0xff] }
0x1c22   : > { %v11533_v34 = vpop.eup %11532  ;;  %11542 = vrcp.f32 %v7814_v33  ;;  %v7815_v22 = vadd.f32 1.0, %v11531_v27  ;;  %v16567_v18 = vadd.f32 %v11930_v35, %v10621_v23  ;;  %v7733_v54 = vpop.f32.mrb[217].mxu0 }
0x1c23   : > { %11544 = vrcp.f32 %v7812_v15  ;;  %v7813_v51 = vadd.f32 1.0, %v11533_v34  ;;  %v16572_v21 = vadd.f32 %v11931_v10, %v7733_v54  ;;  %v10622_v28 = vpop.f32.mrb[218].mxu0  ;;  %v11937_v34 = vld [vmem:[%s17091_s5 + $0xe8] sm:$0xff] }
0x1c24   : > { %11546 = vrcp.f32 %v7815_v22  ;;  %v9631_v11 = vmul.f32 -1.442695, %v16567_v18  ;;  %v16578_v4 = vadd.f32 %v11932_v48, %v10622_v28  ;;  %v7736_v32 = vpop.f32.mrb[219].mxu0 }
0x1c25   : > { %11548 = vrcp.f32 %v7813_v51  ;;  %v9629_v46 = vmul.f32 -1.442695, %v16572_v21  ;;  %v16584_v52 = vadd.f32 %v11933_v9, %v7736_v32 }
0x1c26   : > { %11550 = vpow2.f32 %v9631_v11  ;;  %v9632_v53 = vmul.f32 -1.442695, %v16578_v4 }
0x1c27   : > { %v11535_v44 = vpop.eup %11534  ;;  %11552 = vpow2.f32 %v9629_v46  ;;  %v9630_v13 = vmul.f32 -1.442695, %v16584_v52 }
0x1c28   : > { %v11537_v29 = vpop.eup %11536  ;;  %v7818_v14 = vadd.f32 1.0, %v11535_v44  ;;  %11554 = vpow2.f32 %v9632_v53 }
0x1c29   : > { %v11539_v36 = vpop.eup %11538  ;;  %v7816_v12 = vadd.f32 1.0, %v11537_v29  ;;  %11556 = vpow2.f32 %v9630_v13  ;;  %v10625_v41 = vpop.f32.mrb[220].mxu0 }
0x1c2a   : > { %v11541_v38 = vpop.eup %11540  ;;  %11558 = vrcp.f32 %v7818_v14  ;;  %v7819_v39 = vadd.f32 1.0, %v11539_v36  ;;  %v16591_v37 = vadd.f32 %v11934_v43, %v10625_v41  ;;  %v7749_v59 = vpop.f32.mrb[221].mxu0 }
0x1c2b   : > { %11560 = vrcp.f32 %v7816_v12  ;;  %v7817_v55 = vadd.f32 1.0, %v11541_v38  ;;  %v16596_v7 = vadd.f32 %v11935_v8, %v7749_v59  ;;  %v10626_v47 = vpop.f32.mrb[222].mxu0 }
0x1c2c   : > { %v11543_v5 = vpop.eup %11542  ;;  %11562 = vrcp.f32 %v7819_v39  ;;  %v9635_v6 = vmul.f32 -1.442695, %v16591_v37  ;;  %v16602_v33 = vadd.f32 %v11936_v0, %v10626_v47  ;;  %v7752_v27 = vpop.f32.mrb[223].mxu0 }
0x1c2d   : > { %v11545_v15 = vpop.eup %11544  ;;  %11564 = vrcp.f32 %v7817_v55  ;;  %v9633_v23 = vmul.f32 -1.442695, %v16596_v7  ;;  %v16608_v22 = vadd.f32 %v11937_v34, %v7752_v27  ;;  %v7862_v10 = vmul.f32 %v11543_v5, %v16519_v26 }
0x1c2e   : > { %v11547_v35 = vpop.eup %11546  ;;  %11566 = vpow2.f32 %v9635_v6  ;;  %v9636_v54 = vmul.f32 -1.442695, %v16602_v33  ;;  %v7860_v32 = vmul.f32 %v11545_v15, %v16524_v57 }
0x1c2f   : > { %v11549_v51 = vpop.eup %11548  ;;  %v7863_v28 = vmul.f32 %v11547_v35, %v16530_v31  ;;  %11568 = vpow2.f32 %v9633_v23  ;;  %v9634_v11 = vmul.f32 -1.442695, %v16608_v22 }
0x1c30   : > { %v11551_v48 = vpop.eup %11550  ;;  %v7861_v46 = vmul.f32 %v11549_v51, %v16536_v50  ;;  %11570 = vpow2.f32 %v9636_v54 }
0x1c31   : > { %v11553_v9 = vpop.eup %11552  ;;  %v7877_v53 = vpack.c.bf16 %v7863_v28, %v7862_v10  ;;  %v7822_v44 = vadd.f32 1.0, %v11551_v48  ;;  %11572 = vpow2.f32 %v9634_v11 }
0x1c32   : > { %v11555_v13 = vpop.eup %11554  ;;  %v7876_v29 = vpack.c.bf16 %v7861_v46, %v7860_v32  ;;  %v7820_v14 = vadd.f32 1.0, %v11553_v9 }
0x1c33   : > { %v11557_v36 = vpop.eup %11556  ;;  %11574 = vrcp.f32 %v7822_v44  ;;  %v7823_v26 = vadd.f32 1.0, %v11555_v13  ;;  %v8055_v13 = vpop.permute.xlu0 %8054 }
0x1c34   : > { %v11559_v31 = vpop.eup %11558  ;;  %11576 = vrcp.f32 %v7820_v14  ;;  %v7821_v12 = vadd.f32 1.0, %v11557_v36  ;;  %10635 = vmatprep.mubr.msk.bf16.mxu1 %vm1552_vm1, %v7876_v29  ;;  %v8057_v29 = vpop.permute.xlu1 %8056 }
0x1c35   : > { %v11561_v41 = vpop.eup %11560  ;;  %11578 = vrcp.f32 %v7823_v26  ;;  %10636 = vmatmul.mubr.msk.bf16.vlgmr.msra.gmra.mrb[208].mxu1 %vm1552_vm1, %v7877_v53  ;;  %v7866_v38 = vmul.f32 %v11559_v31, %v16543_v19 }
0x1c36   : > { %v11563_v57 = vpop.eup %11562  ;;  %11580 = vrcp.f32 %v7821_v12  ;;  %v7864_v59 = vmul.f32 %v11561_v41, %v16548_v40  ;;  %v11939_v41 = vld [vmem:[%s17091_s5 + $0x100] sm:$0xff] }
0x1c37   : > { %v11565_v50 = vpop.eup %11564  ;;  %v7867_v39 = vmul.f32 %v11563_v57, %v16554_v56  ;;  %v8059_v14 = vpop.permute.xlu0 %8058 }
0x1c38   : > { %v11567_v43 = vpop.eup %11566  ;;  %v7865_v55 = vmul.f32 %v11565_v50, %v16560_v20  ;;  %v8061_v36 = vpop.permute.xlu1 %8060 }
0x1c39   : > { %v11569_v8 = vpop.eup %11568  ;;  %v7879_v47 = vpack.c.bf16 %v7867_v39, %v7866_v38  ;;  %v7826_v5 = vadd.f32 1.0, %v11567_v43  ;;  %v11940_v38 = vld [vmem:[%s17091_s5 + $0x118] sm:$0xff] }
0x1c3a   : > { %v11571_v6 = vpop.eup %11570  ;;  %v7878_v0 = vpack.c.bf16 %v7865_v55, %v7864_v59  ;;  %v7824_v27 = vadd.f32 1.0, %v11569_v8  ;;  %v11941_v59 = vld [vmem:[%s17091_s5 + $0x108] sm:$0xff] }
0x1c3b   : > { %v11573_v15 = vpop.eup %11572  ;;  %11582 = vrcp.f32 %v7826_v5  ;;  %v7827_v23 = vadd.f32 1.0, %v11571_v6  ;;  %v8063_v26 = vpop.permute.xlu0 %8062 }
0x1c3c   : > { %11584 = vrcp.f32 %v7824_v27  ;;  %v7825_v34 = vadd.f32 1.0, %v11573_v15  ;;  %10639 = vmatprep.mubr.msk.bf16.mxu1 %vm1552_vm1, %v7878_v0  ;;  %v11942_v15 = vld [vmem:[%s17091_s5 + $0x130] sm:$0xff] }
0x1c3d   : > { %v11575_v19 = vpop.eup %11574  ;;  %11586 = vrcp.f32 %v7827_v23  ;;  %10640 = vmatmul.mubr.msk.bf16.gmra.mrb[212].mxu1 %vm1552_vm1, %v7879_v47 }
0x1c3e   : > { %v11577_v40 = vpop.eup %11576  ;;  %11588 = vrcp.f32 %v7825_v34  ;;  %v7870_v35 = vmul.f32 %v11575_v19, %v16567_v18 }
0x1c3f   : > { %v11579_v56 = vpop.eup %11578  ;;  %v7868_v51 = vmul.f32 %v11577_v40, %v16572_v21  ;;  %v8067_v47 = vpop.permute.xlu0 %8066  ;;  %v11943_v40 = vld [vmem:[%s17091_s5 + $0x120] sm:$0xff] }
0x1c40   : > { %v11581_v20 = vpop.eup %11580  ;;  %v7871_v54 = vmul.f32 %v11579_v56, %v16578_v4 }
0x1c41   : > { %v7869_v10 = vmul.f32 %v11581_v20, %v16584_v52 }
0x1c42   : > { %v7881_v28 = vpack.c.bf16 %v7871_v54, %v7870_v35  ;;  %v11944_v35 = vld [vmem:[%s17091_s5 + $0x138] sm:$0xff] }
0x1c43   : > { %v7880_v11 = vpack.c.bf16 %v7869_v10, %v7868_v51  ;;  %v8071_v10 = vpop.permute.xlu0 %8070 }
0x1c45   : > { %v11583_v48 = vpop.eup %11582  ;;  %10643 = vmatprep.mubr.msk.bf16.mxu1 %vm1552_vm1, %v7880_v11 }
0x1c46   : > { %v11585_v32 = vpop.eup %11584  ;;  %10644 = vmatmul.mubr.msk.bf16.gmra.mrb[216].mxu1 %vm1552_vm1, %v7881_v28  ;;  %v7874_v53 = vmul.f32 %v11583_v48, %v16591_v37  ;;  %v11938_v37 = vld [vmem:[%s17091_s5 + $0x110] sm:$0xff]  ;;  %v11945_v28 = vld [vmem:[%s17091_s5 + $0x128] sm:$0xff] }
0x1c47   : > { %v11587_v46 = vpop.eup %11586  ;;  %v7872_v4 = vmul.f32 %v11585_v32, %v16596_v7 }
0x1c48   : > { %v11589_v9 = vpop.eup %11588  ;;  %v7875_v18 = vmul.f32 %v11587_v46, %v16602_v33 }
0x1c49   : > { %v7873_v21 = vmul.f32 %v11589_v9, %v16608_v22  ;;  %v8065_v22 = vpop.permute.xlu1 %8064 }
0x1c4a   : > { %v7883_v44 = vpack.c.bf16 %v7875_v18, %v7874_v53  ;;  %v8075_v18 = vpop.permute.xlu0 %8074 }
0x1c4b   : > { %v7882_v52 = vpack.c.bf16 %v7873_v21, %v7872_v4  ;;  %v11946_v4 = vld [vmem:[%s17091_s5 + $0x150] sm:$0xff] }
0x1c4d   : > { %10647 = vmatprep.mubr.msk.bf16.mxu1 %vm1552_vm1, %v7882_v52  ;;  %v8069_v6 = vpop.permute.xlu1 %8068 }
0x1c4e   : > { %10648 = vmatmul.mubr.msk.bf16.gmra.mrb[220].mxu1 %vm1552_vm1, %v7883_v44 }
0x1c51   : > { %v8073_v32 = vpop.permute.xlu1 %8072 }
0x1d08   : > { %v10637_v31 = vpop.f32.mrb[208].mxu1 }
0x1d09   : > { %v16639_v33 = vadd.f32 %v11938_v37, %v10637_v31  ;;  %v7942_v7 = vpop.f32.mrb[209].mxu1 }
0x1d0a   : > { %v10638_v12 = vpop.f32.mrb[210].mxu1  ;;  %v16644_v57 = vadd.f32 %v11939_v41, %v7942_v7  ;;  %v11949_v7 = vld [vmem:[%s17091_s5 + $0x148] sm:$0xff] }
0x1d0b   : > { %v8104_v50 = vmul.f32 %v8059_v14, %v16639_v33  ;;  %v16650_v39 = vadd.f32 %v11940_v38, %v10638_v12  ;;  %v7945_v43 = vpop.f32.mrb[211].mxu1 }
0x1d0c   : > { %v16655_v55 = vadd.f32 %v11941_v59, %v7945_v43  ;;  %v8102_v5 = vmul.f32 %v8055_v13, %v16644_v57  ;;  %v8077_v13 = vpop.permute.xlu1 %8076 }
0x1d0d   : > { %v8105_v8 = vmul.f32 %v8061_v36, %v16650_v39  ;;  %8138 = vrot.lane.b32.xlu0 %v8104_v50, %s11979_s27  ;;  %v8079_v50 = vpop.permute.xlu0 %8078 }
0x1d0e   : > { %v8103_v27 = vmul.f32 %v8057_v29, %v16655_v55  ;;  %v11947_v29 = vld [vmem:[%s17091_s5 + $0x140] sm:$0xff] }
0x1d0f   : > { %8140 = vrot.lane.b32.xlu1 %v8105_v8, %s11979_s27 }
0x1d10   : > { %v10641_v0 = vpop.f32.mrb[212].mxu1  ;;  %v8081_v59 = vpop.permute.xlu1 %8080 }
0x1d11   : > { %v16665_v23 = vadd.f32 %v11942_v15, %v10641_v0  ;;  %v7958_v34 = vpop.f32.mrb[213].mxu1  ;;  %8134 = vrot.lane.b32.xlu0 %v8102_v5, %s11979_s27 }
0x1d12   : > { %v10642_v19 = vpop.f32.mrb[214].mxu1  ;;  %v16671_v56 = vadd.f32 %v11943_v40, %v7958_v34 }
0x1d13   : > { %v8108_v20 = vmul.f32 %v8067_v47, %v16665_v23  ;;  %v16677_v54 = vadd.f32 %v11944_v35, %v10642_v19  ;;  %v7961_v51 = vpop.f32.mrb[215].mxu1  ;;  %8136 = vrot.lane.b32.xlu1 %v8103_v27, %s11979_s27  ;;  %v11950_v47 = vld [vmem:[%s17091_s5 + $0x160] sm:$0xff]  ;;  %v11951_v27 = vld [vmem:[%s17091_s5 + $0x170] sm:$0xff]  ;;  %v11952_v19 = vld [vmem:[%s17091_s5 + $0x168] sm:$0xff] }
0x1d14   : > { %v16683_v11 = vadd.f32 %v11945_v28, %v7961_v51  ;;  %v8106_v46 = vmul.f32 %v8063_v26, %v16671_v56  ;;  %v11948_v26 = vld [vmem:[%s17091_s5 + $0x158] sm:$0xff]  ;;  %v8085_v28 = vpop.permute.xlu1 %8084 }
0x1d15   : > { %v8109_v48 = vmul.f32 %v8069_v6, %v16677_v54  ;;  %8146 = vrot.lane.b32.xlu0 %v8108_v20, %s11979_s27  ;;  %v8083_v20 = vpop.permute.xlu0 %8082  ;;  %v11953_v35 = vld [vmem:[%s17091_s5 + $0x178] sm:$0xff] }
0x1d16   : > { %v8107_v9 = vmul.f32 %v8065_v22, %v16683_v11 }
0x1d17   : > { %8148 = vrot.lane.b32.xlu1 %v8109_v48, %s11979_s27 }
0x1d19   : > { %v10645_v53 = vpop.f32.mrb[216].mxu1  ;;  %8142 = vrot.lane.b32.xlu0 %v8106_v46, %s11979_s27  ;;  %v8007_v46 = vadd.f32 %v16639_v33, %v16200_v1  ;;  %v8006_v1 = vadd.f32 %v16655_v55, %v16191_v61  ;;  %v8009_v55 = vadd.f32 %v16671_v56, %v16217_v17 }
0x1d1a   : > { %v16694_v21 = vadd.f32 %v11946_v4, %v10645_v53  ;;  %v7974_v44 = vpop.f32.mrb[217].mxu1 }
0x1d1b   : > { %v10646_v52 = vpop.f32.mrb[218].mxu1  ;;  %8144 = vrot.lane.b32.xlu1 %v8107_v9, %s11979_s27  ;;  %v16700_v14 = vadd.f32 %v11947_v29, %v7974_v44 }
0x1d1c   : > { %v8112_v36 = vmul.f32 %v8075_v18, %v16694_v21  ;;  %v16706_v31 = vadd.f32 %v11948_v26, %v10646_v52  ;;  %v7977_v37 = vpop.f32.mrb[219].mxu1  ;;  %v8008_v18 = vadd.f32 %v16650_v39, %v16207_v63  ;;  %v8005_v52 = vadd.f32 %v16644_v57, %v16184_v24 }
0x1d1d   : > { %v16711_v22 = vadd.f32 %v11949_v7, %v7977_v37  ;;  %v8110_v41 = vmul.f32 %v8071_v10, %v16700_v14  ;;  %v8011_v39 = vadd.f32 %v16665_v23, %v16237_v45  ;;  %v8012_v57 = vadd.f32 %v16677_v54, %v16247_v25 }
0x1d1e   : > { %v8113_v12 = vmul.f32 %v8077_v13, %v16706_v31  ;;  %8154 = vrot.lane.b32.xlu0 %v8112_v36, %s11979_s27  ;;  %v8010_v23 = vadd.f32 %v16683_v11, %v16224_v49  ;;  %v8015_v54 = vadd.f32 %v16694_v21, %v16280_v62  ;;  %v8013_v11 = vadd.f32 %v16700_v14, %v16260_v42 }
0x1d1f   : > { %v8111_v43 = vmul.f32 %v8073_v32, %v16711_v22  ;;  %v8014_v21 = vadd.f32 %v16711_v22, %v16268_v30 }
0x1d20   : > { %8156 = vrot.lane.b32.xlu1 %v8113_v12, %s11979_s27  ;;  %v8016_v12 = vadd.f32 %v16706_v31, %v16287_v58 }
0x1d21   : > { %v10649_v38 = vpop.f32.mrb[220].mxu1 }
0x1d22   : > { %v7990_v8 = vpop.f32.mrb[221].mxu1  ;;  %8150 = vrot.lane.b32.xlu0 %v8110_v41, %s11979_s27  ;;  %v16728_v15 = vadd.f32 %v11951_v27, %v10649_v38  ;;  %v8514_v27 = vld [vmem:[%s12569_s18 + $0x20] sm:$0xff] (%p12050_p5) }
0x1d23   : > { %v16722_v5 = vadd.f32 %v11950_v47, %v7990_v8  ;;  %v10650_v6 = vpop.f32.mrb[222].mxu1 }
0x1d24   : > { %v7993_v0 = vpop.f32.mrb[223].mxu1  ;;  %8152 = vrot.lane.b32.xlu1 %v8111_v43, %s11979_s27  ;;  %v16739_v51 = vadd.f32 %v11953_v35, %v10650_v6  ;;  %v8116_v48 = vmul.f32 %v8083_v20, %v16728_v15  ;;  %v8019_v22 = vadd.f32 %v16728_v15, %v16314_v3  ;;  %v8508_v3 = vld [vmem:[%s12569_s18 + $0x8] sm:$0xff] (%p12050_p5)  ;;  %v8526_v35 = vld [vmem:[%s12569_s18 + $0x50] sm:$0xff] (%p12050_p5) }
0x1d25   : > { %v8114_v34 = vmul.f32 %v8079_v50, %v16722_v5  ;;  %v16734_v40 = vadd.f32 %v11952_v19, %v7993_v0  ;;  %v8017_v31 = vadd.f32 %v16722_v5, %v16297_v16  ;;  %v8512_v0 = vld [vmem:[%s12569_s18 + $0x18] sm:$0xff] (%p12050_p5)  ;;  %v8516_v15 = vld [vmem:[%s12569_s18 + $0x28] sm:$0xff] (%p12050_p5) }
0x1d26   : > { %v8117_v32 = vmul.f32 %v8085_v28, %v16739_v51  ;;  %v8020_v16 = vadd.f32 %v16739_v51, %v16321_v60  ;;  %v8510_v60 = vld [vmem:[%s12569_s18 + $0x10] sm:$0xff] (%p12050_p5)  ;;  %v8520_v19 = vld [vmem:[%s12569_s18 + $0x38] sm:$0xff] (%p12050_p5)  ;;  %v8524_v20 = vld [vmem:[%s12569_s18 + $0x48] sm:$0xff] (%p12050_p5) }
0x1d27   : > { %v8115_v10 = vmul.f32 %v8081_v59, %v16734_v40  ;;  %8158 = vrot.lane.b32.xlu0 %v8114_v34, %s11979_s27  ;;  %v8018_v43 = vadd.f32 %v16734_v40, %v16304_v2  ;;  %v8506_v2 = vld [vmem:[%s12569_s18] sm:$0xff] (%p12050_p5)  ;;  %v8518_v34 = vld [vmem:[%s12569_s18 + $0x30] sm:$0xff] (%p12050_p5)  ;;  %v8528_v51 = vld [vmem:[%s12569_s18 + $0x58] sm:$0xff] (%p12050_p5) }
0x1d28   : > { %v8522_v40 = vld [vmem:[%s12569_s18 + $0x40] sm:$0xff] (%p12050_p5)  ;;  %v8532_v28 = vld [vmem:[%s12569_s18 + $0x68] sm:$0xff] (%p12050_p5) }
0x1d29   : > { %8160 = vrot.lane.b32.xlu1 %v8115_v10, %s11979_s27  ;;  %v8530_v10 = vld [vmem:[%s12569_s18 + $0x60] sm:$0xff] (%p12050_p5) }
0x1d2b   : > { %8162 = vrot.lane.b32.xlu0 %v8116_v48, %s11979_s27  ;;  %v8534_v48 = vld [vmem:[%s12569_s18 + $0x70] sm:$0xff] (%p12050_p5) }
0x1d2d   : > { %8164 = vrot.lane.b32.xlu1 %v8117_v32, %s11979_s27  ;;  %s9684_s27 = sshll.u32 (%p12050_p5), %s12031_s24, 7  ;;  %v8536_v32 = vld [vmem:[%s12569_s18 + $0x78] sm:$0xff] (%p12050_p5) }
0x1d2e   : > { %s16821_s15 = scalar_lea.vmem (%p12050_p5), %s17092_s6, %s9684_s27 }
0x1d2f   : > { %8507 = vst [vmem:[%s16821_s15] sm:$0xff] (%p12050_p5), %v8506_v2  ;;  %8509 = vst [vmem:[%s16821_s15 + $0x8] sm:$0xff] (%p12050_p5), %v8508_v3  ;;  %v8634_v2 = vld [vmem:[%s12569_s18 + $0x200] sm:$0xff] (%p12050_p5)  ;;  %v8636_v3 = vld [vmem:[%s12569_s18 + $0x208] sm:$0xff] (%p12050_p5) }
0x1d30   : > { %8511 = vst [vmem:[%s16821_s15 + $0x10] sm:$0xff] (%p12050_p5), %v8510_v60  ;;  %8513 = vst [vmem:[%s16821_s15 + $0x18] sm:$0xff] (%p12050_p5), %v8512_v0  ;;  %v8638_v60 = vld [vmem:[%s12569_s18 + $0x210] sm:$0xff] (%p12050_p5)  ;;  %v8640_v0 = vld [vmem:[%s12569_s18 + $0x218] sm:$0xff] (%p12050_p5) }
0x1d31   : > { %8515 = vst [vmem:[%s16821_s15 + $0x20] sm:$0xff] (%p12050_p5), %v8514_v27  ;;  %8517 = vst [vmem:[%s16821_s15 + $0x28] sm:$0xff] (%p12050_p5), %v8516_v15  ;;  %v8642_v27 = vld [vmem:[%s12569_s18 + $0x220] sm:$0xff] (%p12050_p5)  ;;  %v8644_v15 = vld [vmem:[%s12569_s18 + $0x228] sm:$0xff] (%p12050_p5) }
0x1d32   : > { %8519 = vst [vmem:[%s16821_s15 + $0x30] sm:$0xff] (%p12050_p5), %v8518_v34  ;;  %8521 = vst [vmem:[%s16821_s15 + $0x38] sm:$0xff] (%p12050_p5), %v8520_v19  ;;  %v8646_v34 = vld [vmem:[%s12569_s18 + $0x230] sm:$0xff] (%p12050_p5)  ;;  %v8648_v19 = vld [vmem:[%s12569_s18 + $0x238] sm:$0xff] (%p12050_p5) }
0x1d33   : > { %8523 = vst [vmem:[%s16821_s15 + $0x40] sm:$0xff] (%p12050_p5), %v8522_v40  ;;  %8525 = vst [vmem:[%s16821_s15 + $0x48] sm:$0xff] (%p12050_p5), %v8524_v20  ;;  %v8650_v40 = vld [vmem:[%s12569_s18 + $0x240] sm:$0xff] (%p12050_p5)  ;;  %v8652_v20 = vld [vmem:[%s12569_s18 + $0x248] sm:$0xff] (%p12050_p5) }
0x1d34   : > { %8527 = vst [vmem:[%s16821_s15 + $0x50] sm:$0xff] (%p12050_p5), %v8526_v35  ;;  %8529 = vst [vmem:[%s16821_s15 + $0x58] sm:$0xff] (%p12050_p5), %v8528_v51  ;;  %v8654_v35 = vld [vmem:[%s12569_s18 + $0x250] sm:$0xff] (%p12050_p5)  ;;  %v8656_v51 = vld [vmem:[%s12569_s18 + $0x258] sm:$0xff] (%p12050_p5) }
0x1d35   : > { %8531 = vst [vmem:[%s16821_s15 + $0x60] sm:$0xff] (%p12050_p5), %v8530_v10  ;;  %8533 = vst [vmem:[%s16821_s15 + $0x68] sm:$0xff] (%p12050_p5), %v8532_v28  ;;  %v8658_v10 = vld [vmem:[%s12569_s18 + $0x260] sm:$0xff] (%p12050_p5)  ;;  %v8660_v28 = vld [vmem:[%s12569_s18 + $0x268] sm:$0xff] (%p12050_p5) }
0x1d36   : > { %8535 = vst [vmem:[%s16821_s15 + $0x70] sm:$0xff] (%p12050_p5), %v8534_v48  ;;  %8537 = vst [vmem:[%s16821_s15 + $0x78] sm:$0xff] (%p12050_p5), %v8536_v32  ;;  %v8662_v48 = vld [vmem:[%s12569_s18 + $0x270] sm:$0xff] (%p12050_p5)  ;;  %v8664_v32 = vld [vmem:[%s12569_s18 + $0x278] sm:$0xff] (%p12050_p5) }
0x1d37   : > { %8635 = vst [vmem:[%s16821_s15 + $0x400] sm:$0xff] (%p12050_p5), %v8634_v2  ;;  %8637 = vst [vmem:[%s16821_s15 + $0x408] sm:$0xff] (%p12050_p5), %v8636_v3 }
0x1d38   : > { %8639 = vst [vmem:[%s16821_s15 + $0x410] sm:$0xff] (%p12050_p5), %v8638_v60  ;;  %8641 = vst [vmem:[%s16821_s15 + $0x418] sm:$0xff] (%p12050_p5), %v8640_v0 }
0x1d39   : > { %8643 = vst [vmem:[%s16821_s15 + $0x420] sm:$0xff] (%p12050_p5), %v8642_v27  ;;  %8645 = vst [vmem:[%s16821_s15 + $0x428] sm:$0xff] (%p12050_p5), %v8644_v15 }
0x1d3a   : > { %8647 = vst [vmem:[%s16821_s15 + $0x430] sm:$0xff] (%p12050_p5), %v8646_v34  ;;  %8649 = vst [vmem:[%s16821_s15 + $0x438] sm:$0xff] (%p12050_p5), %v8648_v19 }
0x1d3b   : > { %8651 = vst [vmem:[%s16821_s15 + $0x440] sm:$0xff] (%p12050_p5), %v8650_v40  ;;  %8653 = vst [vmem:[%s16821_s15 + $0x448] sm:$0xff] (%p12050_p5), %v8652_v20 }
0x1d3c   : > { %8655 = vst [vmem:[%s16821_s15 + $0x450] sm:$0xff] (%p12050_p5), %v8654_v35  ;;  %8657 = vst [vmem:[%s16821_s15 + $0x458] sm:$0xff] (%p12050_p5), %v8656_v51 }
0x1d3d   : > { %8659 = vst [vmem:[%s16821_s15 + $0x460] sm:$0xff] (%p12050_p5), %v8658_v10  ;;  %8661 = vst [vmem:[%s16821_s15 + $0x468] sm:$0xff] (%p12050_p5), %v8660_v28 }
0x1d3e   : > { %8663 = vst [vmem:[%s16821_s15 + $0x470] sm:$0xff] (%p12050_p5), %v8662_v48  ;;  %8665 = vst [vmem:[%s16821_s15 + $0x478] sm:$0xff] (%p12050_p5), %v8664_v32 }
0x1d7f   : > { %v8139_v9 = vpop.permute.xlu0 %8138 }
0x1d80   : > { %v8184_v53 = vadd.f32 %v8139_v9, %v8007_v46  ;;  %v8538_v46 = vld [vmem:[%s12569_s18 + $0x80] sm:$0xff] (%p12050_p5)  ;;  %v8540_v9 = vld [vmem:[%s12569_s18 + $0x88] sm:$0xff] (%p12050_p5) }
0x1d81   : > { %v8141_v4 = vpop.permute.xlu1 %8140  ;;  %8539 = vst [vmem:[%s16821_s15 + $0x100] sm:$0xff] (%p12050_p5), %v8538_v46  ;;  %8541 = vst [vmem:[%s16821_s15 + $0x108] sm:$0xff] (%p12050_p5), %v8540_v9  ;;  %v8666_v46 = vld [vmem:[%s12569_s18 + $0x280] sm:$0xff] (%p12050_p5)  ;;  %v8668_v9 = vld [vmem:[%s12569_s18 + $0x288] sm:$0xff] (%p12050_p5) }
0x1d82   : > { %9663 = vst.msk [vmem:[%s12569_s18 + $0x390] sm:$0xff] %vm1346_vm0, %v8184_v53  ;;  %v8185_v44 = vadd.f32 %v8141_v4, %v8008_v18  ;;  %v8542_v53 = vld [vmem:[%s12569_s18 + $0x90] sm:$0xff] (%p12050_p5)  ;;  %v8544_v18 = vld [vmem:[%s12569_s18 + $0x98] sm:$0xff] (%p12050_p5)  ;;  %v8546_v4 = vld [vmem:[%s12569_s18 + $0xa0] sm:$0xff] (%p12050_p5) }
0x1d83   : > { %v8135_v13 = vpop.permute.xlu0 %8134  ;;  %8543 = vst [vmem:[%s16821_s15 + $0x110] sm:$0xff] (%p12050_p5), %v8542_v53  ;;  %8545 = vst [vmem:[%s16821_s15 + $0x118] sm:$0xff] (%p12050_p5), %v8544_v18  ;;  %v8670_v53 = vld [vmem:[%s12569_s18 + $0x290] sm:$0xff] (%p12050_p5)  ;;  %v8672_v18 = vld [vmem:[%s12569_s18 + $0x298] sm:$0xff] (%p12050_p5) }
0x1d84   : > { %9664 = vst.msk [vmem:[%s12569_s18 + $0x398] sm:$0xff] %vm1346_vm0, %v8185_v44  ;;  %v8182_v29 = vadd.f32 %v8135_v13, %v8005_v52  ;;  %8547 = vst [vmem:[%s16821_s15 + $0x120] sm:$0xff] (%p12050_p5), %v8546_v4  ;;  %v8548_v44 = vld [vmem:[%s12569_s18 + $0xa8] sm:$0xff] (%p12050_p5)  ;;  %v8550_v52 = vld [vmem:[%s12569_s18 + $0xb0] sm:$0xff] (%p12050_p5) }
0x1d85   : > { %v8137_v33 = vpop.permute.xlu1 %8136  ;;  %v8552_v13 = vld [vmem:[%s12569_s18 + $0xb8] sm:$0xff] (%p12050_p5)  ;;  %8549 = vst [vmem:[%s16821_s15 + $0x128] sm:$0xff] (%p12050_p5), %v8548_v44  ;;  %8551 = vst [vmem:[%s16821_s15 + $0x130] sm:$0xff] (%p12050_p5), %v8550_v52  ;;  %v8674_v4 = vld [vmem:[%s12569_s18 + $0x2a0] sm:$0xff] (%p12050_p5) }
0x1d86   : > { %9661 = vst.msk [vmem:[%s12569_s18 + $0x380] sm:$0xff] %vm1346_vm0, %v8182_v29  ;;  %v8183_v63 = vadd.f32 %v8137_v33, %v8006_v1  ;;  %8553 = vst [vmem:[%s16821_s15 + $0x138] sm:$0xff] (%p12050_p5), %v8552_v13  ;;  %v8554_v29 = vld [vmem:[%s12569_s18 + $0xc0] sm:$0xff] (%p12050_p5)  ;;  %v8556_v1 = vld [vmem:[%s12569_s18 + $0xc8] sm:$0xff] (%p12050_p5) }
0x1d87   : > { %v8147_v36 = vpop.permute.xlu0 %8146  ;;  %v8558_v33 = vld [vmem:[%s12569_s18 + $0xd0] sm:$0xff] (%p12050_p5)  ;;  %8555 = vst [vmem:[%s16821_s15 + $0x140] sm:$0xff] (%p12050_p5), %v8554_v29  ;;  %8557 = vst [vmem:[%s16821_s15 + $0x148] sm:$0xff] (%p12050_p5), %v8556_v1  ;;  %v8676_v44 = vld [vmem:[%s12569_s18 + $0x2a8] sm:$0xff] (%p12050_p5) }
0x1d88   : > { %9662 = vst.msk [vmem:[%s12569_s18 + $0x388] sm:$0xff] %vm1346_vm0, %v8183_v63  ;;  %v8188_v24 = vadd.f32 %v8147_v36, %v8011_v39  ;;  %8559 = vst [vmem:[%s16821_s15 + $0x150] sm:$0xff] (%p12050_p5), %v8558_v33  ;;  %v8560_v63 = vld [vmem:[%s12569_s18 + $0xd8] sm:$0xff] (%p12050_p5)  ;;  %v8562_v39 = vld [vmem:[%s12569_s18 + $0xe0] sm:$0xff] (%p12050_p5) }
0x1d89   : > { %v8149_v26 = vpop.permute.xlu1 %8148  ;;  %v8564_v36 = vld [vmem:[%s12569_s18 + $0xe8] sm:$0xff] (%p12050_p5)  ;;  %8561 = vst [vmem:[%s16821_s15 + $0x158] sm:$0xff] (%p12050_p5), %v8560_v63  ;;  %8563 = vst [vmem:[%s16821_s15 + $0x160] sm:$0xff] (%p12050_p5), %v8562_v39  ;;  %v8678_v52 = vld [vmem:[%s12569_s18 + $0x2b0] sm:$0xff] (%p12050_p5) }
0x1d8a   : > { %9667 = vst.msk [vmem:[%s12569_s18 + $0x3b0] sm:$0xff] %vm1346_vm0, %v8188_v24  ;;  %v8189_v61 = vadd.f32 %v8149_v26, %v8012_v57  ;;  %8565 = vst [vmem:[%s16821_s15 + $0x168] sm:$0xff] (%p12050_p5), %v8564_v36  ;;  %v8566_v24 = vld [vmem:[%s12569_s18 + $0xf0] sm:$0xff] (%p12050_p5)  ;;  %v8568_v57 = vld [vmem:[%s12569_s18 + $0xf8] sm:$0xff] (%p12050_p5) }
0x1d8b   : > { %v8143_v37 = vpop.permute.xlu0 %8142  ;;  %v8570_v26 = vld [vmem:[%s12569_s18 + $0x100] sm:$0xff] (%p12050_p5)  ;;  %8567 = vst [vmem:[%s16821_s15 + $0x170] sm:$0xff] (%p12050_p5), %v8566_v24  ;;  %8569 = vst [vmem:[%s16821_s15 + $0x178] sm:$0xff] (%p12050_p5), %v8568_v57  ;;  %v8680_v13 = vld [vmem:[%s12569_s18 + $0x2b8] sm:$0xff] (%p12050_p5) }
0x1d8c   : > { %9668 = vst.msk [vmem:[%s12569_s18 + $0x3b8] sm:$0xff] %vm1346_vm0, %v8189_v61  ;;  %v8186_v45 = vadd.f32 %v8143_v37, %v8009_v55  ;;  %8571 = vst [vmem:[%s16821_s15 + $0x200] sm:$0xff] (%p12050_p5), %v8570_v26  ;;  %v8572_v61 = vld [vmem:[%s12569_s18 + $0x108] sm:$0xff] (%p12050_p5)  ;;  %v8574_v55 = vld [vmem:[%s12569_s18 + $0x110] sm:$0xff] (%p12050_p5) }
0x1d8d   : > { %v8145_v7 = vpop.permute.xlu1 %8144  ;;  %v8576_v37 = vld [vmem:[%s12569_s18 + $0x118] sm:$0xff] (%p12050_p5)  ;;  %8573 = vst [vmem:[%s16821_s15 + $0x208] sm:$0xff] (%p12050_p5), %v8572_v61  ;;  %8575 = vst [vmem:[%s16821_s15 + $0x210] sm:$0xff] (%p12050_p5), %v8574_v55  ;;  %v8682_v29 = vld [vmem:[%s12569_s18 + $0x2c0] sm:$0xff] (%p12050_p5) }
0x1d8e   : > { %9665 = vst.msk [vmem:[%s12569_s18 + $0x3a0] sm:$0xff] %vm1346_vm0, %v8186_v45  ;;  %v8187_v25 = vadd.f32 %v8145_v7, %v8010_v23  ;;  %8577 = vst [vmem:[%s16821_s15 + $0x218] sm:$0xff] (%p12050_p5), %v8576_v37  ;;  %v8578_v45 = vld [vmem:[%s12569_s18 + $0x120] sm:$0xff] (%p12050_p5)  ;;  %v8580_v23 = vld [vmem:[%s12569_s18 + $0x128] sm:$0xff] (%p12050_p5) }
0x1d8f   : > { %v8582_v7 = vld [vmem:[%s12569_s18 + $0x130] sm:$0xff] (%p12050_p5)  ;;  %8579 = vst [vmem:[%s16821_s15 + $0x220] sm:$0xff] (%p12050_p5), %v8578_v45  ;;  %8581 = vst [vmem:[%s16821_s15 + $0x228] sm:$0xff] (%p12050_p5), %v8580_v23  ;;  %v8684_v1 = vld [vmem:[%s12569_s18 + $0x2c8] sm:$0xff] (%p12050_p5) }
0x1d90   : > { %9666 = vst.msk [vmem:[%s12569_s18 + $0x3a8] sm:$0xff] %vm1346_vm0, %v8187_v25  ;;  %v8155_v17 = vpop.permute.xlu0 %8154  ;;  %8583 = vst [vmem:[%s16821_s15 + $0x230] sm:$0xff] (%p12050_p5), %v8582_v7  ;;  %v8584_v25 = vld [vmem:[%s12569_s18 + $0x138] sm:$0xff] (%p12050_p5)  ;;  %v8686_v33 = vld [vmem:[%s12569_s18 + $0x2d0] sm:$0xff] (%p12050_p5) }
0x1d91   : > { %v8192_v56 = vadd.f32 %v8155_v17, %v8015_v54  ;;  %v8586_v54 = vld [vmem:[%s12569_s18 + $0x140] sm:$0xff] (%p12050_p5)  ;;  %v8588_v17 = vld [vmem:[%s12569_s18 + $0x148] sm:$0xff] (%p12050_p5)  ;;  %8585 = vst [vmem:[%s16821_s15 + $0x238] sm:$0xff] (%p12050_p5), %v8584_v25  ;;  %8667 = vst [vmem:[%s16821_s15 + $0x500] sm:$0xff] (%p12050_p5), %v8666_v46 }
0x1d92   : > { %v8157_v41 = vpop.permute.xlu1 %8156  ;;  %8587 = vst [vmem:[%s16821_s15 + $0x240] sm:$0xff] (%p12050_p5), %v8586_v54  ;;  %8589 = vst [vmem:[%s16821_s15 + $0x248] sm:$0xff] (%p12050_p5), %v8588_v17  ;;  %v8688_v63 = vld [vmem:[%s12569_s18 + $0x2d8] sm:$0xff] (%p12050_p5)  ;;  %v8690_v39 = vld [vmem:[%s12569_s18 + $0x2e0] sm:$0xff] (%p12050_p5) }
0x1d93   : > { %9671 = vst.msk [vmem:[%s12569_s18 + $0x3d0] sm:$0xff] %vm1346_vm0, %v8192_v56  ;;  %v8193_v49 = vadd.f32 %v8157_v41, %v8016_v12  ;;  %v8590_v56 = vld [vmem:[%s12569_s18 + $0x150] sm:$0xff] (%p12050_p5)  ;;  %v8592_v12 = vld [vmem:[%s12569_s18 + $0x158] sm:$0xff] (%p12050_p5)  ;;  %v8594_v41 = vld [vmem:[%s12569_s18 + $0x160] sm:$0xff] (%p12050_p5) }
0x1d94   : > { %v8151_v50 = vpop.permute.xlu0 %8150  ;;  %8591 = vst [vmem:[%s16821_s15 + $0x250] sm:$0xff] (%p12050_p5), %v8590_v56  ;;  %8593 = vst [vmem:[%s16821_s15 + $0x258] sm:$0xff] (%p12050_p5), %v8592_v12  ;;  %v8692_v36 = vld [vmem:[%s12569_s18 + $0x2e8] sm:$0xff] (%p12050_p5)  ;;  %v8694_v24 = vld [vmem:[%s12569_s18 + $0x2f0] sm:$0xff] (%p12050_p5) }
0x1d95   : > { %9672 = vst.msk [vmem:[%s12569_s18 + $0x3d8] sm:$0xff] %vm1346_vm0, %v8193_v49  ;;  %v8190_v62 = vadd.f32 %v8151_v50, %v8013_v11  ;;  %8595 = vst [vmem:[%s16821_s15 + $0x260] sm:$0xff] (%p12050_p5), %v8594_v41  ;;  %v8596_v49 = vld [vmem:[%s12569_s18 + $0x168] sm:$0xff] (%p12050_p5)  ;;  %v8598_v11 = vld [vmem:[%s12569_s18 + $0x170] sm:$0xff] (%p12050_p5) }
0x1d96   : > { %v8153_v38 = vpop.permute.xlu1 %8152  ;;  %v8600_v50 = vld [vmem:[%s12569_s18 + $0x178] sm:$0xff] (%p12050_p5)  ;;  %8597 = vst [vmem:[%s16821_s15 + $0x268] sm:$0xff] (%p12050_p5), %v8596_v49  ;;  %8599 = vst [vmem:[%s16821_s15 + $0x270] sm:$0xff] (%p12050_p5), %v8598_v11  ;;  %v8698_v26 = vld [vmem:[%s12569_s18 + $0x300] sm:$0xff] (%p12050_p5) }
0x1d97   : > { %9669 = vst.msk [vmem:[%s12569_s18 + $0x3c0] sm:$0xff] %vm1346_vm0, %v8190_v62  ;;  %v8191_v58 = vadd.f32 %v8153_v38, %v8014_v21  ;;  %8601 = vst [vmem:[%s16821_s15 + $0x278] sm:$0xff] (%p12050_p5), %v8600_v50  ;;  %v8602_v62 = vld [vmem:[%s12569_s18 + $0x180] sm:$0xff] (%p12050_p5)  ;;  %v8604_v21 = vld [vmem:[%s12569_s18 + $0x188] sm:$0xff] (%p12050_p5) }
0x1d98   : > { %v8606_v38 = vld [vmem:[%s12569_s18 + $0x190] sm:$0xff] (%p12050_p5)  ;;  %8603 = vst [vmem:[%s16821_s15 + $0x300] sm:$0xff] (%p12050_p5), %v8602_v62  ;;  %8605 = vst [vmem:[%s16821_s15 + $0x308] sm:$0xff] (%p12050_p5), %v8604_v21  ;;  %v8696_v57 = vld [vmem:[%s12569_s18 + $0x2f8] sm:$0xff] (%p12050_p5) }
0x1d99   : > { %9670 = vst.msk [vmem:[%s12569_s18 + $0x3c8] sm:$0xff] %vm1346_vm0, %v8191_v58  ;;  %v8159_v42 = vpop.permute.xlu0 %8158  ;;  %8607 = vst [vmem:[%s16821_s15 + $0x310] sm:$0xff] (%p12050_p5), %v8606_v38  ;;  %v8608_v58 = vld [vmem:[%s12569_s18 + $0x198] sm:$0xff] (%p12050_p5)  ;;  %v8700_v61 = vld [vmem:[%s12569_s18 + $0x308] sm:$0xff] (%p12050_p5) }
0x1d9a   : > { %v8194_v14 = vadd.f32 %v8159_v42, %v8017_v31  ;;  %v8610_v31 = vld [vmem:[%s12569_s18 + $0x1a0] sm:$0xff] (%p12050_p5)  ;;  %v8612_v42 = vld [vmem:[%s12569_s18 + $0x1a8] sm:$0xff] (%p12050_p5)  ;;  %8609 = vst [vmem:[%s16821_s15 + $0x318] sm:$0xff] (%p12050_p5), %v8608_v58  ;;  %8669 = vst [vmem:[%s16821_s15 + $0x508] sm:$0xff] (%p12050_p5), %v8668_v9 }
0x1d9b   : > { %v8161_v59 = vpop.permute.xlu1 %8160  ;;  %8611 = vst [vmem:[%s16821_s15 + $0x320] sm:$0xff] (%p12050_p5), %v8610_v31  ;;  %8613 = vst [vmem:[%s16821_s15 + $0x328] sm:$0xff] (%p12050_p5), %v8612_v42  ;;  %v8702_v55 = vld [vmem:[%s12569_s18 + $0x310] sm:$0xff] (%p12050_p5)  ;;  %v8704_v37 = vld [vmem:[%s12569_s18 + $0x318] sm:$0xff] (%p12050_p5) }
0x1d9c   : > { %9673 = vst.msk [vmem:[%s12569_s18 + $0x3e0] sm:$0xff] %vm1346_vm0, %v8194_v14  ;;  %v8195_v30 = vadd.f32 %v8161_v59, %v8018_v43  ;;  %8221 = sbr.rel (!%p12050_p5) target bundleno = 7611 (0x1dbb), region = 124  ;;  %v8614_v14 = vld [vmem:[%s12569_s18 + $0x1b0] sm:$0xff] (%p12050_p5)  ;;  %v8616_v43 = vld [vmem:[%s12569_s18 + $0x1b8] sm:$0xff] (%p12050_p5)  ;;  %v8618_v59 = vld [vmem:[%s12569_s18 + $0x1c0] sm:$0xff] (%p12050_p5) }
0x1d9d   : > { %v8163_v8 = vpop.permute.xlu0 %8162  ;;  %8615 = vst [vmem:[%s16821_s15 + $0x330] sm:$0xff] (%p12050_p5), %v8614_v14  ;;  %8617 = vst [vmem:[%s16821_s15 + $0x338] sm:$0xff] (%p12050_p5), %v8616_v43  ;;  %v8706_v45 = vld [vmem:[%s12569_s18 + $0x320] sm:$0xff] (%p12050_p5)  ;;  %v8708_v23 = vld [vmem:[%s12569_s18 + $0x328] sm:$0xff] (%p12050_p5) }
0x1d9e   : > { %9674 = vst.msk [vmem:[%s12569_s18 + $0x3e8] sm:$0xff] %vm1346_vm0, %v8195_v30  ;;  %v8196_v47 = vadd.f32 %v8163_v8, %v8019_v22  ;;  %8619 = vst [vmem:[%s16821_s15 + $0x340] sm:$0xff] (%p12050_p5), %v8618_v59  ;;  %v8620_v30 = vld [vmem:[%s12569_s18 + $0x1c8] sm:$0xff] (%p12050_p5)  ;;  %v8622_v22 = vld [vmem:[%s12569_s18 + $0x1d0] sm:$0xff] (%p12050_p5) }
0x1d9f   : > { %v8165_v5 = vpop.permute.xlu1 %8164  ;;  %v8624_v8 = vld [vmem:[%s12569_s18 + $0x1d8] sm:$0xff] (%p12050_p5)  ;;  %8621 = vst [vmem:[%s16821_s15 + $0x348] sm:$0xff] (%p12050_p5), %v8620_v30  ;;  %8623 = vst [vmem:[%s16821_s15 + $0x350] sm:$0xff] (%p12050_p5), %v8622_v22  ;;  %v8710_v7 = vld [vmem:[%s12569_s18 + $0x330] sm:$0xff] (%p12050_p5) }
0x1da0   : > { %9675 = vst.msk [vmem:[%s12569_s18 + $0x3f0] sm:$0xff] %vm1346_vm0, %v8196_v47  ;;  %v8197_v6 = vadd.f32 %v8165_v5, %v8020_v16  ;;  %8625 = vst [vmem:[%s16821_s15 + $0x358] sm:$0xff] (%p12050_p5), %v8624_v8  ;;  %v8626_v47 = vld [vmem:[%s12569_s18 + $0x1e0] sm:$0xff] (%p12050_p5)  ;;  %v8628_v16 = vld [vmem:[%s12569_s18 + $0x1e8] sm:$0xff] (%p12050_p5) }
0x1da1   : > { %v8630_v5 = vld [vmem:[%s12569_s18 + $0x1f0] sm:$0xff] (%p12050_p5)  ;;  %8627 = vst [vmem:[%s16821_s15 + $0x360] sm:$0xff] (%p12050_p5), %v8626_v47  ;;  %8629 = vst [vmem:[%s16821_s15 + $0x368] sm:$0xff] (%p12050_p5), %v8628_v16  ;;  %v8712_v25 = vld [vmem:[%s12569_s18 + $0x338] sm:$0xff] (%p12050_p5) }
0x1da2   : > { %9676 = vst.msk [vmem:[%s12569_s18 + $0x3f8] sm:$0xff] %vm1346_vm0, %v8197_v6  ;;  %8631 = vst [vmem:[%s16821_s15 + $0x370] sm:$0xff] (%p12050_p5), %v8630_v5  ;;  %v8632_v6 = vld [vmem:[%s12569_s18 + $0x1f8] sm:$0xff] (%p12050_p5)  ;;  %v8714_v54 = vld [vmem:[%s12569_s18 + $0x340] sm:$0xff] (%p12050_p5) }
0x1da3   : > { %8633 = vst [vmem:[%s16821_s15 + $0x378] sm:$0xff] %v8632_v6  ;;  %8671 = vst [vmem:[%s16821_s15 + $0x510] sm:$0xff] %v8670_v53  ;;  %v8716_v17 = vld [vmem:[%s12569_s18 + $0x348] sm:$0xff]  ;;  %v8718_v56 = vld [vmem:[%s12569_s18 + $0x350] sm:$0xff] }
0x1da4   : > { %8673 = vst [vmem:[%s16821_s15 + $0x518] sm:$0xff] %v8672_v18  ;;  %8675 = vst [vmem:[%s16821_s15 + $0x520] sm:$0xff] %v8674_v4  ;;  %v8720_v12 = vld [vmem:[%s12569_s18 + $0x358] sm:$0xff]  ;;  %v8722_v41 = vld [vmem:[%s12569_s18 + $0x360] sm:$0xff] }
0x1da5   : > { %8677 = vst [vmem:[%s16821_s15 + $0x528] sm:$0xff] %v8676_v44  ;;  %8679 = vst [vmem:[%s16821_s15 + $0x530] sm:$0xff] %v8678_v52  ;;  %v8724_v49 = vld [vmem:[%s12569_s18 + $0x368] sm:$0xff]  ;;  %v8726_v11 = vld [vmem:[%s12569_s18 + $0x370] sm:$0xff] }
0x1da6   : > { %8681 = vst [vmem:[%s16821_s15 + $0x538] sm:$0xff] %v8680_v13  ;;  %8683 = vst [vmem:[%s16821_s15 + $0x540] sm:$0xff] %v8682_v29  ;;  %v8728_v50 = vld [vmem:[%s12569_s18 + $0x378] sm:$0xff]  ;;  %v8730_v62 = vld [vmem:[%s12569_s18 + $0x380] sm:$0xff] }
0x1da7   : > { %8685 = vst [vmem:[%s16821_s15 + $0x548] sm:$0xff] %v8684_v1  ;;  %8687 = vst [vmem:[%s16821_s15 + $0x550] sm:$0xff] %v8686_v33  ;;  %v8732_v21 = vld [vmem:[%s12569_s18 + $0x388] sm:$0xff]  ;;  %v8734_v38 = vld [vmem:[%s12569_s18 + $0x390] sm:$0xff] }
0x1da8   : > { %8689 = vst [vmem:[%s16821_s15 + $0x558] sm:$0xff] %v8688_v63  ;;  %8691 = vst [vmem:[%s16821_s15 + $0x560] sm:$0xff] %v8690_v39  ;;  %v8736_v58 = vld [vmem:[%s12569_s18 + $0x398] sm:$0xff]  ;;  %v8738_v31 = vld [vmem:[%s12569_s18 + $0x3a0] sm:$0xff] }
0x1da9   : > { %8693 = vst [vmem:[%s16821_s15 + $0x568] sm:$0xff] %v8692_v36  ;;  %8695 = vst [vmem:[%s16821_s15 + $0x570] sm:$0xff] %v8694_v24  ;;  %v8740_v42 = vld [vmem:[%s12569_s18 + $0x3a8] sm:$0xff]  ;;  %v8742_v14 = vld [vmem:[%s12569_s18 + $0x3b0] sm:$0xff] }
0x1daa   : > { %8697 = vst [vmem:[%s16821_s15 + $0x578] sm:$0xff] %v8696_v57  ;;  %8699 = vst [vmem:[%s16821_s15 + $0x600] sm:$0xff] %v8698_v26  ;;  %v8744_v43 = vld [vmem:[%s12569_s18 + $0x3b8] sm:$0xff]  ;;  %v8746_v59 = vld [vmem:[%s12569_s18 + $0x3c0] sm:$0xff] }
0x1dab   : > { %8701 = vst [vmem:[%s16821_s15 + $0x608] sm:$0xff] %v8700_v61  ;;  %8703 = vst [vmem:[%s16821_s15 + $0x610] sm:$0xff] %v8702_v55  ;;  %v8748_v30 = vld [vmem:[%s12569_s18 + $0x3c8] sm:$0xff]  ;;  %v8750_v22 = vld [vmem:[%s12569_s18 + $0x3d0] sm:$0xff] }
0x1dac   : > { %8705 = vst [vmem:[%s16821_s15 + $0x618] sm:$0xff] %v8704_v37  ;;  %8707 = vst [vmem:[%s16821_s15 + $0x620] sm:$0xff] %v8706_v45  ;;  %v8752_v8 = vld [vmem:[%s12569_s18 + $0x3d8] sm:$0xff]  ;;  %v8754_v47 = vld [vmem:[%s12569_s18 + $0x3e0] sm:$0xff] }
0x1dad   : > { %8709 = vst [vmem:[%s16821_s15 + $0x628] sm:$0xff] %v8708_v23  ;;  %8711 = vst [vmem:[%s16821_s15 + $0x630] sm:$0xff] %v8710_v7  ;;  %v8756_v16 = vld [vmem:[%s12569_s18 + $0x3e8] sm:$0xff]  ;;  %v8758_v5 = vld [vmem:[%s12569_s18 + $0x3f0] sm:$0xff] }
0x1dae   : > { %8713 = vst [vmem:[%s16821_s15 + $0x638] sm:$0xff] %v8712_v25  ;;  %8715 = vst [vmem:[%s16821_s15 + $0x640] sm:$0xff] %v8714_v54  ;;  %v8760_v6 = vld [vmem:[%s12569_s18 + $0x3f8] sm:$0xff] }
0x1daf   : > { %8717 = vst [vmem:[%s16821_s15 + $0x648] sm:$0xff] %v8716_v17  ;;  %8719 = vst [vmem:[%s16821_s15 + $0x650] sm:$0xff] %v8718_v56 }
0x1db0   : > { %8721 = vst [vmem:[%s16821_s15 + $0x658] sm:$0xff] %v8720_v12  ;;  %8723 = vst [vmem:[%s16821_s15 + $0x660] sm:$0xff] %v8722_v41 }
0x1db1   : > { %8725 = vst [vmem:[%s16821_s15 + $0x668] sm:$0xff] %v8724_v49  ;;  %8727 = vst [vmem:[%s16821_s15 + $0x670] sm:$0xff] %v8726_v11 }
0x1db2   : > { %8729 = vst [vmem:[%s16821_s15 + $0x678] sm:$0xff] %v8728_v50  ;;  %8731 = vst [vmem:[%s16821_s15 + $0x700] sm:$0xff] %v8730_v62 }
0x1db3   : > { %8733 = vst [vmem:[%s16821_s15 + $0x708] sm:$0xff] %v8732_v21  ;;  %8735 = vst [vmem:[%s16821_s15 + $0x710] sm:$0xff] %v8734_v38 }
0x1db4   : > { %8737 = vst [vmem:[%s16821_s15 + $0x718] sm:$0xff] %v8736_v58  ;;  %8739 = vst [vmem:[%s16821_s15 + $0x720] sm:$0xff] %v8738_v31 }
0x1db5   : > { %8741 = vst [vmem:[%s16821_s15 + $0x728] sm:$0xff] %v8740_v42  ;;  %8743 = vst [vmem:[%s16821_s15 + $0x730] sm:$0xff] %v8742_v14 }
0x1db6   : > { %8745 = vst [vmem:[%s16821_s15 + $0x738] sm:$0xff] %v8744_v43  ;;  %8747 = vst [vmem:[%s16821_s15 + $0x740] sm:$0xff] %v8746_v59 }
0x1db7   : > { %8749 = vst [vmem:[%s16821_s15 + $0x748] sm:$0xff] %v8748_v30  ;;  %8751 = vst [vmem:[%s16821_s15 + $0x750] sm:$0xff] %v8750_v22 }
0x1db8   : > { %8753 = vst [vmem:[%s16821_s15 + $0x758] sm:$0xff] %v8752_v8  ;;  %8755 = vst [vmem:[%s16821_s15 + $0x760] sm:$0xff] %v8754_v47 }
0x1db9   : > { %8757 = vst [vmem:[%s16821_s15 + $0x768] sm:$0xff] %v8756_v16  ;;  %8759 = vst [vmem:[%s16821_s15 + $0x770] sm:$0xff] %v8758_v5 }
0x1dba   : > { %8761 = vst [vmem:[%s16821_s15 + $0x778] sm:$0xff] %v8760_v6 }
0x1dbb PF: > { %p13_p11 = scmp.ge.s32.totalorder %s12034_s25, 4   ;;  %s17095_s21 = smov %s11972_s22 }
0x1dbc   : > { %s17096_s22 = smov %s12044_s28  ;;  %s17097_s23 = smov %s12034_s25 }
0x1dbd   :  { %15 = sbr.rel (!%p13_p11) target bundleno = 2 (0x2), region = 227 }

</bundles_post_ra>
